<compile_context>
chip_gen: v7x
topology: tpu7x:2x2x1
jax: 0.10.0
libtpu: 0.0.40
codegen_flags: <defaults>
</compile_context>

<pallas_src>
import functools

import jax
import jax.numpy as jnp
from jax import lax
from jax.experimental import pallas as pl
from jax.experimental.pallas import tpu as pltpu

n_embd = 384
n_head = 6
head_size = n_embd // n_head   # 64
block_size = 256

_NEG_BIG = -1e30  # finite mask value (robust even for fully-masked rows)


# ---------------- Pallas kernel ----------------

def fused_mha_kernel(x_ref, wq_ref, wk_ref, wv_ref, wproj_ref, b_ref,
                     o_ref, q_scr, k_scr, v_scr, oh_scr, *, heads, hs, tq):
    """One (batch, q-tile) grid step of fused causal multi-head attention.

    x_ref     : (T, C)    bf16   full sequence for this batch element
    wq_ref    : (C, H*hs) bf16   (1/sqrt(hs) scale folded in)
    wk_ref    : (C, H*hs) bf16
    wv_ref    : (C, H*hs) bf16
    wproj_ref : (H*hs, C) bf16
    b_ref     : (1, C)    f32
    o_ref     : (TQ, C)   f32
    scratch   : q (TQ,H*hs) / k,v (T,H*hs) / head-staging (TQ,H*hs), all bf16
    """
    qi = pl.program_id(1)
    n_kv = qi + 1                     # kv tiles at/below the diagonal
    tk = tq

    # ---- Q projection for this query tile (lane-dense N = H*hs = 384) ----
    q_row0 = pl.multiple_of(qi * tq, tq)
    xq = x_ref[pl.ds(q_row0, tq), :]                                      # (TQ, C)
    q_scr[...] = jnp.dot(xq, wq_ref[...],
                         preferred_element_type=jnp.float32).astype(jnp.bfloat16)

    # ---- K / V projection, causal prefix only (kv tiles 0 .. qi) ----
    def kv_proj_body(j, _):
        r0 = pl.multiple_of(j * tk, tk)
        xj = x_ref[pl.ds(r0, tk), :]                                      # (TK, C)
        k_scr[pl.ds(r0, tk), :] = jnp.dot(
            xj, wk_ref[...], preferred_element_type=jnp.float32).astype(jnp.bfloat16)
        v_scr[pl.ds(r0, tk), :] = jnp.dot(
            xj, wv_ref[...], preferred_element_type=jnp.float32).astype(jnp.bfloat16)
        return 0

    lax.fori_loop(0, n_kv, kv_proj_body, 0)

    # ---- per-head flash (online-softmax) attention over kv tiles ----
    row = jax.lax.broadcasted_iota(jnp.int32, (tq, tk), 0) + qi * tq      # global q pos
    col0 = jax.lax.broadcasted_iota(jnp.int32, (tq, tk), 1)               # local k pos

    for h in range(heads):                                                # static unroll
        q_h = q_scr[:, pl.ds(h * hs, hs)]                                 # (TQ, hs) bf16

        def kv_attn_body(j, carry):
            m, l, acc = carry
            r0 = pl.multiple_of(j * tk, tk)
            k_h = k_scr[pl.ds(r0, tk), pl.ds(h * hs, hs)]                 # (TK, hs)
            v_h = v_scr[pl.ds(r0, tk), pl.ds(h * hs, hs)]                 # (TK, hs)

            # q @ k^T without materialising k.T (contract last dims on MXU)
            s = lax.dot_general(q_h, k_h, (((1,), (1,)), ((), ())),
                                preferred_element_type=jnp.float32)       # (TQ, TK) f32
            s = jnp.where((col0 + j * tk) <= row, s, _NEG_BIG)            # causal mask

            m_new = jnp.maximum(m, jnp.max(s, axis=-1, keepdims=True))
            alpha = jnp.exp(m - m_new)
            p = jnp.exp(s - m_new)
            l_new = alpha * l + jnp.sum(p, axis=-1, keepdims=True)
            # attention-weight dropout: identity (eval mode)
            acc_new = alpha * acc + jnp.dot(p.astype(jnp.bfloat16), v_h,
                                            preferred_element_type=jnp.float32)
            return m_new, l_new, acc_new

        m0 = jnp.full((tq, 1), _NEG_BIG, jnp.float32)
        l0 = jnp.zeros((tq, 1), jnp.float32)
        a0 = jnp.zeros((tq, hs), jnp.float32)
        m, l, acc = lax.fori_loop(0, n_kv, kv_attn_body, (m0, l0, a0))

        inv_l = pl.reciprocal(l, approx=True)
        oh_scr[:, pl.ds(h * hs, hs)] = (acc * inv_l).astype(jnp.bfloat16)

    # ---- single deferred output projection (K = H*hs = 384) + bias ----
    out = jnp.dot(oh_scr[...], wproj_ref[...], preferred_element_type=jnp.float32)
    # output dropout: identity (eval mode)
    o_ref[...] = out + b_ref[...]                                         # (1,C) bcast


# ---------------- wrappers ----------------

def prepare_mha_params(wq, wk, wv, w_proj, b_proj):
    """One-time weight fusion, hoisted out of the per-call path.

    wq/wk/wv: [H, C, hs] f32; w_proj: [H*hs, C] f32; b_proj: [C] f32.
    Folds 1/sqrt(hs) into Wq, flattens per-head weights to lane-dense
    [C, H*hs], casts MXU operands to bf16.
    """
    H, C, hs = wq.shape
    scale = 1.0 / jnp.sqrt(jnp.float32(hs))

    def flat(w):                                   # [H, C, hs] -> [C, H*hs]
        return jnp.transpose(w, (1, 0, 2)).reshape(C, H * hs)

    wq_f = flat(wq * scale).astype(jnp.bfloat16)
    wk_f = flat(wk).astype(jnp.bfloat16)
    wv_f = flat(wv).astype(jnp.bfloat16)
    wproj_f = w_proj.astype(jnp.bfloat16)
    b2 = b_proj.reshape(1, C).astype(jnp.float32)
    return wq_f, wk_f, wv_f, wproj_f, b2


@jax.jit
def multi_head_attention(x, wq_f, wk_f, wv_f, wproj_f, b2):
    """x: [B, T, C] f32; fused weights from prepare_mha_params."""
    B, T, C = x.shape
    Hhs = wq_f.shape[1]
    hs = head_size
    H = Hhs // hs

    # Query tile (= kv tile); 128 keeps score tiles at (128,128) and gives
    # >= 2 parallel grid steps per batch element at block_size=256.
    TQ = 128 if (T >= 128 and T % 128 == 0) else T
    n_q = T // TQ

    x_bf = x.astype(jnp.bfloat16)
    kernel = functools.partial(fused_mha_kernel, heads=H, hs=hs, tq=TQ)

    # Advisory cost (causal ~halves the quadratic terms).
    flops = B * (2 * T * C * 3 * Hhs + (4 * T * T * Hhs) // 2 + 2 * T * Hhs * C)
    transcendentals = (B * H * T * T) // 2
    bytes_accessed = (B * T * C * 2
                      + 2 * (wq_f.size + wk_f.size + wv_f.size + wproj_f.size)
                      + b2.size * 4
                      + B * T * C * 4)

    return pl.pallas_call(
        kernel,
        out_shape=jax.ShapeDtypeStruct((B, T, C), jnp.float32),
        grid_spec=pltpu.PrefetchScalarGridSpec(
            num_scalar_prefetch=0,
            grid=(B, n_q),
            in_specs=[
                pl.BlockSpec((None, T, C), lambda b, q: (b, 0, 0)),   # x (full seq)
                pl.BlockSpec((C, Hhs), lambda b, q: (0, 0)),          # Wq (scaled)
                pl.BlockSpec((C, Hhs), lambda b, q: (0, 0)),          # Wk
                pl.BlockSpec((C, Hhs), lambda b, q: (0, 0)),          # Wv
                pl.BlockSpec((Hhs, C), lambda b, q: (0, 0)),          # Wproj
                pl.BlockSpec((1, C), lambda b, q: (0, 0)),            # bias
            ],
            out_specs=pl.BlockSpec((None, TQ, C), lambda b, q: (b, q, 0)),
            scratch_shapes=[
                pltpu.VMEM((TQ, Hhs), jnp.bfloat16),   # Q tile (all heads)
                pltpu.VMEM((T, Hhs), jnp.bfloat16),    # K, causal prefix
                pltpu.VMEM((T, Hhs), jnp.bfloat16),    # V, causal prefix
                pltpu.VMEM((TQ, Hhs), jnp.bfloat16),   # per-head output staging
            ],
        ),
        compiler_params=pltpu.CompilerParams(
            dimension_semantics=("parallel", "parallel"),
            vmem_limit_bytes=32 * 1024 * 1024,         # working set ~4 MiB; ample headroom
        ),
        cost_estimate=pl.CostEstimate(
            flops=flops, transcendentals=transcendentals,
            bytes_accessed=bytes_accessed),
    )(x_bf, wq_f, wk_f, wv_f, wproj_f, b2)


# ---------------- pure-JAX reference (for correctness check) ----------------

def reference(x, wq, wk, wv, w_proj, b_proj):
    B, T, C = x.shape
    H, _, hs = wq.shape
    q = jnp.einsum("btc,hcd->bhtd", x, wq)
    k = jnp.einsum("btc,hcd->bhtd", x, wk)
    v = jnp.einsum("btc,hcd->bhtd", x, wv)
    s = jnp.einsum("bhtd,bhsd->bhts", q, k) * (hs ** -0.5)
    mask = jnp.tril(jnp.ones((T, T), dtype=bool))
    s = jnp.where(mask, s, -jnp.inf)
    p = jax.nn.softmax(s, axis=-1)
    o = jnp.einsum("bhts,bhsd->bhtd", p, v)
    o = jnp.transpose(o, (0, 2, 1, 3)).reshape(B, T, H * hs)
    return o @ w_proj + b_proj


if __name__ == "__main__":
    # block_size=256 is the module's context length; n_embd=384 fixed by module.
    B, T = 2, block_size

    key = jax.random.PRNGKey(0)
    kx, kq, kk, kv, kw, kb = jax.random.split(key, 6)

    x = jax.random.normal(kx, (B, T, n_embd), dtype=jnp.float32)
    scale_in = 1.0 / jnp.sqrt(jnp.float32(n_embd))
    wq = jax.random.normal(kq, (n_head, n_embd, head_size), jnp.float32) * scale_in
    wk = jax.random.normal(kk, (n_head, n_embd, head_size), jnp.float32) * scale_in
    wv = jax.random.normal(kv, (n_head, n_embd, head_size), jnp.float32) * scale_in
    w_proj = jax.random.normal(kw, (n_head * head_size, n_embd), jnp.float32) * scale_in
    b_proj = jax.random.normal(kb, (n_embd,), jnp.float32) * 0.01

    params = prepare_mha_params(wq, wk, wv, w_proj, b_proj)   # one-time fusion
    out = multi_head_attention(x, *params)
    out = jax.block_until_ready(out)

    ref = reference(x, wq, wk, wv, w_proj, b_proj)
    assert out.shape == (B, T, n_embd)
    # bf16 MXU operands (f32 accumulation / f32 softmax) -> relaxed tolerance.
    assert jnp.allclose(out, ref, atol=5e-2, rtol=5e-2), "mismatch vs reference"

    print("KERNEL_OK")
</pallas_src>

<mosaic_0001>
module attributes {stable_mosaic.version = 11 : i64} {
  func.func @fused_mha_kernel(%arg0: i32, %arg1: i32, %arg2: memref<1x256x384xbf16, #tpu.memory_space<vmem>>, %arg3: memref<384x384xbf16, #tpu.memory_space<vmem>>, %arg4: memref<384x384xbf16, #tpu.memory_space<vmem>>, %arg5: memref<384x384xbf16, #tpu.memory_space<vmem>>, %arg6: memref<384x384xbf16, #tpu.memory_space<vmem>>, %arg7: memref<1x384xf32, #tpu.memory_space<vmem>>, %arg8: memref<1x128x384xf32, #tpu.memory_space<vmem>>, %arg9: memref<128x384xbf16, #tpu.memory_space<vmem>>, %arg10: memref<256x384xbf16, #tpu.memory_space<vmem>>, %arg11: memref<256x384xbf16, #tpu.memory_space<vmem>>, %arg12: memref<128x384xbf16, #tpu.memory_space<vmem>>) attributes {dimension_semantics = [#tpu.dimension_semantics<parallel>, #tpu.dimension_semantics<parallel>], iteration_bounds = array<i64: 2, 2>, scalar_prefetch = 0 : i64, scratch_operands = 4 : i64, tpu.core_type = #tpu.core_type<tc>, window_params = [{transform_indices = @transform_0, window_bounds = array<i64: 1, 256, 384>}, {pipeline_mode = #tpu.pipeline_mode<synchronous>, transform_indices = @transform_1, window_bounds = array<i64: 384, 384>}, {pipeline_mode = #tpu.pipeline_mode<synchronous>, transform_indices = @transform_2, window_bounds = array<i64: 384, 384>}, {pipeline_mode = #tpu.pipeline_mode<synchronous>, transform_indices = @transform_3, window_bounds = array<i64: 384, 384>}, {pipeline_mode = #tpu.pipeline_mode<synchronous>, transform_indices = @transform_4, window_bounds = array<i64: 384, 384>}, {pipeline_mode = #tpu.pipeline_mode<synchronous>, transform_indices = @transform_5, window_bounds = array<i64: 1, 384>}, {transform_indices = @transform_6, window_bounds = array<i64: 1, 128, 384>}]} {
    %c1_i32 = arith.constant 1 : i32
    %0 = arith.addi %arg1, %c1_i32 : i32
    %c128_i32 = arith.constant 128 : i32
    %1 = arith.muli %arg1, %c128_i32 : i32
    %2 = tpu.assume_multiple %1, 128 : i32
    %c0 = arith.constant 0 : index
    %3 = arith.index_cast %2 : i32 to index
    %c0_0 = arith.constant 0 : index
    %4 = vector.load %arg2[%c0, %3, %c0_0] : memref<1x256x384xbf16, #tpu.memory_space<vmem>>, vector<1x128x384xbf16>
    %5 = vector.shape_cast %4 : vector<1x128x384xbf16> to vector<128x384xbf16>
    %c0_1 = arith.constant 0 : index
    %c0_2 = arith.constant 0 : index
    %6 = vector.load %arg3[%c0_1, %c0_2] : memref<384x384xbf16, #tpu.memory_space<vmem>>, vector<384x384xbf16>
    %cst = arith.constant dense<0.000000e+00> : vector<128x384xf32>
    %7 = tpu.matmul %5, %6, %cst {dimension_numbers = #tpu.dot_dimension_numbers<[1], [0], [0], [1], [0, 0, 1, 1], [], []>} : vector<128x384xbf16>, vector<384x384xbf16>, vector<128x384xf32> -> vector<128x384xf32>
    %8 = arith.truncf %7 : vector<128x384xf32> to vector<128x384xbf16>
    %c0_3 = arith.constant 0 : index
    %c0_4 = arith.constant 0 : index
    %9 = vector.load %arg9[%c0_3, %c0_4] : memref<128x384xbf16, #tpu.memory_space<vmem>>, vector<128x384xbf16>
    tpu.vector_store %arg9[%c0_3, %c0_4], %8 {strides = array<i32>} : memref<128x384xbf16, #tpu.memory_space<vmem>>, vector<128x384xbf16>,
    %c0_i32 = arith.constant 0 : i32
    %c0_i32_5 = arith.constant 0 : i32
    %10 = arith.subi %0, %c0_i32 : i32
    %11 = arith.addi %c0_i32, %10 : i32
    %c1_i32_6 = arith.constant 1 : i32
    %12 = scf.for %arg13 = %c0_i32 to %11 step %c1_i32_6 iter_args(%arg14 = %c0_i32_5) -> (i32)  : i32 {
      %c128_i32_67 = arith.constant 128 : i32
      %99 = arith.muli %arg13, %c128_i32_67 : i32
      %100 = tpu.assume_multiple %99, 128 : i32
      %c0_68 = arith.constant 0 : index
      %101 = arith.index_cast %100 : i32 to index
      %c0_69 = arith.constant 0 : index
      %102 = vector.load %arg2[%c0_68, %101, %c0_69] : memref<1x256x384xbf16, #tpu.memory_space<vmem>>, vector<1x128x384xbf16>
      %103 = vector.shape_cast %102 : vector<1x128x384xbf16> to vector<128x384xbf16>
      %c0_70 = arith.constant 0 : index
      %c0_71 = arith.constant 0 : index
      %104 = vector.load %arg4[%c0_70, %c0_71] : memref<384x384xbf16, #tpu.memory_space<vmem>>, vector<384x384xbf16>
      %cst_72 = arith.constant dense<0.000000e+00> : vector<128x384xf32>
      %105 = tpu.matmul %103, %104, %cst_72 {dimension_numbers = #tpu.dot_dimension_numbers<[1], [0], [0], [1], [0, 0, 1, 1], [], []>} : vector<128x384xbf16>, vector<384x384xbf16>, vector<128x384xf32> -> vector<128x384xf32>
      %106 = arith.truncf %105 : vector<128x384xf32> to vector<128x384xbf16>
      %107 = arith.index_cast %100 : i32 to index
      %c0_73 = arith.constant 0 : index
      %108 = vector.load %arg10[%107, %c0_73] : memref<256x384xbf16, #tpu.memory_space<vmem>>, vector<128x384xbf16>
      tpu.vector_store %arg10[%107, %c0_73], %106 {strides = array<i32>} : memref<256x384xbf16, #tpu.memory_space<vmem>>, vector<128x384xbf16>,
      %c0_74 = arith.constant 0 : index
      %c0_75 = arith.constant 0 : index
      %109 = vector.load %arg5[%c0_74, %c0_75] : memref<384x384xbf16, #tpu.memory_space<vmem>>, vector<384x384xbf16>
      %cst_76 = arith.constant dense<0.000000e+00> : vector<128x384xf32>
      %110 = tpu.matmul %103, %109, %cst_76 {dimension_numbers = #tpu.dot_dimension_numbers<[1], [0], [0], [1], [0, 0, 1, 1], [], []>} : vector<128x384xbf16>, vector<384x384xbf16>, vector<128x384xf32> -> vector<128x384xf32>
      %111 = arith.truncf %110 : vector<128x384xf32> to vector<128x384xbf16>
      %112 = arith.index_cast %100 : i32 to index
      %c0_77 = arith.constant 0 : index
      %113 = vector.load %arg11[%112, %c0_77] : memref<256x384xbf16, #tpu.memory_space<vmem>>, vector<128x384xbf16>
      tpu.vector_store %arg11[%112, %c0_77], %111 {strides = array<i32>} : memref<256x384xbf16, #tpu.memory_space<vmem>>, vector<128x384xbf16>,
      %c0_i32_78 = arith.constant 0 : i32
      scf.yield %c0_i32_78 : i32
    }
    %13 = tpu.iota {dimensions = array<i32: 0>} : vector<128x128xi32>
    %c128_i32_7 = arith.constant 128 : i32
    %14 = arith.muli %arg1, %c128_i32_7 : i32
    %15 = vector.broadcast %14 : i32 to vector<128x128xi32>
    %16 = arith.addi %13, %15 : vector<128x128xi32>
    %17 = tpu.iota {dimensions = array<i32: 1>} : vector<128x128xi32>
    %c0_8 = arith.constant 0 : index
    %c0_9 = arith.constant 0 : index
    %18 = vector.load %arg9[%c0_8, %c0_9] : memref<128x384xbf16, #tpu.memory_space<vmem>>, vector<128x64xbf16>
    %cst_10 = arith.constant -1.000000e+30 : f32
    %19 = vector.broadcast %cst_10 : f32 to vector<128x1xf32>
    %cst_11 = arith.constant 0.000000e+00 : f32
    %20 = vector.broadcast %cst_11 : f32 to vector<128x1xf32>
    %cst_12 = arith.constant 0.000000e+00 : f32
    %21 = vector.broadcast %cst_12 : f32 to vector<128x64xf32>
    %c0_i32_13 = arith.constant 0 : i32
    %22 = arith.subi %0, %c0_i32_13 : i32
    %23 = arith.addi %c0_i32_13, %22 : i32
    %c1_i32_14 = arith.constant 1 : i32
    %24:3 = scf.for %arg13 = %c0_i32_13 to %23 step %c1_i32_14 iter_args(%arg14 = %19, %arg15 = %20, %arg16 = %21) -> (vector<128x1xf32>, vector<128x1xf32>, vector<128x64xf32>)  : i32 {
      %c128_i32_67 = arith.constant 128 : i32
      %99 = arith.muli %arg13, %c128_i32_67 : i32
      %100 = tpu.assume_multiple %99, 128 : i32
      %101 = arith.index_cast %100 : i32 to index
      %c0_68 = arith.constant 0 : index
      %102 = vector.load %arg10[%101, %c0_68] : memref<256x384xbf16, #tpu.memory_space<vmem>>, vector<128x64xbf16>
      %103 = arith.index_cast %100 : i32 to index
      %c0_69 = arith.constant 0 : index
      %104 = vector.load %arg11[%103, %c0_69] : memref<256x384xbf16, #tpu.memory_space<vmem>>, vector<128x64xbf16>
      %cst_70 = arith.constant dense<0.000000e+00> : vector<128x128xf32>
      %105 = tpu.matmul %18, %102, %cst_70 {dimension_numbers = #tpu.dot_dimension_numbers<[1], [1], [0], [0], [0, 0, 1, 0], [], []>} : vector<128x64xbf16>, vector<128x64xbf16>, vector<128x128xf32> -> vector<128x128xf32>
      %c128_i32_71 = arith.constant 128 : i32
      %106 = arith.muli %arg13, %c128_i32_71 : i32
      %107 = vector.broadcast %106 : i32 to vector<128x128xi32>
      %108 = arith.addi %17, %107 : vector<128x128xi32>
      %109 = arith.cmpi sle, %108, %16 : vector<128x128xi32>
      %cst_72 = arith.constant -1.000000e+30 : f32
      %110 = vector.broadcast %cst_72 : f32 to vector<128x128xf32>
      %111 = arith.select %109, %105, %110 : vector<128x128xi1>, vector<128x128xf32>
      %cst_73 = arith.constant dense<0xFF800000> : vector<128xf32>
      %112 = vector.multi_reduction <maximumf>, %111, %cst_73 [1] : vector<128x128xf32> to vector<128xf32>
      %113 = vector.shape_cast %112 : vector<128xf32> to vector<128x1xf32>
      %114 = arith.maximumf %arg14, %113 : vector<128x1xf32>
      %115 = arith.subf %arg14, %114 : vector<128x1xf32>
      %116 = math.exp %115 : vector<128x1xf32>
      %117 = vector.broadcast %114 : vector<128x1xf32> to vector<128x128xf32>
      %118 = arith.subf %111, %117 : vector<128x128xf32>
      %119 = math.exp %118 : vector<128x128xf32>
      %120 = arith.mulf %116, %arg15 : vector<128x1xf32>
      %cst_74 = arith.constant dense<0.000000e+00> : vector<128xf32>
      %121 = vector.multi_reduction <add>, %119, %cst_74 [1] : vector<128x128xf32> to vector<128xf32>
      %122 = vector.shape_cast %121 : vector<128xf32> to vector<128x1xf32>
      %123 = arith.addf %120, %122 : vector<128x1xf32>
      %124 = vector.broadcast %116 : vector<128x1xf32> to vector<128x64xf32>
      %125 = arith.mulf %124, %arg16 : vector<128x64xf32>
      %126 = arith.truncf %119 : vector<128x128xf32> to vector<128x128xbf16>
      %cst_75 = arith.constant dense<0.000000e+00> : vector<128x64xf32>
      %127 = tpu.matmul %126, %104, %cst_75 {dimension_numbers = #tpu.dot_dimension_numbers<[1], [0], [0], [1], [0, 0, 1, 1], [], []>} : vector<128x128xbf16>, vector<128x64xbf16>, vector<128x64xf32> -> vector<128x64xf32>
      %128 = arith.addf %125, %127 : vector<128x64xf32>
      scf.yield %114, %123, %128 : vector<128x1xf32>, vector<128x1xf32>, vector<128x64xf32>
    }
    %25 = tpu.reciprocal %24#1 {approx = true} : vector<128x1xf32> -> vector<128x1xf32>
    %26 = vector.broadcast %25 : vector<128x1xf32> to vector<128x64xf32>
    %27 = arith.mulf %24#2, %26 : vector<128x64xf32>
    %28 = arith.truncf %27 : vector<128x64xf32> to vector<128x64xbf16>
    %c0_15 = arith.constant 0 : index
    %c0_16 = arith.constant 0 : index
    %29 = vector.load %arg12[%c0_15, %c0_16] : memref<128x384xbf16, #tpu.memory_space<vmem>>, vector<128x64xbf16>
    tpu.vector_store %arg12[%c0_15, %c0_16], %28 {strides = array<i32>} : memref<128x384xbf16, #tpu.memory_space<vmem>>, vector<128x64xbf16>,
    %c0_17 = arith.constant 0 : index
    %c64 = arith.constant 64 : index
    %30 = vector.load %arg9[%c0_17, %c64] : memref<128x384xbf16, #tpu.memory_space<vmem>>, vector<128x64xbf16>
    %cst_18 = arith.constant -1.000000e+30 : f32
    %31 = vector.broadcast %cst_18 : f32 to vector<128x1xf32>
    %cst_19 = arith.constant 0.000000e+00 : f32
    %32 = vector.broadcast %cst_19 : f32 to vector<128x1xf32>
    %cst_20 = arith.constant 0.000000e+00 : f32
    %33 = vector.broadcast %cst_20 : f32 to vector<128x64xf32>
    %c0_i32_21 = arith.constant 0 : i32
    %34 = arith.subi %0, %c0_i32_21 : i32
    %35 = arith.addi %c0_i32_21, %34 : i32
    %c1_i32_22 = arith.constant 1 : i32
    %36:3 = scf.for %arg13 = %c0_i32_21 to %35 step %c1_i32_22 iter_args(%arg14 = %31, %arg15 = %32, %arg16 = %33) -> (vector<128x1xf32>, vector<128x1xf32>, vector<128x64xf32>)  : i32 {
      %c128_i32_67 = arith.constant 128 : i32
      %99 = arith.muli %arg13, %c128_i32_67 : i32
      %100 = tpu.assume_multiple %99, 128 : i32
      %101 = arith.index_cast %100 : i32 to index
      %c64_68 = arith.constant 64 : index
      %102 = vector.load %arg10[%101, %c64_68] : memref<256x384xbf16, #tpu.memory_space<vmem>>, vector<128x64xbf16>
      %103 = arith.index_cast %100 : i32 to index
      %c64_69 = arith.constant 64 : index
      %104 = vector.load %arg11[%103, %c64_69] : memref<256x384xbf16, #tpu.memory_space<vmem>>, vector<128x64xbf16>
      %cst_70 = arith.constant dense<0.000000e+00> : vector<128x128xf32>
      %105 = tpu.matmul %30, %102, %cst_70 {dimension_numbers = #tpu.dot_dimension_numbers<[1], [1], [0], [0], [0, 0, 1, 0], [], []>} : vector<128x64xbf16>, vector<128x64xbf16>, vector<128x128xf32> -> vector<128x128xf32>
      %c128_i32_71 = arith.constant 128 : i32
      %106 = arith.muli %arg13, %c128_i32_71 : i32
      %107 = vector.broadcast %106 : i32 to vector<128x128xi32>
      %108 = arith.addi %17, %107 : vector<128x128xi32>
      %109 = arith.cmpi sle, %108, %16 : vector<128x128xi32>
      %cst_72 = arith.constant -1.000000e+30 : f32
      %110 = vector.broadcast %cst_72 : f32 to vector<128x128xf32>
      %111 = arith.select %109, %105, %110 : vector<128x128xi1>, vector<128x128xf32>
      %cst_73 = arith.constant dense<0xFF800000> : vector<128xf32>
      %112 = vector.multi_reduction <maximumf>, %111, %cst_73 [1] : vector<128x128xf32> to vector<128xf32>
      %113 = vector.shape_cast %112 : vector<128xf32> to vector<128x1xf32>
      %114 = arith.maximumf %arg14, %113 : vector<128x1xf32>
      %115 = arith.subf %arg14, %114 : vector<128x1xf32>
      %116 = math.exp %115 : vector<128x1xf32>
      %117 = vector.broadcast %114 : vector<128x1xf32> to vector<128x128xf32>
      %118 = arith.subf %111, %117 : vector<128x128xf32>
      %119 = math.exp %118 : vector<128x128xf32>
      %120 = arith.mulf %116, %arg15 : vector<128x1xf32>
      %cst_74 = arith.constant dense<0.000000e+00> : vector<128xf32>
      %121 = vector.multi_reduction <add>, %119, %cst_74 [1] : vector<128x128xf32> to vector<128xf32>
      %122 = vector.shape_cast %121 : vector<128xf32> to vector<128x1xf32>
      %123 = arith.addf %120, %122 : vector<128x1xf32>
      %124 = vector.broadcast %116 : vector<128x1xf32> to vector<128x64xf32>
      %125 = arith.mulf %124, %arg16 : vector<128x64xf32>
      %126 = arith.truncf %119 : vector<128x128xf32> to vector<128x128xbf16>
      %cst_75 = arith.constant dense<0.000000e+00> : vector<128x64xf32>
      %127 = tpu.matmul %126, %104, %cst_75 {dimension_numbers = #tpu.dot_dimension_numbers<[1], [0], [0], [1], [0, 0, 1, 1], [], []>} : vector<128x128xbf16>, vector<128x64xbf16>, vector<128x64xf32> -> vector<128x64xf32>
      %128 = arith.addf %125, %127 : vector<128x64xf32>
      scf.yield %114, %123, %128 : vector<128x1xf32>, vector<128x1xf32>, vector<128x64xf32>
    }
    %37 = tpu.reciprocal %36#1 {approx = true} : vector<128x1xf32> -> vector<128x1xf32>
    %38 = vector.broadcast %37 : vector<128x1xf32> to vector<128x64xf32>
    %39 = arith.mulf %36#2, %38 : vector<128x64xf32>
    %40 = arith.truncf %39 : vector<128x64xf32> to vector<128x64xbf16>
    %c0_23 = arith.constant 0 : index
    %c64_24 = arith.constant 64 : index
    %41 = vector.load %arg12[%c0_23, %c64_24] : memref<128x384xbf16, #tpu.memory_space<vmem>>, vector<128x64xbf16>
    tpu.vector_store %arg12[%c0_23, %c64_24], %40 {strides = array<i32>} : memref<128x384xbf16, #tpu.memory_space<vmem>>, vector<128x64xbf16>,
    %c0_25 = arith.constant 0 : index
    %c128 = arith.constant 128 : index
    %42 = vector.load %arg9[%c0_25, %c128] : memref<128x384xbf16, #tpu.memory_space<vmem>>, vector<128x64xbf16>
    %cst_26 = arith.constant -1.000000e+30 : f32
    %43 = vector.broadcast %cst_26 : f32 to vector<128x1xf32>
    %cst_27 = arith.constant 0.000000e+00 : f32
    %44 = vector.broadcast %cst_27 : f32 to vector<128x1xf32>
    %cst_28 = arith.constant 0.000000e+00 : f32
    %45 = vector.broadcast %cst_28 : f32 to vector<128x64xf32>
    %c0_i32_29 = arith.constant 0 : i32
    %46 = arith.subi %0, %c0_i32_29 : i32
    %47 = arith.addi %c0_i32_29, %46 : i32
    %c1_i32_30 = arith.constant 1 : i32
    %48:3 = scf.for %arg13 = %c0_i32_29 to %47 step %c1_i32_30 iter_args(%arg14 = %43, %arg15 = %44, %arg16 = %45) -> (vector<128x1xf32>, vector<128x1xf32>, vector<128x64xf32>)  : i32 {
      %c128_i32_67 = arith.constant 128 : i32
      %99 = arith.muli %arg13, %c128_i32_67 : i32
      %100 = tpu.assume_multiple %99, 128 : i32
      %101 = arith.index_cast %100 : i32 to index
      %c128_68 = arith.constant 128 : index
      %102 = vector.load %arg10[%101, %c128_68] : memref<256x384xbf16, #tpu.memory_space<vmem>>, vector<128x64xbf16>
      %103 = arith.index_cast %100 : i32 to index
      %c128_69 = arith.constant 128 : index
      %104 = vector.load %arg11[%103, %c128_69] : memref<256x384xbf16, #tpu.memory_space<vmem>>, vector<128x64xbf16>
      %cst_70 = arith.constant dense<0.000000e+00> : vector<128x128xf32>
      %105 = tpu.matmul %42, %102, %cst_70 {dimension_numbers = #tpu.dot_dimension_numbers<[1], [1], [0], [0], [0, 0, 1, 0], [], []>} : vector<128x64xbf16>, vector<128x64xbf16>, vector<128x128xf32> -> vector<128x128xf32>
      %c128_i32_71 = arith.constant 128 : i32
      %106 = arith.muli %arg13, %c128_i32_71 : i32
      %107 = vector.broadcast %106 : i32 to vector<128x128xi32>
      %108 = arith.addi %17, %107 : vector<128x128xi32>
      %109 = arith.cmpi sle, %108, %16 : vector<128x128xi32>
      %cst_72 = arith.constant -1.000000e+30 : f32
      %110 = vector.broadcast %cst_72 : f32 to vector<128x128xf32>
      %111 = arith.select %109, %105, %110 : vector<128x128xi1>, vector<128x128xf32>
      %cst_73 = arith.constant dense<0xFF800000> : vector<128xf32>
      %112 = vector.multi_reduction <maximumf>, %111, %cst_73 [1] : vector<128x128xf32> to vector<128xf32>
      %113 = vector.shape_cast %112 : vector<128xf32> to vector<128x1xf32>
      %114 = arith.maximumf %arg14, %113 : vector<128x1xf32>
      %115 = arith.subf %arg14, %114 : vector<128x1xf32>
      %116 = math.exp %115 : vector<128x1xf32>
      %117 = vector.broadcast %114 : vector<128x1xf32> to vector<128x128xf32>
      %118 = arith.subf %111, %117 : vector<128x128xf32>
      %119 = math.exp %118 : vector<128x128xf32>
      %120 = arith.mulf %116, %arg15 : vector<128x1xf32>
      %cst_74 = arith.constant dense<0.000000e+00> : vector<128xf32>
      %121 = vector.multi_reduction <add>, %119, %cst_74 [1] : vector<128x128xf32> to vector<128xf32>
      %122 = vector.shape_cast %121 : vector<128xf32> to vector<128x1xf32>
      %123 = arith.addf %120, %122 : vector<128x1xf32>
      %124 = vector.broadcast %116 : vector<128x1xf32> to vector<128x64xf32>
      %125 = arith.mulf %124, %arg16 : vector<128x64xf32>
      %126 = arith.truncf %119 : vector<128x128xf32> to vector<128x128xbf16>
      %cst_75 = arith.constant dense<0.000000e+00> : vector<128x64xf32>
      %127 = tpu.matmul %126, %104, %cst_75 {dimension_numbers = #tpu.dot_dimension_numbers<[1], [0], [0], [1], [0, 0, 1, 1], [], []>} : vector<128x128xbf16>, vector<128x64xbf16>, vector<128x64xf32> -> vector<128x64xf32>
      %128 = arith.addf %125, %127 : vector<128x64xf32>
      scf.yield %114, %123, %128 : vector<128x1xf32>, vector<128x1xf32>, vector<128x64xf32>
    }
    %49 = tpu.reciprocal %48#1 {approx = true} : vector<128x1xf32> -> vector<128x1xf32>
    %50 = vector.broadcast %49 : vector<128x1xf32> to vector<128x64xf32>
    %51 = arith.mulf %48#2, %50 : vector<128x64xf32>
    %52 = arith.truncf %51 : vector<128x64xf32> to vector<128x64xbf16>
    %c0_31 = arith.constant 0 : index
    %c128_32 = arith.constant 128 : index
    %53 = vector.load %arg12[%c0_31, %c128_32] : memref<128x384xbf16, #tpu.memory_space<vmem>>, vector<128x64xbf16>
    tpu.vector_store %arg12[%c0_31, %c128_32], %52 {strides = array<i32>} : memref<128x384xbf16, #tpu.memory_space<vmem>>, vector<128x64xbf16>,
    %c0_33 = arith.constant 0 : index
    %c192 = arith.constant 192 : index
    %54 = vector.load %arg9[%c0_33, %c192] : memref<128x384xbf16, #tpu.memory_space<vmem>>, vector<128x64xbf16>
    %cst_34 = arith.constant -1.000000e+30 : f32
    %55 = vector.broadcast %cst_34 : f32 to vector<128x1xf32>
    %cst_35 = arith.constant 0.000000e+00 : f32
    %56 = vector.broadcast %cst_35 : f32 to vector<128x1xf32>
    %cst_36 = arith.constant 0.000000e+00 : f32
    %57 = vector.broadcast %cst_36 : f32 to vector<128x64xf32>
    %c0_i32_37 = arith.constant 0 : i32
    %58 = arith.subi %0, %c0_i32_37 : i32
    %59 = arith.addi %c0_i32_37, %58 : i32
    %c1_i32_38 = arith.constant 1 : i32
    %60:3 = scf.for %arg13 = %c0_i32_37 to %59 step %c1_i32_38 iter_args(%arg14 = %55, %arg15 = %56, %arg16 = %57) -> (vector<128x1xf32>, vector<128x1xf32>, vector<128x64xf32>)  : i32 {
      %c128_i32_67 = arith.constant 128 : i32
      %99 = arith.muli %arg13, %c128_i32_67 : i32
      %100 = tpu.assume_multiple %99, 128 : i32
      %101 = arith.index_cast %100 : i32 to index
      %c192_68 = arith.constant 192 : index
      %102 = vector.load %arg10[%101, %c192_68] : memref<256x384xbf16, #tpu.memory_space<vmem>>, vector<128x64xbf16>
      %103 = arith.index_cast %100 : i32 to index
      %c192_69 = arith.constant 192 : index
      %104 = vector.load %arg11[%103, %c192_69] : memref<256x384xbf16, #tpu.memory_space<vmem>>, vector<128x64xbf16>
      %cst_70 = arith.constant dense<0.000000e+00> : vector<128x128xf32>
      %105 = tpu.matmul %54, %102, %cst_70 {dimension_numbers = #tpu.dot_dimension_numbers<[1], [1], [0], [0], [0, 0, 1, 0], [], []>} : vector<128x64xbf16>, vector<128x64xbf16>, vector<128x128xf32> -> vector<128x128xf32>
      %c128_i32_71 = arith.constant 128 : i32
      %106 = arith.muli %arg13, %c128_i32_71 : i32
      %107 = vector.broadcast %106 : i32 to vector<128x128xi32>
      %108 = arith.addi %17, %107 : vector<128x128xi32>
      %109 = arith.cmpi sle, %108, %16 : vector<128x128xi32>
      %cst_72 = arith.constant -1.000000e+30 : f32
      %110 = vector.broadcast %cst_72 : f32 to vector<128x128xf32>
      %111 = arith.select %109, %105, %110 : vector<128x128xi1>, vector<128x128xf32>
      %cst_73 = arith.constant dense<0xFF800000> : vector<128xf32>
      %112 = vector.multi_reduction <maximumf>, %111, %cst_73 [1] : vector<128x128xf32> to vector<128xf32>
      %113 = vector.shape_cast %112 : vector<128xf32> to vector<128x1xf32>
      %114 = arith.maximumf %arg14, %113 : vector<128x1xf32>
      %115 = arith.subf %arg14, %114 : vector<128x1xf32>
      %116 = math.exp %115 : vector<128x1xf32>
      %117 = vector.broadcast %114 : vector<128x1xf32> to vector<128x128xf32>
      %118 = arith.subf %111, %117 : vector<128x128xf32>
      %119 = math.exp %118 : vector<128x128xf32>
      %120 = arith.mulf %116, %arg15 : vector<128x1xf32>
      %cst_74 = arith.constant dense<0.000000e+00> : vector<128xf32>
      %121 = vector.multi_reduction <add>, %119, %cst_74 [1] : vector<128x128xf32> to vector<128xf32>
      %122 = vector.shape_cast %121 : vector<128xf32> to vector<128x1xf32>
      %123 = arith.addf %120, %122 : vector<128x1xf32>
      %124 = vector.broadcast %116 : vector<128x1xf32> to vector<128x64xf32>
      %125 = arith.mulf %124, %arg16 : vector<128x64xf32>
      %126 = arith.truncf %119 : vector<128x128xf32> to vector<128x128xbf16>
      %cst_75 = arith.constant dense<0.000000e+00> : vector<128x64xf32>
      %127 = tpu.matmul %126, %104, %cst_75 {dimension_numbers = #tpu.dot_dimension_numbers<[1], [0], [0], [1], [0, 0, 1, 1], [], []>} : vector<128x128xbf16>, vector<128x64xbf16>, vector<128x64xf32> -> vector<128x64xf32>
      %128 = arith.addf %125, %127 : vector<128x64xf32>
      scf.yield %114, %123, %128 : vector<128x1xf32>, vector<128x1xf32>, vector<128x64xf32>
    }
    %61 = tpu.reciprocal %60#1 {approx = true} : vector<128x1xf32> -> vector<128x1xf32>
    %62 = vector.broadcast %61 : vector<128x1xf32> to vector<128x64xf32>
    %63 = arith.mulf %60#2, %62 : vector<128x64xf32>
    %64 = arith.truncf %63 : vector<128x64xf32> to vector<128x64xbf16>
    %c0_39 = arith.constant 0 : index
    %c192_40 = arith.constant 192 : index
    %65 = vector.load %arg12[%c0_39, %c192_40] : memref<128x384xbf16, #tpu.memory_space<vmem>>, vector<128x64xbf16>
    tpu.vector_store %arg12[%c0_39, %c192_40], %64 {strides = array<i32>} : memref<128x384xbf16, #tpu.memory_space<vmem>>, vector<128x64xbf16>,
    %c0_41 = arith.constant 0 : index
    %c256 = arith.constant 256 : index
    %66 = vector.load %arg9[%c0_41, %c256] : memref<128x384xbf16, #tpu.memory_space<vmem>>, vector<128x64xbf16>
    %cst_42 = arith.constant -1.000000e+30 : f32
    %67 = vector.broadcast %cst_42 : f32 to vector<128x1xf32>
    %cst_43 = arith.constant 0.000000e+00 : f32
    %68 = vector.broadcast %cst_43 : f32 to vector<128x1xf32>
    %cst_44 = arith.constant 0.000000e+00 : f32
    %69 = vector.broadcast %cst_44 : f32 to vector<128x64xf32>
    %c0_i32_45 = arith.constant 0 : i32
    %70 = arith.subi %0, %c0_i32_45 : i32
    %71 = arith.addi %c0_i32_45, %70 : i32
    %c1_i32_46 = arith.constant 1 : i32
    %72:3 = scf.for %arg13 = %c0_i32_45 to %71 step %c1_i32_46 iter_args(%arg14 = %67, %arg15 = %68, %arg16 = %69) -> (vector<128x1xf32>, vector<128x1xf32>, vector<128x64xf32>)  : i32 {
      %c128_i32_67 = arith.constant 128 : i32
      %99 = arith.muli %arg13, %c128_i32_67 : i32
      %100 = tpu.assume_multiple %99, 128 : i32
      %101 = arith.index_cast %100 : i32 to index
      %c256_68 = arith.constant 256 : index
      %102 = vector.load %arg10[%101, %c256_68] : memref<256x384xbf16, #tpu.memory_space<vmem>>, vector<128x64xbf16>
      %103 = arith.index_cast %100 : i32 to index
      %c256_69 = arith.constant 256 : index
      %104 = vector.load %arg11[%103, %c256_69] : memref<256x384xbf16, #tpu.memory_space<vmem>>, vector<128x64xbf16>
      %cst_70 = arith.constant dense<0.000000e+00> : vector<128x128xf32>
      %105 = tpu.matmul %66, %102, %cst_70 {dimension_numbers = #tpu.dot_dimension_numbers<[1], [1], [0], [0], [0, 0, 1, 0], [], []>} : vector<128x64xbf16>, vector<128x64xbf16>, vector<128x128xf32> -> vector<128x128xf32>
      %c128_i32_71 = arith.constant 128 : i32
      %106 = arith.muli %arg13, %c128_i32_71 : i32
      %107 = vector.broadcast %106 : i32 to vector<128x128xi32>
      %108 = arith.addi %17, %107 : vector<128x128xi32>
      %109 = arith.cmpi sle, %108, %16 : vector<128x128xi32>
      %cst_72 = arith.constant -1.000000e+30 : f32
      %110 = vector.broadcast %cst_72 : f32 to vector<128x128xf32>
      %111 = arith.select %109, %105, %110 : vector<128x128xi1>, vector<128x128xf32>
      %cst_73 = arith.constant dense<0xFF800000> : vector<128xf32>
      %112 = vector.multi_reduction <maximumf>, %111, %cst_73 [1] : vector<128x128xf32> to vector<128xf32>
      %113 = vector.shape_cast %112 : vector<128xf32> to vector<128x1xf32>
      %114 = arith.maximumf %arg14, %113 : vector<128x1xf32>
      %115 = arith.subf %arg14, %114 : vector<128x1xf32>
      %116 = math.exp %115 : vector<128x1xf32>
      %117 = vector.broadcast %114 : vector<128x1xf32> to vector<128x128xf32>
      %118 = arith.subf %111, %117 : vector<128x128xf32>
      %119 = math.exp %118 : vector<128x128xf32>
      %120 = arith.mulf %116, %arg15 : vector<128x1xf32>
      %cst_74 = arith.constant dense<0.000000e+00> : vector<128xf32>
      %121 = vector.multi_reduction <add>, %119, %cst_74 [1] : vector<128x128xf32> to vector<128xf32>
      %122 = vector.shape_cast %121 : vector<128xf32> to vector<128x1xf32>
      %123 = arith.addf %120, %122 : vector<128x1xf32>
      %124 = vector.broadcast %116 : vector<128x1xf32> to vector<128x64xf32>
      %125 = arith.mulf %124, %arg16 : vector<128x64xf32>
      %126 = arith.truncf %119 : vector<128x128xf32> to vector<128x128xbf16>
      %cst_75 = arith.constant dense<0.000000e+00> : vector<128x64xf32>
      %127 = tpu.matmul %126, %104, %cst_75 {dimension_numbers = #tpu.dot_dimension_numbers<[1], [0], [0], [1], [0, 0, 1, 1], [], []>} : vector<128x128xbf16>, vector<128x64xbf16>, vector<128x64xf32> -> vector<128x64xf32>
      %128 = arith.addf %125, %127 : vector<128x64xf32>
      scf.yield %114, %123, %128 : vector<128x1xf32>, vector<128x1xf32>, vector<128x64xf32>
    }
    %73 = tpu.reciprocal %72#1 {approx = true} : vector<128x1xf32> -> vector<128x1xf32>
    %74 = vector.broadcast %73 : vector<128x1xf32> to vector<128x64xf32>
    %75 = arith.mulf %72#2, %74 : vector<128x64xf32>
    %76 = arith.truncf %75 : vector<128x64xf32> to vector<128x64xbf16>
    %c0_47 = arith.constant 0 : index
    %c256_48 = arith.constant 256 : index
    %77 = vector.load %arg12[%c0_47, %c256_48] : memref<128x384xbf16, #tpu.memory_space<vmem>>, vector<128x64xbf16>
    tpu.vector_store %arg12[%c0_47, %c256_48], %76 {strides = array<i32>} : memref<128x384xbf16, #tpu.memory_space<vmem>>, vector<128x64xbf16>,
    %c0_49 = arith.constant 0 : index
    %c320 = arith.constant 320 : index
    %78 = vector.load %arg9[%c0_49, %c320] : memref<128x384xbf16, #tpu.memory_space<vmem>>, vector<128x64xbf16>
    %cst_50 = arith.constant -1.000000e+30 : f32
    %79 = vector.broadcast %cst_50 : f32 to vector<128x1xf32>
    %cst_51 = arith.constant 0.000000e+00 : f32
    %80 = vector.broadcast %cst_51 : f32 to vector<128x1xf32>
    %cst_52 = arith.constant 0.000000e+00 : f32
    %81 = vector.broadcast %cst_52 : f32 to vector<128x64xf32>
    %c0_i32_53 = arith.constant 0 : i32
    %82 = arith.subi %0, %c0_i32_53 : i32
    %83 = arith.addi %c0_i32_53, %82 : i32
    %c1_i32_54 = arith.constant 1 : i32
    %84:3 = scf.for %arg13 = %c0_i32_53 to %83 step %c1_i32_54 iter_args(%arg14 = %79, %arg15 = %80, %arg16 = %81) -> (vector<128x1xf32>, vector<128x1xf32>, vector<128x64xf32>)  : i32 {
      %c128_i32_67 = arith.constant 128 : i32
      %99 = arith.muli %arg13, %c128_i32_67 : i32
      %100 = tpu.assume_multiple %99, 128 : i32
      %101 = arith.index_cast %100 : i32 to index
      %c320_68 = arith.constant 320 : index
      %102 = vector.load %arg10[%101, %c320_68] : memref<256x384xbf16, #tpu.memory_space<vmem>>, vector<128x64xbf16>
      %103 = arith.index_cast %100 : i32 to index
      %c320_69 = arith.constant 320 : index
      %104 = vector.load %arg11[%103, %c320_69] : memref<256x384xbf16, #tpu.memory_space<vmem>>, vector<128x64xbf16>
      %cst_70 = arith.constant dense<0.000000e+00> : vector<128x128xf32>
      %105 = tpu.matmul %78, %102, %cst_70 {dimension_numbers = #tpu.dot_dimension_numbers<[1], [1], [0], [0], [0, 0, 1, 0], [], []>} : vector<128x64xbf16>, vector<128x64xbf16>, vector<128x128xf32> -> vector<128x128xf32>
      %c128_i32_71 = arith.constant 128 : i32
      %106 = arith.muli %arg13, %c128_i32_71 : i32
      %107 = vector.broadcast %106 : i32 to vector<128x128xi32>
      %108 = arith.addi %17, %107 : vector<128x128xi32>
      %109 = arith.cmpi sle, %108, %16 : vector<128x128xi32>
      %cst_72 = arith.constant -1.000000e+30 : f32
      %110 = vector.broadcast %cst_72 : f32 to vector<128x128xf32>
      %111 = arith.select %109, %105, %110 : vector<128x128xi1>, vector<128x128xf32>
      %cst_73 = arith.constant dense<0xFF800000> : vector<128xf32>
      %112 = vector.multi_reduction <maximumf>, %111, %cst_73 [1] : vector<128x128xf32> to vector<128xf32>
      %113 = vector.shape_cast %112 : vector<128xf32> to vector<128x1xf32>
      %114 = arith.maximumf %arg14, %113 : vector<128x1xf32>
      %115 = arith.subf %arg14, %114 : vector<128x1xf32>
      %116 = math.exp %115 : vector<128x1xf32>
      %117 = vector.broadcast %114 : vector<128x1xf32> to vector<128x128xf32>
      %118 = arith.subf %111, %117 : vector<128x128xf32>
      %119 = math.exp %118 : vector<128x128xf32>
      %120 = arith.mulf %116, %arg15 : vector<128x1xf32>
      %cst_74 = arith.constant dense<0.000000e+00> : vector<128xf32>
      %121 = vector.multi_reduction <add>, %119, %cst_74 [1] : vector<128x128xf32> to vector<128xf32>
      %122 = vector.shape_cast %121 : vector<128xf32> to vector<128x1xf32>
      %123 = arith.addf %120, %122 : vector<128x1xf32>
      %124 = vector.broadcast %116 : vector<128x1xf32> to vector<128x64xf32>
      %125 = arith.mulf %124, %arg16 : vector<128x64xf32>
      %126 = arith.truncf %119 : vector<128x128xf32> to vector<128x128xbf16>
      %cst_75 = arith.constant dense<0.000000e+00> : vector<128x64xf32>
      %127 = tpu.matmul %126, %104, %cst_75 {dimension_numbers = #tpu.dot_dimension_numbers<[1], [0], [0], [1], [0, 0, 1, 1], [], []>} : vector<128x128xbf16>, vector<128x64xbf16>, vector<128x64xf32> -> vector<128x64xf32>
      %128 = arith.addf %125, %127 : vector<128x64xf32>
      scf.yield %114, %123, %128 : vector<128x1xf32>, vector<128x1xf32>, vector<128x64xf32>
    }
    %85 = tpu.reciprocal %84#1 {approx = true} : vector<128x1xf32> -> vector<128x1xf32>
    %86 = vector.broadcast %85 : vector<128x1xf32> to vector<128x64xf32>
    %87 = arith.mulf %84#2, %86 : vector<128x64xf32>
    %88 = arith.truncf %87 : vector<128x64xf32> to vector<128x64xbf16>
    %c0_55 = arith.constant 0 : index
    %c320_56 = arith.constant 320 : index
    %89 = vector.load %arg12[%c0_55, %c320_56] : memref<128x384xbf16, #tpu.memory_space<vmem>>, vector<128x64xbf16>
    tpu.vector_store %arg12[%c0_55, %c320_56], %88 {strides = array<i32>} : memref<128x384xbf16, #tpu.memory_space<vmem>>, vector<128x64xbf16>,
    %c0_57 = arith.constant 0 : index
    %c0_58 = arith.constant 0 : index
    %90 = vector.load %arg12[%c0_57, %c0_58] : memref<128x384xbf16, #tpu.memory_space<vmem>>, vector<128x384xbf16>
    %c0_59 = arith.constant 0 : index
    %c0_60 = arith.constant 0 : index
    %91 = vector.load %arg6[%c0_59, %c0_60] : memref<384x384xbf16, #tpu.memory_space<vmem>>, vector<384x384xbf16>
    %cst_61 = arith.constant dense<0.000000e+00> : vector<128x384xf32>
    %92 = tpu.matmul %90, %91, %cst_61 {dimension_numbers = #tpu.dot_dimension_numbers<[1], [0], [0], [1], [0, 0, 1, 1], [], []>} : vector<128x384xbf16>, vector<384x384xbf16>, vector<128x384xf32> -> vector<128x384xf32>
    %c0_62 = arith.constant 0 : index
    %c0_63 = arith.constant 0 : index
    %93 = vector.load %arg7[%c0_62, %c0_63] : memref<1x384xf32, #tpu.memory_space<vmem>>, vector<1x384xf32>
    %94 = vector.broadcast %93 : vector<1x384xf32> to vector<128x384xf32>
    %95 = arith.addf %92, %94 : vector<128x384xf32>
    %c0_64 = arith.constant 0 : index
    %c0_65 = arith.constant 0 : index
    %c0_66 = arith.constant 0 : index
    %96 = vector.load %arg8[%c0_64, %c0_65, %c0_66] : memref<1x128x384xf32, #tpu.memory_space<vmem>>, vector<1x128x384xf32>
    %97 = vector.shape_cast %96 : vector<1x128x384xf32> to vector<128x384xf32>
    %98 = vector.shape_cast %95 : vector<128x384xf32> to vector<1x128x384xf32>
    tpu.vector_store %arg8[%c0_64, %c0_65, %c0_66], %98 {strides = array<i32>} : memref<1x128x384xf32, #tpu.memory_space<vmem>>, vector<1x128x384xf32>,
    return
  }
  func.func @transform_0(%arg0: i32, %arg1: i32) -> (i32, i32, i32) {
    %c0_i32 = arith.constant 0 : i32
    %c0_i32_0 = arith.constant 0 : i32
    %c0_i32_1 = arith.constant 0 : i32
    return %arg0, %c0_i32, %c0_i32_0 : i32, i32, i32
  }
  func.func @transform_1(%arg0: i32, %arg1: i32) -> (i32, i32) {
    %c0_i32 = arith.constant 0 : i32
    %c0_i32_0 = arith.constant 0 : i32
    %c0_i32_1 = arith.constant 0 : i32
    return %c0_i32, %c0_i32_0 : i32, i32
  }
  func.func @transform_2(%arg0: i32, %arg1: i32) -> (i32, i32) {
    %c0_i32 = arith.constant 0 : i32
    %c0_i32_0 = arith.constant 0 : i32
    %c0_i32_1 = arith.constant 0 : i32
    return %c0_i32, %c0_i32_0 : i32, i32
  }
  func.func @transform_3(%arg0: i32, %arg1: i32) -> (i32, i32) {
    %c0_i32 = arith.constant 0 : i32
    %c0_i32_0 = arith.constant 0 : i32
    %c0_i32_1 = arith.constant 0 : i32
    return %c0_i32, %c0_i32_0 : i32, i32
  }
  func.func @transform_4(%arg0: i32, %arg1: i32) -> (i32, i32) {
    %c0_i32 = arith.constant 0 : i32
    %c0_i32_0 = arith.constant 0 : i32
    %c0_i32_1 = arith.constant 0 : i32
    return %c0_i32, %c0_i32_0 : i32, i32
  }
  func.func @transform_5(%arg0: i32, %arg1: i32) -> (i32, i32) {
    %c0_i32 = arith.constant 0 : i32
    %c0_i32_0 = arith.constant 0 : i32
    %c0_i32_1 = arith.constant 0 : i32
    return %c0_i32, %c0_i32_0 : i32, i32
  }
  func.func @transform_6(%arg0: i32, %arg1: i32) -> (i32, i32, i32) {
    %c0_i32 = arith.constant 0 : i32
    %c0_i32_0 = arith.constant 0 : i32
    return %arg0, %arg1, %c0_i32 : i32, i32, i32
  }
}

</mosaic_0001>

<bundles_post_ra>
// kernel: multi_head_attention.1
= control target key start
LH: loop header
LB: loop body
LE: loop exit
PB: predicated region body
PF: predicated region fallthrough
CT: control target
= control target key end

     0   :  { %s28918_s0 = inlined_call_operand.vmem [shape: bf16[2,256,384], index: 0, kind: input, shape index: {}]   ;;  %s28919_s1 = inlined_call_operand.vmem [shape: bf16[384,384], index: 1, kind: input, shape index: {}]   ;;  %s28920_s2 = inlined_call_operand.vmem [shape: bf16[384,384], index: 2, kind: input, shape index: {}]   ;;  %s28921_s3 = inlined_call_operand.vmem [shape: bf16[384,384], index: 3, kind: input, shape index: {}]   ;;  %s28922_s4 = inlined_call_operand.vmem [shape: bf16[384,384], index: 4, kind: input, shape index: {}]   ;;  %s28923_s5 = inlined_call_operand.hbm [shape: f32[1,384], index: 5, kind: input, shape index: {}]   ;;  %s28924_s6 = inlined_call_operand.hbm [shape: f32[2,256,384], index: 6, kind: output, shape index: {}]  }
   0x1   :  { %29057 = sst [smem:[#allocation325_spill]] %s28918_s0 }
   0x2   :  { %29058 = sst [smem:[#allocation326_spill]] %s28923_s5 }
   0x3   :  { %11 = vsyncpa [#allocation7], 0 }
   0x4   :  { %12 = vsyncpa [#allocation8], 0 }
   0x5   :  { %14 = vsyncpa [#allocation8 + $0x1], 0  ;;  %s20607_s21 = smov 0   ;;  %s20609_s22 = smov 0  }
   0x6   :  { %s20611_s23 = smov 0   ;;  %s20613_s24 = smov 0  }
   0x7   :  { %s20615_s25 = smov 0   ;;  %s20617_s26 = smov 0  }
   0x8   :  { %s20619_s27 = smov 0   ;;  %s20621_s28 = smov 0  }
   0x9 LB: > { %s9817_s29 = sadd.s32 4294967295, %s18612_s28   ;;  %s9818_s30 = sadd.s32 4294967294, %s18612_s28   ;;  %s18612_s28 = sphi %s20621_s28, %s20_s28   ;;  %s18608_s27 = sphi %s20619_s27, %s30488_s27   ;;  %s18604_s26 = sphi %s20617_s26, %s30487_s26   ;;  %s18600_s25 = sphi %s20615_s25, %s30486_s25   ;;  %s18596_s24 = sphi %s20613_s24, %s30485_s24   ;;  %s18592_s23 = sphi %s20611_s23, %s30484_s23   ;;  %s18588_s22 = sphi %s20609_s22, %s30483_s22   ;;  %s18584_s21 = sphi %s20607_s21, %s30482_s21  }
   0xa   : > { %s29_s7 = sadd.s32 1, %s18604_s26  ;;  %s32_s8 = sadd.s32 1, %s18608_s27 }
   0xb   : > { %p30_p0 = scmp.ge.s32.totalorder %s29_s7, 2  ;;  %s172_s9 = sadd.s32 1, %s18592_s23 }
   0xc   : > { %p182_p1 = scmp.ne.s32.totalorder %s18592_s23, %s18588_s22  ;;  %p183_p2 = scmp.eq.s32.totalorder %s9817_s29, 3 }
   0xd   : > { %s30490_s7 = smov (%p30_p0, %s29_s7), 0  ;;  %s30492_s8 = smov (!%p30_p0, %s32_s8), %s18608_s27 }
   0xe   : > { %29059 = sst [smem:[#allocation12_spill]] %s30490_s7  ;;  %s168_s10 = ssub.s32 %s18604_s26, %s30490_s7 }
   0xf   : > { %p20659_p3 = por %p183_p2, %p182_p1  ;;  %p34_p4 = scmp.ge.s32.totalorder %s30492_s8, 2 }
  0x10   : > { %p188_p5 = scmp.ne.s32.totalorder %s18588_s22, %s18584_s21  ;;  %p189_p6 = scmp.eq.s32.totalorder %s9818_s30, 3 }
  0x11   : > { %s29060_s11 = scalar_select %p20659_p3, 1, 0 }
  0x12   : > { %p9819_p7 = scmp.ge.s32.totalorder %s18612_s28, 1  ;;  %s30494_s8 = smov (%p34_p4, %s30492_s8), 0 }
  0x13   : > { %29061 = sst [smem:[#allocation13_spill]] %s30494_s8  ;;  %p20668_p8 = por %p189_p6, %p188_p5 }
  0x14   : > { %p196_p9 = scmp.lt.s32.totalorder %s18612_s28, 5  ;;  %s167_s13 = ssub.s32 %s18608_s27, %s30494_s8 }
  0x15   : > { %s29062_s12 = scalar_select %p20668_p8, 1, 0 }
  0x16   : > { %s169_s14 = sor.u32 %s168_s10, %s167_s13  ;;  %p20675_p10 = pnand %p9819_p7, %p196_p9 }
  0x17   : > { %p170_p11 = scmp.eq.s32.totalorder %s169_s14, 0  ;;  %p20679_p12 = scmp.eq.s32.totalorder %s9817_s29, 0 }
  0x18   : > { %s29063_s15 = scalar_select %p20675_p10, 1, 0 }
  0x19   : > { %s29064_s16 = scalar_select %p20679_p12, 1, 0 }
  0x1a   : > { %p11535_p13 = pneg %p20675_p10  ;;  %s20562_s18 = smov [#allocation6]  }
  0x1b   : > { %s20686_s17 = scalar_select %p170_p11, %s18592_s23, %s172_s9  }
  0x1c   : > { %s221_s19 = sshll.u32 %s20562_s18, 4  ;;  %p20690_p0 = pnand %p20679_p12, %p11535_p13  ;;  %s222_s19 = int_to_ptr.vmem [resolvable:$true] %s221_s19 }
  0x1d   : > { %s29066_s5 = sld [smem:[#allocation326_spill]] }
  0x1e   : > { %p16540_p2 = pneg %p20690_p0 }
  0x23   : > { %s16538_s29 = scalar_lea.hbm %s29066_s5, 48 }
  0x24   : > { %p16539_p1 = scmp.ne.s32.totalorder %s29066_s5, %s16538_s29  ;;  %p16545_p6 = scmp.lt.u32.totalorder %s16538_s29, %s29066_s5 }
  0x26   : > { %p16541_p4 = pnand %p16540_p2, %p16539_p1 }
  0x28   : > { %p16542_p5 = pneg %p16541_p4 }
  0x2a   : > { %p16547_p7 = pnand %p16545_p6, %p16542_p5 }
  0x2c   : > { %16550 = shalt.err (!%p16547_p7)
}
  0x2d   : > { %s16551_s8 = scalar_lea.vmem %s222_s19, 48  ;;  %s16558_s30 = scalar_lea.vmem %s222_s19, 64 }
  0x2e   : > { %p16552_p9 = scmp.ne.s32.totalorder %s222_s19, %s16551_s8  ;;  %p16559_p8 = scmp.lt.s32.totalorder %s222_s19, %s222_s19 }
  0x2f   : > { %p16560_p3 = scmp.lt.s32.totalorder %s16558_s30, %s16551_s8 }
  0x30   : > { %p16554_p11 = pnand %p16552_p9, %p16540_p2 }
  0x31   : > { %p16561_p12 = por %p16560_p3, %p16559_p8 }
  0x32   : > { %p16555_p13 = pneg %p16554_p11 }
  0x34   : > { %p16562_p10 = pnand %p16561_p12, %p16555_p13 }
  0x36   : > { %16565 = shalt.err (!%p16562_p10)
}
  0x37   : > { %11538 = dma.hbm_to_vmem [thread:$0]  (!%p20690_p0), %s29066_s5, 48, %s222_s19, [#allocation7]  }
  0x38   : > { %p29067_p1 = scmp.ne.s32.totalorder %s29063_s15, 0 }
  0x3a   : > { %242 = sbr.rel (%p29067_p1) target bundleno = 6484 (0x1954), region = 44 }
  0x41   : > { %p29068_p4 = scmp.ne.s32.totalorder %s29064_s16, 0 }
  0x43   : > { %18575 = dma.done.wait (%p29068_p4), [#allocation7], 48  }
  0x44   : > { %18577 = vsyncadd (%p29068_p4), [#allocation7], 4294967248  ;;  %s28930_s8 = sand.u32 1, %s18588_s22   ;;  %s20718_s29 = sadd.s32 1, %s18596_s24  ;;  %v28934_v0 = vmov 0  }
  0x45   : > { %s20722_s20 = smul.u32 384, %s28930_s8  ;;  %1111 = vmatprep.mubr.bf16.mxu1 %v28934_v0  ;;  %v15515_v1 = vld [vmem:[%s28919_s1 + $0x4] ss:$12 sps:$4 sm:$0xff]   ;;  %v15519_v3 = vld [vmem:[%s28919_s1] ss:$12 sps:$4 sm:$0xff]   ;;  %p272_p3 = scmp.lt.s32.totalorder %s18600_s25, 1 }
  0x46   : > { %v20731_v2 = vld [vmem:[%s28919_s1 + $0x184] ss:$12 sps:$4 sm:$0xff]   ;;  %926 = vmatprep.subr.bf16.mxu0 %v15515_v1  ;;  %v20739_v4 = vld [vmem:[%s28919_s1 + $0x180] ss:$12 sps:$4 sm:$0xff]   ;;  %v15521_v5 = vld [vmem:[%s28919_s1 + $0x1c] ss:$12 sps:$4 sm:$0xff]  }
  0x47   : > { %11285 = vmatprep.subr.bf16.mxu1 %v20731_v2  ;;  %927 = vmatpush1.bf16.msra.mxu0 %v15519_v3  ;;  %v20749_v6 = vld [vmem:[%s28919_s1 + $0x19c] ss:$12 sps:$4 sm:$0xff]   ;;  %v15525_v7 = vld [vmem:[%s28919_s1 + $0x18] ss:$12 sps:$4 sm:$0xff]   ;;  %v15527_v9 = vld [vmem:[%s28919_s1 + $0x34] ss:$12 sps:$4 sm:$0xff]  }
  0x48   : > { %11293 = vmatpush1.bf16.msra.mxu1 %v20739_v4  ;;  %928 = vmatprep.subr.bf16.mxu0 %v15521_v5  ;;  %v20757_v8 = vld [vmem:[%s28919_s1 + $0x198] ss:$12 sps:$4 sm:$0xff]   ;;  %v20767_v10 = vld [vmem:[%s28919_s1 + $0x1b4] ss:$12 sps:$4 sm:$0xff]   ;;  %v15531_v11 = vld [vmem:[%s28919_s1 + $0x30] ss:$12 sps:$4 sm:$0xff]  }
  0x49   : > { %11286 = vmatprep.subr.bf16.mxu1 %v20749_v6  ;;  %v20775_v12 = vld [vmem:[%s28919_s1 + $0x1b0] ss:$12 sps:$4 sm:$0xff]   ;;  %v15533_v13 = vld [vmem:[%s28919_s1 + $0x4c] ss:$12 sps:$4 sm:$0xff]   ;;  %s273_s19 = scalar_select %p272_p3, %s18600_s25, 1 }
  0x4a   : > { %v20785_v14 = vld [vmem:[%s28919_s1 + $0x1cc] ss:$12 sps:$4 sm:$0xff]   ;;  %v15537_v15 = vld [vmem:[%s28919_s1 + $0x48] ss:$12 sps:$4 sm:$0xff]   ;;  %s28932_s9 = sshll.u32 %s18596_s24, 7  ;;  %s29069_s0 = sld [smem:[#allocation325_spill]] }
  0x4b   : > { %929 = vmatpush1.bf16.msra.mxu0 %v15525_v7  ;;  %v20796_v16 = vld [vmem:[%s28919_s1 + $0x1c8] ss:$12 sps:$4 sm:$0xff]   ;;  %v15539_v17 = vld [vmem:[%s28919_s1 + $0x64] ss:$12 sps:$4 sm:$0xff]   ;;  %s11526_s14 = smul.u32 384, %s273_s19  ;;  %s281_s16 = sshra.s32 %s28932_s9, 3 }
  0x4c   : > { %11294 = vmatpush1.bf16.msra.mxu1 %v20757_v8  ;;  %930 = vmatprep.subr.bf16.mxu0 %v15527_v9  ;;  %v20805_v18 = vld [vmem:[%s28919_s1 + $0x1e4] ss:$12 sps:$4 sm:$0xff]   ;;  %v15543_v19 = vld [vmem:[%s28919_s1 + $0x60] ss:$12 sps:$4 sm:$0xff]   ;;  %v15545_v21 = vld [vmem:[%s28919_s1 + $0x7c] ss:$12 sps:$4 sm:$0xff]  }
  0x4d   : > { %11287 = vmatprep.subr.bf16.mxu1 %v20767_v10  ;;  %v20815_v20 = vld [vmem:[%s28919_s1 + $0x1e0] ss:$12 sps:$4 sm:$0xff]   ;;  %v20825_v22 = vld [vmem:[%s28919_s1 + $0x1fc] ss:$12 sps:$4 sm:$0xff]   ;;  %s10245_s5 = smul.u32 12, %s281_s16  ;;  %p9923_p8 = scmp.le.s32.totalorder %s20718_s29, 0 }
  0x4e   : > { %v15549_v23 = vld [vmem:[%s28919_s1 + $0x78] ss:$12 sps:$4 sm:$0xff]   ;;  %v15551_v25 = vld [vmem:[%s28919_s1 + $0x94] ss:$12 sps:$4 sm:$0xff]   ;;  %v15555_v27 = vld [vmem:[%s28919_s1 + $0x90] ss:$12 sps:$4 sm:$0xff]  }
  0x4f   : > { %931 = vmatpush1.bf16.msra.mxu0 %v15531_v11  ;;  %v20839_v24 = vld [vmem:[%s28919_s1 + $0x1f8] ss:$12 sps:$4 sm:$0xff]   ;;  %v20848_v26 = vld [vmem:[%s28919_s1 + $0x214] ss:$12 sps:$4 sm:$0xff]   ;;  %v20860_v28 = vld [vmem:[%s28919_s1 + $0x210] ss:$12 sps:$4 sm:$0xff]  }
  0x50   : > { %11295 = vmatpush1.bf16.msra.mxu1 %v20775_v12  ;;  %932 = vmatprep.subr.bf16.mxu0 %v15533_v13  ;;  %s20830_s18 = scalar_lea.vmem %s29069_s0, %s11526_s14  ;;  %v15557_v29 = vld [vmem:[%s28919_s1 + $0xac] ss:$12 sps:$4 sm:$0xff]   ;;  %v15561_v31 = vld [vmem:[%s28919_s1 + $0xa8] ss:$12 sps:$4 sm:$0xff]   ;;  %v15563_v33 = vld [vmem:[%s28919_s1 + $0xc4] ss:$12 sps:$4 sm:$0xff]  }
  0x51   : > { %11288 = vmatprep.subr.bf16.mxu1 %v20785_v14  ;;  %s20851_s9 = scalar_lea.vmem %s20830_s18, %s10245_s5  ;;  %v20869_v30 = vld [vmem:[%s28919_s1 + $0x22c] ss:$12 sps:$4 sm:$0xff]   ;;  %v20877_v32 = vld [vmem:[%s28919_s1 + $0x228] ss:$12 sps:$4 sm:$0xff]   ;;  %v15578_v45 = vld [vmem:[%s28919_s1 + $0xf0] ss:$12 sps:$4 sm:$0xff]  }
  0x52   : > { %v20885_v34 = vld [vmem:[%s20851_s9 + $0x68] ss:$12 sps:$4 sm:$0xff]   ;;  %v15567_v36 = vld [vmem:[%s28919_s1 + $0xc0] ss:$12 sps:$4 sm:$0xff]   ;;  %v15572_v40 = vld [vmem:[%s28919_s1 + $0xd8] ss:$12 sps:$4 sm:$0xff]  }
  0x53   : > { %933 = vmatpush1.bf16.msra.mxu0 %v15537_v15  ;;  %v15566_v35 = vld [vmem:[%s28919_s1 + $0xc8] ss:$12 sps:$4 sm:$0xff]   ;;  %v15571_v39 = vld [vmem:[%s28919_s1 + $0xe0] ss:$12 sps:$4 sm:$0xff]   ;;  %v15577_v43 = vld [vmem:[%s28919_s1 + $0xf8] ss:$12 sps:$4 sm:$0xff]  }
  0x54   : > { %11296 = vmatpush1.bf16.msra.mxu1 %v20796_v16  ;;  %934 = vmatprep.subr.bf16.mxu0 %v15539_v17  ;;  %v15568_v37 = vld [vmem:[%s28919_s1 + $0x8] ss:$12 sps:$4 sm:$0xff]   ;;  %v15573_v41 = vld [vmem:[%s28919_s1 + $0x20] ss:$12 sps:$4 sm:$0xff]   ;;  %v15579_v46 = vld [vmem:[%s28919_s1 + $0x38] ss:$12 sps:$4 sm:$0xff]  }
  0x55   : > { %11289 = vmatprep.subr.bf16.mxu1 %v20805_v18  ;;  %v15569_v38 = vld [vmem:[%s28919_s1 + $0xdc] ss:$12 sps:$4 sm:$0xff]   ;;  %v15574_v42 = vld [vmem:[%s28919_s1 + $0xf4] ss:$12 sps:$4 sm:$0xff]   ;;  %v15580_v47 = vld [vmem:[%s28919_s1 + $0x10c] ss:$12 sps:$4 sm:$0xff]  }
  0x56   : > { %v20918_v44 = vld [vmem:[%s20851_s9 + $0x80] ss:$12 sps:$4 sm:$0xff]   ;;  %v15582_v48 = vld [vmem:[%s28919_s1 + $0x110] ss:$12 sps:$4 sm:$0xff]   ;;  %v15583_v49 = vld [vmem:[%s28919_s1 + $0x108] ss:$12 sps:$4 sm:$0xff]  }
  0x57   : > { %935 = vmatpush1.bf16.msra.mxu0 %v15543_v19  ;;  %v15584_v50 = vld [vmem:[%s28919_s1 + $0x50] ss:$12 sps:$4 sm:$0xff]   ;;  %v15588_v52 = vld [vmem:[%s28919_s1 + $0x128] ss:$12 sps:$4 sm:$0xff]   ;;  %v20947_v53 = vld [vmem:[%s20851_s9 + $0x98] ss:$12 sps:$4 sm:$0xff]  }
  0x58   : > { %11297 = vmatpush1.bf16.msra.mxu1 %v20815_v20  ;;  %936 = vmatprep.subr.bf16.mxu0 %v15545_v21  ;;  %v15585_v51 = vld [vmem:[%s28919_s1 + $0x124] ss:$12 sps:$4 sm:$0xff]   ;;  %v15589_v54 = vld [vmem:[%s28919_s1 + $0x120] ss:$12 sps:$4 sm:$0xff]   ;;  %v15590_v55 = vld [vmem:[%s28919_s1 + $0x68] ss:$12 sps:$4 sm:$0xff]  }
  0x59   : > { %11290 = vmatprep.subr.bf16.mxu1 %v20825_v22  ;;  %v15591_v56 = vld [vmem:[%s28919_s1 + $0x13c] ss:$12 sps:$4 sm:$0xff]   ;;  %v15593_v57 = vld [vmem:[%s28919_s1 + $0x140] ss:$12 sps:$4 sm:$0xff]   ;;  %v15594_v58 = vld [vmem:[%s28919_s1 + $0x138] ss:$12 sps:$4 sm:$0xff]  }
  0x5a   : > { %v15595_v59 = vld [vmem:[%s28919_s1 + $0x80] ss:$12 sps:$4 sm:$0xff]   ;;  %v15599_v61 = vld [vmem:[%s28919_s1 + $0x158] ss:$12 sps:$4 sm:$0xff]   ;;  %v20977_v63 = vld [vmem:[%s20851_s9 + $0xb0] ss:$12 sps:$4 sm:$0xff]  }
  0x5b   : > { %937 = vmatpush1.bf16.msra.mxu0 %v15549_v23  ;;  %v15596_v60 = vld [vmem:[%s28919_s1 + $0x154] ss:$12 sps:$4 sm:$0xff]   ;;  %v15609_v62 = vld [vmem:[%s20851_s9 + $0x4] ss:$12 sps:$4 sm:$0xff]   ;;  %v15602_v5 = vld [vmem:[%s28919_s1 + $0x16c] ss:$12 sps:$4 sm:$0xff]  }
  0x5c   : > { %11298 = vmatpush1.bf16.msra.mxu1 %v20839_v24  ;;  %938 = vmatprep.subr.bf16.mxu0 %v15551_v25  ;;  %v15600_v1 = vld [vmem:[%s28919_s1 + $0x150] ss:$12 sps:$4 sm:$0xff]   ;;  %v15601_v3 = vld [vmem:[%s28919_s1 + $0x98] ss:$12 sps:$4 sm:$0xff]   ;;  %v15605_v9 = vld [vmem:[%s28919_s1 + $0x168] ss:$12 sps:$4 sm:$0xff]  }
  0x5d   : > { %11291 = vmatprep.subr.bf16.mxu1 %v20848_v26  ;;  %958 = vmatprep.mubr.bf16.mxu0 %v15609_v62  ;;  %v15604_v7 = vld [vmem:[%s28919_s1 + $0x170] ss:$12 sps:$4 sm:$0xff]   ;;  %v15610_v13 = vld [vmem:[%s28919_s1 + $0x188] ss:$12 sps:$4 sm:$0xff]   ;;  %v15607_v15 = vld [vmem:[%s20851_s9] ss:$12 sps:$4 sm:$0xff]  }
  0x5e   : > { %v15606_v11 = vld [vmem:[%s28919_s1 + $0xb0] ss:$12 sps:$4 sm:$0xff]   ;;  %v15614_v19 = vld [vmem:[%s28919_s1 + $0x1a0] ss:$12 sps:$4 sm:$0xff]   ;;  %v15618_v21 = vld [vmem:[%s28919_s1 + $0x1b8] ss:$12 sps:$4 sm:$0xff]  }
  0x5f   : > { %939 = vmatpush1.bf16.msra.mxu0 %v15555_v27  ;;  %v15611_v17 = vld [vmem:[%s20851_s9 + $0x1c] ss:$12 sps:$4 sm:$0xff]   ;;  %v15615_v23 = vld [vmem:[%s20851_s9 + $0x34] ss:$12 sps:$4 sm:$0xff]   ;;  %v15629_v25 = vld [vmem:[%s20851_s9 + $0x78] ss:$12 sps:$4 sm:$0xff]  }
  0x60   : > { %11299 = vmatpush1.bf16.msra.mxu1 %v20860_v28  ;;  %940 = vmatprep.subr.bf16.mxu0 %v15557_v29  ;;  %v15633_v27 = vld [vmem:[%s20851_s9 + $0x90] ss:$12 sps:$4 sm:$0xff]   ;;  %v15637_v29 = vld [vmem:[%s20851_s9 + $0xa8] ss:$12 sps:$4 sm:$0xff]   ;;  %s21146_s30 = smov (!%p9923_p8), 0  }
  0x61   : > { %11292 = vmatprep.subr.bf16.mxu1 %v20869_v30 }
  0x63   : > { %941 = vmatpush1.bf16.msra.mxu0 %v15561_v31  ;;  %v15640_v31 = vld [vmem:[%s20851_s9 + $0x20] ss:$12 sps:$4 sm:$0xff]  }
  0x64   : > { %11300 = vmatpush1.bf16.msra.mxu1 %v20877_v32  ;;  %942 = vmatprep.subr.bf16.mxu0 %v15563_v33  ;;  %v15642_v33 = vld [vmem:[%s20851_s9 + $0x50] ss:$12 sps:$4 sm:$0xff]  }
  0x65   : > { %10261 = vmatprep.subr.bf16.mxu1 %v15566_v35 }
  0x67   : > { %1112 = vmatmul.mubr.bf16.vlgmr.msra.gmra.mrb[0].mxu1 %v20885_v34  ;;  %943 = vmatpush1.bf16.msra.mxu0 %v15567_v36 }
  0x68   : > { %10262 = vmatpush3.bf16.msra.mxu1 %v15568_v37  ;;  %944 = vmatprep.subr.bf16.mxu0 %v15569_v38 }
  0x69   : > { %10263 = vmatprep.subr.bf16.mxu1 %v15571_v39  ;;  %1121 = vmatprep.mubr.bf16.mxu1 %v28934_v0 }
  0x6b   : > { %945 = vmatpush1.bf16.msra.mxu0 %v15572_v40 }
  0x6c   : > { %10264 = vmatpush3.bf16.msra.mxu1 %v15573_v41  ;;  %946 = vmatprep.subr.bf16.mxu0 %v15574_v42 }
  0x6d   : > { %10265 = vmatprep.subr.bf16.mxu1 %v15577_v43 }
  0x6f   : > { %1122 = vmatmul.mubr.bf16.gmra.mrb[4].mxu1 %v20918_v44  ;;  %947 = vmatpush1.bf16.msra.mxu0 %v15578_v45 }
  0x70   : > { %10266 = vmatpush3.bf16.msra.mxu1 %v15579_v46  ;;  %948 = vmatprep.subr.bf16.mxu0 %v15580_v47 }
  0x71   : > { %10267 = vmatprep.subr.bf16.mxu1 %v15582_v48  ;;  %1131 = vmatprep.mubr.bf16.mxu1 %v28934_v0 }
  0x73   : > { %949 = vmatpush1.bf16.msra.mxu0 %v15583_v49 }
  0x74   : > { %10268 = vmatpush3.bf16.msra.mxu1 %v15584_v50  ;;  %950 = vmatprep.subr.bf16.mxu0 %v15585_v51 }
  0x75   : > { %10269 = vmatprep.subr.bf16.mxu1 %v15588_v52 }
  0x77   : > { %1132 = vmatmul.mubr.bf16.gmra.mrb[8].mxu1 %v20947_v53  ;;  %951 = vmatpush1.bf16.msra.mxu0 %v15589_v54 }
  0x78   : > { %10270 = vmatpush3.bf16.msra.mxu1 %v15590_v55  ;;  %952 = vmatprep.subr.bf16.mxu0 %v15591_v56 }
  0x79   : > { %10271 = vmatprep.subr.bf16.mxu1 %v15593_v57  ;;  %1141 = vmatprep.mubr.bf16.mxu1 %v28934_v0 }
  0x7b   : > { %953 = vmatpush1.bf16.msra.mxu0 %v15594_v58 }
  0x7c   : > { %10272 = vmatpush3.bf16.msra.mxu1 %v15595_v59  ;;  %954 = vmatprep.subr.bf16.mxu0 %v15596_v60 }
  0x7d   : > { %10273 = vmatprep.subr.bf16.mxu1 %v15599_v61 }
  0x7f   : > { %1142 = vmatmul.mubr.bf16.gmra.mrb[12].mxu1 %v20977_v63  ;;  %955 = vmatpush1.bf16.msra.mxu0 %v15600_v1 }
  0x80   : > { %10274 = vmatpush3.bf16.msra.mxu1 %v15601_v3  ;;  %956 = vmatprep.subr.bf16.mxu0 %v15602_v5 }
  0x81   : > { %10275 = vmatprep.subr.bf16.mxu1 %v15604_v7  ;;  %1184 = vmatprep.mubr.bf16.mxu1 %v15609_v62 }
  0x83   : > { %957 = vmatpush1.bf16.msra.mxu0 %v15605_v9 }
  0x84   : > { %10276 = vmatpush3.bf16.msra.mxu1 %v15606_v11  ;;  %1039 = vmatprep.subr.bf16.mxu0 %v20731_v2  ;;  %v15613_v2 = vld [vmem:[%s20851_s9 + $0x18] ss:$12 sps:$4 sm:$0xff]  }
  0x85   : > { %10773 = vmatprep.subr.bf16.mxu1 %v15610_v13 }
  0x86   : > { %959 = vmatmul.mubr.bf16.vlgmr.msra.gmra.mrb[0].mxu0 %v15607_v15 }
  0x87   : > { %1185 = vmatmul.mubr.bf16.vlgmr.msra.gmra.mrb[16].mxu1 %v15607_v15  ;;  %1040 = vmatpush1.bf16.msra.mxu0 %v20739_v4  ;;  %v15622_v4 = vld [vmem:[%s28919_s1 + $0x1d0] ss:$12 sps:$4 sm:$0xff]  }
  0x88   : > { %10774 = vmatpush3.bf16.msra.mxu1 %v15610_v13  ;;  %968 = vmatprep.mubr.bf16.mxu0 %v15611_v17 }
  0x89   : > { %1192 = vmatprep.mubr.bf16.mxu1 %v15611_v17  ;;  %10775 = vmatprep.subr.bf16.mxu1 %v15614_v19 }
  0x8a   : > { %1041 = vmatprep.subr.bf16.mxu0 %v20749_v6  ;;  %v15626_v6 = vld [vmem:[%s28919_s1 + $0x1e8] ss:$12 sps:$4 sm:$0xff]  }
  0x8b   : > { %1042 = vmatpush1.bf16.msra.mxu0 %v20757_v8  ;;  %v15617_v8 = vld [vmem:[%s20851_s9 + $0x30] ss:$12 sps:$4 sm:$0xff]  }
  0x8c   : > { %10776 = vmatpush3.bf16.msra.mxu1 %v15614_v19  ;;  %1043 = vmatprep.subr.bf16.mxu0 %v20767_v10  ;;  %v15619_v10 = vld [vmem:[%s20851_s9 + $0x4c] ss:$12 sps:$4 sm:$0xff]  }
  0x8d   : > { %10777 = vmatprep.subr.bf16.mxu1 %v15618_v21 }
  0x8e   : > { %969 = vmatmul.mubr.bf16.gmra.mrb[4].mxu0 %v15613_v2 }
  0x8f   : > { %1193 = vmatmul.mubr.bf16.gmra.mrb[20].mxu1 %v15613_v2  ;;  %978 = vmatprep.mubr.bf16.mxu0 %v15615_v23 }
  0x90   : > { %1200 = vmatprep.mubr.bf16.mxu1 %v15615_v23  ;;  %10778 = vmatpush3.bf16.msra.mxu1 %v15618_v21 }
  0x91   : > { %1044 = vmatpush1.bf16.msra.mxu0 %v20775_v12  ;;  %10779 = vmatprep.subr.bf16.mxu1 %v15622_v4  ;;  %v15630_v12 = vld [vmem:[%s28919_s1 + $0x200] ss:$12 sps:$4 sm:$0xff]  }
  0x92   : > { %1045 = vmatprep.subr.bf16.mxu0 %v20785_v14  ;;  %v15634_v14 = vld [vmem:[%s28919_s1 + $0x218] ss:$12 sps:$4 sm:$0xff]  }
  0x94   : > { %10780 = vmatpush3.bf16.msra.mxu1 %v15622_v4 }
  0x95   : > { %1046 = vmatpush1.bf16.msra.mxu0 %v20796_v16  ;;  %10781 = vmatprep.subr.bf16.mxu1 %v15626_v6  ;;  %v15621_v16 = vld [vmem:[%s20851_s9 + $0x48] ss:$12 sps:$4 sm:$0xff]  }
  0x96   : > { %1047 = vmatprep.subr.bf16.mxu0 %v20805_v18  ;;  %979 = vmatmul.mubr.bf16.gmra.mrb[8].mxu0 %v15617_v8  ;;  %v15623_v18 = vld [vmem:[%s20851_s9 + $0x64] ss:$12 sps:$4 sm:$0xff]  }
  0x97   : > { %1201 = vmatmul.mubr.bf16.gmra.mrb[24].mxu1 %v15617_v8  ;;  %988 = vmatprep.mubr.bf16.mxu0 %v15619_v10 }
  0x98   : > { %1208 = vmatprep.mubr.bf16.mxu1 %v15619_v10  ;;  %10782 = vmatpush3.bf16.msra.mxu1 %v15626_v6 }
  0x99   : > { %1048 = vmatpush1.bf16.msra.mxu0 %v20815_v20  ;;  %10783 = vmatprep.subr.bf16.mxu1 %v15630_v12  ;;  %v15638_v20 = vld [vmem:[%s28919_s1 + $0x230] ss:$12 sps:$4 sm:$0xff]  }
  0x9a   : > { %1049 = vmatprep.subr.bf16.mxu0 %v20825_v22  ;;  %v15625_v22 = vld [vmem:[%s20851_s9 + $0x60] ss:$12 sps:$4 sm:$0xff]  }
  0x9c   : > { %10784 = vmatpush3.bf16.msra.mxu1 %v15630_v12 }
  0x9d   : > { %1050 = vmatpush1.bf16.msra.mxu0 %v20839_v24  ;;  %10785 = vmatprep.subr.bf16.mxu1 %v15634_v14  ;;  %v15627_v24 = vld [vmem:[%s20851_s9 + $0x7c] ss:$12 sps:$4 sm:$0xff]  }
  0x9e   : > { %1051 = vmatprep.subr.bf16.mxu0 %v20848_v26  ;;  %989 = vmatmul.mubr.bf16.gmra.mrb[12].mxu0 %v15621_v16  ;;  %v15631_v26 = vld [vmem:[%s20851_s9 + $0x94] ss:$12 sps:$4 sm:$0xff]  }
  0x9f   : > { %1209 = vmatmul.mubr.bf16.gmra.mrb[28].mxu1 %v15621_v16  ;;  %998 = vmatprep.mubr.bf16.mxu0 %v15623_v18 }
  0xa0   : > { %1216 = vmatprep.mubr.bf16.mxu1 %v15623_v18  ;;  %10786 = vmatpush3.bf16.msra.mxu1 %v15634_v14 }
  0xa1   : > { %1052 = vmatpush1.bf16.msra.mxu0 %v20860_v28  ;;  %10787 = vmatprep.subr.bf16.mxu1 %v15638_v20  ;;  %v15635_v28 = vld [vmem:[%s20851_s9 + $0xac] ss:$12 sps:$4 sm:$0xff]  }
  0xa2   : > { %1053 = vmatprep.subr.bf16.mxu0 %v20869_v30  ;;  %v15639_v30 = vld [vmem:[%s20851_s9 + $0x8] ss:$12 sps:$4 sm:$0xff]  }
  0xa4   : > { %10788 = vmatpush3.bf16.msra.mxu1 %v15638_v20 }
  0xa5   : > { %1054 = vmatpush1.bf16.msra.mxu0 %v20877_v32  ;;  %v15641_v32 = vld [vmem:[%s20851_s9 + $0x38] ss:$12 sps:$4 sm:$0xff]   ;;  %s21141_s9 = scalar_lea.vmem [#allocation9], %s20722_s20 }
  0xa6   : > { %999 = vmatmul.mubr.bf16.gmra.mrb[16].mxu0 %v15625_v22 }
  0xa7   : > { %1217 = vmatmul.mubr.bf16.gmra.mrb[32].mxu1 %v15625_v22  ;;  %1008 = vmatprep.mubr.bf16.mxu0 %v15627_v24 }
  0xa8   : > { %1224 = vmatprep.mubr.bf16.mxu1 %v15627_v24 }
  0xae   : > { %1009 = vmatmul.mubr.bf16.gmra.mrb[20].mxu0 %v15629_v25 }
  0xaf   : > { %1225 = vmatmul.mubr.bf16.gmra.mrb[36].mxu1 %v15629_v25  ;;  %1018 = vmatprep.mubr.bf16.mxu0 %v15631_v26 }
  0xb0   : > { %1232 = vmatprep.mubr.bf16.mxu1 %v15631_v26 }
  0xb6   : > { %1019 = vmatmul.mubr.bf16.gmra.mrb[24].mxu0 %v15633_v27 }
  0xb7   : > { %1233 = vmatmul.mubr.bf16.gmra.mrb[40].mxu1 %v15633_v27  ;;  %1028 = vmatprep.mubr.bf16.mxu0 %v15635_v28 }
  0xb8   : > { %1240 = vmatprep.mubr.bf16.mxu1 %v15635_v28 }
  0xbe   : > { %1029 = vmatmul.mubr.bf16.gmra.mrb[28].mxu0 %v15637_v29 }
  0xbf   : > { %1241 = vmatmul.mubr.bf16.gmra.mrb[44].mxu1 %v15637_v29  ;;  %1071 = vmatprep.mubr.bf16.mxu0 %v28934_v0 }
  0xc0   : > { %10789 = vmatprep.mubr.bf16.mxu1 %v15639_v30 }
  0xc6   : > { %1072 = vmatmul.mubr.bf16.vlgmr.msra.gmra.mrb[0].mxu0 %v15639_v30 }
  0xc7   : > { %10790 = vmatmul.mubr.bf16.vlgmr.msra.gmra.mrb[48].mxu1 %v15640_v31  ;;  %1081 = vmatprep.mubr.bf16.mxu0 %v28934_v0 }
  0xc8   : > { %10793 = vmatprep.mubr.bf16.mxu1 %v15641_v32 }
  0xce   : > { %1082 = vmatmul.mubr.bf16.gmra.mrb[4].mxu0 %v15640_v31 }
  0xcf   : > { %10794 = vmatmul.mubr.bf16.gmra.mrb[52].mxu1 %v15642_v33  ;;  %1091 = vmatprep.mubr.bf16.mxu0 %v28934_v0 }
  0xd0   : > { %10797 = vmatprep.mubr.bf16.mxu1 %v20885_v34 }
  0xd6   : > { %1092 = vmatmul.mubr.bf16.gmra.mrb[8].mxu0 %v15641_v32 }
  0xd7   : > { %10798 = vmatmul.mubr.bf16.gmra.mrb[56].mxu1 %v20918_v44  ;;  %1101 = vmatprep.mubr.bf16.mxu0 %v28934_v0 }
  0xd8   : > { %10801 = vmatprep.mubr.bf16.mxu1 %v20947_v53 }
  0xde   : > { %1102 = vmatmul.mubr.bf16.gmra.mrb[12].mxu0 %v15642_v33 }
  0xdf   : > { %10802 = vmatmul.mubr.bf16.gmra.mrb[60].mxu1 %v20977_v63 }
 0x13a   : > { %v1113_v35 = vpop.f32.mrb[0].mxu1 }
 0x13b   : > { %v1115_v36 = vpop.f32.mrb[1].mxu1 }
 0x13c   : > { %v1117_v37 = vpop.f32.mrb[2].mxu1 }
 0x13d   : > { %v1119_v38 = vpop.f32.mrb[3].mxu1 }
 0x142   : > { %v1123_v39 = vpop.f32.mrb[4].mxu1 }
 0x143   : > { %v1125_v40 = vpop.f32.mrb[5].mxu1 }
 0x144   : > { %v1127_v41 = vpop.f32.mrb[6].mxu1 }
 0x145   : > { %v21065_v42 = vpop.f32.mrb[7].mxu1 }
 0x14a   : > { %v21067_v34 = vpop.f32.mrb[8].mxu1 }
 0x14b   : > { %v21069_v43 = vpop.f32.mrb[9].mxu1 }
 0x14c   : > { %v21071_v44 = vpop.f32.mrb[10].mxu1 }
 0x14d   : > { %v21073_v45 = vpop.f32.mrb[11].mxu1 }
 0x152   : > { %v21075_v46 = vpop.f32.mrb[12].mxu1 }
 0x153   : > { %v21077_v47 = vpop.f32.mrb[13].mxu1 }
 0x154   : > { %v21079_v48 = vpop.f32.mrb[14].mxu1 }
 0x155   : > { %v21081_v49 = vpop.f32.mrb[15].mxu1 }
 0x15a   : > { %v10277_v50 = vpop.f32.mrb[16].mxu1 }
 0x15b   : > { %v10278_v51 = vpop.f32.mrb[17].mxu1 }
 0x15c   : > { %v21083_v52 = vadd.f32 %v10278_v51, %v10277_v50  ;;  %v10280_v53 = vpop.f32.mrb[18].mxu1 }
 0x15d   : > { %v10281_v54 = vpop.f32.mrb[19].mxu1 }
 0x15e   : > { %v21085_v55 = vadd.f32 %v10281_v54, %v10280_v53 }
 0x162   : > { %v10283_v56 = vpop.f32.mrb[20].mxu1 }
 0x163   : > { %v10284_v57 = vpop.f32.mrb[21].mxu1 }
 0x164   : > { %v21087_v58 = vadd.f32 %v10284_v57, %v10283_v56  ;;  %v10286_v59 = vpop.f32.mrb[22].mxu1 }
 0x165   : > { %v10287_v60 = vpop.f32.mrb[23].mxu1 }
 0x166   : > { %v21089_v61 = vadd.f32 %v10287_v60, %v10286_v59 }
 0x16a   : > { %v10289_v62 = vpop.f32.mrb[24].mxu1 }
 0x16b   : > { %v10290_v63 = vpop.f32.mrb[25].mxu1 }
 0x16c   : > { %v21091_v1 = vadd.f32 %v10290_v63, %v10289_v62  ;;  %v10292_v3 = vpop.f32.mrb[26].mxu1 }
 0x16d   : > { %v10293_v5 = vpop.f32.mrb[27].mxu1 }
 0x16e   : > { %v21093_v7 = vadd.f32 %v10293_v5, %v10292_v3 }
 0x172   : > { %v10295_v9 = vpop.f32.mrb[28].mxu1 }
 0x173   : > { %v10296_v11 = vpop.f32.mrb[29].mxu1 }
 0x174   : > { %v21095_v13 = vadd.f32 %v10296_v11, %v10295_v9  ;;  %v10298_v15 = vpop.f32.mrb[30].mxu1 }
 0x175   : > { %v10299_v17 = vpop.f32.mrb[31].mxu1 }
 0x176   : > { %v21097_v19 = vadd.f32 %v10299_v17, %v10298_v15 }
 0x179   : > { %v1000_v21 = vpop.f32.mrb[16].mxu0 }
 0x17a   : > { %v10301_v2 = vpop.f32.mrb[32].mxu1  ;;  %v1114_v23 = vadd.f32 %v1113_v35, %v1000_v21  ;;  %v1002_v4 = vpop.f32.mrb[17].mxu0 }
 0x17b   : > { %v10302_v6 = vpop.f32.mrb[33].mxu1  ;;  %v1116_v8 = vadd.f32 %v1115_v36, %v1002_v4  ;;  %v1004_v12 = vpop.f32.mrb[18].mxu0 }
 0x17c   : > { %v21099_v10 = vadd.f32 %v10302_v6, %v10301_v2  ;;  %v10304_v14 = vpop.f32.mrb[34].mxu1  ;;  %v1118_v16 = vadd.f32 %v1117_v37, %v1004_v12  ;;  %v1006_v18 = vpop.f32.mrb[19].mxu0 }
 0x17d   : > { %v10305_v20 = vpop.f32.mrb[35].mxu1  ;;  %v1120_v22 = vadd.f32 %v1119_v38, %v1006_v18 }
 0x17e   : > { %v21101_v24 = vadd.f32 %v10305_v20, %v10304_v14  ;;  %v1358_v25 = vpack.c.bf16 %v1118_v16, %v1114_v23 }
 0x17f   : > { %v1359_v26 = vpack.c.bf16 %v1120_v22, %v1116_v8 }
 0x180   : > { %1382 = vst [vmem:[#allocation2 + $0x60] sm:$0xff] %v1358_v25 }
 0x181   : > { %1383 = vst [vmem:[#allocation2 + $0x68] sm:$0xff] %v1359_v26  ;;  %v1010_v27 = vpop.f32.mrb[20].mxu0 }
 0x182   : > { %v10307_v28 = vpop.f32.mrb[36].mxu1  ;;  %v1124_v29 = vadd.f32 %v1123_v39, %v1010_v27  ;;  %v1012_v30 = vpop.f32.mrb[21].mxu0 }
 0x183   : > { %v10308_v31 = vpop.f32.mrb[37].mxu1  ;;  %v1126_v32 = vadd.f32 %v1125_v40, %v1012_v30  ;;  %v1014_v35 = vpop.f32.mrb[22].mxu0 }
 0x184   : > { %v21103_v33 = vadd.f32 %v10308_v31, %v10307_v28  ;;  %v10310_v36 = vpop.f32.mrb[38].mxu1  ;;  %v1128_v37 = vadd.f32 %v1127_v41, %v1014_v35  ;;  %v1016_v50 = vpop.f32.mrb[23].mxu0 }
 0x185   : > { %v10311_v51 = vpop.f32.mrb[39].mxu1  ;;  %v1130_v38 = vadd.f32 %v21065_v42, %v1016_v50 }
 0x186   : > { %v21106_v53 = vadd.f32 %v10311_v51, %v10310_v36  ;;  %v1361_v54 = vpack.c.bf16 %v1128_v37, %v1124_v29 }
 0x187   : > { %v1362_v56 = vpack.c.bf16 %v1130_v38, %v1126_v32 }
 0x188   : > { %1385 = vst [vmem:[#allocation2 + $0x78] sm:$0xff] %v1361_v54 }
 0x189   : > { %1386 = vst [vmem:[#allocation2 + $0x80] sm:$0xff] %v1362_v56  ;;  %v1020_v57 = vpop.f32.mrb[24].mxu0 }
 0x18a   : > { %v10313_v39 = vpop.f32.mrb[40].mxu1  ;;  %v1134_v59 = vadd.f32 %v21067_v34, %v1020_v57  ;;  %v1022_v40 = vpop.f32.mrb[25].mxu0 }
 0x18b   : > { %v10314_v60 = vpop.f32.mrb[41].mxu1  ;;  %v1136_v62 = vadd.f32 %v21069_v43, %v1022_v40  ;;  %v1024_v41 = vpop.f32.mrb[26].mxu0 }
 0x18c   : > { %v21110_v63 = vadd.f32 %v10314_v60, %v10313_v39  ;;  %v10316_v3 = vpop.f32.mrb[42].mxu1  ;;  %v1138_v42 = vadd.f32 %v21071_v44, %v1024_v41  ;;  %v1026_v5 = vpop.f32.mrb[27].mxu0 }
 0x18d   : > { %v10317_v9 = vpop.f32.mrb[43].mxu1  ;;  %v1140_v11 = vadd.f32 %v21073_v45, %v1026_v5 }
 0x18e   : > { %v21114_v15 = vadd.f32 %v10317_v9, %v10316_v3  ;;  %v1364_v17 = vpack.c.bf16 %v1138_v42, %v1134_v59 }
 0x18f   : > { %v1365_v21 = vpack.c.bf16 %v1140_v11, %v1136_v62 }
 0x190   : > { %1388 = vst [vmem:[#allocation2 + $0x90] sm:$0xff] %v1364_v17 }
 0x191   : > { %1389 = vst [vmem:[#allocation2 + $0x98] sm:$0xff] %v1365_v21  ;;  %v1030_v34 = vpop.f32.mrb[28].mxu0 }
 0x192   : > { %v10319_v2 = vpop.f32.mrb[44].mxu1  ;;  %v1144_v43 = vadd.f32 %v21075_v46, %v1030_v34  ;;  %v1032_v23 = vpop.f32.mrb[29].mxu0 }
 0x193   : > { %v10320_v4 = vpop.f32.mrb[45].mxu1  ;;  %v1146_v6 = vadd.f32 %v21077_v47, %v1032_v23  ;;  %v1034_v44 = vpop.f32.mrb[30].mxu0 }
 0x194   : > { %v21118_v8 = vadd.f32 %v10320_v4, %v10319_v2  ;;  %v10322_v12 = vpop.f32.mrb[46].mxu1  ;;  %v1148_v45 = vadd.f32 %v21079_v48, %v1034_v44  ;;  %v1036_v14 = vpop.f32.mrb[31].mxu0 }
 0x195   : > { %v10323_v16 = vpop.f32.mrb[47].mxu1  ;;  %v1150_v18 = vadd.f32 %v21081_v49, %v1036_v14 }
 0x196   : > { %v21122_v20 = vadd.f32 %v10323_v16, %v10322_v12  ;;  %v1367_v22 = vpack.c.bf16 %v1148_v45, %v1144_v43 }
 0x197   : > { %v1368_v25 = vpack.c.bf16 %v1150_v18, %v1146_v6 }
 0x198   : > { %1391 = vst [vmem:[#allocation2 + $0xa8] sm:$0xff] %v1367_v22 }
 0x199   : > { %1392 = vst [vmem:[#allocation2 + $0xb0] sm:$0xff] %v1368_v25  ;;  %v1073_v46 = vpop.f32.mrb[0].mxu0 }
 0x19a   : > { %v10791_v26 = vpop.f32.mrb[48].mxu1  ;;  %v1075_v27 = vpop.f32.mrb[1].mxu0 }
 0x19b   : > { %v1292_v47 = vadd.f32 %v10791_v26, %v21087_v58  ;;  %v1283_v28 = vpop.f32.mrb[49].mxu1  ;;  %v1077_v30 = vpop.f32.mrb[2].mxu0 }
 0x19c   : > { %v1284_v29 = vadd.f32 %v21083_v52, %v1283_v28  ;;  %v10792_v48 = vpop.f32.mrb[50].mxu1  ;;  %v1346_v31 = vpack.c.bf16 %v1077_v30, %v1073_v46  ;;  %v1079_v49 = vpop.f32.mrb[3].mxu0 }
 0x19d   : > { %v1295_v32 = vadd.f32 %v10792_v48, %v21089_v61  ;;  %v1286_v35 = vpop.f32.mrb[51].mxu1  ;;  %v1347_v36 = vpack.c.bf16 %v1079_v49, %v1075_v27 }
 0x19e   : > { %v1287_v37 = vadd.f32 %v21085_v55, %v1286_v35  ;;  %1370 = vst [vmem:[#allocation2] sm:$0xff] %v1346_v31 }
 0x19f   : > { %v1351_v50 = vpack.c.bf16 %v1295_v32, %v1292_v47  ;;  %1371 = vst [vmem:[#allocation2 + $0x8] sm:$0xff] %v1347_v36 }
 0x1a0   : > { %v1348_v51 = vpack.c.bf16 %v1287_v37, %v1284_v29 }
 0x1a1   : > { %1375 = vst [vmem:[#allocation2 + $0x28] sm:$0xff] %v1351_v50  ;;  %v1083_v58 = vpop.f32.mrb[4].mxu0 }
 0x1a2   : > { %1372 = vst [vmem:[#allocation2 + $0x10] sm:$0xff] %v1348_v51  ;;  %v10795_v38 = vpop.f32.mrb[52].mxu1  ;;  %v1085_v54 = vpop.f32.mrb[5].mxu0 }
 0x1a3   : > { %v1308_v52 = vadd.f32 %v10795_v38, %v21095_v13  ;;  %v1299_v56 = vpop.f32.mrb[53].mxu1  ;;  %v1087_v61 = vpop.f32.mrb[6].mxu0 }
 0x1a4   : > { %v1300_v57 = vadd.f32 %v21091_v1, %v1299_v56  ;;  %v10796_v39 = vpop.f32.mrb[54].mxu1  ;;  %v1349_v59 = vpack.c.bf16 %v1087_v61, %v1083_v58  ;;  %v1089_v55 = vpop.f32.mrb[7].mxu0 }
 0x1a5   : > { %v1311_v40 = vadd.f32 %v10796_v39, %v21097_v19  ;;  %v1302_v60 = vpop.f32.mrb[55].mxu1  ;;  %v1350_v62 = vpack.c.bf16 %v1089_v55, %v1085_v54 }
 0x1a6   : > { %v1303_v41 = vadd.f32 %v21093_v7, %v1302_v60  ;;  %1373 = vst [vmem:[#allocation2 + $0x18] sm:$0xff] %v1349_v59 }
 0x1a7   : > { %v1357_v3 = vpack.c.bf16 %v1311_v40, %v1308_v52  ;;  %1374 = vst [vmem:[#allocation2 + $0x20] sm:$0xff] %v1350_v62 }
 0x1a8   : > { %v1354_v42 = vpack.c.bf16 %v1303_v41, %v1300_v57 }
 0x1a9   : > { %1381 = vst [vmem:[#allocation2 + $0x58] sm:$0xff] %v1357_v3  ;;  %v1093_v13 = vpop.f32.mrb[8].mxu0 }
 0x1aa   : > { %1378 = vst [vmem:[#allocation2 + $0x40] sm:$0xff] %v1354_v42  ;;  %v10799_v5 = vpop.f32.mrb[56].mxu1  ;;  %v1095_v9 = vpop.f32.mrb[9].mxu0 }
 0x1ab   : > { %v1324_v1 = vadd.f32 %v10799_v5, %v21103_v33  ;;  %v1315_v11 = vpop.f32.mrb[57].mxu1  ;;  %v1097_v19 = vpop.f32.mrb[10].mxu0 }
 0x1ac   : > { %v1316_v17 = vadd.f32 %v21099_v10, %v1315_v11  ;;  %v10800_v21 = vpop.f32.mrb[58].mxu1  ;;  %v1352_v34 = vpack.c.bf16 %v1097_v19, %v1093_v13  ;;  %v1099_v7 = vpop.f32.mrb[11].mxu0 }
 0x1ad   : > { %v1327_v2 = vadd.f32 %v10800_v21, %v21106_v53  ;;  %v1318_v43 = vpop.f32.mrb[59].mxu1  ;;  %v1353_v23 = vpack.c.bf16 %v1099_v7, %v1095_v9 }
 0x1ae   : > { %v1319_v4 = vadd.f32 %v21101_v24, %v1318_v43  ;;  %1376 = vst [vmem:[#allocation2 + $0x30] sm:$0xff] %v1352_v34 }
 0x1af   : > { %v1363_v6 = vpack.c.bf16 %v1327_v2, %v1324_v1  ;;  %1377 = vst [vmem:[#allocation2 + $0x38] sm:$0xff] %v1353_v23 }
 0x1b0   : > { %v1360_v44 = vpack.c.bf16 %v1319_v4, %v1316_v17 }
 0x1b1   : > { %1387 = vst [vmem:[#allocation2 + $0x88] sm:$0xff] %v1363_v6  ;;  %v1103_v33 = vpop.f32.mrb[12].mxu0 }
 0x1b2   : > { %1384 = vst [vmem:[#allocation2 + $0x70] sm:$0xff] %v1360_v44  ;;  %v10803_v12 = vpop.f32.mrb[60].mxu1  ;;  %v1105_v45 = vpop.f32.mrb[13].mxu0 }
 0x1b3   : > { %v1340_v10 = vadd.f32 %v10803_v12, %v21118_v8  ;;  %v1331_v14 = vpop.f32.mrb[61].mxu1  ;;  %v1107_v16 = vpop.f32.mrb[14].mxu0 }
 0x1b4   : > { %v1332_v53 = vadd.f32 %v21110_v63, %v1331_v14  ;;  %v10804_v18 = vpop.f32.mrb[62].mxu1  ;;  %v1355_v22 = vpack.c.bf16 %v1107_v16, %v1103_v33  ;;  %v1109_v25 = vpop.f32.mrb[15].mxu0  ;;  %8879 = sbr.rel (%p9923_p8) target bundleno = 944 (0x3b0), region = 143 }
 0x1b5   : > { %v1343_v24 = vadd.f32 %v10804_v18, %v21122_v20  ;;  %v1334_v46 = vpop.f32.mrb[63].mxu1  ;;  %v1356_v26 = vpack.c.bf16 %v1109_v25, %v1105_v45 }
 0x1b6   : > { %v1335_v47 = vadd.f32 %v21114_v15, %v1334_v46  ;;  %1379 = vst [vmem:[#allocation2 + $0x48] sm:$0xff] %v1355_v22 }
 0x1b7   : > { %v1369_v27 = vpack.c.bf16 %v1343_v24, %v1340_v10  ;;  %1380 = vst [vmem:[#allocation2 + $0x50] sm:$0xff] %v1356_v26 }
 0x1b8   : > { %v1366_v28 = vpack.c.bf16 %v1335_v47, %v1332_v53 }
 0x1b9   : > { %1393 = vst [vmem:[#allocation2 + $0xb8] sm:$0xff] %v1369_v27 }
 0x1ba   : > { %1390 = vst [vmem:[#allocation2 + $0xa0] sm:$0xff] %v1366_v28 }
 0x1bb LB: >> { %v15643_v63 = vld [vmem:[%s28920_s2 + $0x4] ss:$12 sps:$4 sm:$0xff]   ;;  %v15645_v15 = vld [vmem:[%s28920_s2 + $0xc8] ss:$12 sps:$4 sm:$0xff]   ;;  %v15646_v8 = vld [vmem:[%s28920_s2] ss:$12 sps:$4 sm:$0xff]   ;;  %s18616_s30 = sphi %s21146_s30, %s1397_s30  }
 0x1bc   : >> { %2046 = vmatprep.subr.bf16.mxu0 %v15643_v63  ;;  %10341 = vmatprep.subr.bf16.mxu1 %v15645_v15  ;;  %v15647_v20 = vld [vmem:[%s28920_s2 + $0x8] ss:$12 sps:$4 sm:$0xff]   ;;  %v15650_v30 = vld [vmem:[%s28920_s2 + $0xe0] ss:$12 sps:$4 sm:$0xff]   ;;  %v15651_v48 = vld [vmem:[%s28920_s2 + $0x18] ss:$12 sps:$4 sm:$0xff]  }
 0x1bd   : >> { %2047 = vmatpush1.bf16.msra.mxu0 %v15646_v8  ;;  %v15648_v29 = vld [vmem:[%s28920_s2 + $0x1c] ss:$12 sps:$4 sm:$0xff]   ;;  %10342 = vmatpush3.bf16.msra.mxu1 %v15647_v20  ;;  %v15652_v31 = vld [vmem:[%s28920_s2 + $0x20] ss:$12 sps:$4 sm:$0xff]   ;;  %v15655_v49 = vld [vmem:[%s28920_s2 + $0xf8] ss:$12 sps:$4 sm:$0xff]  }
 0x1be   : >> { %2048 = vmatprep.subr.bf16.mxu0 %v15648_v29  ;;  %10343 = vmatprep.subr.bf16.mxu1 %v15650_v30  ;;  %v15653_v32 = vld [vmem:[%s28920_s2 + $0x34] ss:$12 sps:$4 sm:$0xff]   ;;  %v15656_v35 = vld [vmem:[%s28920_s2 + $0x30] ss:$12 sps:$4 sm:$0xff]   ;;  %v15657_v36 = vld [vmem:[%s28920_s2 + $0x38] ss:$12 sps:$4 sm:$0xff]  }
 0x1bf   : >> { %v15658_v37 = vld [vmem:[%s28920_s2 + $0x4c] ss:$12 sps:$4 sm:$0xff]   ;;  %v15660_v50 = vld [vmem:[%s28920_s2 + $0x110] ss:$12 sps:$4 sm:$0xff]   ;;  %v15661_v51 = vld [vmem:[%s28920_s2 + $0x48] ss:$12 sps:$4 sm:$0xff]  }
 0x1c0   : >> { %v15662_v58 = vld [vmem:[%s28920_s2 + $0x50] ss:$12 sps:$4 sm:$0xff]   ;;  %s28933_s19 = sshll.u32 %s18616_s30, 7  ;;  %v15665_v52 = vld [vmem:[%s28920_s2 + $0x128] ss:$12 sps:$4 sm:$0xff]   ;;  %s29070_s8 = sshll.u32 %s18616_s30, 7 }
 0x1c1   : >> { %2049 = vmatpush1.bf16.msra.mxu0 %v15651_v48  ;;  %10344 = vmatpush3.bf16.msra.mxu1 %v15652_v31  ;;  %v15663_v38 = vld [vmem:[%s28920_s2 + $0x64] ss:$12 sps:$4 sm:$0xff]   ;;  %v15666_v54 = vld [vmem:[%s28920_s2 + $0x60] ss:$12 sps:$4 sm:$0xff]   ;;  %v15667_v56 = vld [vmem:[%s28920_s2 + $0x68] ss:$12 sps:$4 sm:$0xff]  }
 0x1c2   : >> { %2050 = vmatprep.subr.bf16.mxu0 %v15653_v32  ;;  %10345 = vmatprep.subr.bf16.mxu1 %v15655_v49  ;;  %v15668_v57 = vld [vmem:[%s28920_s2 + $0x7c] ss:$12 sps:$4 sm:$0xff]   ;;  %s1401_s5 = sshra.s32 %s28933_s19, 3  ;;  %v15670_v61 = vld [vmem:[%s28920_s2 + $0x140] ss:$12 sps:$4 sm:$0xff]   ;;  %s21781_s19 = sshra.s32 %s29070_s8, 4 }
 0x1c3   : >> { %v15671_v39 = vld [vmem:[%s28920_s2 + $0x78] ss:$12 sps:$4 sm:$0xff]   ;;  %v15672_v59 = vld [vmem:[%s28920_s2 + $0x80] ss:$12 sps:$4 sm:$0xff]   ;;  %s10246_s15 = smul.u32 12, %s1401_s5  ;;  %s1397_s30 = sadd.s32 1, %s18616_s30  }
 0x1c4   : >> { %v15673_v40 = vld [vmem:[%s28920_s2 + $0x94] ss:$12 sps:$4 sm:$0xff]   ;;  %v15675_v55 = vld [vmem:[%s28920_s2 + $0x158] ss:$12 sps:$4 sm:$0xff]   ;;  %v15676_v60 = vld [vmem:[%s28920_s2 + $0x90] ss:$12 sps:$4 sm:$0xff]   ;;  %p1396_p10 = scmp.ge.s32.totalorder %s1397_s30, %s20718_s29 }
 0x1c5   : >> { %2051 = vmatpush1.bf16.msra.mxu0 %v15656_v35  ;;  %10346 = vmatpush3.bf16.msra.mxu1 %v15657_v36  ;;  %s21236_s14 = scalar_lea.vmem %s20830_s18, %s10246_s15  ;;  %v15677_v62 = vld [vmem:[%s28920_s2 + $0x98] ss:$12 sps:$4 sm:$0xff]   ;;  %v15680_v3 = vld [vmem:[%s28920_s2 + $0x170] ss:$12 sps:$4 sm:$0xff]   ;;  %v15681_v13 = vld [vmem:[%s28920_s2 + $0xa8] ss:$12 sps:$4 sm:$0xff]  }
 0x1c6   : >> { %2052 = vmatprep.subr.bf16.mxu0 %v15658_v37  ;;  %10347 = vmatprep.subr.bf16.mxu1 %v15660_v50  ;;  %v15678_v41 = vld [vmem:[%s28920_s2 + $0xac] ss:$12 sps:$4 sm:$0xff]   ;;  %v21248_v42 = vld [vmem:[%s21236_s14 + $0x4] ss:$12 sps:$4 sm:$0xff]   ;;  %v15689_v9 = vld [vmem:[%s28920_s2 + $0x188] ss:$12 sps:$4 sm:$0xff]  }
 0x1c7   : >> { %v15682_v5 = vld [vmem:[%s28920_s2 + $0xb0] ss:$12 sps:$4 sm:$0xff]   ;;  %2304 = vmatprep.mubr.bf16.mxu1 %v21248_v42  ;;  %v21264_v11 = vld [vmem:[%s21236_s14] ss:$12 sps:$4 sm:$0xff]   ;;  %2078 = vmatprep.mubr.bf16.mxu0 %v21248_v42  ;;  %v15692_v2 = vld [vmem:[%s28920_s2 + $0xd8] ss:$12 sps:$4 sm:$0xff]  }
 0x1c8   : >> { %v15685_v1 = vld [vmem:[%s28920_s2 + $0xc4] ss:$12 sps:$4 sm:$0xff]   ;;  %v15688_v17 = vld [vmem:[%s28920_s2 + $0xc0] ss:$12 sps:$4 sm:$0xff]   ;;  %v15690_v19 = vld [vmem:[%s28920_s2 + $0xdc] ss:$12 sps:$4 sm:$0xff]  }
 0x1c9   : >> { %2053 = vmatpush1.bf16.msra.mxu0 %v15661_v51  ;;  %10348 = vmatpush3.bf16.msra.mxu1 %v15662_v58  ;;  %v21274_v21 = vld [vmem:[%s21236_s14 + $0x1c] ss:$12 sps:$4 sm:$0xff]   ;;  %v15699_v34 = vld [vmem:[%s28920_s2 + $0x1a0] ss:$12 sps:$4 sm:$0xff]   ;;  %v21288_v43 = vld [vmem:[%s21236_s14 + $0x18] ss:$12 sps:$4 sm:$0xff]  }
 0x1ca   : >> { %2054 = vmatprep.subr.bf16.mxu0 %v15663_v38  ;;  %10349 = vmatprep.subr.bf16.mxu1 %v15665_v52  ;;  %v15695_v7 = vld [vmem:[%s28920_s2 + $0xf4] ss:$12 sps:$4 sm:$0xff]   ;;  %v15698_v23 = vld [vmem:[%s28920_s2 + $0xf0] ss:$12 sps:$4 sm:$0xff]   ;;  %v15709_v4 = vld [vmem:[%s28920_s2 + $0x1b8] ss:$12 sps:$4 sm:$0xff]  }
 0x1cb   : >> { %v15700_v6 = vld [vmem:[%s28920_s2 + $0x10c] ss:$12 sps:$4 sm:$0xff]   ;;  %v21300_v44 = vld [vmem:[%s21236_s14 + $0x34] ss:$12 sps:$4 sm:$0xff]   ;;  %v15705_v12 = vld [vmem:[%s28920_s2 + $0x124] ss:$12 sps:$4 sm:$0xff]  }
 0x1cc   : >> { %v15702_v33 = vld [vmem:[%s28920_s2 + $0x108] ss:$12 sps:$4 sm:$0xff]   ;;  %v15719_v10 = vld [vmem:[%s28920_s2 + $0x1d0] ss:$12 sps:$4 sm:$0xff]   ;;  %v15708_v14 = vld [vmem:[%s28920_s2 + $0x120] ss:$12 sps:$4 sm:$0xff]  }
 0x1cd   : >> { %2055 = vmatpush1.bf16.msra.mxu0 %v15666_v54  ;;  %10350 = vmatpush3.bf16.msra.mxu1 %v15667_v56  ;;  %v21314_v45 = vld [vmem:[%s21236_s14 + $0x30] ss:$12 sps:$4 sm:$0xff]   ;;  %v21323_v16 = vld [vmem:[%s21236_s14 + $0x4c] ss:$12 sps:$4 sm:$0xff]   ;;  %v15729_v18 = vld [vmem:[%s28920_s2 + $0x1e8] ss:$12 sps:$4 sm:$0xff]  }
 0x1ce   : >> { %2056 = vmatprep.subr.bf16.mxu0 %v15668_v57  ;;  %10351 = vmatprep.subr.bf16.mxu1 %v15670_v61  ;;  %v15710_v53 = vld [vmem:[%s28920_s2 + $0x13c] ss:$12 sps:$4 sm:$0xff]   ;;  %v15712_v22 = vld [vmem:[%s28920_s2 + $0x138] ss:$12 sps:$4 sm:$0xff]   ;;  %v15715_v24 = vld [vmem:[%s28920_s2 + $0x154] ss:$12 sps:$4 sm:$0xff]  }
 0x1cf   : >> { %v15736_v25 = vld [vmem:[%s28920_s2 + $0x200] ss:$12 sps:$4 sm:$0xff]   ;;  %v21340_v46 = vld [vmem:[%s21236_s14 + $0x48] ss:$12 sps:$4 sm:$0xff]   ;;  %v15718_v26 = vld [vmem:[%s28920_s2 + $0x150] ss:$12 sps:$4 sm:$0xff]  }
 0x1d0   : >> { %v15720_v47 = vld [vmem:[%s28920_s2 + $0x16c] ss:$12 sps:$4 sm:$0xff]   ;;  %v21349_v27 = vld [vmem:[%s21236_s14 + $0x64] ss:$12 sps:$4 sm:$0xff]   ;;  %v15722_v63 = vld [vmem:[%s28920_s2 + $0x168] ss:$12 sps:$4 sm:$0xff]  }
 0x1d1   : >> { %2057 = vmatpush1.bf16.msra.mxu0 %v15671_v39  ;;  %10352 = vmatpush3.bf16.msra.mxu1 %v15672_v59  ;;  %v15743_v28 = vld [vmem:[%s28920_s2 + $0x218] ss:$12 sps:$4 sm:$0xff]   ;;  %v15750_v8 = vld [vmem:[%s28920_s2 + $0x230] ss:$12 sps:$4 sm:$0xff]   ;;  %v15725_v20 = vld [vmem:[%s28920_s2 + $0x180] ss:$12 sps:$4 sm:$0xff]  }
 0x1d2   : >> { %2058 = vmatprep.subr.bf16.mxu0 %v15673_v40  ;;  %10353 = vmatprep.subr.bf16.mxu1 %v15675_v55  ;;  %v15727_v15 = vld [vmem:[%s28920_s2 + $0x184] ss:$12 sps:$4 sm:$0xff]   ;;  %v21369_v29 = vld [vmem:[%s21236_s14 + $0x60] ss:$12 sps:$4 sm:$0xff]   ;;  %v21372_v30 = vld [vmem:[%s21236_s14 + $0x7c] ss:$12 sps:$4 sm:$0xff]  }
 0x1d3   : >> { %v15734_v48 = vld [vmem:[%s28920_s2 + $0x19c] ss:$12 sps:$4 sm:$0xff]   ;;  %v15754_v31 = vld [vmem:[%s28921_s3 + $0x4] ss:$12 sps:$4 sm:$0xff]   ;;  %v15741_v49 = vld [vmem:[%s28920_s2 + $0x1b4] ss:$12 sps:$4 sm:$0xff]  }
 0x1d4   : >> { %v15732_v32 = vld [vmem:[%s28920_s2 + $0x198] ss:$12 sps:$4 sm:$0xff]   ;;  %v21394_v36 = vld [vmem:[%s21236_s14 + $0x94] ss:$12 sps:$4 sm:$0xff]   ;;  %v15739_v37 = vld [vmem:[%s28920_s2 + $0x1b0] ss:$12 sps:$4 sm:$0xff]  }
 0x1d5   : >> { %2059 = vmatpush1.bf16.msra.mxu0 %v15676_v60  ;;  %10354 = vmatpush3.bf16.msra.mxu1 %v15677_v62  ;;  %v21391_v35 = vld [vmem:[%s21236_s14 + $0x78] ss:$12 sps:$4 sm:$0xff]   ;;  %v15746_v51 = vld [vmem:[%s28920_s2 + $0x1c8] ss:$12 sps:$4 sm:$0xff]   ;;  %v21413_v38 = vld [vmem:[%s21236_s14 + $0x90] ss:$12 sps:$4 sm:$0xff]  }
 0x1d6   : >> { %2060 = vmatprep.subr.bf16.mxu0 %v15678_v41  ;;  %10355 = vmatprep.subr.bf16.mxu1 %v15680_v3  ;;  %v15748_v50 = vld [vmem:[%s28920_s2 + $0x1cc] ss:$12 sps:$4 sm:$0xff]   ;;  %v15757_v58 = vld [vmem:[%s28920_s2 + $0x1e4] ss:$12 sps:$4 sm:$0xff]   ;;  %v15768_v56 = vld [vmem:[%s28920_s2 + $0x1fc] ss:$12 sps:$4 sm:$0xff]  }
 0x1d7   : >> { %v21416_v52 = vld [vmem:[%s21236_s14 + $0xac] ss:$12 sps:$4 sm:$0xff]   ;;  %v15779_v61 = vld [vmem:[%s28920_s2 + $0x214] ss:$12 sps:$4 sm:$0xff]   ;;  %v15777_v40 = vld [vmem:[%s28920_s2 + $0x210] ss:$12 sps:$4 sm:$0xff]  }
 0x1d8   : >> { %v15755_v54 = vld [vmem:[%s28920_s2 + $0x1e0] ss:$12 sps:$4 sm:$0xff]   ;;  %v15766_v57 = vld [vmem:[%s28920_s2 + $0x1f8] ss:$12 sps:$4 sm:$0xff]   ;;  %v21435_v39 = vld [vmem:[%s21236_s14 + $0xa8] ss:$12 sps:$4 sm:$0xff]  }
 0x1d9   : >> { %2061 = vmatpush1.bf16.msra.mxu0 %v15681_v13  ;;  %10356 = vmatpush3.bf16.msra.mxu1 %v15682_v5  ;;  %v21438_v59 = vld [vmem:[%s21236_s14 + $0x8] ss:$12 sps:$4 sm:$0xff]   ;;  %v15790_v55 = vld [vmem:[%s28920_s2 + $0x22c] ss:$12 sps:$4 sm:$0xff]   ;;  %s10247_s10 = smul.u32 24, %s21781_s19 }
 0x1da   : >> { %2062 = vmatprep.subr.bf16.mxu0 %v15685_v1  ;;  %10805 = vmatprep.subr.bf16.mxu1 %v15689_v9  ;;  %v15788_v60 = vld [vmem:[%s28920_s2 + $0x228] ss:$12 sps:$4 sm:$0xff]   ;;  %v15752_v41 = vld [vmem:[%s28921_s3] ss:$12 sps:$4 sm:$0xff]   ;;  %v21463_v13 = vld [vmem:[%s21236_s14 + $0x38] ss:$12 sps:$4 sm:$0xff]  }
 0x1db   : >> { %v15798_v62 = vld [vmem:[%s28921_s3 + $0xc8] ss:$12 sps:$4 sm:$0xff]   ;;  %v21460_v3 = vld [vmem:[%s21236_s14 + $0x20] ss:$12 sps:$4 sm:$0xff]   ;;  %v15759_v1 = vld [vmem:[%s28921_s3 + $0x18] ss:$12 sps:$4 sm:$0xff]  }
 0x1dc   : >> { %2305 = vmatmul.mubr.bf16.vlgmr.msra.gmra.mrb[0].mxu1 %v21264_v11  ;;  %v15761_v5 = vld [vmem:[%s28921_s3 + $0x1c] ss:$12 sps:$4 sm:$0xff]   ;;  %s21788_s15 = scalar_lea.vmem [#allocation3], %s10247_s10  ;;  %s21837_s20 = scalar_lea.vmem [#allocation4], %s10247_s10 }
 0x1dd   : >> { %2063 = vmatpush1.bf16.msra.mxu0 %v15688_v17  ;;  %10806 = vmatpush3.bf16.msra.mxu1 %v15689_v9  ;;  %v15765_v9 = vld [vmem:[%s28921_s3 + $0x34] ss:$12 sps:$4 sm:$0xff]   ;;  %v15763_v17 = vld [vmem:[%s28921_s3 + $0x30] ss:$12 sps:$4 sm:$0xff]  }
 0x1de   : >> { %2064 = vmatprep.subr.bf16.mxu0 %v15690_v19  ;;  %2312 = vmatprep.mubr.bf16.mxu1 %v21274_v21  ;;  %v21482_v19 = vld [vmem:[%s21236_s14 + $0x50] ss:$12 sps:$4 sm:$0xff]  }
 0x1df   : >> { %10807 = vmatprep.subr.bf16.mxu1 %v15699_v34 }
 0x1e1   : >> { %2065 = vmatpush1.bf16.msra.mxu0 %v15692_v2  ;;  %10808 = vmatpush3.bf16.msra.mxu1 %v15699_v34  ;;  %v21485_v34 = vld [vmem:[%s21236_s14 + $0x68] ss:$12 sps:$4 sm:$0xff]   ;;  %v15772_v2 = vld [vmem:[%s28921_s3 + $0x4c] ss:$12 sps:$4 sm:$0xff]  }
 0x1e2   : >> { %2066 = vmatprep.subr.bf16.mxu0 %v15695_v7  ;;  %10809 = vmatprep.subr.bf16.mxu1 %v15709_v4  ;;  %v15770_v7 = vld [vmem:[%s28921_s3 + $0x48] ss:$12 sps:$4 sm:$0xff]  }
 0x1e4   : >> { %2313 = vmatmul.mubr.bf16.gmra.mrb[4].mxu1 %v21288_v43 }
 0x1e5   : >> { %2067 = vmatpush1.bf16.msra.mxu0 %v15698_v23  ;;  %2320 = vmatprep.mubr.bf16.mxu1 %v21300_v44  ;;  %v15776_v23 = vld [vmem:[%s28921_s3 + $0x64] ss:$12 sps:$4 sm:$0xff]  }
 0x1e6   : >> { %2068 = vmatprep.subr.bf16.mxu0 %v15700_v6  ;;  %10810 = vmatpush3.bf16.msra.mxu1 %v15709_v4  ;;  %v21501_v4 = vld [vmem:[%s21236_s14 + $0x80] ss:$12 sps:$4 sm:$0xff]  }
 0x1e7   : >> { %10811 = vmatprep.subr.bf16.mxu1 %v15719_v10  ;;  %v15774_v6 = vld [vmem:[%s28921_s3 + $0x60] ss:$12 sps:$4 sm:$0xff]  }
 0x1e9   : >> { %2069 = vmatpush1.bf16.msra.mxu0 %v15702_v33  ;;  %v21507_v33 = vld [vmem:[%s21236_s14 + $0x98] ss:$12 sps:$4 sm:$0xff]  }
 0x1ea   : >> { %2070 = vmatprep.subr.bf16.mxu0 %v15705_v12  ;;  %10812 = vmatpush3.bf16.msra.mxu1 %v15719_v10  ;;  %v15783_v12 = vld [vmem:[%s28921_s3 + $0x7c] ss:$12 sps:$4 sm:$0xff]   ;;  %v15781_v10 = vld [vmem:[%s28921_s3 + $0x78] ss:$12 sps:$4 sm:$0xff]  }
 0x1eb   : >> { %10813 = vmatprep.subr.bf16.mxu1 %v15729_v18 }
 0x1ec   : >> { %2321 = vmatmul.mubr.bf16.gmra.mrb[8].mxu1 %v21314_v45 }
 0x1ed   : >> { %2071 = vmatpush1.bf16.msra.mxu0 %v15708_v14  ;;  %2328 = vmatprep.mubr.bf16.mxu1 %v21323_v16  ;;  %v15787_v14 = vld [vmem:[%s28921_s3 + $0x94] ss:$12 sps:$4 sm:$0xff]  }
 0x1ee   : >> { %2072 = vmatprep.subr.bf16.mxu0 %v15710_v53  ;;  %10814 = vmatpush3.bf16.msra.mxu1 %v15729_v18  ;;  %v21523_v53 = vld [vmem:[%s21236_s14 + $0xb0] ss:$12 sps:$4 sm:$0xff]  }
 0x1ef   : >> { %10815 = vmatprep.subr.bf16.mxu1 %v15736_v25  ;;  %v15785_v18 = vld [vmem:[%s28921_s3 + $0x90] ss:$12 sps:$4 sm:$0xff]  }
 0x1f1   : >> { %2073 = vmatpush1.bf16.msra.mxu0 %v15712_v22  ;;  %v15794_v22 = vld [vmem:[%s28921_s3 + $0xac] ss:$12 sps:$4 sm:$0xff]  }
 0x1f2   : >> { %2074 = vmatprep.subr.bf16.mxu0 %v15715_v24  ;;  %10816 = vmatpush3.bf16.msra.mxu1 %v15736_v25  ;;  %v20564_v24 = vmov 0   ;;  %v15792_v25 = vld [vmem:[%s28921_s3 + $0xa8] ss:$12 sps:$4 sm:$0xff]  }
 0x1f3   : >> { %10817 = vmatprep.subr.bf16.mxu1 %v15743_v28 }
 0x1f4   : >> { %2329 = vmatmul.mubr.bf16.gmra.mrb[12].mxu1 %v21340_v46 }
 0x1f5   : >> { %2075 = vmatpush1.bf16.msra.mxu0 %v15718_v26  ;;  %2336 = vmatprep.mubr.bf16.mxu1 %v21349_v27  ;;  %v15797_v26 = vld [vmem:[%s28921_s3 + $0xc4] ss:$12 sps:$4 sm:$0xff]  }
 0x1f6   : >> { %2076 = vmatprep.subr.bf16.mxu0 %v15720_v47  ;;  %10818 = vmatpush3.bf16.msra.mxu1 %v15743_v28  ;;  %v15795_v47 = vld [vmem:[%s28921_s3 + $0xc0] ss:$12 sps:$4 sm:$0xff]   ;;  %v15799_v28 = vld [vmem:[%s28921_s3 + $0x8] ss:$12 sps:$4 sm:$0xff]  }
 0x1f7   : >> { %10819 = vmatprep.subr.bf16.mxu1 %v15750_v8 }
 0x1f9   : >> { %2077 = vmatpush1.bf16.msra.mxu0 %v15722_v63  ;;  %v15806_v63 = vld [vmem:[%s28921_s3 + $0xe0] ss:$12 sps:$4 sm:$0xff]  }
 0x1fa   : >> { %2159 = vmatprep.subr.bf16.mxu0 %v15727_v15  ;;  %10820 = vmatpush3.bf16.msra.mxu1 %v15750_v8  ;;  %v15802_v15 = vld [vmem:[%s28921_s3 + $0xdc] ss:$12 sps:$4 sm:$0xff]   ;;  %v15807_v8 = vld [vmem:[%s28921_s3 + $0x20] ss:$12 sps:$4 sm:$0xff]  }
 0x1fb   : >> { %2999 = vmatprep.subr.bf16.mxu1 %v15754_v31  ;;  %v15805_v31 = vld [vmem:[%s28921_s3 + $0xf4] ss:$12 sps:$4 sm:$0xff]  }
 0x1fc   : >> { %2079 = vmatmul.mubr.bf16.vlgmr.msra.gmra.mrb[0].mxu0 %v21264_v11  ;;  %2337 = vmatmul.mubr.bf16.gmra.mrb[16].mxu1 %v21369_v29 }
 0x1fd   : >> { %2160 = vmatpush1.bf16.msra.mxu0 %v15725_v20  ;;  %2088 = vmatprep.mubr.bf16.mxu0 %v21274_v21  ;;  %v15800_v20 = vld [vmem:[%s28921_s3 + $0xd8] ss:$12 sps:$4 sm:$0xff]  }
 0x1fe   : >> { %2344 = vmatprep.mubr.bf16.mxu1 %v21372_v30  ;;  %2161 = vmatprep.subr.bf16.mxu0 %v15734_v48  ;;  %v15814_v48 = vld [vmem:[%s28921_s3 + $0xf8] ss:$12 sps:$4 sm:$0xff]  }
 0x201   : >> { %2162 = vmatpush1.bf16.msra.mxu0 %v15732_v32  ;;  %v15815_v32 = vld [vmem:[%s28921_s3 + $0x38] ss:$12 sps:$4 sm:$0xff]  }
 0x202   : >> { %2163 = vmatprep.subr.bf16.mxu0 %v15741_v49  ;;  %v15803_v49 = vld [vmem:[%s28921_s3 + $0xf0] ss:$12 sps:$4 sm:$0xff]  }
 0x204   : >> { %2089 = vmatmul.mubr.bf16.gmra.mrb[4].mxu0 %v21288_v43  ;;  %2345 = vmatmul.mubr.bf16.gmra.mrb[20].mxu1 %v21391_v35 }
 0x205   : >> { %2098 = vmatprep.mubr.bf16.mxu0 %v21300_v44  ;;  %2352 = vmatprep.mubr.bf16.mxu1 %v21394_v36 }
 0x206   : >> { %2164 = vmatpush1.bf16.msra.mxu0 %v15739_v37  ;;  %v15822_v37 = vld [vmem:[%s28921_s3 + $0x110] ss:$12 sps:$4 sm:$0xff]  }
 0x207   : >> { %2165 = vmatprep.subr.bf16.mxu0 %v15748_v50  ;;  %v15810_v50 = vld [vmem:[%s28921_s3 + $0x10c] ss:$12 sps:$4 sm:$0xff]  }
 0x20a   : >> { %2166 = vmatpush1.bf16.msra.mxu0 %v15746_v51  ;;  %v15823_v51 = vld [vmem:[%s28921_s3 + $0x50] ss:$12 sps:$4 sm:$0xff]  }
 0x20b   : >> { %2167 = vmatprep.subr.bf16.mxu0 %v15757_v58  ;;  %v15808_v58 = vld [vmem:[%s28921_s3 + $0x108] ss:$12 sps:$4 sm:$0xff]  }
 0x20c   : >> { %2099 = vmatmul.mubr.bf16.gmra.mrb[8].mxu0 %v21314_v45  ;;  %2353 = vmatmul.mubr.bf16.gmra.mrb[24].mxu1 %v21413_v38 }
 0x20d   : >> { %2108 = vmatprep.mubr.bf16.mxu0 %v21323_v16  ;;  %2360 = vmatprep.mubr.bf16.mxu1 %v21416_v52 }
 0x20e   : >> { %2168 = vmatpush1.bf16.msra.mxu0 %v15755_v54  ;;  %v15827_v54 = vld [vmem:[%s28921_s3 + $0x128] ss:$12 sps:$4 sm:$0xff]  }
 0x20f   : >> { %2169 = vmatprep.subr.bf16.mxu0 %v15768_v56  ;;  %v15813_v56 = vld [vmem:[%s28921_s3 + $0x124] ss:$12 sps:$4 sm:$0xff]  }
 0x212   : >> { %2170 = vmatpush1.bf16.msra.mxu0 %v15766_v57  ;;  %v15828_v57 = vld [vmem:[%s28921_s3 + $0x68] ss:$12 sps:$4 sm:$0xff]  }
 0x213   : >> { %2171 = vmatprep.subr.bf16.mxu0 %v15779_v61  ;;  %v15811_v61 = vld [vmem:[%s28921_s3 + $0x120] ss:$12 sps:$4 sm:$0xff]  }
 0x214   : >> { %2109 = vmatmul.mubr.bf16.gmra.mrb[12].mxu0 %v21340_v46  ;;  %2361 = vmatmul.mubr.bf16.gmra.mrb[28].mxu1 %v21435_v39 }
 0x215   : >> { %2118 = vmatprep.mubr.bf16.mxu0 %v21349_v27  ;;  %10821 = vmatprep.mubr.bf16.mxu1 %v21438_v59 }
 0x216   : >> { %2172 = vmatpush1.bf16.msra.mxu0 %v15777_v40  ;;  %v15832_v40 = vld [vmem:[%s28921_s3 + $0x140] ss:$12 sps:$4 sm:$0xff]  }
 0x217   : >> { %2173 = vmatprep.subr.bf16.mxu0 %v15790_v55  ;;  %v15818_v55 = vld [vmem:[%s28921_s3 + $0x13c] ss:$12 sps:$4 sm:$0xff]  }
 0x21a   : >> { %2174 = vmatpush1.bf16.msra.mxu0 %v15788_v60  ;;  %v15833_v60 = vld [vmem:[%s28921_s3 + $0x80] ss:$12 sps:$4 sm:$0xff]  }
 0x21b   : >> { %10421 = vmatprep.subr.bf16.mxu0 %v15798_v62  ;;  %v15816_v62 = vld [vmem:[%s28921_s3 + $0x138] ss:$12 sps:$4 sm:$0xff]  }
 0x21c   : >> { %2119 = vmatmul.mubr.bf16.gmra.mrb[16].mxu0 %v21369_v29  ;;  %10822 = vmatmul.mubr.bf16.vlgmr.msra.gmra.mrb[32].mxu1 %v21460_v3 }
 0x21d   : >> { %2128 = vmatprep.mubr.bf16.mxu0 %v21372_v30  ;;  %3000 = vmatpush1.bf16.msra.mxu1 %v15752_v41  ;;  %v15837_v41 = vld [vmem:[%s28921_s3 + $0x158] ss:$12 sps:$4 sm:$0xff]  }
 0x21e   : >> { %10825 = vmatprep.mubr.bf16.mxu1 %v21463_v13  ;;  %3001 = vmatprep.subr.bf16.mxu1 %v15761_v5  ;;  %v15821_v5 = vld [vmem:[%s28921_s3 + $0x154] ss:$12 sps:$4 sm:$0xff]  }
 0x221   : >> { %3002 = vmatpush1.bf16.msra.mxu1 %v15759_v1  ;;  %v15838_v1 = vld [vmem:[%s28921_s3 + $0x98] ss:$12 sps:$4 sm:$0xff]  }
 0x222   : >> { %3003 = vmatprep.subr.bf16.mxu1 %v15765_v9  ;;  %v15819_v9 = vld [vmem:[%s28921_s3 + $0x150] ss:$12 sps:$4 sm:$0xff]  }
 0x224   : >> { %2129 = vmatmul.mubr.bf16.gmra.mrb[20].mxu0 %v21391_v35  ;;  %10826 = vmatmul.mubr.bf16.gmra.mrb[36].mxu1 %v21482_v19 }
 0x225   : >> { %2138 = vmatprep.mubr.bf16.mxu0 %v21394_v36  ;;  %3004 = vmatpush1.bf16.msra.mxu1 %v15763_v17  ;;  %v15842_v17 = vld [vmem:[%s28921_s3 + $0x170] ss:$12 sps:$4 sm:$0xff]  }
 0x226   : >> { %10829 = vmatprep.mubr.bf16.mxu1 %v21485_v34  ;;  %3005 = vmatprep.subr.bf16.mxu1 %v15772_v2  ;;  %v15826_v2 = vld [vmem:[%s28921_s3 + $0x16c] ss:$12 sps:$4 sm:$0xff]  }
 0x229   : >> { %3006 = vmatpush1.bf16.msra.mxu1 %v15770_v7  ;;  %v15843_v7 = vld [vmem:[%s28921_s3 + $0xb0] ss:$12 sps:$4 sm:$0xff]  }
 0x22a   : >> { %3007 = vmatprep.subr.bf16.mxu1 %v15776_v23  ;;  %v15824_v23 = vld [vmem:[%s28921_s3 + $0x168] ss:$12 sps:$4 sm:$0xff]  }
 0x22c   : >> { %2139 = vmatmul.mubr.bf16.gmra.mrb[24].mxu0 %v21413_v38  ;;  %10830 = vmatmul.mubr.bf16.gmra.mrb[40].mxu1 %v21501_v4 }
 0x22d   : >> { %2148 = vmatprep.mubr.bf16.mxu0 %v21416_v52  ;;  %3008 = vmatpush1.bf16.msra.mxu1 %v15774_v6  ;;  %v15847_v6 = vld [vmem:[%s28921_s3 + $0x188] ss:$12 sps:$4 sm:$0xff]  }
 0x22e   : >> { %10833 = vmatprep.mubr.bf16.mxu1 %v21507_v33  ;;  %3009 = vmatprep.subr.bf16.mxu1 %v15783_v12  ;;  %v15831_v12 = vld [vmem:[%s28921_s3 + $0x184] ss:$12 sps:$4 sm:$0xff]  }
 0x231   : >> { %3010 = vmatpush1.bf16.msra.mxu1 %v15781_v10  ;;  %v15829_v10 = vld [vmem:[%s28921_s3 + $0x180] ss:$12 sps:$4 sm:$0xff]  }
 0x232   : >> { %3011 = vmatprep.subr.bf16.mxu1 %v15787_v14  ;;  %v15836_v14 = vld [vmem:[%s28921_s3 + $0x19c] ss:$12 sps:$4 sm:$0xff]  }
 0x234   : >> { %2149 = vmatmul.mubr.bf16.gmra.mrb[28].mxu0 %v21435_v39  ;;  %10834 = vmatmul.mubr.bf16.gmra.mrb[44].mxu1 %v21523_v53 }
 0x235   : >> { %2191 = vmatprep.mubr.bf16.mxu0 %v20564_v24  ;;  %3012 = vmatpush1.bf16.msra.mxu1 %v15785_v18  ;;  %v15834_v18 = vld [vmem:[%s28921_s3 + $0x198] ss:$12 sps:$4 sm:$0xff]  }
 0x236   : >> { %3031 = vmatprep.mubr.bf16.mxu1 %v21248_v42  ;;  %3013 = vmatprep.subr.bf16.mxu1 %v15794_v22  ;;  %v15841_v22 = vld [vmem:[%s28921_s3 + $0x1b4] ss:$12 sps:$4 sm:$0xff]  }
 0x239   : >> { %3014 = vmatpush1.bf16.msra.mxu1 %v15792_v25  ;;  %v15839_v25 = vld [vmem:[%s28921_s3 + $0x1b0] ss:$12 sps:$4 sm:$0xff]  }
 0x23a   : >> { %3015 = vmatprep.subr.bf16.mxu1 %v15797_v26  ;;  %v15846_v26 = vld [vmem:[%s28921_s3 + $0x1cc] ss:$12 sps:$4 sm:$0xff]  }
 0x23c   : >> { %2192 = vmatmul.mubr.bf16.vlgmr.msra.gmra.mrb[0].mxu0 %v21438_v59 }
 0x23d   : >> { %10422 = vmatpush3.bf16.msra.mxu0 %v15799_v28  ;;  %2201 = vmatprep.mubr.bf16.mxu0 %v20564_v24  ;;  %v15850_v28 = vld [vmem:[%s28921_s3 + $0x1e4] ss:$12 sps:$4 sm:$0xff]  }
 0x23e   : >> { %3016 = vmatpush1.bf16.msra.mxu1 %v15795_v47  ;;  %10423 = vmatprep.subr.bf16.mxu0 %v15806_v63  ;;  %v15844_v47 = vld [vmem:[%s28921_s3 + $0x1c8] ss:$12 sps:$4 sm:$0xff]   ;;  %v15848_v63 = vld [vmem:[%s28921_s3 + $0x1e0] ss:$12 sps:$4 sm:$0xff]  }
 0x23f   : >> { %3017 = vmatprep.subr.bf16.mxu1 %v15802_v15  ;;  %v15854_v15 = vld [vmem:[%s28921_s3 + $0x1fc] ss:$12 sps:$4 sm:$0xff]  }
 0x241   : >> { %10424 = vmatpush3.bf16.msra.mxu0 %v15807_v8  ;;  %v15852_v8 = vld [vmem:[%s28921_s3 + $0x1f8] ss:$12 sps:$4 sm:$0xff]  }
 0x242   : >> { %3018 = vmatpush1.bf16.msra.mxu1 %v15800_v20  ;;  %10425 = vmatprep.subr.bf16.mxu0 %v15814_v48  ;;  %v15858_v20 = vld [vmem:[%s28921_s3 + $0x214] ss:$12 sps:$4 sm:$0xff]   ;;  %v15856_v48 = vld [vmem:[%s28921_s3 + $0x210] ss:$12 sps:$4 sm:$0xff]  }
 0x243   : >> { %3019 = vmatprep.subr.bf16.mxu1 %v15805_v31  ;;  %v15862_v31 = vld [vmem:[%s28921_s3 + $0x22c] ss:$12 sps:$4 sm:$0xff]  }
 0x244   : >> { %2202 = vmatmul.mubr.bf16.gmra.mrb[4].mxu0 %v21460_v3 }
 0x245   : >> { %2211 = vmatprep.mubr.bf16.mxu0 %v20564_v24  ;;  %10426 = vmatpush3.bf16.msra.mxu0 %v15815_v32  ;;  %v15860_v32 = vld [vmem:[%s28921_s3 + $0x228] ss:$12 sps:$4 sm:$0xff]  }
 0x246   : >> { %3020 = vmatpush1.bf16.msra.mxu1 %v15803_v49  ;;  %10427 = vmatprep.subr.bf16.mxu0 %v15822_v37  ;;  %v15851_v49 = vld [vmem:[%s28921_s3 + $0x1a0] ss:$12 sps:$4 sm:$0xff]   ;;  %v15859_v37 = vld [vmem:[%s28921_s3 + $0x1d0] ss:$12 sps:$4 sm:$0xff]  }
 0x247   : >> { %3021 = vmatprep.subr.bf16.mxu1 %v15810_v50 }
 0x249   : >> { %10428 = vmatpush3.bf16.msra.mxu0 %v15823_v51 }
 0x24a   : >> { %3022 = vmatpush1.bf16.msra.mxu1 %v15808_v58  ;;  %10429 = vmatprep.subr.bf16.mxu0 %v15827_v54 }
 0x24b   : >> { %3023 = vmatprep.subr.bf16.mxu1 %v15813_v56 }
 0x24c   : >> { %2212 = vmatmul.mubr.bf16.gmra.mrb[8].mxu0 %v21463_v13 }
 0x24d   : >> { %2221 = vmatprep.mubr.bf16.mxu0 %v20564_v24  ;;  %10430 = vmatpush3.bf16.msra.mxu0 %v15828_v57 }
 0x24e   : >> { %3024 = vmatpush1.bf16.msra.mxu1 %v15811_v61  ;;  %10431 = vmatprep.subr.bf16.mxu0 %v15832_v40 }
 0x24f   : >> { %3025 = vmatprep.subr.bf16.mxu1 %v15818_v55 }
 0x251   : >> { %10432 = vmatpush3.bf16.msra.mxu0 %v15833_v60 }
 0x252   : >> { %3026 = vmatpush1.bf16.msra.mxu1 %v15816_v62  ;;  %10433 = vmatprep.subr.bf16.mxu0 %v15837_v41 }
 0x253   : >> { %3027 = vmatprep.subr.bf16.mxu1 %v15821_v5 }
 0x254   : >> { %2222 = vmatmul.mubr.bf16.gmra.mrb[12].mxu0 %v21482_v19 }
 0x255   : >> { %2231 = vmatprep.mubr.bf16.mxu0 %v20564_v24  ;;  %10434 = vmatpush3.bf16.msra.mxu0 %v15838_v1 }
 0x256   : >> { %3028 = vmatpush1.bf16.msra.mxu1 %v15819_v9  ;;  %10435 = vmatprep.subr.bf16.mxu0 %v15842_v17 }
 0x257   : >> { %3029 = vmatprep.subr.bf16.mxu1 %v15826_v2 }
 0x259   : >> { %10436 = vmatpush3.bf16.msra.mxu0 %v15843_v7 }
 0x25a   : >> { %3030 = vmatpush1.bf16.msra.mxu1 %v15824_v23  ;;  %10837 = vmatprep.subr.bf16.mxu0 %v15847_v6 }
 0x25b   : >> { %3112 = vmatprep.subr.bf16.mxu1 %v15831_v12 }
 0x25c   : >> { %2232 = vmatmul.mubr.bf16.gmra.mrb[16].mxu0 %v21485_v34 }
 0x25d   : >> { %3032 = vmatmul.mubr.bf16.vlgmr.msra.gmra.mrb[48].mxu1 %v21264_v11  ;;  %2241 = vmatprep.mubr.bf16.mxu0 %v20564_v24 }
 0x25e   : >> { %3113 = vmatpush1.bf16.msra.mxu1 %v15829_v10  ;;  %3041 = vmatprep.mubr.bf16.mxu1 %v21274_v21 }
 0x25f   : >> { %3114 = vmatprep.subr.bf16.mxu1 %v15836_v14 }
 0x262   : >> { %3115 = vmatpush1.bf16.msra.mxu1 %v15834_v18 }
 0x263   : >> { %3116 = vmatprep.subr.bf16.mxu1 %v15841_v22 }
 0x264   : >> { %2242 = vmatmul.mubr.bf16.gmra.mrb[20].mxu0 %v21501_v4 }
 0x265   : >> { %3042 = vmatmul.mubr.bf16.gmra.mrb[52].mxu1 %v21288_v43  ;;  %2251 = vmatprep.mubr.bf16.mxu0 %v20564_v24 }
 0x266   : >> { %3051 = vmatprep.mubr.bf16.mxu1 %v21300_v44  ;;  %3117 = vmatpush1.bf16.msra.mxu1 %v15839_v25 }
 0x267   : >> { %3118 = vmatprep.subr.bf16.mxu1 %v15846_v26 }
 0x26a   : >> { %3119 = vmatpush1.bf16.msra.mxu1 %v15844_v47 }
 0x26b   : >> { %3120 = vmatprep.subr.bf16.mxu1 %v15850_v28 }
 0x26c   : >> { %2252 = vmatmul.mubr.bf16.gmra.mrb[24].mxu0 %v21507_v33 }
 0x26d   : >> { %3052 = vmatmul.mubr.bf16.gmra.mrb[56].mxu1 %v21314_v45  ;;  %2261 = vmatprep.mubr.bf16.mxu0 %v20564_v24 }
 0x26e   : >> { %3061 = vmatprep.mubr.bf16.mxu1 %v21323_v16  ;;  %3121 = vmatpush1.bf16.msra.mxu1 %v15848_v63 }
 0x26f   : >> { %3122 = vmatprep.subr.bf16.mxu1 %v15854_v15 }
 0x272   : >> { %3123 = vmatpush1.bf16.msra.mxu1 %v15852_v8 }
 0x273   : >> { %3124 = vmatprep.subr.bf16.mxu1 %v15858_v20 }
 0x274   : >> { %2262 = vmatmul.mubr.bf16.gmra.mrb[28].mxu0 %v21523_v53 }
 0x275   : >> { %3062 = vmatmul.mubr.bf16.gmra.mrb[60].mxu1 %v21340_v46  ;;  %3257 = vmatprep.mubr.bf16.mxu0 %v21248_v42  ;;  %v15855_v42 = vld [vmem:[%s28921_s3 + $0x1b8] ss:$12 sps:$4 sm:$0xff]  }
 0x276   : >> { %3071 = vmatprep.mubr.bf16.mxu1 %v21349_v27  ;;  %3125 = vmatpush1.bf16.msra.mxu1 %v15856_v48 }
 0x277   : >> { %3126 = vmatprep.subr.bf16.mxu1 %v15862_v31 }
 0x27a   : >> { %3127 = vmatpush1.bf16.msra.mxu1 %v15860_v32 }
 0x27c   : >> { %3258 = vmatmul.mubr.bf16.vlgmr.msra.gmra.mrb[32].mxu0 %v21264_v11  ;;  %v15863_v11 = vld [vmem:[%s28921_s3 + $0x1e8] ss:$12 sps:$4 sm:$0xff]  }
 0x27d   : >> { %3072 = vmatmul.mubr.bf16.gmra.mrb[64].mxu1 %v21369_v29  ;;  %10838 = vmatpush3.bf16.msra.mxu0 %v15847_v6 }
 0x27e   : >> { %3081 = vmatprep.mubr.bf16.mxu1 %v21372_v30  ;;  %3265 = vmatprep.mubr.bf16.mxu0 %v21274_v21  ;;  %v15864_v21 = vld [vmem:[%s28921_s3 + $0x200] ss:$12 sps:$4 sm:$0xff]  }
 0x27f   : >> { %10839 = vmatprep.subr.bf16.mxu0 %v15851_v49 }
 0x281   : >> { %10840 = vmatpush3.bf16.msra.mxu0 %v15851_v49 }
 0x282   : >> { %10841 = vmatprep.subr.bf16.mxu0 %v15855_v42 }
 0x284   : >> { %3266 = vmatmul.mubr.bf16.gmra.mrb[36].mxu0 %v21288_v43  ;;  %v15865_v43 = vld [vmem:[%s28921_s3 + $0x218] ss:$12 sps:$4 sm:$0xff]  }
 0x285   : >> { %3082 = vmatmul.mubr.bf16.gmra.mrb[68].mxu1 %v21391_v35  ;;  %3273 = vmatprep.mubr.bf16.mxu0 %v21300_v44  ;;  %v15866_v44 = vld [vmem:[%s28921_s3 + $0x230] ss:$12 sps:$4 sm:$0xff]  }
 0x286   : >> { %3091 = vmatprep.mubr.bf16.mxu1 %v21394_v36  ;;  %10842 = vmatpush3.bf16.msra.mxu0 %v15855_v42 }
 0x287   : >> { %10843 = vmatprep.subr.bf16.mxu0 %v15859_v37 }
 0x28a   : >> { %10844 = vmatpush3.bf16.msra.mxu0 %v15859_v37 }
 0x28b   : >> { %10845 = vmatprep.subr.bf16.mxu0 %v15863_v11 }
 0x28c   : >> { %3274 = vmatmul.mubr.bf16.gmra.mrb[40].mxu0 %v21314_v45 }
 0x28d   : >> { %3092 = vmatmul.mubr.bf16.gmra.mrb[72].mxu1 %v21413_v38  ;;  %3281 = vmatprep.mubr.bf16.mxu0 %v21323_v16 }
 0x28e   : >> { %3101 = vmatprep.mubr.bf16.mxu1 %v21416_v52  ;;  %10846 = vmatpush3.bf16.msra.mxu0 %v15863_v11 }
 0x28f   : >> { %10847 = vmatprep.subr.bf16.mxu0 %v15864_v21 }
 0x292   : >> { %10848 = vmatpush3.bf16.msra.mxu0 %v15864_v21 }
 0x293   : >> { %10849 = vmatprep.subr.bf16.mxu0 %v15865_v43 }
 0x294   : >> { %3282 = vmatmul.mubr.bf16.gmra.mrb[44].mxu0 %v21340_v46 }
 0x295   : >> { %3102 = vmatmul.mubr.bf16.gmra.mrb[76].mxu1 %v21435_v39  ;;  %3289 = vmatprep.mubr.bf16.mxu0 %v21349_v27 }
 0x296   : >> { %3144 = vmatprep.mubr.bf16.mxu1 %v20564_v24  ;;  %10850 = vmatpush3.bf16.msra.mxu0 %v15865_v43 }
 0x297   : >> { %10851 = vmatprep.subr.bf16.mxu0 %v15866_v44 }
 0x29a   : >> { %10852 = vmatpush3.bf16.msra.mxu0 %v15866_v44 }
 0x29c   : >> { %3290 = vmatmul.mubr.bf16.gmra.mrb[48].mxu0 %v21369_v29 }
 0x29d   : >> { %3145 = vmatmul.mubr.bf16.vlgmr.msra.gmra.mrb[48].mxu1 %v21438_v59  ;;  %3297 = vmatprep.mubr.bf16.mxu0 %v21372_v30 }
 0x29e   : >> { %3154 = vmatprep.mubr.bf16.mxu1 %v20564_v24 }
 0x2a4   : >> { %3298 = vmatmul.mubr.bf16.gmra.mrb[52].mxu0 %v21391_v35 }
 0x2a5   : >> { %3155 = vmatmul.mubr.bf16.gmra.mrb[52].mxu1 %v21460_v3  ;;  %3305 = vmatprep.mubr.bf16.mxu0 %v21394_v36 }
 0x2a6   : >> { %3164 = vmatprep.mubr.bf16.mxu1 %v20564_v24 }
 0x2ac   : >> { %3306 = vmatmul.mubr.bf16.gmra.mrb[56].mxu0 %v21413_v38 }
 0x2ad   : >> { %3165 = vmatmul.mubr.bf16.gmra.mrb[56].mxu1 %v21463_v13  ;;  %3313 = vmatprep.mubr.bf16.mxu0 %v21416_v52 }
 0x2ae   : >> { %3174 = vmatprep.mubr.bf16.mxu1 %v20564_v24 }
 0x2af   : >> { %v10357_v45 = vpop.f32.mrb[0].mxu1 }
 0x2b0   : >> { %v10358_v16 = vpop.f32.mrb[1].mxu1 }
 0x2b1   : >> { %v21755_v46 = vadd.f32 %v10358_v16, %v10357_v45  ;;  %v10360_v27 = vpop.f32.mrb[2].mxu1 }
 0x2b2   : >> { %v10361_v29 = vpop.f32.mrb[3].mxu1 }
 0x2b3   : >> { %v21757_v30 = vadd.f32 %v10361_v29, %v10360_v27 }
 0x2b4   : >> { %3314 = vmatmul.mubr.bf16.gmra.mrb[60].mxu0 %v21435_v39 }
 0x2b5   : >> { %3175 = vmatmul.mubr.bf16.gmra.mrb[60].mxu1 %v21482_v19  ;;  %10853 = vmatprep.mubr.bf16.mxu0 %v21438_v59 }
 0x2b6   : >> { %3184 = vmatprep.mubr.bf16.mxu1 %v20564_v24 }
 0x2b7   : >> { %v10363_v35 = vpop.f32.mrb[4].mxu1 }
 0x2b8   : >> { %v10364_v36 = vpop.f32.mrb[5].mxu1 }
 0x2b9   : >> { %v10365_v38 = vadd.f32 %v10364_v36, %v10363_v35  ;;  %v10366_v52 = vpop.f32.mrb[6].mxu1 }
 0x2ba   : >> { %v10367_v50 = vpop.f32.mrb[7].mxu1 }
 0x2bb   : >> { %v10368_v51 = vadd.f32 %v10367_v50, %v10366_v52 }
 0x2bc   : >> { %10854 = vmatmul.mubr.bf16.vlgmr.msra.gmra.mrb[64].mxu0 %v21460_v3 }
 0x2bd   : >> { %3185 = vmatmul.mubr.bf16.gmra.mrb[64].mxu1 %v21485_v34  ;;  %10857 = vmatprep.mubr.bf16.mxu0 %v21463_v13 }
 0x2be   : >> { %3194 = vmatprep.mubr.bf16.mxu1 %v20564_v24 }
 0x2bf   : >> { %v10369_v39 = vpop.f32.mrb[8].mxu1 }
 0x2c0   : >> { %v10370_v58 = vpop.f32.mrb[9].mxu1 }
 0x2c1   : >> { %v10371_v54 = vadd.f32 %v10370_v58, %v10369_v39  ;;  %v10372_v59 = vpop.f32.mrb[10].mxu1 }
 0x2c2   : >> { %v10373_v56 = vpop.f32.mrb[11].mxu1 }
 0x2c3   : >> { %v21767_v57 = vadd.f32 %v10373_v56, %v10372_v59 }
 0x2c4   : >> { %10858 = vmatmul.mubr.bf16.gmra.mrb[68].mxu0 %v21482_v19 }
 0x2c5   : >> { %3195 = vmatmul.mubr.bf16.gmra.mrb[68].mxu1 %v21501_v4  ;;  %10861 = vmatprep.mubr.bf16.mxu0 %v21485_v34 }
 0x2c6   : >> { %3204 = vmatprep.mubr.bf16.mxu1 %v20564_v24 }
 0x2c7   : >> { %v10375_v3 = vpop.f32.mrb[12].mxu1 }
 0x2c8   : >> { %v10376_v61 = vpop.f32.mrb[13].mxu1 }
 0x2c9   : >> { %v10377_v13 = vadd.f32 %v10376_v61, %v10375_v3  ;;  %v10378_v40 = vpop.f32.mrb[14].mxu1 }
 0x2ca   : >> { %v10379_v55 = vpop.f32.mrb[15].mxu1 }
 0x2cb   : >> { %v10380_v60 = vadd.f32 %v10379_v55, %v10378_v40 }
 0x2cc   : >> { %10862 = vmatmul.mubr.bf16.gmra.mrb[72].mxu0 %v21501_v4 }
 0x2cd   : >> { %3205 = vmatmul.mubr.bf16.gmra.mrb[72].mxu1 %v21507_v33  ;;  %10865 = vmatprep.mubr.bf16.mxu0 %v21507_v33 }
 0x2ce   : >> { %3214 = vmatprep.mubr.bf16.mxu1 %v20564_v24 }
 0x2cf   : >> { %v10381_v19 = vpop.f32.mrb[16].mxu1 }
 0x2d0   : >> { %v10382_v62 = vpop.f32.mrb[17].mxu1 }
 0x2d1   : >> { %v10383_v41 = vadd.f32 %v10382_v62, %v10381_v19  ;;  %v10384_v34 = vpop.f32.mrb[18].mxu1 }
 0x2d2   : >> { %v10385_v5 = vpop.f32.mrb[19].mxu1 }
 0x2d3   : >> { %v10386_v1 = vadd.f32 %v10385_v5, %v10384_v34 }
 0x2d4   : >> { %10866 = vmatmul.mubr.bf16.gmra.mrb[76].mxu0 %v21523_v53 }
 0x2d5   : >> { %3215 = vmatmul.mubr.bf16.gmra.mrb[76].mxu1 %v21523_v53 }
 0x2d7   : >> { %v10387_v9 = vpop.f32.mrb[20].mxu1 }
 0x2d8   : >> { %v10388_v17 = vpop.f32.mrb[21].mxu1 }
 0x2d9   : >> { %v10389_v2 = vadd.f32 %v10388_v17, %v10387_v9  ;;  %v10390_v4 = vpop.f32.mrb[22].mxu1 }
 0x2da   : >> { %v10391_v7 = vpop.f32.mrb[23].mxu1 }
 0x2db   : >> { %v10392_v23 = vadd.f32 %v10391_v7, %v10390_v4 }
 0x2df   : >> { %v10393_v33 = vpop.f32.mrb[24].mxu1 }
 0x2e0   : >> { %v10394_v6 = vpop.f32.mrb[25].mxu1 }
 0x2e1   : >> { %v10395_v24 = vadd.f32 %v10394_v6, %v10393_v33  ;;  %v10396_v12 = vpop.f32.mrb[26].mxu1 }
 0x2e2   : >> { %v10397_v10 = vpop.f32.mrb[27].mxu1 }
 0x2e3   : >> { %v10398_v14 = vadd.f32 %v10397_v10, %v10396_v12 }
 0x2e7   : >> { %v10399_v18 = vpop.f32.mrb[28].mxu1 }
 0x2e8   : >> { %v10400_v22 = vpop.f32.mrb[29].mxu1 }
 0x2e9   : >> { %v10401_v25 = vadd.f32 %v10400_v22, %v10399_v18  ;;  %v10402_v26 = vpop.f32.mrb[30].mxu1 }
 0x2ea   : >> { %v10403_v47 = vpop.f32.mrb[31].mxu1 }
 0x2eb   : >> { %v10404_v28 = vadd.f32 %v10403_v47, %v10402_v26 }
 0x2ef   : >> { %v10823_v53 = vpop.f32.mrb[32].mxu1 }
 0x2f0   : >> { %v2412_v63 = vadd.f32 %v10823_v53, %v10365_v38  ;;  %v2403_v15 = vpop.f32.mrb[33].mxu1 }
 0x2f1   : >> { %v2404_v8 = vadd.f32 %v21755_v46, %v2403_v15  ;;  %v10824_v20 = vpop.f32.mrb[34].mxu1 }
 0x2f2   : >> { %v2415_v48 = vadd.f32 %v10824_v20, %v10368_v51  ;;  %v2406_v31 = vpop.f32.mrb[35].mxu1 }
 0x2f3   : >> { %v2407_v32 = vadd.f32 %v21757_v30, %v2406_v31 }
 0x2f4   : >> { %v2471_v49 = vpack.c.bf16 %v2415_v48, %v2412_v63 }
 0x2f5   : >> { %v2468_v42 = vpack.c.bf16 %v2407_v32, %v2404_v8 }
 0x2f6   : >> { %2500 = vst [vmem:[%s21788_s15 + $0x28] sm:$0xff] %v2471_v49 }
 0x2f7   : >> { %2497 = vst [vmem:[%s21788_s15 + $0x10] sm:$0xff] %v2468_v42  ;;  %v10827_v37 = vpop.f32.mrb[36].mxu1 }
 0x2f8   : >> { %v2428_v11 = vadd.f32 %v10827_v37, %v10377_v13  ;;  %v2419_v21 = vpop.f32.mrb[37].mxu1 }
 0x2f9   : >> { %v2420_v43 = vadd.f32 %v10371_v54, %v2419_v21  ;;  %v10828_v44 = vpop.f32.mrb[38].mxu1 }
 0x2fa   : >> { %v2431_v45 = vadd.f32 %v10828_v44, %v10380_v60  ;;  %v2422_v16 = vpop.f32.mrb[39].mxu1 }
 0x2fb   : >> { %v2423_v46 = vadd.f32 %v21767_v57, %v2422_v16 }
 0x2fc   : >> { %v2477_v27 = vpack.c.bf16 %v2431_v45, %v2428_v11 }
 0x2fd   : >> { %v2474_v29 = vpack.c.bf16 %v2423_v46, %v2420_v43 }
 0x2fe   : >> { %2506 = vst [vmem:[%s21788_s15 + $0x58] sm:$0xff] %v2477_v27 }
 0x2ff   : >> { %2503 = vst [vmem:[%s21788_s15 + $0x40] sm:$0xff] %v2474_v29  ;;  %v10831_v30 = vpop.f32.mrb[40].mxu1 }
 0x300   : >> { %v2444_v35 = vadd.f32 %v10831_v30, %v10389_v2  ;;  %v2435_v36 = vpop.f32.mrb[41].mxu1 }
 0x301   : >> { %v2436_v38 = vadd.f32 %v10383_v41, %v2435_v36  ;;  %v10832_v52 = vpop.f32.mrb[42].mxu1 }
 0x302   : >> { %v2447_v50 = vadd.f32 %v10832_v52, %v10392_v23  ;;  %v2438_v51 = vpop.f32.mrb[43].mxu1 }
 0x303   : >> { %v2439_v39 = vadd.f32 %v10386_v1, %v2438_v51 }
 0x304   : >> { %v2483_v58 = vpack.c.bf16 %v2447_v50, %v2444_v35 }
 0x305   : >> { %v2480_v54 = vpack.c.bf16 %v2439_v39, %v2436_v38 }
 0x306   : >> { %2512 = vst [vmem:[%s21788_s15 + $0x88] sm:$0xff] %v2483_v58 }
 0x307   : >> { %2509 = vst [vmem:[%s21788_s15 + $0x70] sm:$0xff] %v2480_v54  ;;  %v10835_v59 = vpop.f32.mrb[44].mxu1 }
 0x308   : >> { %v2460_v56 = vadd.f32 %v10835_v59, %v10401_v25  ;;  %v2451_v57 = vpop.f32.mrb[45].mxu1 }
 0x309   : >> { %v2452_v3 = vadd.f32 %v10395_v24, %v2451_v57  ;;  %v10836_v61 = vpop.f32.mrb[46].mxu1 }
 0x30a   : >> { %v2463_v13 = vadd.f32 %v10836_v61, %v10404_v28  ;;  %v2454_v40 = vpop.f32.mrb[47].mxu1 }
 0x30b   : >> { %v2455_v55 = vadd.f32 %v10398_v14, %v2454_v40 }
 0x30c   : >> { %v2489_v60 = vpack.c.bf16 %v2463_v13, %v2460_v56 }
 0x30d   : >> { %v2486_v19 = vpack.c.bf16 %v2455_v55, %v2452_v3 }
 0x30e   : >> { %2518 = vst [vmem:[%s21788_s15 + $0xb8] sm:$0xff] %v2489_v60 }
 0x30f   : >> { %v2193_v62 = vpop.f32.mrb[0].mxu0  ;;  %2515 = vst [vmem:[%s21788_s15 + $0xa0] sm:$0xff] %v2486_v19 }
 0x310   : >> { %v2195_v41 = vpop.f32.mrb[1].mxu0 }
 0x311   : >> { %v2197_v34 = vpop.f32.mrb[2].mxu0 }
 0x312   : >> { %v2466_v5 = vpack.c.bf16 %v2197_v34, %v2193_v62  ;;  %v2199_v1 = vpop.f32.mrb[3].mxu0 }
 0x313   : >> { %v2467_v9 = vpack.c.bf16 %v2199_v1, %v2195_v41 }
 0x314   : >> { %2495 = vst [vmem:[%s21788_s15] sm:$0xff] %v2466_v5 }
 0x315   : >> { %2496 = vst [vmem:[%s21788_s15 + $0x8] sm:$0xff] %v2467_v9 }
 0x317   : >> { %v2203_v17 = vpop.f32.mrb[4].mxu0 }
 0x318   : >> { %v2205_v2 = vpop.f32.mrb[5].mxu0 }
 0x319   : >> { %v2207_v4 = vpop.f32.mrb[6].mxu0 }
 0x31a   : >> { %v2469_v7 = vpack.c.bf16 %v2207_v4, %v2203_v17  ;;  %v2209_v23 = vpop.f32.mrb[7].mxu0 }
 0x31b   : >> { %v2470_v33 = vpack.c.bf16 %v2209_v23, %v2205_v2 }
 0x31c   : >> { %2498 = vst [vmem:[%s21788_s15 + $0x18] sm:$0xff] %v2469_v7 }
 0x31d   : >> { %2499 = vst [vmem:[%s21788_s15 + $0x20] sm:$0xff] %v2470_v33 }
 0x31f   : >> { %v2213_v6 = vpop.f32.mrb[8].mxu0 }
 0x320   : >> { %v2215_v24 = vpop.f32.mrb[9].mxu0 }
 0x321   : >> { %v2217_v12 = vpop.f32.mrb[10].mxu0 }
 0x322   : >> { %v2472_v10 = vpack.c.bf16 %v2217_v12, %v2213_v6  ;;  %v2219_v14 = vpop.f32.mrb[11].mxu0 }
 0x323   : >> { %v2473_v18 = vpack.c.bf16 %v2219_v14, %v2215_v24 }
 0x324   : >> { %2501 = vst [vmem:[%s21788_s15 + $0x30] sm:$0xff] %v2472_v10 }
 0x325   : >> { %2502 = vst [vmem:[%s21788_s15 + $0x38] sm:$0xff] %v2473_v18 }
 0x327   : >> { %v2223_v22 = vpop.f32.mrb[12].mxu0 }
 0x328   : >> { %v2225_v25 = vpop.f32.mrb[13].mxu0 }
 0x329   : >> { %v2227_v26 = vpop.f32.mrb[14].mxu0 }
 0x32a   : >> { %v2475_v47 = vpack.c.bf16 %v2227_v26, %v2223_v22  ;;  %v2229_v28 = vpop.f32.mrb[15].mxu0 }
 0x32b   : >> { %v2476_v53 = vpack.c.bf16 %v2229_v28, %v2225_v25 }
 0x32c   : >> { %2504 = vst [vmem:[%s21788_s15 + $0x48] sm:$0xff] %v2475_v47 }
 0x32d   : >> { %2505 = vst [vmem:[%s21788_s15 + $0x50] sm:$0xff] %v2476_v53 }
 0x32f   : >> { %v2233_v63 = vpop.f32.mrb[16].mxu0 }
 0x330   : >> { %v2235_v15 = vpop.f32.mrb[17].mxu0 }
 0x331   : >> { %v2237_v8 = vpop.f32.mrb[18].mxu0 }
 0x332   : >> { %v2478_v20 = vpack.c.bf16 %v2237_v8, %v2233_v63  ;;  %v2239_v48 = vpop.f32.mrb[19].mxu0 }
 0x333   : >> { %v2479_v31 = vpack.c.bf16 %v2239_v48, %v2235_v15 }
 0x334   : >> { %2507 = vst [vmem:[%s21788_s15 + $0x60] sm:$0xff] %v2478_v20 }
 0x335   : >> { %2508 = vst [vmem:[%s21788_s15 + $0x68] sm:$0xff] %v2479_v31 }
 0x337   : >> { %v2243_v32 = vpop.f32.mrb[20].mxu0 }
 0x338   : >> { %v2245_v49 = vpop.f32.mrb[21].mxu0 }
 0x339   : >> { %v2247_v42 = vpop.f32.mrb[22].mxu0 }
 0x33a   : >> { %v2481_v37 = vpack.c.bf16 %v2247_v42, %v2243_v32  ;;  %v2249_v11 = vpop.f32.mrb[23].mxu0 }
 0x33b   : >> { %v2482_v21 = vpack.c.bf16 %v2249_v11, %v2245_v49 }
 0x33c   : >> { %2510 = vst [vmem:[%s21788_s15 + $0x78] sm:$0xff] %v2481_v37 }
 0x33d   : >> { %2511 = vst [vmem:[%s21788_s15 + $0x80] sm:$0xff] %v2482_v21 }
 0x33f   : >> { %v2253_v43 = vpop.f32.mrb[24].mxu0 }
 0x340   : >> { %v2255_v44 = vpop.f32.mrb[25].mxu0 }
 0x341   : >> { %v2257_v45 = vpop.f32.mrb[26].mxu0 }
 0x342   : >> { %v2484_v16 = vpack.c.bf16 %v2257_v45, %v2253_v43  ;;  %v2259_v46 = vpop.f32.mrb[27].mxu0 }
 0x343   : >> { %v2485_v27 = vpack.c.bf16 %v2259_v46, %v2255_v44 }
 0x344   : >> { %2513 = vst [vmem:[%s21788_s15 + $0x90] sm:$0xff] %v2484_v16 }
 0x345   : >> { %2514 = vst [vmem:[%s21788_s15 + $0x98] sm:$0xff] %v2485_v27 }
 0x347   : >> { %v2263_v29 = vpop.f32.mrb[28].mxu0 }
 0x348   : >> { %v2265_v30 = vpop.f32.mrb[29].mxu0 }
 0x349   : >> { %v2267_v35 = vpop.f32.mrb[30].mxu0 }
 0x34a   : >> { %v2487_v36 = vpack.c.bf16 %v2267_v35, %v2263_v29  ;;  %v2269_v38 = vpop.f32.mrb[31].mxu0 }
 0x34b   : >> { %v2488_v52 = vpack.c.bf16 %v2269_v38, %v2265_v30 }
 0x34c   : >> { %2516 = vst [vmem:[%s21788_s15 + $0xa8] sm:$0xff] %v2487_v36 }
 0x34d   : >> { %2517 = vst [vmem:[%s21788_s15 + $0xb0] sm:$0xff] %v2488_v52 }
 0x34f   : >> { %v10437_v50 = vpop.f32.mrb[32].mxu0 }
 0x350   : >> { %v10438_v51 = vpop.f32.mrb[33].mxu0 }
 0x351   : >> { %v21815_v39 = vadd.f32 %v10438_v51, %v10437_v50  ;;  %v10440_v58 = vpop.f32.mrb[34].mxu0 }
 0x352   : >> { %v10441_v54 = vpop.f32.mrb[35].mxu0 }
 0x353   : >> { %v21817_v59 = vadd.f32 %v10441_v54, %v10440_v58 }
 0x357   : >> { %v10443_v56 = vpop.f32.mrb[36].mxu0 }
 0x358   : >> { %v10444_v57 = vpop.f32.mrb[37].mxu0 }
 0x359   : >> { %v21819_v3 = vadd.f32 %v10444_v57, %v10443_v56  ;;  %v10446_v61 = vpop.f32.mrb[38].mxu0 }
 0x35a   : >> { %v10447_v13 = vpop.f32.mrb[39].mxu0 }
 0x35b   : >> { %v21821_v40 = vadd.f32 %v10447_v13, %v10446_v61 }
 0x35f   : >> { %v10449_v55 = vpop.f32.mrb[40].mxu0 }
 0x360   : >> { %v10450_v60 = vpop.f32.mrb[41].mxu0 }
 0x361   : >> { %v21823_v19 = vadd.f32 %v10450_v60, %v10449_v55  ;;  %v10452_v62 = vpop.f32.mrb[42].mxu0 }
 0x362   : >> { %v10453_v41 = vpop.f32.mrb[43].mxu0 }
 0x363   : >> { %v21825_v34 = vadd.f32 %v10453_v41, %v10452_v62 }
 0x367   : >> { %v10455_v5 = vpop.f32.mrb[44].mxu0 }
 0x368   : >> { %v10456_v1 = vpop.f32.mrb[45].mxu0 }
 0x369   : >> { %v21827_v9 = vadd.f32 %v10456_v1, %v10455_v5  ;;  %v10458_v17 = vpop.f32.mrb[46].mxu0 }
 0x36a   : >> { %v10459_v2 = vpop.f32.mrb[47].mxu0 }
 0x36b   : >> { %v21829_v4 = vadd.f32 %v10459_v2, %v10458_v17 }
 0x36f   : >> { %v10461_v7 = vpop.f32.mrb[48].mxu0 }
 0x370   : >> { %v3146_v23 = vpop.f32.mrb[48].mxu1  ;;  %v10462_v33 = vpop.f32.mrb[49].mxu0 }
 0x371   : >> { %v3148_v6 = vpop.f32.mrb[49].mxu1  ;;  %v21831_v24 = vadd.f32 %v10462_v33, %v10461_v7  ;;  %v10464_v12 = vpop.f32.mrb[50].mxu0 }
 0x372   : >> { %v3150_v10 = vpop.f32.mrb[50].mxu1  ;;  %v10465_v14 = vpop.f32.mrb[51].mxu0 }
 0x373   : >> { %v3419_v18 = vpack.c.bf16 %v3150_v10, %v3146_v23  ;;  %v3152_v22 = vpop.f32.mrb[51].mxu1  ;;  %v21833_v25 = vadd.f32 %v10465_v14, %v10464_v12 }
 0x374   : >> { %v3420_v26 = vpack.c.bf16 %v3152_v22, %v3148_v6 }
 0x375   : >> { %3445 = vst [vmem:[%s21837_s20] sm:$0xff] %v3419_v18 }
 0x376   : >> { %3446 = vst [vmem:[%s21837_s20 + $0x8] sm:$0xff] %v3420_v26 }
 0x377   : >> { %v10467_v47 = vpop.f32.mrb[52].mxu0 }
 0x378   : >> { %v3156_v28 = vpop.f32.mrb[52].mxu1  ;;  %v10468_v53 = vpop.f32.mrb[53].mxu0 }
 0x379   : >> { %v3158_v63 = vpop.f32.mrb[53].mxu1  ;;  %v21841_v15 = vadd.f32 %v10468_v53, %v10467_v47  ;;  %v10470_v8 = vpop.f32.mrb[54].mxu0 }
 0x37a   : >> { %v3160_v20 = vpop.f32.mrb[54].mxu1  ;;  %v10471_v48 = vpop.f32.mrb[55].mxu0 }
 0x37b   : >> { %v3422_v31 = vpack.c.bf16 %v3160_v20, %v3156_v28  ;;  %v3162_v32 = vpop.f32.mrb[55].mxu1  ;;  %v21843_v49 = vadd.f32 %v10471_v48, %v10470_v8 }
 0x37c   : >> { %v3423_v42 = vpack.c.bf16 %v3162_v32, %v3158_v63 }
 0x37d   : >> { %3448 = vst [vmem:[%s21837_s20 + $0x18] sm:$0xff] %v3422_v31 }
 0x37e   : >> { %3449 = vst [vmem:[%s21837_s20 + $0x20] sm:$0xff] %v3423_v42 }
 0x37f   : >> { %v10473_v37 = vpop.f32.mrb[56].mxu0 }
 0x380   : >> { %v3166_v11 = vpop.f32.mrb[56].mxu1  ;;  %v10474_v21 = vpop.f32.mrb[57].mxu0 }
 0x381   : >> { %v3168_v43 = vpop.f32.mrb[57].mxu1  ;;  %v21847_v44 = vadd.f32 %v10474_v21, %v10473_v37  ;;  %v10476_v45 = vpop.f32.mrb[58].mxu0 }
 0x382   : >> { %v3170_v16 = vpop.f32.mrb[58].mxu1  ;;  %v10477_v46 = vpop.f32.mrb[59].mxu0 }
 0x383   : >> { %v3425_v27 = vpack.c.bf16 %v3170_v16, %v3166_v11  ;;  %v3172_v29 = vpop.f32.mrb[59].mxu1  ;;  %v21849_v30 = vadd.f32 %v10477_v46, %v10476_v45 }
 0x384   : >> { %v3426_v35 = vpack.c.bf16 %v3172_v29, %v3168_v43 }
 0x385   : >> { %3451 = vst [vmem:[%s21837_s20 + $0x30] sm:$0xff] %v3425_v27 }
 0x386   : >> { %3452 = vst [vmem:[%s21837_s20 + $0x38] sm:$0xff] %v3426_v35 }
 0x387   : >> { %v10479_v36 = vpop.f32.mrb[60].mxu0 }
 0x388   : >> { %v3176_v38 = vpop.f32.mrb[60].mxu1  ;;  %v10480_v52 = vpop.f32.mrb[61].mxu0 }
 0x389   : >> { %v3178_v50 = vpop.f32.mrb[61].mxu1  ;;  %v21853_v51 = vadd.f32 %v10480_v52, %v10479_v36  ;;  %v10482_v58 = vpop.f32.mrb[62].mxu0 }
 0x38a   : >> { %v3180_v54 = vpop.f32.mrb[62].mxu1  ;;  %v10483_v56 = vpop.f32.mrb[63].mxu0 }
 0x38b   : >> { %v3428_v57 = vpack.c.bf16 %v3180_v54, %v3176_v38  ;;  %v3182_v61 = vpop.f32.mrb[63].mxu1  ;;  %v21855_v13 = vadd.f32 %v10483_v56, %v10482_v58 }
 0x38c   : >> { %v3429_v55 = vpack.c.bf16 %v3182_v61, %v3178_v50 }
 0x38d   : >> { %3454 = vst [vmem:[%s21837_s20 + $0x48] sm:$0xff] %v3428_v57 }
 0x38e   : >> { %3455 = vst [vmem:[%s21837_s20 + $0x50] sm:$0xff] %v3429_v55 }
 0x38f   : >> { %v10855_v60 = vpop.f32.mrb[64].mxu0 }
 0x390   : >> { %v3186_v62 = vpop.f32.mrb[64].mxu1  ;;  %v3365_v41 = vadd.f32 %v10855_v60, %v21819_v3  ;;  %v3356_v5 = vpop.f32.mrb[65].mxu0 }
 0x391   : >> { %v3188_v1 = vpop.f32.mrb[65].mxu1  ;;  %v3357_v17 = vadd.f32 %v21815_v39, %v3356_v5  ;;  %v10856_v2 = vpop.f32.mrb[66].mxu0 }
 0x392   : >> { %v3190_v7 = vpop.f32.mrb[66].mxu1  ;;  %v3368_v23 = vadd.f32 %v10856_v2, %v21821_v40  ;;  %v3359_v33 = vpop.f32.mrb[67].mxu0 }
 0x393   : >> { %v3431_v6 = vpack.c.bf16 %v3190_v7, %v3186_v62  ;;  %v3192_v12 = vpop.f32.mrb[67].mxu1  ;;  %v3360_v10 = vadd.f32 %v21817_v59, %v3359_v33 }
 0x394   : >> { %v3432_v14 = vpack.c.bf16 %v3192_v12, %v3188_v1  ;;  %v3424_v18 = vpack.c.bf16 %v3368_v23, %v3365_v41 }
 0x395   : >> { %3457 = vst [vmem:[%s21837_s20 + $0x60] sm:$0xff] %v3431_v6  ;;  %v3421_v22 = vpack.c.bf16 %v3360_v10, %v3357_v17 }
 0x396   : >> { %3458 = vst [vmem:[%s21837_s20 + $0x68] sm:$0xff] %v3432_v14  ;;  %3450 = vst [vmem:[%s21837_s20 + $0x28] sm:$0xff] %v3424_v18 }
 0x397   : >> { %3447 = vst [vmem:[%s21837_s20 + $0x10] sm:$0xff] %v3421_v22  ;;  %v10859_v3 = vpop.f32.mrb[68].mxu0 }
 0x398   : >> { %v3196_v26 = vpop.f32.mrb[68].mxu1  ;;  %v3381_v39 = vadd.f32 %v10859_v3, %v21827_v9  ;;  %v3372_v40 = vpop.f32.mrb[69].mxu0 }
 0x399   : >> { %v3198_v47 = vpop.f32.mrb[69].mxu1  ;;  %v3373_v28 = vadd.f32 %v21823_v19, %v3372_v40  ;;  %v10860_v59 = vpop.f32.mrb[70].mxu0 }
 0x39a   : >> { %v3200_v53 = vpop.f32.mrb[70].mxu1  ;;  %v3384_v63 = vadd.f32 %v10860_v59, %v21829_v4  ;;  %v3375_v8 = vpop.f32.mrb[71].mxu0 }
 0x39b   : >> { %v3434_v20 = vpack.c.bf16 %v3200_v53, %v3196_v26  ;;  %v3202_v48 = vpop.f32.mrb[71].mxu1  ;;  %v3376_v31 = vadd.f32 %v21825_v34, %v3375_v8 }
 0x39c   : >> { %v3435_v32 = vpack.c.bf16 %v3202_v48, %v3198_v47  ;;  %v3430_v42 = vpack.c.bf16 %v3384_v63, %v3381_v39 }
 0x39d   : >> { %3460 = vst [vmem:[%s21837_s20 + $0x78] sm:$0xff] %v3434_v20  ;;  %v3427_v37 = vpack.c.bf16 %v3376_v31, %v3373_v28 }
 0x39e   : >> { %3461 = vst [vmem:[%s21837_s20 + $0x80] sm:$0xff] %v3435_v32  ;;  %3456 = vst [vmem:[%s21837_s20 + $0x58] sm:$0xff] %v3430_v42 }
 0x39f   : >> { %3453 = vst [vmem:[%s21837_s20 + $0x40] sm:$0xff] %v3427_v37  ;;  %v10863_v9 = vpop.f32.mrb[72].mxu0 }
 0x3a0   : >> { %v3206_v11 = vpop.f32.mrb[72].mxu1  ;;  %v3397_v19 = vadd.f32 %v10863_v9, %v21841_v15  ;;  %v3388_v4 = vpop.f32.mrb[73].mxu0 }
 0x3a1   : >> { %v3208_v21 = vpop.f32.mrb[73].mxu1  ;;  %v3389_v43 = vadd.f32 %v21831_v24, %v3388_v4  ;;  %v10864_v34 = vpop.f32.mrb[74].mxu0 }
 0x3a2   : >> { %v3210_v45 = vpop.f32.mrb[74].mxu1  ;;  %v3400_v16 = vadd.f32 %v10864_v34, %v21843_v49  ;;  %v3391_v46 = vpop.f32.mrb[75].mxu0 }
 0x3a3   : >> { %v3437_v27 = vpack.c.bf16 %v3210_v45, %v3206_v11  ;;  %v3212_v29 = vpop.f32.mrb[75].mxu1  ;;  %v3392_v35 = vadd.f32 %v21833_v25, %v3391_v46 }
 0x3a4   : >> { %v3438_v36 = vpack.c.bf16 %v3212_v29, %v3208_v21  ;;  %v3436_v38 = vpack.c.bf16 %v3400_v16, %v3397_v19 }
 0x3a5   : >> { %3463 = vst [vmem:[%s21837_s20 + $0x90] sm:$0xff] %v3437_v27  ;;  %v3433_v52 = vpack.c.bf16 %v3392_v35, %v3389_v43 }
 0x3a6   : >> { %3464 = vst [vmem:[%s21837_s20 + $0x98] sm:$0xff] %v3438_v36  ;;  %3462 = vst [vmem:[%s21837_s20 + $0x88] sm:$0xff] %v3436_v38 }
 0x3a7   : >> { %3459 = vst [vmem:[%s21837_s20 + $0x70] sm:$0xff] %v3433_v52  ;;  %v10867_v15 = vpop.f32.mrb[76].mxu0 }
 0x3a8   : >> { %v3216_v50 = vpop.f32.mrb[76].mxu1  ;;  %v3413_v24 = vadd.f32 %v10867_v15, %v21853_v51  ;;  %v3404_v49 = vpop.f32.mrb[77].mxu0 }
 0x3a9   : >> { %v3218_v58 = vpop.f32.mrb[77].mxu1  ;;  %v3405_v54 = vadd.f32 %v21847_v44, %v3404_v49  ;;  %v10868_v25 = vpop.f32.mrb[78].mxu0  ;;  %1399 = sbr.rel (!%p1396_p10) target bundleno = 443 (0x1bb), region = 149 }
 0x3aa   : >> { %v3220_v56 = vpop.f32.mrb[78].mxu1  ;;  %v3416_v57 = vadd.f32 %v10868_v25, %v21855_v13  ;;  %v3407_v61 = vpop.f32.mrb[79].mxu0 }
 0x3ab   : >> { %v3440_v55 = vpack.c.bf16 %v3220_v56, %v3216_v50  ;;  %v3222_v60 = vpop.f32.mrb[79].mxu1  ;;  %v3408_v62 = vadd.f32 %v21849_v30, %v3407_v61 }
 0x3ac   : >> { %v3441_v41 = vpack.c.bf16 %v3222_v60, %v3218_v58  ;;  %v3442_v5 = vpack.c.bf16 %v3416_v57, %v3413_v24 }
 0x3ad   : >> { %3466 = vst [vmem:[%s21837_s20 + $0xa8] sm:$0xff] %v3440_v55  ;;  %v3439_v1 = vpack.c.bf16 %v3408_v62, %v3405_v54 }
 0x3ae   : >> { %3467 = vst [vmem:[%s21837_s20 + $0xb0] sm:$0xff] %v3441_v41  ;;  %3468 = vst [vmem:[%s21837_s20 + $0xb8] sm:$0xff] %v3442_v5 }
 0x3af   : >> { %3465 = vst [vmem:[%s21837_s20 + $0xa0] sm:$0xff] %v3439_v1 }
 0x3b0 PF: > { %v3469_v44 = vlaneseq  ;;  %v21895_v51 = vld [vmem:[#allocation2] sm:$0xff]  ;;  %v21897_v30 = vld [vmem:[#allocation2 + $0x18] sm:$0xff]  ;;  %v21899_v13 = vld [vmem:[#allocation2 + $0x30] sm:$0xff]  ;;  %s29081_s18 = sshll.u32 %s18596_s24, 7  ;;  %v21965_v35 = vmov 0.0   ;;  %v21967_v36 = vmov 0.0  }
 0x3b1   : > { %29071 = vst [vmem:[#allocation14_spill] sm:$0xff] %v21895_v51  ;;  %29072 = vst [vmem:[#allocation15_spill] sm:$0xff] %v21897_v30  ;;  %v21903_v2 = vld [vmem:[#allocation2 + $0x60] sm:$0xff]  ;;  %v21905_v7 = vld [vmem:[#allocation2 + $0x78] sm:$0xff]  ;;  %v3486_v10 = vstv %s29081_s18  ;;  %v21969_v38 = vmov 0.0   ;;  %v21971_v52 = vmov 0.0  }
 0x3b2   : > { %29073 = vst [vmem:[#allocation16_spill] sm:$0xff] %v21899_v13  ;;  %v21901_v17 = vld [vmem:[#allocation2 + $0x48] sm:$0xff]  ;;  %29075 = vst [vmem:[#allocation18_spill] sm:$0xff] %v21903_v2  ;;  %v21907_v23 = vshrl.u32 %v3469_v44, 7  ;;  %v21909_v33 = vand.u32 127, %v3469_v44  ;;  %v21911_v6 = vld [vmem:[#allocation2 + $0x90] sm:$0xff] }
 0x3b3   : > { %29074 = vst [vmem:[#allocation17_spill] sm:$0xff] %v21901_v17  ;;  %29076 = vst [vmem:[#allocation19_spill] sm:$0xff] %v21905_v7  ;;  %v21913_v12 = vld [vmem:[#allocation2 + $0xa8] sm:$0xff]  ;;  %v21973_v15 = vmov 0.0   ;;  %v21975_v50 = vmov 0.0   ;;  %v21977_v24 = vmov 0.0  }
 0x3b4   : > { %29077 = vst [vmem:[#allocation20_spill] sm:$0xff] %v21907_v23  ;;  %29078 = vst [vmem:[#allocation21_spill] sm:$0xff] %v21909_v33  ;;  %v3471_v14 = vadd.s32 8, %v21907_v23  ;;  %v3472_v18 = vadd.s32 16, %v21907_v23  ;;  %v3473_v22 = vadd.s32 24, %v21907_v23  ;;  %v3474_v3 = vadd.s32 32, %v21907_v23 }
 0x3b5   : > { %29079 = vst [vmem:[#allocation22_spill] sm:$0xff] %v21911_v6  ;;  %29080 = vst [vmem:[#allocation23_spill] sm:$0xff] %v21913_v12  ;;  %v3475_v26 = vadd.s32 40, %v21907_v23  ;;  %v3476_v39 = vadd.s32 48, %v21907_v23  ;;  %v3477_v40 = vadd.s32 56, %v21907_v23  ;;  %v3478_v47 = vadd.s32 64, %v21907_v23 }
 0x3b6   : > { %v3479_v28 = vadd.s32 72, %v21907_v23  ;;  %v3480_v59 = vadd.s32 80, %v21907_v23  ;;  %v3481_v53 = vadd.s32 88, %v21907_v23  ;;  %v3482_v63 = vadd.s32 96, %v21907_v23 }
 0x3b7   : > { %v3483_v8 = vadd.s32 104, %v21907_v23  ;;  %v3484_v20 = vadd.s32 112, %v21907_v23  ;;  %v3485_v48 = vadd.s32 120, %v21907_v23  ;;  %v21933_v31 = vadd.s32 %v3486_v10, %v21907_v23 }
 0x3b8   : > { %v21935_v32 = vadd.s32 %v3486_v10, %v3471_v14  ;;  %v21937_v42 = vadd.s32 %v3486_v10, %v3472_v18  ;;  %v21939_v37 = vadd.s32 %v3486_v10, %v3473_v22  ;;  %v21941_v9 = vadd.s32 %v3486_v10, %v3474_v3 }
 0x3b9   : > { %29082 = vst [vmem:[#allocation24_spill] sm:$0xff] %v21933_v31  ;;  %v21943_v11 = vadd.s32 %v3486_v10, %v3475_v26  ;;  %v21945_v19 = vadd.s32 %v3486_v10, %v3476_v39  ;;  %v21947_v4 = vadd.s32 %v3486_v10, %v3477_v40  ;;  %v21949_v21 = vadd.s32 %v3486_v10, %v3478_v47 }
 0x3ba   : > { %29083 = vst [vmem:[#allocation25_spill] sm:$0xff] %v21935_v32  ;;  %29084 = vst [vmem:[#allocation26_spill] sm:$0xff] %v21937_v42  ;;  %v21951_v43 = vadd.s32 %v3486_v10, %v3479_v28  ;;  %v21953_v34 = vadd.s32 %v3486_v10, %v3480_v59  ;;  %v21955_v45 = vadd.s32 %v3486_v10, %v3481_v53  ;;  %v21979_v49 = vmov 0.0  }
 0x3bb   : > { %29085 = vst [vmem:[#allocation27_spill] sm:$0xff] %v21939_v37  ;;  %29086 = vst [vmem:[#allocation28_spill] sm:$0xff] %v21941_v9  ;;  %v21957_v16 = vadd.s32 %v3486_v10, %v3482_v63  ;;  %v21959_v46 = vadd.s32 %v3486_v10, %v3483_v8  ;;  %v21961_v27 = vadd.s32 %v3486_v10, %v3484_v20  ;;  %v21981_v58 = vmov 0.0   ;;  %8932 = sbr.rel (%p9923_p8) target bundleno = 1673 (0x689), region = 154 }
 0x3bc   : > { %29087 = vst [vmem:[#allocation29_spill] sm:$0xff] %v21943_v11  ;;  %29088 = vst [vmem:[#allocation30_spill] sm:$0xff] %v21945_v19  ;;  %v21963_v29 = vadd.s32 %v3486_v10, %v3485_v48  ;;  %v21983_v54 = vmov 0.0   ;;  %v21985_v25 = vmov 0.0   ;;  %v21987_v56 = vmov 0.0  }
 0x3bd   : > { %29089 = vst [vmem:[#allocation31_spill] sm:$0xff] %v21947_v4  ;;  %29090 = vst [vmem:[#allocation32_spill] sm:$0xff] %v21949_v21  ;;  %v21989_v57 = vmov 0.0   ;;  %v21991_v61 = vmov 0.0   ;;  %v21993_v55 = vmov 0.0   ;;  %v21995_v60 = vmov 0.0  }
 0x3be   : > { %29091 = vst [vmem:[#allocation33_spill] sm:$0xff] %v21951_v43  ;;  %29092 = vst [vmem:[#allocation34_spill] sm:$0xff] %v21953_v34  ;;  %v21997_v62 = vmov 0.0   ;;  %v21999_v41 = vmov 0.0   ;;  %v22001_v5 = vmov 0.0   ;;  %v22003_v1 = vmov 0.0  }
 0x3bf   : > { %29093 = vst [vmem:[#allocation35_spill] sm:$0xff] %v21955_v45  ;;  %29094 = vst [vmem:[#allocation36_spill] sm:$0xff] %v21957_v16  ;;  %v22005_v44 = vmov 0.0   ;;  %v22007_v10 = vmov 0.0   ;;  %v22009_v14 = vmov 0.0   ;;  %v22011_v18 = vmov 0.0  }
 0x3c0   : > { %29095 = vst [vmem:[#allocation37_spill] sm:$0xff] %v21959_v46  ;;  %29096 = vst [vmem:[#allocation38_spill] sm:$0xff] %v21961_v27  ;;  %v22013_v22 = vmov 0.0   ;;  %v22015_v3 = vmov 0.0   ;;  %v22017_v26 = vmov 0.0   ;;  %v22019_v39 = vmov 0.0  }
 0x3c1   : > { %29097 = vst [vmem:[#allocation39_spill] sm:$0xff] %v21963_v29  ;;  %v22021_v40 = vmov 0.0   ;;  %v22023_v47 = vmov 0.0   ;;  %v22025_v28 = vmov 0.0   ;;  %v22027_v59 = vmov 0.0  }
 0x3c2   : > { %v22031_v53 = vmov 0.0   ;;  %v22033_v63 = vmov 0.0   ;;  %v22035_v8 = vmov 0.0   ;;  %v22037_v20 = vmov 0.0   ;;  %s22127_s30 = smov 0  }
 0x3c3   : > { %29098 = vst [vmem:[#allocation40_spill] sm:$0xff] %v22035_v8  ;;  %v22039_v48 = vmov 0.0   ;;  %v22041_v0 = vmov 0.0   ;;  %v22043_v23 = vmov 0.0   ;;  %v22045_v46 = vmov 0.0  }
 0x3c4   : > { %29099 = vst [vmem:[#allocation41_spill] sm:$0xff] %v22039_v48  ;;  %29100 = vst [vmem:[#allocation42_spill] sm:$0xff] %v22045_v46  ;;  %v22047_v29 = vmov 0.0   ;;  %v22049_v16 = vmov 0.0   ;;  %v22051_v35 = vmov 0.0   ;;  %v22053_v36 = vmov 0.0  }
 0x3c5   : > { %29101 = vst [vmem:[#allocation43_spill] sm:$0xff] %v22051_v35  ;;  %v22055_v38 = vmov 0.0   ;;  %v22057_v52 = vmov 0.0   ;;  %v22059_v15 = vmov 0.0   ;;  %v22061_v50 = vmov 0.0  }
 0x3c6   : > { %29102 = vst [vmem:[#allocation44_spill] sm:$0xff] %v22061_v50  ;;  %v22063_v24 = vmov 0.0   ;;  %v22065_v49 = vmov 0.0   ;;  %v22067_v58 = vmov 0.0   ;;  %v22069_v54 = vmov 0.0  }
 0x3c7   : > { %v22071_v25 = vmov 0.0   ;;  %v22073_v56 = vmov 0.0   ;;  %v22075_v57 = vmov 0.0   ;;  %v22077_v61 = vmov 0.0  }
 0x3c8   : > { %v22079_v55 = vmov 0.0   ;;  %v22081_v60 = vmov 0.0   ;;  %v22083_v62 = vmov 0.0   ;;  %v22085_v41 = vmov 0.0  }
 0x3c9   : > { %v22087_v5 = vmov 0.0   ;;  %v22089_v1 = vmov 0.0   ;;  %v22091_v44 = vmov 0.0   ;;  %v22093_v10 = vmov 0.0  }
 0x3ca   : > { %v22095_v14 = vmov -1e+30   ;;  %v22097_v18 = vmov -1e+30   ;;  %v22099_v22 = vmov -1e+30  }
 0x3cb   : > { %v22101_v3 = vmov -1e+30   ;;  %v22103_v26 = vmov -1e+30   ;;  %v22105_v39 = vmov -1e+30  }
 0x3cc   : > { %v22107_v40 = vmov -1e+30   ;;  %v22109_v47 = vmov -1e+30   ;;  %v22111_v28 = vmov -1e+30  }
 0x3cd   : > { %v22113_v59 = vmov -1e+30   ;;  %v22115_v27 = vmov -1e+30   ;;  %v22117_v43 = vmov -1e+30  }
 0x3ce   : > { %v22119_v45 = vmov -1e+30   ;;  %v22121_v21 = vmov -1e+30   ;;  %v22123_v34 = vmov -1e+30  }
 0x3cf   : > { %v22125_v11 = vmov -1e+30  }
 0x3d0 LB: >> { %29108 = vst [vmem:[#allocation45_spill] sm:$0xff] %v18620_v53  ;;  %29109 = vst [vmem:[#allocation46_spill] sm:$0xff] %v18624_v63  ;;  %v29110_v8 = vld [vmem:[#allocation40_spill] sm:$0xff]  ;;  %v29113_v48 = vld [vmem:[#allocation41_spill] sm:$0xff]  ;;  %vm3591_vm0 = vcmask 523264   ;;  %s10097_s16 = sshll.u32 %s18812_s30, 7  ;;  %s18812_s30 = sphi %s22127_s30, %s29291_s30   ;;  %v18808_v11 = vphi %v22125_v11, %v29290_v11   ;;  %v18804_v34 = vphi %v22123_v34, %v29289_v34   ;;  %v18800_v21 = vphi %v22121_v21, %v29288_v21   ;;  %v18796_v45 = vphi %v22119_v45, %v29287_v45   ;;  %v18792_v43 = vphi %v22117_v43, %v29286_v43   ;;  %v18788_v27 = vphi %v22115_v27, %v29285_v27   ;;  %v18784_v59 = vphi %v22113_v59, %v29284_v59   ;;  %v18780_v28 = vphi %v22111_v28, %v29283_v28   ;;  %v18776_v47 = vphi %v22109_v47, %v29282_v47   ;;  %v18772_v40 = vphi %v22107_v40, %v29281_v40   ;;  %v18768_v39 = vphi %v22105_v39, %v29280_v39   ;;  %v18764_v26 = vphi %v22103_v26, %v29279_v26   ;;  %v18760_v3 = vphi %v22101_v3, %v29278_v3   ;;  %v18756_v22 = vphi %v22099_v22, %v29277_v22   ;;  %v18752_v18 = vphi %v22097_v18, %v29276_v18   ;;  %v18748_v14 = vphi %v22095_v14, %v29275_v14   ;;  %v18744_v10 = vphi %v22093_v10, %v29274_v10   ;;  %v18740_v44 = vphi %v22091_v44, %v29273_v44   ;;  %v18736_v1 = vphi %v22089_v1, %v29272_v1   ;;  %v18732_v5 = vphi %v22087_v5, %v29271_v5   ;;  %v18728_v41 = vphi %v22085_v41, %v29270_v41   ;;  %v18724_v62 = vphi %v22083_v62, %v29269_v62   ;;  %v18720_v60 = vphi %v22081_v60, %v29268_v60   ;;  %v18716_v55 = vphi %v22079_v55, %v29267_v55   ;;  %v18712_v61 = vphi %v22077_v61, %v29266_v61   ;;  %v18708_v57 = vphi %v22075_v57, %v29265_v57   ;;  %v18704_v56 = vphi %v22073_v56, %v29264_v56   ;;  %v18700_v25 = vphi %v22071_v25, %v29263_v25   ;;  %v18696_v54 = vphi %v22069_v54, %v29262_v54   ;;  %v18692_v58 = vphi %v22067_v58, %v29261_v58   ;;  %v18688_v49 = vphi %v22065_v49, %v29260_v49   ;;  %v18684_v24 = vphi %v22063_v24, %v29259_v24   ;;  %v18676_v15 = vphi %v22059_v15, %v29257_v15   ;;  %v18672_v52 = vphi %v22057_v52, %v29256_v52   ;;  %v18668_v38 = vphi %v22055_v38, %v29255_v38   ;;  %v18664_v36 = vphi %v22053_v36, %v29254_v36   ;;  %v18656_v16 = vphi %v22049_v16, %v29252_v16   ;;  %v18652_v29 = vphi %v22047_v29, %v29251_v29   ;;  %v18644_v23 = vphi %v22043_v23, %v29249_v23   ;;  %v18640_v0 = vphi %v22041_v0, %v29248_v0   ;;  %v18632_v20 = vphi %v22037_v20, %v29246_v20   ;;  %v18624_v63 = vphi %v22033_v63, %v29244_v63   ;;  %v18620_v53 = vphi %v22031_v53, %v29243_v53  }
 0x3d1   : >> { %29111 = vst [vmem:[#allocation40_spill] sm:$0xff] %v29110_v8  ;;  %29112 = vst [vmem:[#allocation47_spill] sm:$0xff] %v18632_v20  ;;  %v29117_v46 = vld [vmem:[#allocation42_spill] sm:$0xff]  ;;  %v29121_v35 = vld [vmem:[#allocation43_spill] sm:$0xff]  ;;  %s22281_s0 = sshra.s32 %s10097_s16, 4  ;;  %s3516_s7 = sadd.s32 1, %s18812_s30  }
 0x3d2   : >> { %29114 = vst [vmem:[#allocation41_spill] sm:$0xff] %v29113_v48  ;;  %29115 = vst [vmem:[#allocation48_spill] sm:$0xff] %v18640_v0  ;;  %v29127_v50 = vld [vmem:[#allocation44_spill] sm:$0xff]  ;;  %v29129_v51 = vld [vmem:[#allocation14_spill] sm:$0xff]  ;;  %s10249_s5 = smul.u32 24, %s22281_s0  ;;  %p22705_p12 = scmp.ge.s32.totalorder %s3516_s7, %s20718_s29 }
 0x3d3   : >> { %29116 = vst [vmem:[#allocation49_spill] sm:$0xff] %v18644_v23  ;;  %29118 = vst [vmem:[#allocation42_spill] sm:$0xff] %v29117_v46  ;;  %10885 = vmatprep.mubr.msk.bf16.mxu0 %vm3591_vm0, %v29129_v51  ;;  %v29130_v30 = vld [vmem:[#allocation15_spill] sm:$0xff]  ;;  %v29131_v13 = vld [vmem:[#allocation16_spill] sm:$0xff]  ;;  %s29291_s30 = smov %s3516_s7 }
 0x3d4   : >> { %29119 = vst [vmem:[#allocation50_spill] sm:$0xff] %v18652_v29  ;;  %29120 = vst [vmem:[#allocation51_spill] sm:$0xff] %v18656_v16  ;;  %s3572_s13 = scalar_lea.vmem [#allocation3], %s10249_s5  ;;  %v29132_v17 = vld [vmem:[#allocation17_spill] sm:$0xff]  ;;  %v29133_v2 = vld [vmem:[#allocation18_spill] sm:$0xff]  ;;  %s22318_s14 = scalar_lea.vmem [#allocation4], %s10249_s5 }
 0x3d5   : >> { %29122 = vst [vmem:[#allocation43_spill] sm:$0xff] %v29121_v35  ;;  %29123 = vst [vmem:[#allocation52_spill] sm:$0xff] %v18664_v36  ;;  %v3573_v8 = vld [vmem:[%s3572_s13] sm:$0xff]  ;;  %v3574_v53 = vld [vmem:[%s3572_s13 + $0x18] sm:$0xff] }
 0x3d6   : >> { %29124 = vst [vmem:[#allocation53_spill] sm:$0xff] %v18668_v38  ;;  %29125 = vst [vmem:[#allocation54_spill] sm:$0xff] %v18672_v52  ;;  %11477 = vmatprep.subr.msk.bf16.mxu0 %vm3591_vm0, %v3573_v8  ;;  %v3617_v20 = vsel %vm3591_vm0, %v3573_v8, 0  ;;  %v3620_v51 = vsel %vm3591_vm0, %v3574_v53, 0  ;;  %v3575_v63 = vld [vmem:[%s3572_s13 + $0x30] sm:$0xff]  ;;  %v3576_v48 = vld [vmem:[%s3572_s13 + $0x48] sm:$0xff] }
 0x3d7   : >> { %29126 = vst [vmem:[#allocation55_spill] sm:$0xff] %v18676_v15  ;;  %29128 = vst [vmem:[#allocation44_spill] sm:$0xff] %v29127_v50  ;;  %10870 = vmatpush3.bf16.xpose.msra.mxu0 %v3617_v20  ;;  %v3623_v23 = vsel %vm3591_vm0, %v3575_v63, 0  ;;  %v3626_v46 = vsel %vm3591_vm0, %v3576_v48, 0  ;;  %v3577_v0 = vld [vmem:[%s3572_s13 + $0x60] sm:$0xff]  ;;  %v3578_v20 = vld [vmem:[%s3572_s13 + $0x78] sm:$0xff] }
 0x3d8   : >> { %11478 = vmatprep.subr.msk.bf16.mxu0 %vm3591_vm0, %v3574_v53  ;;  %v3629_v8 = vsel %vm3591_vm0, %v3577_v0, 0  ;;  %v3579_v53 = vld [vmem:[%s3572_s13 + $0x90] sm:$0xff]  ;;  %v29135_v6 = vld [vmem:[#allocation22_spill] sm:$0xff]  ;;  %v29137_v33 = vld [vmem:[#allocation21_spill] sm:$0xff] }
 0x3d9   : >> { %v29134_v7 = vld [vmem:[#allocation19_spill] sm:$0xff]  ;;  %v29138_v42 = vld [vmem:[#allocation26_spill] sm:$0xff]  ;;  %v29139_v31 = vld [vmem:[#allocation24_spill] sm:$0xff] }
 0x3da   : >> { %v29136_v12 = vld [vmem:[#allocation23_spill] sm:$0xff]  ;;  %v29141_v32 = vld [vmem:[#allocation25_spill] sm:$0xff]  ;;  %v29142_v19 = vld [vmem:[#allocation30_spill] sm:$0xff] }
 0x3db   : >> { %v29140_v37 = vld [vmem:[#allocation27_spill] sm:$0xff]  ;;  %v29143_v9 = vld [vmem:[#allocation28_spill] sm:$0xff] }
 0x3dc   : >> { %v29144_v4 = vld [vmem:[#allocation31_spill] sm:$0xff] }
 0x3df   : >> { %10872 = vmatpush3.bf16.xpose.msra.mxu0 %v3620_v51  ;;  %v3632_v51 = vsel %vm3591_vm0, %v3578_v20, 0 }
 0x3e0   : >> { %11479 = vmatprep.subr.msk.bf16.mxu0 %vm3591_vm0, %v3575_v63  ;;  %v3580_v63 = vld [vmem:[%s3572_s13 + $0xa8] sm:$0xff] }
 0x3e7   : >> { %10874 = vmatpush3.bf16.xpose.msra.mxu0 %v3623_v23  ;;  %v3635_v23 = vsel %vm3591_vm0, %v3579_v53, 0 }
 0x3e8   : >> { %11480 = vmatprep.subr.msk.bf16.mxu0 %vm3591_vm0, %v3576_v48  ;;  %v3584_v48 = vld [vmem:[%s22318_s14 + $0x18] sm:$0xff] }
 0x3ef   : >> { %10876 = vmatpush3.bf16.xpose.msra.mxu0 %v3626_v46  ;;  %v3638_v46 = vsel %vm3591_vm0, %v3580_v63, 0 }
 0x3f0   : >> { %11481 = vmatprep.subr.msk.bf16.mxu0 %vm3591_vm0, %v3577_v0  ;;  %v3583_v0 = vld [vmem:[%s22318_s14] sm:$0xff] }
 0x3f1   : >> { %10901 = vmatprep.subr.bf16.mxu1 %v3583_v0 }
 0x3f2   : >> { %10902 = vmatpush3.bf16.msra.mxu1 %v3583_v0 }
 0x3f3   : >> { %10903 = vmatprep.subr.bf16.mxu1 %v3584_v48 }
 0x3f6   : >> { %10904 = vmatpush3.bf16.msra.mxu1 %v3584_v48 }
 0x3f7   : >> { %10878 = vmatpush3.bf16.xpose.msra.mxu0 %v3629_v8  ;;  %v3737_v8 = vstv %s10097_s16 }
 0x3f8   : >> { %11482 = vmatprep.subr.msk.bf16.mxu0 %vm3591_vm0, %v3578_v20  ;;  %v22325_v20 = vadd.s32 %v3737_v8, %v29137_v33 }
 0x3fa   : >> { %vm3741_vm1 = vcmp.le.s32.totalorder %v22325_v20, %v29138_v42  ;;  %vm3739_vm2 = vcmp.le.s32.totalorder %v22325_v20, %v29139_v31  ;;  %vm3742_vm3 = vcmp.le.s32.totalorder %v22325_v20, %v29140_v37  ;;  %vm3740_vm4 = vcmp.le.s32.totalorder %v22325_v20, %v29141_v32  ;;  %v29150_v32 = vld [vmem:[#allocation38_spill] sm:$0xff] }
 0x3fb   : >> { %vm3745_vm5 = vcmp.le.s32.totalorder %v22325_v20, %v29142_v19  ;;  %vm3743_vm6 = vcmp.le.s32.totalorder %v22325_v20, %v29143_v9  ;;  %vm3746_vm7 = vcmp.le.s32.totalorder %v22325_v20, %v29144_v4  ;;  %v3585_v9 = vld [vmem:[%s22318_s14 + $0x30] sm:$0xff]  ;;  %vm3753_vm13 = vcmp.le.s32.totalorder %v22325_v20, %v29150_v32 }
 0x3fc   : >> { %10905 = vmatprep.subr.bf16.mxu1 %v3585_v9 }
 0x3fd   : >> { %10906 = vmatpush3.bf16.msra.mxu1 %v3585_v9 }
 0x3ff   : >> { %10880 = vmatpush3.bf16.xpose.msra.mxu0 %v3632_v51 }
 0x400   : >> { %11483 = vmatprep.subr.msk.bf16.mxu0 %vm3591_vm0, %v3579_v53 }
 0x407   : >> { %10882 = vmatpush3.bf16.xpose.msra.mxu0 %v3635_v23 }
 0x408   : >> { %11484 = vmatprep.subr.msk.bf16.mxu0 %vm3591_vm0, %v3580_v63 }
 0x40f   : >> { %10884 = vmatpush3.bf16.xpose.msra.mxu0 %v3638_v46 }
 0x416   : >> { %10886 = vmatmul.mubr.msk.bf16.vlgmr.msra.gmra.mrb[0].mxu0 %vm3591_vm0, %v29130_v30 }
 0x417   : >> { %10889 = vmatprep.mubr.msk.bf16.mxu0 %vm3591_vm0, %v29131_v13 }
 0x41e   : >> { %10890 = vmatmul.mubr.msk.bf16.gmra.mrb[4].mxu0 %vm3591_vm0, %v29132_v17  ;;  %v29146_v17 = vld [vmem:[#allocation34_spill] sm:$0xff] }
 0x41f   : >> { %10893 = vmatprep.mubr.msk.bf16.mxu0 %vm3591_vm0, %v29133_v2  ;;  %v29145_v2 = vld [vmem:[#allocation29_spill] sm:$0xff]  ;;  %vm3749_vm9 = vcmp.le.s32.totalorder %v22325_v20, %v29146_v17 }
 0x420   : >> { %vm3744_vm8 = vcmp.le.s32.totalorder %v22325_v20, %v29145_v2  ;;  %v29147_v2 = vld [vmem:[#allocation32_spill] sm:$0xff] }
 0x421   : >> { %vm3747_vm10 = vcmp.le.s32.totalorder %v22325_v20, %v29147_v2 }
 0x426   : >> { %10894 = vmatmul.mubr.msk.bf16.gmra.mrb[8].mxu0 %vm3591_vm0, %v29134_v7 }
 0x427   : >> { %10897 = vmatprep.mubr.msk.bf16.mxu0 %vm3591_vm0, %v29135_v6 }
 0x42e   : >> { %10898 = vmatmul.mubr.msk.bf16.gmra.mrb[12].mxu0 %vm3591_vm0, %v29136_v12 }
 0x4e9   : >> { %v10887_v51 = vpop.f32.mrb[0].mxu0 }
 0x4ea   : >> { %v3674_v53 = vpop.f32.mrb[1].mxu0  ;;  %v22333_v23 = vsel %vm3741_vm1, %v10887_v51, -1e+30 }
 0x4eb   : >> { %3775 = vmax.xlane.f32.xlu1 %v22333_v23  ;;  %v10888_v63 = vpop.f32.mrb[2].mxu0  ;;  %v22338_v46 = vsel %vm3739_vm2, %v3674_v53, -1e+30 }
 0x4ec   : >> { %3771 = vmax.xlane.f32.xlu0 %v22338_v46  ;;  %v3677_v0 = vpop.f32.mrb[3].mxu0  ;;  %v22341_v48 = vsel %vm3742_vm3, %v10888_v63, -1e+30 }
 0x4ed   : >> { %v22343_v8 = vsel %vm3740_vm4, %v3677_v0, -1e+30 }
 0x4ef   : >> { %3777 = vmax.xlane.f32.xlu1 %v22341_v48 }
 0x4f0   : >> { %3773 = vmax.xlane.f32.xlu0 %v22343_v8 }
 0x4f1   : >> { %v10891_v51 = vpop.f32.mrb[4].mxu0 }
 0x4f2   : >> { %v3690_v53 = vpop.f32.mrb[5].mxu0  ;;  %v22355_v63 = vsel %vm3745_vm5, %v10891_v51, -1e+30 }
 0x4f3   : >> { %v10892_v0 = vpop.f32.mrb[6].mxu0  ;;  %v22357_v6 = vsel %vm3743_vm6, %v3690_v53, -1e+30  ;;  %v29148_v53 = vld [vmem:[#allocation35_spill] sm:$0xff] }
 0x4f4   : >> { %3779 = vmax.xlane.f32.xlu0 %v22357_v6  ;;  %v3693_v7 = vpop.f32.mrb[7].mxu0  ;;  %v22360_v12 = vsel %vm3746_vm7, %v10892_v0, -1e+30  ;;  %vm3750_vm11 = vcmp.le.s32.totalorder %v22325_v20, %v29148_v53 }
 0x4f5   : >> { %v22362_v13 = vsel %vm3744_vm8, %v3693_v7, -1e+30  ;;  %v29149_v7 = vld [vmem:[#allocation33_spill] sm:$0xff] }
 0x4f6   : >> { %3781 = vmax.xlane.f32.xlu1 %v22362_v13  ;;  %vm3748_vm12 = vcmp.le.s32.totalorder %v22325_v20, %v29149_v7 }
 0x4f8   : >> { %3783 = vmax.xlane.f32.xlu0 %v22355_v63 }
 0x4f9   : >> { %v10895_v51 = vpop.f32.mrb[8].mxu0 }
 0x4fa   : >> { %3785 = vmax.xlane.f32.xlu1 %v22360_v12  ;;  %v3706_v0 = vpop.f32.mrb[9].mxu0  ;;  %v22375_v30 = vsel %vm3749_vm9, %v10895_v51, -1e+30  ;;  %v3586_v51 = vld [vmem:[%s22318_s14 + $0x48] sm:$0xff] }
 0x4fb   : >> { %v10896_v4 = vpop.f32.mrb[10].mxu0  ;;  %v22377_v17 = vsel %vm3747_vm10, %v3706_v0, -1e+30  ;;  %v29151_v0 = vld [vmem:[#allocation36_spill] sm:$0xff]  ;;  %10907 = vmatprep.subr.bf16.mxu1 %v3586_v51 }
 0x4fc   : >> { %3787 = vmax.xlane.f32.xlu0 %v22377_v17  ;;  %v3709_v2 = vpop.f32.mrb[11].mxu0  ;;  %v22381_v19 = vsel %vm3750_vm11, %v10896_v4, -1e+30  ;;  %vm3751_vm14 = vcmp.le.s32.totalorder %v22325_v20, %v29151_v0  ;;  %v29152_v4 = vld [vmem:[#allocation39_spill] sm:$0xff]  ;;  %10908 = vmatpush3.bf16.msra.mxu1 %v3586_v51  ;;  %v3587_v0 = vld [vmem:[%s22318_s14 + $0x60] sm:$0xff] }
 0x4fd   : >> { %v22383_v53 = vsel %vm3748_vm12, %v3709_v2, -1e+30  ;;  %vm3754_vm15 = vcmp.le.s32.totalorder %v22325_v20, %v29152_v4  ;;  %v29153_v2 = vld [vmem:[#allocation37_spill] sm:$0xff]  ;;  %10909 = vmatprep.subr.bf16.mxu1 %v3587_v0 }
 0x4fe   : >> { %3789 = vmax.xlane.f32.xlu1 %v22383_v53  ;;  %vm3752_vm0 = vcmp.le.s32.totalorder %v22325_v20, %v29153_v2  ;;  %v3588_v20 = vld [vmem:[%s22318_s14 + $0x78] sm:$0xff] }
 0x500   : >> { %3791 = vmax.xlane.f32.xlu0 %v22375_v30  ;;  %10910 = vmatpush3.bf16.msra.mxu1 %v3587_v0 }
 0x501   : >> { %v10899_v7 = vpop.f32.mrb[12].mxu0  ;;  %10911 = vmatprep.subr.bf16.mxu1 %v3588_v20 }
 0x502   : >> { %3793 = vmax.xlane.f32.xlu1 %v22381_v19  ;;  %v3722_v9 = vpop.f32.mrb[13].mxu0  ;;  %v22397_v32 = vsel %vm3753_vm13, %v10899_v7, -1e+30  ;;  %v3589_v7 = vld [vmem:[%s22318_s14 + $0x90] sm:$0xff] }
 0x503   : >> { %v10900_v37 = vpop.f32.mrb[14].mxu0  ;;  %v22399_v31 = vsel %vm3751_vm14, %v3722_v9, -1e+30  ;;  %v3590_v9 = vld [vmem:[%s22318_s14 + $0xa8] sm:$0xff] }
 0x504   : >> { %3795 = vmax.xlane.f32.xlu0 %v22399_v31  ;;  %v3725_v42 = vpop.f32.mrb[15].mxu0  ;;  %v22403_v4 = vsel %vm3754_vm15, %v10900_v37, -1e+30  ;;  %10912 = vmatpush3.bf16.msra.mxu1 %v3588_v20 }
 0x505   : >> { %v22405_v51 = vsel %vm3752_vm0, %v3725_v42, -1e+30  ;;  %10913 = vmatprep.subr.bf16.mxu1 %v3589_v7 }
 0x506   : >> { %3797 = vmax.xlane.f32.xlu1 %v22405_v51 }
 0x508   : >> { %3799 = vmax.xlane.f32.xlu0 %v22397_v32  ;;  %10914 = vmatpush3.bf16.msra.mxu1 %v3589_v7 }
 0x509   : >> { %10915 = vmatprep.subr.bf16.mxu1 %v3590_v9 }
 0x50a   : >> { %3801 = vmax.xlane.f32.xlu1 %v22403_v4 }
 0x50c   : >> { %10916 = vmatpush3.bf16.msra.mxu1 %v3590_v9 }
 0x578   : >> { %v3776_v37 = vpop.xlane.xlu1 %3775 }
 0x579   : >> { %v22414_v42 = vmax.f32 %v18800_v21, %v3776_v37   ;;  %v3772_v2 = vpop.xlane.xlu0 %3771 }
 0x57a   : >> { %v22417_v0 = vmax.f32 %v18808_v11, %v3772_v2  }
 0x57b   : >> { %29154 = vst [vmem:[#allocation56_spill] sm:$0xff] %v22414_v42  ;;  %v3869_v20 = vsub.f32 %v22333_v23, %v22414_v42 }
 0x57c   : >> { %29155 = vst [vmem:[#allocation57_spill] sm:$0xff] %v22417_v0  ;;  %v29156_v33 = vmov %v22417_v0  ;;  %v3778_v29 = vpop.xlane.xlu1 %3777 }
 0x57d   : >> { %v3867_v9 = vsub.f32 %v22338_v46, %v29156_v33  ;;  %v3887_v36 = vmul.f32 1.442695, %v3869_v20  ;;  %v22428_v37 = vmax.f32 %v18796_v45, %v3778_v29   ;;  %v3774_v16 = vpop.xlane.xlu0 %3773 }
 0x57e   : >> { %v22431_v2 = vmax.f32 %v18804_v34, %v3774_v16  }
 0x57f   : >> { %29157 = vst [vmem:[#allocation58_spill] sm:$0xff] %v22428_v37  ;;  %v3883_v0 = vmul.f32 1.442695, %v3867_v9  ;;  %v3870_v23 = vsub.f32 %v22341_v48, %v22428_v37  ;;  %15867 = vpow2.f32 %v3887_v36 }
 0x580   : >> { %29158 = vst [vmem:[#allocation59_spill] sm:$0xff] %v22431_v2  ;;  %v3868_v20 = vsub.f32 %v22343_v8, %v22431_v2 }
 0x581   : >> { %v3889_v29 = vmul.f32 1.442695, %v3870_v23  ;;  %v3780_v7 = vpop.xlane.xlu0 %3779  ;;  %15869 = vpow2.f32 %v3883_v0 }
 0x582   : >> { %v3885_v15 = vmul.f32 1.442695, %v3868_v20  ;;  %v22442_v16 = vmax.f32 %v18792_v43, %v3780_v7  }
 0x583   : >> { %v3782_v9 = vpop.xlane.xlu1 %3781  ;;  %15871 = vpow2.f32 %v3889_v29 }
 0x584   : >> { %29159 = vst [vmem:[#allocation60_spill] sm:$0xff] %v22442_v16  ;;  %v29160_v33 = vmov %v22442_v16  ;;  %v22449_v48 = vmax.f32 %v18788_v27, %v3782_v9   ;;  %15873 = vpow2.f32 %v3885_v15 }
 0x585   : >> { %v3871_v36 = vsub.f32 %v22357_v6, %v29160_v33  ;;  %v3784_v38 = vpop.xlane.xlu0 %3783 }
 0x586   : >> { %29161 = vst [vmem:[#allocation61_spill] sm:$0xff] %v22449_v48  ;;  %v29162_v46 = vmov %v22449_v48  ;;  %v22456_v0 = vmax.f32 %v18784_v59, %v3784_v38  }
 0x587   : >> { %v3872_v7 = vsub.f32 %v22362_v13, %v29162_v46  ;;  %v3786_v23 = vpop.xlane.xlu1 %3785  ;;  %v3891_v20 = vmul.f32 1.442695, %v3871_v36 }
 0x588   : >> { %29163 = vst [vmem:[#allocation62_spill] sm:$0xff] %v22456_v0  ;;  %v29164_v2 = vmov %v22456_v0  ;;  %v22459_v29 = vmax.f32 %v18780_v28, %v3786_v23  }
 0x589   : >> { %v3893_v6 = vmul.f32 1.442695, %v3872_v7  ;;  %v3873_v15 = vsub.f32 %v22355_v63, %v29164_v2  ;;  %v3788_v9 = vpop.xlane.xlu0 %3787  ;;  %v15868_v48 = vpop.eup %15867 }
 0x58a   : >> { %29165 = vst [vmem:[#allocation63_spill] sm:$0xff] %v22459_v29  ;;  %v29166_v35 = vmov %v22459_v29  ;;  %v22470_v36 = vmax.f32 %v18776_v47, %v3788_v9   ;;  %3935 = vadd.xlane.f32.xlu0 %v15868_v48 }
 0x58b   : >> { %v3874_v38 = vsub.f32 %v22360_v12, %v29166_v35  ;;  %15875 = vpow2.f32 %v3893_v6  ;;  %v3895_v0 = vmul.f32 1.442695, %v3873_v15  ;;  %v3790_v7 = vpop.xlane.xlu1 %3789  ;;  %v15870_v16 = vpop.eup %15869 }
 0x58c   : >> { %29167 = vst [vmem:[#allocation64_spill] sm:$0xff] %v22470_v36  ;;  %v29168_v8 = vmov %v22470_v36  ;;  %15877 = vpow2.f32 %v3891_v20  ;;  %v22477_v13 = vmax.f32 %v18772_v40, %v3790_v7  }
 0x58d   : >> { %v3897_v23 = vmul.f32 1.442695, %v3874_v38  ;;  %v3875_v29 = vsub.f32 %v22377_v17, %v29168_v8  ;;  %v3792_v12 = vpop.xlane.xlu0 %3791  ;;  %v15872_v50 = vpop.eup %15871  ;;  %15879 = vpow2.f32 %v3895_v0 }
 0x58e   : >> { %29169 = vst [vmem:[#allocation65_spill] sm:$0xff] %v22477_v13  ;;  %v22480_v6 = vmax.f32 %v18768_v39, %v3792_v12   ;;  %v3876_v9 = vsub.f32 %v22383_v53, %v22477_v13  ;;  %3931 = vadd.xlane.f32.xlu0 %v15870_v16  ;;  %3937 = vadd.xlane.f32.xlu1 %v15872_v50  ;;  %v15874_v38 = vpop.eup %15873 }
 0x58f   : >> { %v3899_v15 = vmul.f32 1.442695, %v3875_v29  ;;  %v3794_v17 = vpop.xlane.xlu1 %3793  ;;  %15881 = vpow2.f32 %v3897_v23  ;;  %v3995_v20 = vpack.c.bf16 %v15874_v38, %v15870_v16  ;;  %v3996_v52 = vpack.c.bf16 %v15872_v50, %v15868_v48 }
 0x590   : >> { %29170 = vst [vmem:[#allocation66_spill] sm:$0xff] %v22480_v6  ;;  %v3877_v0 = vsub.f32 %v22375_v30, %v22480_v6  ;;  %v22491_v7 = vmax.f32 %v18764_v26, %v3794_v17   ;;  %v3901_v29 = vmul.f32 1.442695, %v3876_v9 }
 0x591   : >> { %v3796_v12 = vpop.xlane.xlu0 %3795  ;;  %15883 = vpow2.f32 %v3899_v15  ;;  %10917 = vmatprep.mubr.bf16.mxu1 %v3995_v20 }
 0x592   : >> { %29171 = vst [vmem:[#allocation67_spill] sm:$0xff] %v22491_v7  ;;  %v3903_v63 = vmul.f32 1.442695, %v3877_v0  ;;  %v3830_v53 = vsub.f32 %v18764_v26, %v22491_v7  ;;  %v3878_v23 = vsub.f32 %v22381_v19, %v22491_v7  ;;  %v22498_v36 = vmax.f32 %v18760_v3, %v3796_v12   ;;  %3933 = vadd.xlane.f32.xlu1 %v15874_v38 }
 0x593   : >> { %v3798_v30 = vpop.xlane.xlu1 %3797  ;;  %15885 = vpow2.f32 %v3901_v29  ;;  %10918 = vmatmul.mubr.bf16.vlgmr.msra.gmra.mrb[0].mxu1 %v3996_v52 }
 0x594   : >> { %29172 = vst [vmem:[#allocation68_spill] sm:$0xff] %v22498_v36  ;;  %v29173_v13 = vmov %v22498_v36  ;;  %v22501_v9 = vmax.f32 %v18756_v22, %v3798_v30   ;;  %v3905_v17 = vmul.f32 1.442695, %v3878_v23  ;;  %15887 = vpow2.f32 %v3903_v63 }
 0x595   : >> { %v15876_v16 = vpop.eup %15875  ;;  %v3879_v48 = vsub.f32 %v22399_v31, %v29173_v13  ;;  %v3800_v19 = vpop.xlane.xlu0 %3799 }
 0x596   : >> { %29174 = vst [vmem:[#allocation69_spill] sm:$0xff] %v22501_v9  ;;  %v15878_v15 = vpop.eup %15877  ;;  %v3880_v52 = vsub.f32 %v22405_v51, %v22501_v9  ;;  %v22512_v38 = vmax.f32 %v18752_v18, %v3800_v19   ;;  %15889 = vpow2.f32 %v3905_v17 }
 0x597   : >> { %v3907_v36 = vmul.f32 1.442695, %v3879_v48  ;;  %v3802_v0 = vpop.xlane.xlu1 %3801  ;;  %v3997_v29 = vpack.c.bf16 %v15876_v16, %v15878_v15  ;;  %v15880_v23 = vpop.eup %15879 }
 0x598   : >> { %29175 = vst [vmem:[#allocation70_spill] sm:$0xff] %v22512_v38  ;;  %v29176_v12 = vmov %v22512_v38  ;;  %v3909_v30 = vmul.f32 1.442695, %v3880_v52  ;;  %v22519_v20 = vmax.f32 %v18748_v14, %v3802_v0   ;;  %3943 = vadd.xlane.f32.xlu0 %v15880_v23 }
 0x599   : >> { %v3881_v63 = vsub.f32 %v22397_v32, %v29176_v12  ;;  %10921 = vmatprep.mubr.bf16.mxu1 %v3997_v29  ;;  %v15882_v51 = vpop.eup %15881  ;;  %15891 = vpow2.f32 %v3907_v36 }
 0x59a   : >> { %29177 = vst [vmem:[#allocation71_spill] sm:$0xff] %v22519_v20  ;;  %v29178_v50 = vmov %v22519_v20  ;;  %3945 = vadd.xlane.f32.xlu1 %v15882_v51  ;;  %15893 = vpow2.f32 %v3909_v30  ;;  %v3998_v52 = vpack.c.bf16 %v15882_v51, %v15880_v23 }
 0x59b   : >> { %v3911_v19 = vmul.f32 1.442695, %v3881_v63  ;;  %v3882_v17 = vsub.f32 %v22403_v4, %v29178_v50  ;;  %v15884_v38 = vpop.eup %15883 }
 0x59c   : >> { %3939 = vadd.xlane.f32.xlu0 %v15878_v15  ;;  %10922 = vmatmul.mubr.bf16.gmra.mrb[4].mxu1 %v3998_v52 }
 0x59d   : >> { %v3913_v31 = vmul.f32 1.442695, %v3882_v17  ;;  %v15886_v32 = vpop.eup %15885  ;;  %15895 = vpow2.f32 %v3911_v19  ;;  %v29180_v19 = vld [vmem:[#allocation57_spill] sm:$0xff] }
 0x59e   : >> { %3941 = vadd.xlane.f32.xlu1 %v15876_v16  ;;  %v3999_v20 = vpack.c.bf16 %v15886_v32, %v15884_v38  ;;  %v15888_v0 = vpop.eup %15887  ;;  %v29181_v17 = vsub.f32 %v18808_v11, %v29180_v19  ;;  %v29186_v11 = vsub.f32 %v18780_v28, %v29166_v35 }
 0x59f   : >> { %15897 = vpow2.f32 %v3913_v31  ;;  %v29179_v31 = vsub.f32 %v18800_v21, %v22414_v42  ;;  %v29185_v21 = vsub.f32 %v18784_v59, %v29164_v2  ;;  %v29189_v59 = vsub.f32 %v18788_v27, %v29162_v46 }
 0x5a0   : >> { %10925 = vmatprep.mubr.bf16.mxu1 %v3999_v20  ;;  %3951 = vadd.xlane.f32.xlu0 %v15888_v0  ;;  %v15890_v36 = vpop.eup %15889  ;;  %v3835_v52 = vmul.f32 1.442695, %v29181_v17  ;;  %v29183_v20 = vld [vmem:[#allocation59_spill] sm:$0xff]  ;;  %v3857_v27 = vmul.f32 1.442695, %v3830_v53  ;;  %v29198_v53 = vsub.f32 %v18760_v3, %v29173_v13  ;;  %v29201_v3 = vsub.f32 %v18752_v18, %v29176_v12 }
 0x5a1   : >> { %v4000_v29 = vpack.c.bf16 %v15890_v36, %v15888_v0  ;;  %v3839_v51 = vmul.f32 1.442695, %v29179_v31  ;;  %v29184_v0 = vsub.f32 %v18804_v34, %v29183_v20  ;;  %v29187_v34 = vsub.f32 %v18792_v43, %v29160_v33 }
 0x5a2   : >> { %3953 = vadd.xlane.f32.xlu1 %v15890_v36  ;;  %v3845_v28 = vmul.f32 1.442695, %v29189_v59  ;;  %v29190_v43 = vsub.f32 %v18768_v39, %v22480_v6 }
 0x5a3   : >> { %v15892_v63 = vpop.eup %15891  ;;  %15899 = vpow2.f32 %v3839_v51  ;;  %v3837_v36 = vmul.f32 1.442695, %v29184_v0 }
 0x5a4   : >> { %3947 = vadd.xlane.f32.xlu0 %v15884_v38  ;;  %v15894_v4 = vpop.eup %15893  ;;  %10926 = vmatmul.mubr.bf16.gmra.mrb[8].mxu1 %v4000_v29  ;;  %v29182_v38 = vsub.f32 %v18796_v45, %v22428_v37  ;;  %15901 = vpow2.f32 %v3835_v52 }
 0x5a5   : >> { %v4001_v23 = vpack.c.bf16 %v15894_v4, %v15892_v63 }
 0x5a6   : >> { %3949 = vadd.xlane.f32.xlu1 %v15886_v32  ;;  %v3841_v32 = vmul.f32 1.442695, %v29182_v38 }
 0x5a7   : >> { %v15896_v30 = vpop.eup %15895  ;;  %10929 = vmatprep.mubr.bf16.mxu1 %v4001_v23  ;;  %v3849_v23 = vmul.f32 1.442695, %v29186_v11 }
 0x5a8   : >> { %3955 = vadd.xlane.f32.xlu0 %v15892_v63  ;;  %15903 = vpow2.f32 %v3841_v32  ;;  %v3847_v63 = vmul.f32 1.442695, %v29185_v21  ;;  %v3855_v32 = vmul.f32 1.442695, %v29190_v43 }
 0x5a9   : >> { %v15898_v15 = vpop.eup %15897  ;;  %15905 = vpow2.f32 %v3837_v36  ;;  %v29193_v36 = vsub.f32 %v18776_v47, %v29168_v8 }
 0x5aa   : >> { %3957 = vadd.xlane.f32.xlu1 %v15894_v4  ;;  %v4002_v16 = vpack.c.bf16 %v15898_v15, %v15896_v30  ;;  %15907 = vpow2.f32 %v3847_v63 }
 0x5ab   : >> { %15909 = vpow2.f32 %v3849_v23  ;;  %v3851_v21 = vmul.f32 1.442695, %v29193_v36 }
 0x5ac   : >> { %3959 = vadd.xlane.f32.xlu0 %v15896_v30  ;;  %10930 = vmatmul.mubr.bf16.gmra.mrb[12].mxu1 %v4002_v16  ;;  %v3843_v16 = vmul.f32 1.442695, %v29187_v34 }
 0x5ad   : >> { %v22537_v29 = vpop.eup %15899 }
 0x5ae   : >> { %3961 = vadd.xlane.f32.xlu1 %v15898_v15  ;;  %v22545_v30 = vpop.eup %15901  ;;  %v3917_v45 = vmul.f32 %v18736_v1, %v22537_v29  ;;  %15911 = vpow2.f32 %v3843_v16 }
 0x5af   : >> { %v3915_v17 = vmul.f32 %v18744_v10, %v22545_v30  ;;  %15913 = vpow2.f32 %v3845_v28 }
 0x5b0   : >> { %15915 = vpow2.f32 %v3855_v32 }
 0x5b1   : >> { %15917 = vpow2.f32 %v3857_v27 }
 0x5b2   : >> { %v22549_v15 = vpop.eup %15903  ;;  %15919 = vpow2.f32 %v3851_v21 }
 0x5b3   : >> { %v3918_v52 = vmul.f32 %v18732_v5, %v22549_v15  ;;  %v22563_v38 = vpop.eup %15905 }
 0x5b4   : >> { %v3916_v0 = vmul.f32 %v18740_v44, %v22563_v38  ;;  %v22582_v63 = vpop.eup %15907 }
 0x5b5   : >> { %v22587_v26 = vpop.eup %15909  ;;  %v3921_v47 = vmul.f32 %v18720_v60, %v22582_v63 }
 0x5b6   : >> { %v3922_v59 = vmul.f32 %v18716_v55, %v22587_v26 }
 0x5b8   : >> { %v22594_v34 = vpop.eup %15911 }
 0x5b9   : >> { %v22603_v28 = vpop.eup %15913 }
 0x5ba   : >> { %v3920_v18 = vmul.f32 %v18724_v62, %v22603_v28 }
 0x617   : >> { %v3936_v31 = vpop.xlane.xlu0 %3935 }
 0x618   : >> { %v22554_v1 = vadd.f32 %v3936_v31, %v3917_v45   ;;  %v3859_v45 = vmul.f32 1.442695, %v29198_v53 }
 0x61a   : >> { %29188 = vst [vmem:[#allocation72_spill] sm:$0xff] %v22554_v1 }
 0x61b   : >> { %v3932_v20 = vpop.xlane.xlu0 %3931  ;;  %v3938_v1 = vpop.xlane.xlu1 %3937 }
 0x61c   : >> { %v22568_v10 = vadd.f32 %v3932_v20, %v3915_v17   ;;  %v22570_v5 = vadd.f32 %v3938_v1, %v3918_v52   ;;  %v3863_v52 = vmul.f32 1.442695, %v29201_v3  ;;  %v22612_v20 = vpop.eup %15915 }
 0x61d   : >> { %v3925_v36 = vmul.f32 %v18704_v56, %v22612_v20 }
 0x61e   : >> { %29191 = vst [vmem:[#allocation73_spill] sm:$0xff] %v22568_v10  ;;  %29192 = vst [vmem:[#allocation74_spill] sm:$0xff] %v22570_v5  ;;  %v29195_v5 = vld [vmem:[#allocation65_spill] sm:$0xff] }
 0x61f   : >> { %v3934_v39 = vpop.xlane.xlu1 %3933  ;;  %v29196_v11 = vmov %v29195_v5  ;;  %v29197_v10 = vsub.f32 %v18772_v40, %v29195_v5 }
 0x620   : >> { %v22580_v44 = vadd.f32 %v3934_v39, %v3916_v0   ;;  %v22621_v0 = vpop.eup %15917 }
 0x621   : >> { %v3853_v23 = vmul.f32 1.442695, %v29197_v10  ;;  %v15920_v21 = vpop.eup %15919 }
 0x622   : >> { %29194 = vst [vmem:[#allocation75_spill] sm:$0xff] %v22580_v44  ;;  %v29199_v44 = vsub.f32 %v18756_v22, %v22501_v9  ;;  %v3919_v22 = vmul.f32 %v18728_v41, %v22594_v34  ;;  %v3923_v10 = vmul.f32 %v18712_v61, %v15920_v21 }
 0x623   : >> { %15921 = vpow2.f32 %v3853_v23 }
 0x624   : >> { %v3861_v16 = vmul.f32 1.442695, %v29199_v44  ;;  %15923 = vpow2.f32 %v3859_v45 }
 0x625   : >> { %v3944_v40 = vpop.xlane.xlu0 %3943 }
 0x626   : >> { %v22599_v60 = vadd.f32 %v3944_v40, %v3921_v47   ;;  %15925 = vpow2.f32 %v3861_v16 }
 0x627   : >> { %v3946_v43 = vpop.xlane.xlu1 %3945  ;;  %15927 = vpow2.f32 %v3863_v52 }
 0x628   : >> { %29200 = vst [vmem:[#allocation76_spill] sm:$0xff] %v22599_v60  ;;  %v22608_v55 = vadd.f32 %v3946_v43, %v3922_v59   ;;  %v29203_v60 = vsub.f32 %v18748_v14, %v29178_v50  ;;  %v29214_v43 = vld [vmem:[#allocation54_spill] sm:$0xff] }
 0x629   : >> { %v3940_v27 = vpop.xlane.xlu0 %3939 }
 0x62a   : >> { %29202 = vst [vmem:[#allocation77_spill] sm:$0xff] %v22608_v55  ;;  %v3865_v1 = vmul.f32 1.442695, %v29203_v60  ;;  %v22617_v41 = vadd.f32 %v3940_v27, %v3919_v22   ;;  %v3981_v22 = vmul.f32 %v29214_v43, %v22537_v29  ;;  %v29215_v60 = vld [vmem:[#allocation44_spill] sm:$0xff]  ;;  %v29217_v27 = vld [vmem:[#allocation53_spill] sm:$0xff]  ;;  %v29222_v29 = vld [vmem:[#allocation51_spill] sm:$0xff] }
 0x62b   : >> { %v3942_v55 = vpop.xlane.xlu1 %3941  ;;  %v29235_v43 = vld [vmem:[#allocation49_spill] sm:$0xff] }
 0x62c   : >> { %29204 = vst [vmem:[#allocation78_spill] sm:$0xff] %v22617_v41  ;;  %v22623_v62 = vadd.f32 %v3942_v55, %v3920_v18   ;;  %15929 = vpow2.f32 %v3865_v1  ;;  %v3926_v41 = vmul.f32 %v18700_v25, %v22621_v0  ;;  %v3979_v1 = vmul.f32 %v29215_v60, %v22545_v30  ;;  %v29219_v55 = vld [vmem:[#allocation55_spill] sm:$0xff] }
 0x62d   : >> { %v3952_v39 = vpop.xlane.xlu0 %3951  ;;  %v15922_v14 = vpop.eup %15921  ;;  %v3982_v18 = vmul.f32 %v29217_v27, %v22549_v15  ;;  %v3985_v30 = vmul.f32 %v29222_v29, %v22582_v63  ;;  %v29230_v63 = vld [vmem:[#allocation48_spill] sm:$0xff] }
 0x62e   : >> { %29205 = vst [vmem:[#allocation79_spill] sm:$0xff] %v22623_v62  ;;  %v22627_v56 = vadd.f32 %v3952_v39, %v3925_v36   ;;  %v15924_v23 = vpop.eup %15923  ;;  %v3924_v62 = vmul.f32 %v18708_v57, %v15922_v14  ;;  %v3980_v36 = vmul.f32 %v29219_v55, %v22563_v38 }
 0x62f   : >> { %v3954_v5 = vpop.xlane.xlu1 %3953 }
 0x630   : >> { %29206 = vst [vmem:[#allocation80_spill] sm:$0xff] %v22627_v56  ;;  %v22631_v25 = vadd.f32 %v3954_v5, %v3926_v41   ;;  %v15926_v45 = vpop.eup %15925  ;;  %v3927_v56 = vmul.f32 %v18696_v54, %v15924_v23  ;;  %v29223_v41 = vld [vmem:[#allocation52_spill] sm:$0xff] }
 0x631   : >> { %v3948_v53 = vpop.xlane.xlu0 %3947  ;;  %v15928_v44 = vpop.eup %15927  ;;  %v3983_v5 = vmul.f32 %v29223_v41, %v22594_v34  ;;  %v3989_v34 = vmul.f32 %v29230_v63, %v22612_v20  ;;  %v29238_v20 = vld [vmem:[#allocation46_spill] sm:$0xff] }
 0x632   : >> { %v29207_v33 = vmov %v22631_v25  ;;  %v22634_v61 = vadd.f32 %v3948_v53, %v3923_v10   ;;  %v3928_v25 = vmul.f32 %v18692_v58, %v15926_v45  ;;  %v29225_v53 = vld [vmem:[#allocation50_spill] sm:$0xff] }
 0x633   : >> { %v3950_v47 = vpop.xlane.xlu1 %3949  ;;  %v29270_v41 = vld [vmem:[#allocation78_spill] sm:$0xff] }
 0x634   : >> { %29208 = vst [vmem:[#allocation81_spill] sm:$0xff] %v22634_v61  ;;  %v22637_v57 = vadd.f32 %v3950_v47, %v3924_v62   ;;  %v3929_v61 = vmul.f32 %v18688_v49, %v15928_v44  ;;  %v3986_v62 = vmul.f32 %v29225_v53, %v22587_v26 }
 0x635   : >> { %v3956_v16 = vpop.xlane.xlu0 %3955 }
 0x636   : >> { %29209 = vst [vmem:[#allocation82_spill] sm:$0xff] %v22637_v57  ;;  %v22640_v54 = vadd.f32 %v3956_v16, %v3927_v56   ;;  %v15930_v40 = vpop.eup %15929 }
 0x637   : >> { %v3958_v59 = vpop.xlane.xlu1 %3957  ;;  %v3930_v52 = vmul.f32 %v18684_v24, %v15930_v40 }
 0x638   : >> { %v29210_v8 = vmov %v22640_v54  ;;  %v22643_v58 = vadd.f32 %v3958_v59, %v3928_v25  }
 0x639   : >> { %v3960_v3 = vpop.xlane.xlu0 %3959 }
 0x63a   : >> { %v29211_v6 = vmov %v22643_v58  ;;  %v22646_v49 = vadd.f32 %v3960_v3, %v3929_v61  }
 0x63b   : >> { %v3962_v57 = vpop.xlane.xlu1 %3961 }
 0x63c   : >> { %v29212_v7 = vmov %v22646_v49  ;;  %v22649_v24 = vadd.f32 %v3962_v57, %v3930_v52  }
 0x63d   : > { %v29308_v41 = vmov (%p22705_p12), %v29212_v7 }
 0x63e   : >> { %v29213_v13 = vmov %v22649_v24 }
 0x666   : >> { %v10919_v54 = vpop.f32.mrb[0].mxu1 }
 0x667   : >> { %v22655_v52 = vadd.f32 %v10919_v54, %v3981_v22   ;;  %v4037_v58 = vpop.f32.mrb[1].mxu1  ;;  %v3988_v22 = vmul.f32 %v29235_v43, %v15922_v14  ;;  %v29286_v43 = vld [vmem:[#allocation60_spill] sm:$0xff] }
 0x668   : >> { %v22659_v60 = vadd.f32 %v4037_v58, %v3979_v1   ;;  %v10920_v49 = vpop.f32.mrb[2].mxu1 }
 0x669   : >> { %v29216_v9 = vmov %v22655_v52  ;;  %v22663_v38 = vadd.f32 %v10920_v49, %v3982_v18   ;;  %v4040_v24 = vpop.f32.mrb[3].mxu1  ;;  %v29233_v52 = vld [vmem:[#allocation41_spill] sm:$0xff]  ;;  %v29240_v18 = vld [vmem:[#allocation45_spill] sm:$0xff] }
 0x66a   : >> { %v29218_v12 = vmov %v22659_v60  ;;  %v22665_v15 = vadd.f32 %v4040_v24, %v3980_v36   ;;  %v3990_v57 = vmul.f32 %v29233_v52, %v22621_v0  ;;  %v3993_v60 = vmul.f32 %v29238_v20, %v15928_v44  ;;  %v29273_v44 = vld [vmem:[#allocation75_spill] sm:$0xff] }
 0x66b   : >> { %v29220_v31 = vmov %v22663_v38  ;;  %v29227_v38 = vld [vmem:[#allocation43_spill] sm:$0xff]  ;;  %v3994_v55 = vmul.f32 %v29240_v18, %v15930_v40  ;;  %v29256_v52 = vmov %v29216_v9  ;;  %29258 = vst [vmem:[#allocation44_spill] sm:$0xff] %v29218_v12  ;;  %v29259_v24 = vmov %v29213_v13  ;;  %v29276_v18 = vld [vmem:[#allocation70_spill] sm:$0xff] }
 0x66c   : >> { %v29221_v19 = vmov %v22665_v15  ;;  %v3984_v56 = vmul.f32 %v29227_v38, %v22603_v28  ;;  %v29255_v38 = vmov %v29220_v31  ;;  %v29281_v40 = vmov %v29196_v11  ;;  %v29290_v11 = vld [vmem:[#allocation57_spill] sm:$0xff]  ;;  %v29314_v18 = vld [vmem:[#allocation81_spill] sm:$0xff] (%p22705_p12) }
 0x66d   : > { %v29311_v44 = vmov (%p22705_p12), %v29207_v33  ;;  %v29319_v40 = vld [vmem:[#allocation74_spill] sm:$0xff] (%p22705_p12) }
 0x66f   : >> { %v10923_v39 = vpop.f32.mrb[4].mxu1 }
 0x670   : >> { %v22671_v16 = vadd.f32 %v10923_v39, %v3985_v30   ;;  %v4053_v10 = vpop.f32.mrb[5].mxu1  ;;  %v29280_v39 = vld [vmem:[#allocation66_spill] sm:$0xff] }
 0x671   : >> { %v22675_v36 = vadd.f32 %v4053_v10, %v3983_v5   ;;  %v10924_v47 = vpop.f32.mrb[6].mxu1  ;;  %v29271_v5 = vld [vmem:[#allocation74_spill] sm:$0xff]  ;;  %v29274_v10 = vld [vmem:[#allocation73_spill] sm:$0xff] }
 0x672   : >> { %v29224_v51 = vmov %v22671_v16  ;;  %v22679_v29 = vadd.f32 %v10924_v47, %v3986_v62   ;;  %v4056_v15 = vpop.f32.mrb[7].mxu1  ;;  %v29231_v16 = vld [vmem:[#allocation42_spill] sm:$0xff]  ;;  %v29269_v62 = vld [vmem:[#allocation79_spill] sm:$0xff]  ;;  %v29282_v47 = vld [vmem:[#allocation64_spill] sm:$0xff]  ;;  %v29309_v5 = vmov (%p22705_p12), %v29211_v6 }
 0x673   : >> { %v29226_v48 = vmov %v22675_v36  ;;  %v22681_v25 = vadd.f32 %v4056_v15, %v3984_v56   ;;  %v3987_v61 = vmul.f32 %v29231_v16, %v15920_v21  ;;  %v29239_v21 = vld [vmem:[#allocation47_spill] sm:$0xff]  ;;  %v29252_v16 = vmov %v29224_v51  ;;  %v29264_v56 = vld [vmem:[#allocation80_spill] sm:$0xff]  ;;  %v29318_v39 = vld [vmem:[#allocation78_spill] sm:$0xff] (%p22705_p12) }
 0x674   : >> { %v29228_v4 = vmov %v22679_v29  ;;  %v3991_v58 = vmul.f32 %v29239_v21, %v15924_v23  ;;  %v29288_v21 = vld [vmem:[#allocation56_spill] sm:$0xff]  ;;  %v29302_v56 = vmov (%p22705_p12), %v29226_v48  ;;  %v29307_v62 = vmov (%p22705_p12), %v29213_v13  ;;  %v29312_v10 = vld [vmem:[#allocation80_spill] sm:$0xff] (%p22705_p12) }
 0x675   : >> { %v29229_v42 = vmov %v22681_v25  ;;  %v29251_v29 = vmov %v29228_v4  ;;  %v29320_v47 = vld [vmem:[#allocation72_spill] sm:$0xff] (%p22705_p12) }
 0x676   : >> { %29253 = vst [vmem:[#allocation43_spill] sm:$0xff] %v29229_v42 }
 0x677   : >> { %v10927_v59 = vpop.f32.mrb[8].mxu1 }
 0x678   : >> { %v22686_v3 = vadd.f32 %v10927_v59, %v3989_v34   ;;  %v4069_v26 = vpop.f32.mrb[9].mxu1  ;;  %v29284_v59 = vld [vmem:[#allocation62_spill] sm:$0xff]  ;;  %v29289_v34 = vld [vmem:[#allocation59_spill] sm:$0xff] }
 0x679   : >> { %v22690_v49 = vadd.f32 %v4069_v26, %v3987_v61   ;;  %v10928_v28 = vpop.f32.mrb[10].mxu1  ;;  %v29266_v61 = vld [vmem:[#allocation81_spill] sm:$0xff]  ;;  %v29279_v26 = vld [vmem:[#allocation67_spill] sm:$0xff] }
 0x67a   : >> { %v29232_v30 = vmov %v22686_v3  ;;  %v22693_v15 = vadd.f32 %v10928_v28, %v3990_v57   ;;  %v4072_v25 = vpop.f32.mrb[11].mxu1  ;;  %v29265_v57 = vld [vmem:[#allocation82_spill] sm:$0xff]  ;;  %v29278_v3 = vld [vmem:[#allocation68_spill] sm:$0xff]  ;;  %v29304_v61 = vmov (%p22705_p12), %v29216_v9  ;;  %v29317_v26 = vld [vmem:[#allocation79_spill] sm:$0xff] (%p22705_p12) }
 0x67b   : >> { %v29234_v17 = vmov %v22690_v49  ;;  %v22695_v54 = vadd.f32 %v4072_v25, %v3988_v22   ;;  %v29241_v49 = vld [vmem:[#allocation40_spill] sm:$0xff]  ;;  %v29263_v25 = vmov %v29207_v33  ;;  %v29277_v22 = vld [vmem:[#allocation69_spill] sm:$0xff]  ;;  %v29303_v57 = vmov (%p22705_p12), %v29220_v31 }
 0x67c   : >> { %v29236_v50 = vmov %v22693_v15  ;;  %v3992_v36 = vmul.f32 %v29241_v49, %v15926_v45  ;;  %29250 = vst [vmem:[#allocation42_spill] sm:$0xff] %v29234_v17  ;;  %v29257_v15 = vmov %v29221_v19  ;;  %v29260_v49 = vmov %v29212_v7  ;;  %v29283_v28 = vld [vmem:[#allocation63_spill] sm:$0xff]  ;;  %v29287_v45 = vld [vmem:[#allocation58_spill] sm:$0xff]  ;;  %v29315_v22 = vld [vmem:[#allocation77_spill] sm:$0xff] (%p22705_p12) }
 0x67d   : >> { %v29237_v32 = vmov %v22695_v54  ;;  %29247 = vst [vmem:[#allocation41_spill] sm:$0xff] %v29236_v50  ;;  %v29262_v54 = vmov %v29210_v8  ;;  %v29295_v15 = vmov (%p22705_p12), %v29236_v50  ;;  %v29296_v50 = vmov (%p22705_p12), %v29232_v30  ;;  %v29316_v3 = vld [vmem:[#allocation76_spill] sm:$0xff] (%p22705_p12)  ;;  %v29321_v28 = vld [vmem:[#allocation75_spill] sm:$0xff] (%p22705_p12)  ;;  %v29322_v59 = vld [vmem:[#allocation73_spill] sm:$0xff] (%p22705_p12) }
 0x67e   : >> { %v29249_v23 = vmov %v29237_v32  ;;  %v29297_v24 = vmov (%p22705_p12), %v29237_v32  ;;  %v29298_v49 = vmov (%p22705_p12), %v29234_v17  ;;  %v29300_v54 = vmov (%p22705_p12), %v29224_v51 }
 0x67f   : >> { %v10931_v1 = vpop.f32.mrb[12].mxu1  ;;  %v29301_v25 = vmov (%p22705_p12), %v29229_v42 }
 0x680   : >> { %v4114_v46 = vadd.f32 %v10931_v1, %v3993_v60   ;;  %v4085_v27 = vpop.f32.mrb[13].mxu1  ;;  %v29268_v60 = vld [vmem:[#allocation76_spill] sm:$0xff] }
 0x681   : >> { %v4112_v2 = vadd.f32 %v4085_v27, %v3991_v58   ;;  %v10932_v0 = vpop.f32.mrb[14].mxu1  ;;  %v29261_v58 = vmov %v29211_v6  ;;  %v29272_v1 = vld [vmem:[#allocation72_spill] sm:$0xff]  ;;  %v29285_v27 = vld [vmem:[#allocation61_spill] sm:$0xff]  ;;  %v29306_v60 = vmov (%p22705_p12), %v29218_v12 }
 0x682   : >> { %v4115_v35 = vadd.f32 %v10932_v0, %v3994_v55   ;;  %v4088_v14 = vpop.f32.mrb[15].mxu1  ;;  %v29244_v63 = vmov %v4114_v46  ;;  %v29248_v0 = vmov %v29232_v30  ;;  %v29267_v55 = vld [vmem:[#allocation77_spill] sm:$0xff]  ;;  %3518 = sbr.rel (!%p22705_p12) target bundleno = 976 (0x3d0), region = 160  ;;  %v29299_v58 = vmov (%p22705_p12), %v29228_v4 }
 0x683   : >> { %v4113_v37 = vadd.f32 %v4088_v14, %v3992_v36   ;;  %v29246_v20 = vmov %v4112_v2  ;;  %v29254_v36 = vmov %v29226_v48  ;;  %v29275_v14 = vld [vmem:[#allocation71_spill] sm:$0xff]  ;;  %v29294_v52 = vmov (%p22705_p12), %v4112_v2 }
 0x684   : >> { %v29243_v53 = vmov %v4115_v35  ;;  %v29292_v36 = vmov (%p22705_p12), %v4114_v46  ;;  %v29305_v55 = vmov (%p22705_p12), %v29221_v19  ;;  %v29310_v1 = vmov (%p22705_p12), %v29210_v8  ;;  %v29313_v14 = vld [vmem:[#allocation82_spill] sm:$0xff] (%p22705_p12) }
 0x685   : >> { %29245 = vst [vmem:[#allocation40_spill] sm:$0xff] %v4113_v37  ;;  %v29293_v38 = vmov (%p22705_p12), %v4113_v37 }
 0x689 PF: > { %15931 = vrcp.f32 %v18940_v59  ;;  %v22999_v33 = vld [vmem:[#allocation2] sm:$0xff]  ;;  %v23001_v42 = vld [vmem:[#allocation2 + $0x18] sm:$0xff]  ;;  %v23003_v37 = vld [vmem:[#allocation2 + $0x30] sm:$0xff]  ;;  %vm4156_vm1 = vcmask 523264   ;;  %v23037_v20 = vmov 0.0   ;;  %v23045_v21 = vmov 0.0   ;;  %v18940_v59 = vphi %v22027_v59, %v29322_v59   ;;  %v18936_v28 = vphi %v22025_v28, %v29321_v28   ;;  %v18932_v47 = vphi %v22023_v47, %v29320_v47   ;;  %v18928_v40 = vphi %v22021_v40, %v29319_v40   ;;  %v18924_v39 = vphi %v22019_v39, %v29318_v39   ;;  %v18920_v26 = vphi %v22017_v26, %v29317_v26   ;;  %v18916_v3 = vphi %v22015_v3, %v29316_v3   ;;  %v18912_v22 = vphi %v22013_v22, %v29315_v22   ;;  %v18908_v18 = vphi %v22011_v18, %v29314_v18   ;;  %v18904_v14 = vphi %v22009_v14, %v29313_v14   ;;  %v18900_v10 = vphi %v22007_v10, %v29312_v10   ;;  %v18896_v44 = vphi %v22005_v44, %v29311_v44   ;;  %v18892_v1 = vphi %v22003_v1, %v29310_v1   ;;  %v18888_v5 = vphi %v22001_v5, %v29309_v5   ;;  %v18884_v41 = vphi %v21999_v41, %v29308_v41   ;;  %v18880_v62 = vphi %v21997_v62, %v29307_v62   ;;  %v18876_v60 = vphi %v21995_v60, %v29306_v60   ;;  %v18872_v55 = vphi %v21993_v55, %v29305_v55   ;;  %v18868_v61 = vphi %v21991_v61, %v29304_v61   ;;  %v18864_v57 = vphi %v21989_v57, %v29303_v57   ;;  %v18860_v56 = vphi %v21987_v56, %v29302_v56   ;;  %v18856_v25 = vphi %v21985_v25, %v29301_v25   ;;  %v18852_v54 = vphi %v21983_v54, %v29300_v54   ;;  %v18848_v58 = vphi %v21981_v58, %v29299_v58   ;;  %v18844_v49 = vphi %v21979_v49, %v29298_v49   ;;  %v18840_v24 = vphi %v21977_v24, %v29297_v24   ;;  %v18836_v50 = vphi %v21975_v50, %v29296_v50   ;;  %v18832_v15 = vphi %v21973_v15, %v29295_v15   ;;  %v18828_v52 = vphi %v21971_v52, %v29294_v52   ;;  %v18824_v38 = vphi %v21969_v38, %v29293_v38   ;;  %v18820_v36 = vphi %v21967_v36, %v29292_v36   ;;  %v18816_v35 = vphi %v21965_v35, %v4115_v35  }
 0x68a   : > { %29323 = vst [vmem:[#allocation14_spill] sm:$0xff] %v22999_v33  ;;  %29324 = vst [vmem:[#allocation15_spill] sm:$0xff] %v23001_v42  ;;  %15933 = vrcp.f32 %v18936_v28  ;;  %v23005_v2 = vld [vmem:[#allocation2 + $0x48] sm:$0xff]  ;;  %v23007_v46 = vld [vmem:[#allocation2 + $0x60] sm:$0xff]  ;;  %v23051_v27 = vmov 0.0   ;;  %v23057_v0 = vmov 0.0  }
 0x68b   : > { %29325 = vst [vmem:[#allocation16_spill] sm:$0xff] %v23003_v37  ;;  %29326 = vst [vmem:[#allocation17_spill] sm:$0xff] %v23005_v2  ;;  %v23009_v8 = vld [vmem:[#allocation2 + $0x78] sm:$0xff]  ;;  %15935 = vrcp.f32 %v18932_v47  ;;  %v23011_v13 = vld [vmem:[#allocation2 + $0x90] sm:$0xff] }
 0x68c   : > { %29327 = vst [vmem:[#allocation18_spill] sm:$0xff] %v23007_v46  ;;  %29328 = vst [vmem:[#allocation19_spill] sm:$0xff] %v23009_v8  ;;  %v23013_v6 = vld [vmem:[#allocation2 + $0xa8] sm:$0xff]  ;;  %15937 = vrcp.f32 %v18928_v40 }
 0x68d   : > { %29329 = vst [vmem:[#allocation22_spill] sm:$0xff] %v23011_v13  ;;  %29330 = vst [vmem:[#allocation23_spill] sm:$0xff] %v23013_v6  ;;  %15939 = vrcp.f32 %v18924_v39 }
 0x68e   : > { %15941 = vrcp.f32 %v18920_v26 }
 0x68f   : > { %15943 = vrcp.f32 %v18916_v3 }
 0x690   : > { %15945 = vrcp.f32 %v18912_v22 }
 0x691   : > { %15947 = vrcp.f32 %v18908_v18  ;;  %v23053_v18 = vmov 0.0  }
 0x692   : > { %15949 = vrcp.f32 %v18904_v14  ;;  %v23063_v14 = vmov 0.0  }
 0x693   : > { %v15932_v7 = vpop.eup %15931  ;;  %15951 = vrcp.f32 %v18900_v10 }
 0x694   : > { %v15934_v9 = vpop.eup %15933  ;;  %v4132_v12 = vmul.f32 %v18876_v60, %v15932_v7  ;;  %15953 = vrcp.f32 %v18896_v44  ;;  %v23041_v60 = vmov 0.0   ;;  %v23065_v7 = vmov 0.0  }
 0x695   : > { %v15936_v48 = vpop.eup %15935  ;;  %v4133_v19 = vmul.f32 %v18872_v55, %v15934_v9  ;;  %15955 = vrcp.f32 %v18892_v1  ;;  %v23043_v1 = vmov 0.0   ;;  %v23055_v55 = vmov 0.0  }
 0x696   : > { %v15938_v4 = vpop.eup %15937  ;;  %v4134_v51 = vmul.f32 %v18868_v61, %v15936_v48  ;;  %15957 = vrcp.f32 %v18888_v5  ;;  %v23067_v9 = vmov 0.0   ;;  %v23071_v48 = vmov 0.0  }
 0x697   : > { %v15940_v31 = vpop.eup %15939  ;;  %v4148_v11 = vpack.c.bf16 %v4133_v19, %v4132_v12  ;;  %v4135_v17 = vmul.f32 %v18864_v57, %v15938_v4  ;;  %15959 = vrcp.f32 %v18884_v41  ;;  %v23069_v12 = vmov 0.0  }
 0x698   : > { %v15942_v32 = vpop.eup %15941  ;;  %v4136_v23 = vmul.f32 %v18860_v56, %v15940_v31  ;;  %15961 = vrcp.f32 %v18880_v62  ;;  %v23073_v19 = vmov 0.0   ;;  %v23075_v4 = vmov 0.0  }
 0x699   : > { %v15944_v45 = vpop.eup %15943  ;;  %4157 = vst.msk [vmem:[#allocation5] sm:$0xff] %vm4156_vm1, %v4148_v11  ;;  %v4149_v40 = vpack.c.bf16 %v4135_v17, %v4134_v51  ;;  %v4137_v29 = vmul.f32 %v18856_v25, %v15942_v32  ;;  %v23077_v51 = vmov 0.0   ;;  %v23079_v31 = vmov 0.0  }
 0x69a   : > { %v15946_v44 = vpop.eup %15945  ;;  %v4138_v39 = vmul.f32 %v18852_v54, %v15944_v45  ;;  %v23035_v54 = vmov 0.0   ;;  %v23081_v11 = vmov 0.0   ;;  %v23083_v17 = vmov 0.0  }
 0x69b   : > { %v15948_v10 = vpop.eup %15947  ;;  %4158 = vst.msk [vmem:[#allocation5 + $0x18] sm:$0xff] %vm4156_vm1, %v4149_v40  ;;  %v4150_v53 = vpack.c.bf16 %v4137_v29, %v4136_v23  ;;  %v4139_v5 = vmul.f32 %v18848_v58, %v15946_v44  ;;  %v23049_v58 = vmov 0.0   ;;  %v23085_v32 = vmov 0.0  }
 0x69c   : > { %v15950_v47 = vpop.eup %15949  ;;  %v4140_v41 = vmul.f32 %v18844_v49, %v15948_v10  ;;  %v23059_v49 = vmov 0.0   ;;  %v23087_v23 = vmov 0.0   ;;  %v23089_v45 = vmov 0.0  }
 0x69d   : > { %v15952_v63 = vpop.eup %15951  ;;  %4159 = vst.msk [vmem:[#allocation5 + $0x30] sm:$0xff] %vm4156_vm1, %v4150_v53  ;;  %v4151_v62 = vpack.c.bf16 %v4139_v5, %v4138_v39  ;;  %v4141_v56 = vmul.f32 %v18840_v24, %v15950_v47  ;;  %v23091_v40 = vmov 0.0   ;;  %v23093_v29 = vmov 0.0  }
 0x69e   : > { %v15954_v34 = vpop.eup %15953  ;;  %v4142_v59 = vmul.f32 %v18836_v50, %v15952_v63  ;;  %v23095_v44 = vmov 0.0  }
 0x69f   : > { %v15956_v16 = vpop.eup %15955  ;;  %4160 = vst.msk [vmem:[#allocation5 + $0x48] sm:$0xff] %vm4156_vm1, %v4151_v62  ;;  %v4152_v61 = vpack.c.bf16 %v4141_v56, %v4140_v41  ;;  %v4143_v3 = vmul.f32 %v18832_v15, %v15954_v34 }
 0x6a0   : > { %v15958_v30 = vpop.eup %15957  ;;  %v4144_v26 = vmul.f32 %v18828_v52, %v15956_v16  ;;  %v23033_v52 = vmov 0.0  }
 0x6a1   : > { %v15960_v57 = vpop.eup %15959  ;;  %4161 = vst.msk [vmem:[#allocation5 + $0x60] sm:$0xff] %vm4156_vm1, %v4152_v61  ;;  %v4153_v28 = vpack.c.bf16 %v4143_v3, %v4142_v59  ;;  %v4145_v43 = vmul.f32 %v18824_v38, %v15958_v30  ;;  %v23039_v38 = vmov 0.0   ;;  %9081 = sbr.rel (%p9923_p8) target bundleno = 2543 (0x9ef), region = 165 }
 0x6a2   : > { %v15962_v22 = vpop.eup %15961  ;;  %v4146_v24 = vmul.f32 %v18820_v36, %v15960_v57  ;;  %v23061_v36 = vmov 0.0  }
 0x6a3   : > { %4162 = vst.msk [vmem:[#allocation5 + $0x78] sm:$0xff] %vm4156_vm1, %v4153_v28  ;;  %v4154_v50 = vpack.c.bf16 %v4145_v43, %v4144_v26  ;;  %v4147_v25 = vmul.f32 %v18816_v35, %v15962_v22  ;;  %v23047_v35 = vmov 0.0  }
 0x6a5   : > { %4163 = vst.msk [vmem:[#allocation5 + $0x90] sm:$0xff] %vm4156_vm1, %v4154_v50  ;;  %v4155_v15 = vpack.c.bf16 %v4147_v25, %v4146_v24 }
 0x6a7   : > { %4164 = vst.msk [vmem:[#allocation5 + $0xa8] sm:$0xff] %vm4156_vm1, %v4155_v15 }
 0x6a8   : > { %v23099_v39 = vmov 0.0   ;;  %v23101_v10 = vmov 0.0   ;;  %v23103_v53 = vmov 0.0   ;;  %v23105_v5 = vmov 0.0   ;;  %s23195_s19 = smov 0  }
 0x6a9   : > { %v23107_v47 = vmov 0.0   ;;  %v23109_v41 = vmov 0.0   ;;  %v23111_v63 = vmov 0.0   ;;  %v23113_v62 = vmov 0.0  }
 0x6aa   : > { %29331 = vst [vmem:[#allocation83_spill] sm:$0xff] %v23107_v47  ;;  %v23115_v56 = vmov 0.0   ;;  %v23117_v34 = vmov 0.0   ;;  %v23119_v59 = vmov 0.0   ;;  %v23121_v16 = vmov 0.0  }
 0x6ab   : > { %v23123_v61 = vmov 0.0   ;;  %v23125_v3 = vmov 0.0   ;;  %v23127_v30 = vmov 0.0   ;;  %v23129_v26 = vmov 0.0  }
 0x6ac   : > { %v23131_v57 = vmov 0.0   ;;  %v23133_v28 = vmov 0.0   ;;  %v23135_v43 = vmov 0.0   ;;  %v23137_v22 = vmov 0.0  }
 0x6ad   : > { %v23139_v24 = vmov 0.0   ;;  %v23141_v50 = vmov 0.0   ;;  %v23143_v25 = vmov 0.0   ;;  %v23145_v15 = vmov 0.0  }
 0x6ae   : > { %v23147_v52 = vmov 0.0   ;;  %v23149_v54 = vmov 0.0   ;;  %v23151_v20 = vmov 0.0   ;;  %v23153_v38 = vmov 0.0  }
 0x6af   : > { %v23155_v60 = vmov 0.0   ;;  %v23157_v1 = vmov 0.0   ;;  %v23159_v21 = vmov 0.0   ;;  %v23161_v35 = vmov 0.0  }
 0x6b0   : > { %v23163_v58 = vmov -1e+30   ;;  %v23165_v27 = vmov -1e+30   ;;  %v23167_v18 = vmov -1e+30  }
 0x6b1   : > { %v23169_v55 = vmov -1e+30   ;;  %v23171_v0 = vmov -1e+30   ;;  %v23173_v49 = vmov -1e+30  }
 0x6b2   : > { %v23175_v36 = vmov -1e+30   ;;  %v23177_v14 = vmov -1e+30   ;;  %v23179_v7 = vmov -1e+30  }
 0x6b3   : > { %v23181_v9 = vmov -1e+30   ;;  %v23183_v12 = vmov -1e+30   ;;  %v23185_v48 = vmov -1e+30  }
 0x6b4   : > { %v23187_v19 = vmov -1e+30   ;;  %v23189_v4 = vmov -1e+30   ;;  %v23191_v51 = vmov -1e+30  }
 0x6b5   : > { %v23193_v31 = vmov -1e+30  }
 0x6b6 LB: >> { %29333 = vst [vmem:[#allocation84_spill] sm:$0xff] %v18944_v39  ;;  %29334 = vst [vmem:[#allocation85_spill] sm:$0xff] %v18948_v10  ;;  %v29337_v47 = vld [vmem:[#allocation83_spill] sm:$0xff]  ;;  %s10109_s10 = sshll.u32 %s19136_s19, 7  ;;  %s20565_s30 = smov 64   ;;  %v29352_v33 = vld [vmem:[#allocation14_spill] sm:$0xff]  ;;  %s19136_s19 = sphi %s23195_s19, %s29520_s19   ;;  %v19132_v31 = vphi %v23193_v31, %v29519_v31   ;;  %v19128_v51 = vphi %v23191_v51, %v29518_v51   ;;  %v19124_v4 = vphi %v23189_v4, %v29517_v4   ;;  %v19120_v19 = vphi %v23187_v19, %v29516_v19   ;;  %v19116_v48 = vphi %v23185_v48, %v29515_v48   ;;  %v19112_v12 = vphi %v23183_v12, %v29514_v12   ;;  %v19108_v9 = vphi %v23181_v9, %v29513_v9   ;;  %v19104_v7 = vphi %v23179_v7, %v29512_v7   ;;  %v19100_v14 = vphi %v23177_v14, %v29511_v14   ;;  %v19096_v36 = vphi %v23175_v36, %v29510_v36   ;;  %v19092_v49 = vphi %v23173_v49, %v29509_v49   ;;  %v19088_v0 = vphi %v23171_v0, %v29508_v0   ;;  %v19084_v55 = vphi %v23169_v55, %v29507_v55   ;;  %v19080_v18 = vphi %v23167_v18, %v29506_v18   ;;  %v19076_v27 = vphi %v23165_v27, %v29505_v27   ;;  %v19072_v58 = vphi %v23163_v58, %v29504_v58   ;;  %v19068_v35 = vphi %v23161_v35, %v29503_v35   ;;  %v19064_v21 = vphi %v23159_v21, %v29502_v21   ;;  %v19060_v1 = vphi %v23157_v1, %v29501_v1   ;;  %v19056_v60 = vphi %v23155_v60, %v29500_v60   ;;  %v19052_v38 = vphi %v23153_v38, %v29499_v38   ;;  %v19048_v20 = vphi %v23151_v20, %v29498_v20   ;;  %v19044_v54 = vphi %v23149_v54, %v29497_v54   ;;  %v19040_v52 = vphi %v23147_v52, %v29496_v52   ;;  %v19036_v15 = vphi %v23145_v15, %v29495_v15   ;;  %v19032_v25 = vphi %v23143_v25, %v29494_v25   ;;  %v19028_v50 = vphi %v23141_v50, %v29493_v50   ;;  %v19024_v24 = vphi %v23139_v24, %v29492_v24   ;;  %v19020_v22 = vphi %v23137_v22, %v29491_v22   ;;  %v19016_v43 = vphi %v23135_v43, %v29490_v43   ;;  %v19012_v28 = vphi %v23133_v28, %v29489_v28   ;;  %v19008_v57 = vphi %v23131_v57, %v29488_v57   ;;  %v19004_v26 = vphi %v23129_v26, %v29487_v26   ;;  %v19000_v30 = vphi %v23127_v30, %v29486_v30   ;;  %v18996_v3 = vphi %v23125_v3, %v29485_v3   ;;  %v18992_v61 = vphi %v23123_v61, %v29484_v61   ;;  %v18988_v16 = vphi %v23121_v16, %v29483_v16   ;;  %v18984_v59 = vphi %v23119_v59, %v29482_v59   ;;  %v18980_v34 = vphi %v23117_v34, %v29481_v34   ;;  %v18976_v56 = vphi %v23115_v56, %v29480_v56   ;;  %v18972_v62 = vphi %v23113_v62, %v29479_v62   ;;  %v18968_v63 = vphi %v23111_v63, %v29478_v63   ;;  %v18964_v41 = vphi %v23109_v41, %v29477_v41   ;;  %v18956_v5 = vphi %v23105_v5, %v29475_v5   ;;  %v18952_v53 = vphi %v23103_v53, %v29474_v53   ;;  %v18948_v10 = vphi %v23101_v10, %v29473_v10   ;;  %v18944_v39 = vphi %v23099_v39, %v29472_v39  }
 0x6b7   : >> { %29335 = vst [vmem:[#allocation86_spill] sm:$0xff] %v18952_v53  ;;  %29336 = vst [vmem:[#allocation87_spill] sm:$0xff] %v18956_v5  ;;  %s4228_s15 = sshra.s32 %s10109_s10, 4  ;;  %v29353_v42 = vld [vmem:[#allocation15_spill] sm:$0xff]  ;;  %v29354_v37 = vld [vmem:[#allocation16_spill] sm:$0xff]  ;;  %s4176_s0 = sadd.s32 1, %s19136_s19  }
 0x6b8   : >> { %29338 = vst [vmem:[#allocation83_spill] sm:$0xff] %v29337_v47  ;;  %29339 = vst [vmem:[#allocation88_spill] sm:$0xff] %v18964_v41  ;;  %s10251_s20 = smul.u32 24, %s4228_s15  ;;  %v29355_v2 = vld [vmem:[#allocation17_spill] sm:$0xff]  ;;  %v29356_v46 = vld [vmem:[#allocation18_spill] sm:$0xff]  ;;  %p23776_p0 = scmp.ge.s32.totalorder %s4176_s0, %s20718_s29 }
 0x6b9   : >> { %29340 = vst [vmem:[#allocation89_spill] sm:$0xff] %v18968_v63  ;;  %29341 = vst [vmem:[#allocation90_spill] sm:$0xff] %v18972_v62  ;;  %v29357_v8 = vld [vmem:[#allocation19_spill] sm:$0xff]  ;;  %v29358_v13 = vld [vmem:[#allocation22_spill] sm:$0xff]  ;;  %s29520_s19 = smov %s4176_s0 }
 0x6ba   : >> { %29342 = vst [vmem:[#allocation91_spill] sm:$0xff] %v18976_v56  ;;  %29343 = vst [vmem:[#allocation92_spill] sm:$0xff] %v18980_v34  ;;  %s4232_s18 = scalar_lea.vmem [#allocation3], %s10251_s20  ;;  %v29359_v6 = vld [vmem:[#allocation23_spill] sm:$0xff]  ;;  %s23371_s16 = scalar_lea.vmem [#allocation4], %s10251_s20 }
 0x6bb   : >> { %29344 = vst [vmem:[#allocation93_spill] sm:$0xff] %v18984_v59  ;;  %29345 = vst [vmem:[#allocation94_spill] sm:$0xff] %v18988_v16  ;;  %v4233_v11 = vld [vmem:[%s4232_s18] sm:$0xff]  ;;  %v4235_v17 = vld [vmem:[%s4232_s18 + $0x30] sm:$0xff] }
 0x6bc   : >> { %29346 = vst [vmem:[#allocation95_spill] sm:$0xff] %v18992_v61  ;;  %29347 = vst [vmem:[#allocation96_spill] sm:$0xff] %v18996_v3  ;;  %4283 = vrot.lane.b32.xlu0 %v4233_v11, %s20565_s30  ;;  %4287 = vrot.lane.b32.xlu1 %v4235_v17, %s20565_s30  ;;  %v4234_v32 = vld [vmem:[%s4232_s18 + $0x18] sm:$0xff]  ;;  %v4236_v23 = vld [vmem:[%s4232_s18 + $0x48] sm:$0xff] }
 0x6bd   : >> { %29348 = vst [vmem:[#allocation97_spill] sm:$0xff] %v19000_v30  ;;  %29349 = vst [vmem:[#allocation98_spill] sm:$0xff] %v19004_v26  ;;  %v4237_v45 = vld [vmem:[%s4232_s18 + $0x60] sm:$0xff]  ;;  %v4238_v40 = vld [vmem:[%s4232_s18 + $0x78] sm:$0xff] }
 0x6be   : >> { %29350 = vst [vmem:[#allocation99_spill] sm:$0xff] %v19008_v57  ;;  %29351 = vst [vmem:[#allocation100_spill] sm:$0xff] %v19112_v12  ;;  %v4239_v29 = vld [vmem:[%s4232_s18 + $0x90] sm:$0xff]  ;;  %v4240_v44 = vld [vmem:[%s4232_s18 + $0xa8] sm:$0xff] }
 0x6bf   : >> { %v4243_v11 = vld [vmem:[%s23371_s16] sm:$0xff]  ;;  %v4244_v17 = vld [vmem:[%s23371_s16 + $0x18] sm:$0xff] }
 0x6c0   : >> { %4285 = vrot.lane.b32.xlu0 %v4234_v32, %s20565_s30  ;;  %4289 = vrot.lane.b32.xlu1 %v4236_v23, %s20565_s30  ;;  %v4245_v32 = vld [vmem:[%s23371_s16 + $0x30] sm:$0xff]  ;;  %v4246_v23 = vld [vmem:[%s23371_s16 + $0x48] sm:$0xff] }
 0x6c4   : >> { %4291 = vrot.lane.b32.xlu0 %v4237_v45, %s20565_s30  ;;  %4293 = vrot.lane.b32.xlu1 %v4238_v40, %s20565_s30  ;;  %v4247_v45 = vld [vmem:[%s23371_s16 + $0x60] sm:$0xff]  ;;  %v4248_v40 = vld [vmem:[%s23371_s16 + $0x78] sm:$0xff] }
 0x6c8   : >> { %4295 = vrot.lane.b32.xlu0 %v4239_v29, %s20565_s30  ;;  %4297 = vrot.lane.b32.xlu1 %v4240_v44, %s20565_s30 }
 0x6cc   : >> { %4259 = vrot.lane.b32.xlu0 %v29352_v33, %s20565_s30  ;;  %4261 = vrot.lane.b32.xlu1 %v29353_v42, %s20565_s30 }
 0x6d0   : >> { %4263 = vrot.lane.b32.xlu0 %v29354_v37, %s20565_s30  ;;  %4265 = vrot.lane.b32.xlu1 %v29355_v2, %s20565_s30 }
 0x6d4   : >> { %4267 = vrot.lane.b32.xlu0 %v29356_v46, %s20565_s30  ;;  %4269 = vrot.lane.b32.xlu1 %v29357_v8, %s20565_s30  ;;  %v29363_v8 = vld [vmem:[#allocation27_spill] sm:$0xff] }
 0x6d8   : >> { %4271 = vrot.lane.b32.xlu0 %v29358_v13, %s20565_s30  ;;  %4273 = vrot.lane.b32.xlu1 %v29359_v6, %s20565_s30 }
 0x6dc   : >> { %4718 = vrot.lane.b32.xlu1 %v4243_v11, %s20565_s30  ;;  %4720 = vrot.lane.b32.xlu0 %v4244_v17, %s20565_s30 }
 0x6e0   : >> { %4722 = vrot.lane.b32.xlu1 %v4245_v32, %s20565_s30  ;;  %4724 = vrot.lane.b32.xlu0 %v4246_v23, %s20565_s30 }
 0x6e4   : >> { %4726 = vrot.lane.b32.xlu1 %v4247_v45, %s20565_s30  ;;  %4728 = vrot.lane.b32.xlu0 %v4248_v40, %s20565_s30 }
 0x72e   : >> { %v4284_v29 = vpop.permute.xlu0 %4283  ;;  %v4288_v32 = vpop.permute.xlu1 %4287 }
 0x72f   : >> { %11485 = vmatprep.subr.msk.bf16.mxu0 %vm4156_vm1, %v4284_v29  ;;  %v4324_v44 = vsel %vm4156_vm1, %v4284_v29, 0  ;;  %v4330_v45 = vsel %vm4156_vm1, %v4288_v32, 0 }
 0x730   : >> { %10934 = vmatpush3.bf16.xpose.msra.mxu0 %v4324_v44 }
 0x732   : >> { %v4286_v11 = vpop.permute.xlu0 %4285  ;;  %v4290_v40 = vpop.permute.xlu1 %4289 }
 0x733   : >> { %11486 = vmatprep.subr.msk.bf16.mxu0 %vm4156_vm1, %v4286_v11  ;;  %v4327_v17 = vsel %vm4156_vm1, %v4286_v11, 0  ;;  %v4333_v29 = vsel %vm4156_vm1, %v4290_v40, 0 }
 0x736   : >> { %v4292_v2 = vpop.permute.xlu0 %4291  ;;  %v4294_v11 = vpop.permute.xlu1 %4293 }
 0x737   : >> { %v4336_v44 = vsel %vm4156_vm1, %v4292_v2, 0 }
 0x738   : >> { %10936 = vmatpush3.bf16.xpose.msra.mxu0 %v4327_v17  ;;  %v4339_v17 = vsel %vm4156_vm1, %v4294_v11, 0 }
 0x739   : >> { %11487 = vmatprep.subr.msk.bf16.mxu0 %vm4156_vm1, %v4288_v32 }
 0x73a   : >> { %v4296_v23 = vpop.permute.xlu0 %4295  ;;  %v4298_v32 = vpop.permute.xlu1 %4297 }
 0x73e   : >> { %v4260_v6 = vpop.permute.xlu0 %4259 }
 0x73f   : >> { %10949 = vmatprep.mubr.msk.bf16.mxu0 %vm4156_vm1, %v4260_v6  ;;  %v4342_v6 = vsel %vm4156_vm1, %v4296_v23, 0 }
 0x740   : >> { %10938 = vmatpush3.bf16.xpose.msra.mxu0 %v4330_v45  ;;  %v4345_v45 = vsel %vm4156_vm1, %v4298_v32, 0 }
 0x741   : >> { %11488 = vmatprep.subr.msk.bf16.mxu0 %vm4156_vm1, %v4290_v40  ;;  %v4262_v40 = vpop.permute.xlu1 %4261 }
 0x748   : >> { %10940 = vmatpush3.bf16.xpose.msra.mxu0 %v4333_v29  ;;  %v4266_v29 = vpop.permute.xlu1 %4265 }
 0x749   : >> { %11489 = vmatprep.subr.msk.bf16.mxu0 %vm4156_vm1, %v4292_v2  ;;  %v4264_v2 = vpop.permute.xlu0 %4263 }
 0x750   : >> { %10942 = vmatpush3.bf16.xpose.msra.mxu0 %v4336_v44  ;;  %v4268_v44 = vpop.permute.xlu0 %4267 }
 0x751   : >> { %11490 = vmatprep.subr.msk.bf16.mxu0 %vm4156_vm1, %v4294_v11 }
 0x754   : >> { %v4272_v11 = vpop.permute.xlu0 %4271 }
 0x758   : >> { %10944 = vmatpush3.bf16.xpose.msra.mxu0 %v4339_v17 }
 0x759   : >> { %11491 = vmatprep.subr.msk.bf16.mxu0 %vm4156_vm1, %v4296_v23  ;;  %v4270_v23 = vpop.permute.xlu1 %4269 }
 0x75d   : >> { %v4274_v17 = vpop.permute.xlu1 %4273 }
 0x760   : >> { %10946 = vmatpush3.bf16.xpose.msra.mxu0 %v4342_v6 }
 0x761   : >> { %11492 = vmatprep.subr.msk.bf16.mxu0 %vm4156_vm1, %v4298_v32  ;;  %v4719_v6 = vpop.permute.xlu1 %4718  ;;  %v4721_v32 = vpop.permute.xlu0 %4720 }
 0x762   : >> { %10965 = vmatprep.subr.bf16.mxu1 %v4719_v6 }
 0x763   : >> { %10966 = vmatpush3.bf16.msra.mxu1 %v4719_v6  ;;  %v29362_v6 = vld [vmem:[#allocation24_spill] sm:$0xff] }
 0x764   : >> { %10967 = vmatprep.subr.bf16.mxu1 %v4721_v32 }
 0x767   : >> { %10968 = vmatpush3.bf16.msra.mxu1 %v4721_v32 }
 0x768   : >> { %10948 = vmatpush3.bf16.xpose.msra.mxu0 %v4345_v45  ;;  %v4723_v45 = vpop.permute.xlu1 %4722 }
 0x769   : >> { %10969 = vmatprep.subr.bf16.mxu1 %v4723_v45 }
 0x76b   : >> { %10970 = vmatpush3.bf16.msra.mxu1 %v4723_v45 }
 0x76f   : >> { %10950 = vmatmul.mubr.msk.bf16.vlgmr.msra.gmra.mrb[0].mxu0 %vm4156_vm1, %v4262_v40  ;;  %v4725_v40 = vpop.permute.xlu0 %4724 }
 0x770   : >> { %10953 = vmatprep.mubr.msk.bf16.mxu0 %vm4156_vm1, %v4264_v2  ;;  %10971 = vmatprep.subr.bf16.mxu1 %v4725_v40  ;;  %v4727_v2 = vpop.permute.xlu1 %4726 }
 0x771   : >> { %10972 = vmatpush3.bf16.msra.mxu1 %v4725_v40  ;;  %v29364_v40 = vld [vmem:[#allocation25_spill] sm:$0xff] }
 0x772   : >> { %10973 = vmatprep.subr.bf16.mxu1 %v4727_v2 }
 0x775   : >> { %10974 = vmatpush3.bf16.msra.mxu1 %v4727_v2 }
 0x777   : >> { %10954 = vmatmul.mubr.msk.bf16.gmra.mrb[4].mxu0 %vm4156_vm1, %v4266_v29  ;;  %v4729_v29 = vpop.permute.xlu0 %4728 }
 0x778   : >> { %10957 = vmatprep.mubr.msk.bf16.mxu0 %vm4156_vm1, %v4268_v44  ;;  %10975 = vmatprep.subr.bf16.mxu1 %v4729_v29  ;;  %v4444_v44 = vstv %s10109_s10 }
 0x779   : >> { %10976 = vmatpush3.bf16.msra.mxu1 %v4729_v29 }
 0x77f   : >> { %10958 = vmatmul.mubr.msk.bf16.gmra.mrb[8].mxu0 %vm4156_vm1, %v4270_v23  ;;  %v29360_v23 = vld [vmem:[#allocation21_spill] sm:$0xff] }
 0x780   : >> { %10961 = vmatprep.mubr.msk.bf16.mxu0 %vm4156_vm1, %v4272_v11  ;;  %v4445_v11 = vadd.s32 %v4444_v44, %v29360_v23  ;;  %v29366_v23 = vld [vmem:[#allocation28_spill] sm:$0xff] }
 0x782   : >> { %vm4446_vm3 = vcmp.le.s32.totalorder %v4445_v11, %v29362_v6  ;;  %vm4449_vm4 = vcmp.le.s32.totalorder %v4445_v11, %v29363_v8  ;;  %vm4447_vm5 = vcmp.le.s32.totalorder %v4445_v11, %v29364_v40  ;;  %v29365_v8 = vld [vmem:[#allocation30_spill] sm:$0xff]  ;;  %vm4450_vm7 = vcmp.le.s32.totalorder %v4445_v11, %v29366_v23  ;;  %v29367_v6 = vld [vmem:[#allocation31_spill] sm:$0xff] }
 0x783   : >> { %vm4452_vm6 = vcmp.le.s32.totalorder %v4445_v11, %v29365_v8  ;;  %vm4453_vm8 = vcmp.le.s32.totalorder %v4445_v11, %v29367_v6  ;;  %v29369_v23 = vld [vmem:[#allocation34_spill] sm:$0xff] }
 0x784   : >> { %vm4456_vm10 = vcmp.le.s32.totalorder %v4445_v11, %v29369_v23 }
 0x787   : >> { %10962 = vmatmul.mubr.msk.bf16.gmra.mrb[12].mxu0 %vm4156_vm1, %v4274_v17  ;;  %v29361_v17 = vld [vmem:[#allocation26_spill] sm:$0xff] }
 0x788   : >> { %vm4448_vm2 = vcmp.le.s32.totalorder %v4445_v11, %v29361_v17 }
 0x842   : >> { %v10951_v32 = vpop.f32.mrb[0].mxu0 }
 0x843   : >> { %v4381_v45 = vpop.f32.mrb[1].mxu0  ;;  %v23415_v13 = vsel %vm4448_vm2, %v10951_v32, -1e+30 }
 0x844   : >> { %4482 = vmax.xlane.f32.xlu0 %v23415_v13  ;;  %v10952_v2 = vpop.f32.mrb[2].mxu0  ;;  %v23419_v29 = vsel %vm4446_vm3, %v4381_v45, -1e+30  ;;  %v29368_v45 = vld [vmem:[#allocation29_spill] sm:$0xff] }
 0x845   : >> { %v4384_v33 = vpop.f32.mrb[3].mxu0  ;;  %v23421_v37 = vsel %vm4449_vm4, %v10952_v2, -1e+30  ;;  %vm4451_vm9 = vcmp.le.s32.totalorder %v4445_v11, %v29368_v45  ;;  %v29371_v45 = vld [vmem:[#allocation35_spill] sm:$0xff] }
 0x846   : >> { %v23423_v44 = vsel %vm4447_vm5, %v4384_v33, -1e+30  ;;  %vm4457_vm12 = vcmp.le.s32.totalorder %v4445_v11, %v29371_v45 }
 0x847   : >> { %4480 = vmax.xlane.f32.xlu1 %v23423_v44 }
 0x848   : >> { %4478 = vmax.xlane.f32.xlu0 %v23419_v29 }
 0x84a   : >> { %v10955_v17 = vpop.f32.mrb[4].mxu0 }
 0x84b   : >> { %v4397_v32 = vpop.f32.mrb[5].mxu0  ;;  %v23430_v40 = vsel %vm4452_vm6, %v10955_v17, -1e+30  ;;  %v29370_v17 = vld [vmem:[#allocation32_spill] sm:$0xff] }
 0x84c   : >> { %4484 = vmax.xlane.f32.xlu0 %v23421_v37  ;;  %4490 = vmax.xlane.f32.xlu1 %v23430_v40  ;;  %v10956_v33 = vpop.f32.mrb[6].mxu0  ;;  %v23435_v2 = vsel %vm4450_vm7, %v4397_v32, -1e+30  ;;  %vm4454_vm11 = vcmp.le.s32.totalorder %v4445_v11, %v29370_v17  ;;  %v29372_v32 = vld [vmem:[#allocation33_spill] sm:$0xff]  ;;  %v29373_v17 = vld [vmem:[#allocation38_spill] sm:$0xff] }
 0x84d   : >> { %v4400_v42 = vpop.f32.mrb[7].mxu0  ;;  %v23437_v46 = vsel %vm4453_vm8, %v10956_v33, -1e+30  ;;  %vm4455_vm13 = vcmp.le.s32.totalorder %v4445_v11, %v29372_v32  ;;  %vm4460_vm14 = vcmp.le.s32.totalorder %v4445_v11, %v29373_v17  ;;  %v29375_v32 = vld [vmem:[#allocation39_spill] sm:$0xff] }
 0x84e   : >> { %v23439_v8 = vsel %vm4451_vm9, %v4400_v42, -1e+30  ;;  %vm4461_vm0 = vcmp.le.s32.totalorder %v4445_v11, %v29375_v32 }
 0x850   : >> { %4486 = vmax.xlane.f32.xlu1 %v23435_v2  ;;  %4492 = vmax.xlane.f32.xlu0 %v23437_v46 }
 0x852   : >> { %v10959_v6 = vpop.f32.mrb[8].mxu0 }
 0x853   : >> { %v4413_v53 = vpop.f32.mrb[9].mxu0  ;;  %v23446_v39 = vsel %vm4456_vm10, %v10959_v6, -1e+30  ;;  %v29374_v6 = vld [vmem:[#allocation36_spill] sm:$0xff] }
 0x854   : >> { %4488 = vmax.xlane.f32.xlu0 %v23439_v8  ;;  %4498 = vmax.xlane.f32.xlu1 %v23446_v39  ;;  %v10960_v42 = vpop.f32.mrb[10].mxu0  ;;  %v23451_v33 = vsel %vm4454_vm11, %v4413_v53, -1e+30  ;;  %vm4458_vm15 = vcmp.le.s32.totalorder %v4445_v11, %v29374_v6 }
 0x855   : >> { %v4416_v5 = vpop.f32.mrb[11].mxu0  ;;  %v23453_v10 = vsel %vm4457_vm12, %v10960_v42, -1e+30  ;;  %v29376_v42 = vld [vmem:[#allocation37_spill] sm:$0xff] }
 0x856   : >> { %v23455_v23 = vsel %vm4455_vm13, %v4416_v5, -1e+30  ;;  %vm4459_vm2 = vcmp.le.s32.totalorder %v4445_v11, %v29376_v42  ;;  %v4250_v11 = vld [vmem:[%s23371_s16 + $0xa8] sm:$0xff] }
 0x858   : >> { %4494 = vmax.xlane.f32.xlu1 %v23451_v33  ;;  %4500 = vmax.xlane.f32.xlu0 %v23453_v10 }
 0x85a   : >> { %v10963_v45 = vpop.f32.mrb[12].mxu0 }
 0x85b   : >> { %v4429_v53 = vpop.f32.mrb[13].mxu0  ;;  %v23462_v63 = vsel %vm4460_vm14, %v10963_v45, -1e+30  ;;  %v4249_v45 = vld [vmem:[%s23371_s16 + $0x90] sm:$0xff] }
 0x85c   : >> { %4496 = vmax.xlane.f32.xlu0 %v23455_v23  ;;  %4506 = vmax.xlane.f32.xlu1 %v23462_v63  ;;  %v10964_v5 = vpop.f32.mrb[14].mxu0  ;;  %v23467_v47 = vsel %vm4458_vm15, %v4429_v53, -1e+30 }
 0x85d   : >> { %v4432_v17 = vpop.f32.mrb[15].mxu0  ;;  %v23469_v62 = vsel %vm4461_vm0, %v10964_v5, -1e+30 }
 0x85e   : >> { %v23471_v6 = vsel %vm4459_vm2, %v4432_v17, -1e+30 }
 0x85f   : >> { %29377 = vst [vmem:[#allocation101_spill] sm:$0xff] %v23471_v6 }
 0x860   : >> { %4502 = vmax.xlane.f32.xlu1 %v23467_v47  ;;  %4508 = vmax.xlane.f32.xlu0 %v23469_v62 }
 0x864   : >> { %4504 = vmax.xlane.f32.xlu0 %v23471_v6 }
 0x871   : >> { %4730 = vrot.lane.b32.xlu1 %v4249_v45, %s20565_s30 }
 0x87a   : >> { %4732 = vrot.lane.b32.xlu0 %v4250_v11, %s20565_s30 }
 0x8d1   : >> { %v4483_v32 = vpop.xlane.xlu0 %4482 }
 0x8d2   : >> { %v23481_v53 = vmax.f32 %v19124_v4, %v4483_v32  }
 0x8d4   : >> { %29378 = vst [vmem:[#allocation102_spill] sm:$0xff] %v23481_v53  ;;  %v29379_v42 = vmov %v23481_v53  ;;  %v4481_v41 = vpop.xlane.xlu1 %4480 }
 0x8d5   : >> { %v4576_v17 = vsub.f32 %v23415_v13, %v29379_v42  ;;  %v23488_v59 = vmax.f32 %v19128_v51, %v4481_v41   ;;  %v4479_v56 = vpop.xlane.xlu0 %4478 }
 0x8d6   : >> { %v23491_v45 = vmax.f32 %v19132_v31, %v4479_v56  }
 0x8d7   : >> { %29380 = vst [vmem:[#allocation103_spill] sm:$0xff] %v23488_v59  ;;  %v29381_v6 = vmov %v23488_v59  ;;  %v4594_v16 = vmul.f32 1.442695, %v4576_v17 }
 0x8d8   : >> { %29382 = vst [vmem:[#allocation104_spill] sm:$0xff] %v23491_v45  ;;  %v4575_v32 = vsub.f32 %v23423_v44, %v29381_v6  ;;  %v4574_v13 = vsub.f32 %v23419_v29, %v23491_v45 }
 0x8d9   : >> { %15963 = vpow2.f32 %v4594_v16  ;;  %v4491_v41 = vpop.xlane.xlu1 %4490  ;;  %v4485_v59 = vpop.xlane.xlu0 %4484 }
 0x8da   : >> { %v4590_v5 = vmul.f32 1.442695, %v4574_v13  ;;  %v23502_v17 = vmax.f32 %v19108_v9, %v4491_v41   ;;  %v23505_v56 = vmax.f32 %v19120_v19, %v4485_v59   ;;  %v4592_v11 = vmul.f32 1.442695, %v4575_v32 }
 0x8dc   : >> { %29383 = vst [vmem:[#allocation105_spill] sm:$0xff] %v23502_v17  ;;  %29384 = vst [vmem:[#allocation106_spill] sm:$0xff] %v23505_v56  ;;  %v29385_v42 = vmov %v23505_v56  ;;  %v4580_v53 = vsub.f32 %v23430_v40, %v23502_v17  ;;  %15965 = vpow2.f32 %v4590_v5 }
 0x8dd   : >> { %v4577_v16 = vsub.f32 %v23421_v37, %v29385_v42  ;;  %v4487_v13 = vpop.xlane.xlu1 %4486  ;;  %v4493_v34 = vpop.xlane.xlu0 %4492  ;;  %15967 = vpow2.f32 %v4592_v11 }
 0x8de   : >> { %v4602_v41 = vmul.f32 1.442695, %v4580_v53  ;;  %v23516_v59 = vmax.f32 %v19116_v48, %v4487_v13   ;;  %v23519_v56 = vmax.f32 %v19104_v7, %v4493_v34  }
 0x8df   : >> { %v4596_v30 = vmul.f32 1.442695, %v4577_v16 }
 0x8e0   : >> { %29386 = vst [vmem:[#allocation107_spill] sm:$0xff] %v23516_v59  ;;  %v29387_v32 = vmov %v23516_v59  ;;  %29388 = vst [vmem:[#allocation108_spill] sm:$0xff] %v23519_v56  ;;  %v29389_v44 = vmov %v23519_v56  ;;  %15969 = vpow2.f32 %v4602_v41 }
 0x8e1   : >> { %v4578_v29 = vsub.f32 %v23435_v2, %v29387_v32  ;;  %v4499_v5 = vpop.xlane.xlu1 %4498  ;;  %v4489_v53 = vpop.xlane.xlu0 %4488  ;;  %15971 = vpow2.f32 %v4596_v30  ;;  %v4581_v41 = vsub.f32 %v23437_v46, %v29389_v44 }
 0x8e2   : >> { %v23528_v16 = vmax.f32 %v19092_v49, %v4499_v5   ;;  %v23531_v59 = vmax.f32 %v19112_v12, %v4489_v53  }
 0x8e3   : >> { %v23533_v34 = vpop.eup %15963  ;;  %v4598_v11 = vmul.f32 1.442695, %v4578_v29 }
 0x8e4   : >> { %29390 = vst [vmem:[#allocation109_spill] sm:$0xff] %v23528_v16  ;;  %v29391_v13 = vmov %v23528_v16  ;;  %29392 = vst [vmem:[#allocation110_spill] sm:$0xff] %v23531_v59  ;;  %v29393_v6 = vmov %v23531_v59  ;;  %4642 = vadd.xlane.f32.xlu1 %v23533_v34  ;;  %v4604_v59 = vmul.f32 1.442695, %v4581_v41 }
 0x8e5   : >> { %v4584_v56 = vsub.f32 %v23446_v39, %v29391_v13  ;;  %v4579_v53 = vsub.f32 %v23439_v8, %v29393_v6  ;;  %v4495_v16 = vpop.xlane.xlu1 %4494  ;;  %v4501_v30 = vpop.xlane.xlu0 %4500  ;;  %15973 = vpow2.f32 %v4598_v11 }
 0x8e6   : >> { %v23547_v46 = vmax.f32 %v19100_v14, %v4495_v16   ;;  %v23550_v37 = vmax.f32 %v19088_v0, %v4501_v30   ;;  %v15966_v39 = vpop.eup %15965 }
 0x8e7   : >> { %v4610_v29 = vmul.f32 1.442695, %v4584_v56  ;;  %v4600_v2 = vmul.f32 1.442695, %v4579_v53  ;;  %v15968_v56 = vpop.eup %15967 }
 0x8e8   : >> { %29394 = vst [vmem:[#allocation111_spill] sm:$0xff] %v23547_v46  ;;  %29395 = vst [vmem:[#allocation112_spill] sm:$0xff] %v23550_v37  ;;  %v4582_v40 = vsub.f32 %v23451_v33, %v23547_v46  ;;  %4638 = vadd.xlane.f32.xlu1 %v15966_v39  ;;  %v4585_v33 = vsub.f32 %v23453_v10, %v23550_v37 }
 0x8e9   : >> { %v4507_v11 = vpop.xlane.xlu1 %4506  ;;  %v4497_v41 = vpop.xlane.xlu0 %4496  ;;  %15975 = vpow2.f32 %v4610_v29 }
 0x8ea   : >> { %v23559_v16 = vmax.f32 %v19076_v27, %v4507_v11   ;;  %v23562_v30 = vmax.f32 %v19096_v36, %v4497_v41   ;;  %v23564_v53 = vpop.eup %15969  ;;  %15977 = vpow2.f32 %v4604_v59  ;;  %v4606_v5 = vmul.f32 1.442695, %v4582_v40 }
 0x8eb   : >> { %15979 = vpow2.f32 %v4600_v2  ;;  %v15972_v61 = vpop.eup %15971  ;;  %v4702_v41 = vpack.c.bf16 %v15968_v56, %v15966_v39  ;;  %v4612_v2 = vmul.f32 1.442695, %v4585_v33 }
 0x8ec   : >> { %29396 = vst [vmem:[#allocation113_spill] sm:$0xff] %v23559_v16  ;;  %v29397_v6 = vmov %v23559_v16  ;;  %v29398_v12 = vmov %v23562_v30  ;;  %4650 = vadd.xlane.f32.xlu1 %v23564_v53  ;;  %15981 = vpow2.f32 %v4606_v5  ;;  %4644 = vadd.xlane.f32.xlu0 %v15972_v61 }
 0x8ed   : >> { %v4583_v11 = vsub.f32 %v23455_v23, %v29398_v12  ;;  %v4503_v16 = vpop.xlane.xlu1 %4502  ;;  %v4509_v59 = vpop.xlane.xlu0 %4508  ;;  %10981 = vmatprep.mubr.bf16.mxu1 %v4702_v41  ;;  %v4588_v5 = vsub.f32 %v23462_v63, %v29397_v6  ;;  %15983 = vpow2.f32 %v4612_v2  ;;  %v29405_v63 = vld [vmem:[#allocation101_spill] sm:$0xff] }
 0x8ee   : >> { %v23576_v10 = vmax.f32 %v19084_v55, %v4503_v16   ;;  %v23579_v30 = vmax.f32 %v19072_v58, %v4509_v59  }
 0x8ef   : >> { %v15974_v26 = vpop.eup %15973  ;;  %v4608_v29 = vmul.f32 1.442695, %v4583_v11  ;;  %v4618_v3 = vmul.f32 1.442695, %v4588_v5 }
 0x8f0   : >> { %29399 = vst [vmem:[#allocation114_spill] sm:$0xff] %v23576_v10  ;;  %v29400_v40 = vmov %v23576_v10  ;;  %29401 = vst [vmem:[#allocation115_spill] sm:$0xff] %v23579_v30  ;;  %v29402_v8 = vmov %v23579_v30  ;;  %4646 = vadd.xlane.f32.xlu1 %v15974_v26  ;;  %4640 = vadd.xlane.f32.xlu0 %v15968_v56 }
 0x8f1   : >> { %v4586_v39 = vsub.f32 %v23467_v47, %v29400_v40  ;;  %v4731_v33 = vpop.permute.xlu1 %4730  ;;  %v4505_v41 = vpop.xlane.xlu0 %4504  ;;  %15985 = vpow2.f32 %v4608_v29  ;;  %v4589_v2 = vsub.f32 %v23469_v62, %v29402_v8 }
 0x8f2   : >> { %v23590_v59 = vmax.f32 %v19080_v18, %v4505_v41   ;;  %10977 = vmatprep.subr.bf16.mxu1 %v4731_v33 }
 0x8f3   : >> { %v4614_v10 = vmul.f32 1.442695, %v4586_v39  ;;  %10978 = vmatpush3.bf16.msra.mxu1 %v4731_v33  ;;  %v15976_v30 = vpop.eup %15975  ;;  %v4703_v33 = vpack.c.bf16 %v15972_v61, %v23533_v34  ;;  %v4620_v5 = vmul.f32 1.442695, %v4589_v2 }
 0x8f4   : >> { %29403 = vst [vmem:[#allocation116_spill] sm:$0xff] %v23590_v59  ;;  %v29404_v11 = vmov %v23590_v59  ;;  %v15978_v16 = vpop.eup %15977  ;;  %4658 = vadd.xlane.f32.xlu1 %v15976_v30 }
 0x8f5   : >> { %v4587_v23 = vsub.f32 %v29405_v63, %v29404_v11  ;;  %v4733_v57 = vpop.permute.xlu0 %4732  ;;  %v15980_v39 = vpop.eup %15979  ;;  %15987 = vpow2.f32 %v4614_v10  ;;  %4652 = vadd.xlane.f32.xlu0 %v15978_v16  ;;  %v4705_v63 = vpack.c.bf16 %v15978_v16, %v23564_v53 }
 0x8f6   : >> { %10979 = vmatprep.subr.bf16.mxu1 %v4733_v57  ;;  %v15982_v29 = vpop.eup %15981  ;;  %15989 = vpow2.f32 %v4618_v3  ;;  %v4704_v41 = vpack.c.bf16 %v15980_v39, %v15974_v26 }
 0x8f7   : >> { %v4616_v56 = vmul.f32 1.442695, %v4587_v23  ;;  %10980 = vmatpush3.bf16.msra.mxu1 %v4733_v57  ;;  %v15984_v59 = vpop.eup %15983 }
 0x8f8   : >> { %4654 = vadd.xlane.f32.xlu1 %v15982_v29  ;;  %v4707_v26 = vpack.c.bf16 %v15984_v59, %v15976_v30  ;;  %v29409_v30 = vsub.f32 %v19108_v9, %v23502_v17  ;;  %v29414_v9 = vsub.f32 %v19092_v49, %v29391_v13  ;;  %v29418_v49 = vld [vmem:[#allocation100_spill] sm:$0xff] }
 0x8f9   : >> { %15991 = vpow2.f32 %v4616_v56  ;;  %4648 = vadd.xlane.f32.xlu0 %v15980_v39  ;;  %v29406_v56 = vld [vmem:[#allocation102_spill] sm:$0xff] }
 0x8fa   : >> { %10982 = vmatmul.mubr.bf16.vlgmr.msra.gmra.mrb[0].mxu1 %v4703_v33  ;;  %15993 = vpow2.f32 %v4620_v5  ;;  %v29407_v53 = vsub.f32 %v19124_v4, %v29406_v56  ;;  %v29410_v5 = vsub.f32 %v19120_v19, %v29385_v42 }
 0x8fb   : >> { %10985 = vmatprep.mubr.bf16.mxu1 %v4704_v41  ;;  %v15986_v10 = vpop.eup %15985  ;;  %v4554_v41 = vmul.f32 1.442695, %v29409_v30 }
 0x8fc   : >> { %v4706_v62 = vpack.c.bf16 %v15986_v10, %v15982_v29  ;;  %v4546_v16 = vmul.f32 1.442695, %v29407_v53  ;;  %v29408_v29 = vsub.f32 %v19132_v31, %v23491_v45 }
 0x8fd   : >> { %4660 = vadd.xlane.f32.xlu0 %v15984_v59  ;;  %v4548_v59 = vmul.f32 1.442695, %v29410_v5 }
 0x8fe   : >> { %15995 = vpow2.f32 %v4546_v16  ;;  %v4542_v33 = vmul.f32 1.442695, %v29408_v29 }
 0x8ff   : >> { %v15988_v23 = vpop.eup %15987 }
 0x900   : >> { %4662 = vadd.xlane.f32.xlu1 %v15988_v23  ;;  %v15990_v61 = vpop.eup %15989  ;;  %15997 = vpow2.f32 %v4542_v33 }
 0x901   : >> { %4656 = vadd.xlane.f32.xlu0 %v15986_v10  ;;  %15999 = vpow2.f32 %v4554_v41  ;;  %v29411_v10 = vsub.f32 %v19116_v48, %v29387_v32  ;;  %v29415_v48 = vsub.f32 %v19104_v7, %v29389_v44 }
 0x902   : >> { %10986 = vmatmul.mubr.bf16.gmra.mrb[4].mxu1 %v4705_v63  ;;  %v29412_v63 = vld [vmem:[#allocation103_spill] sm:$0xff]  ;;  %16001 = vpow2.f32 %v4548_v59 }
 0x903   : >> { %10989 = vmatprep.mubr.bf16.mxu1 %v4706_v62  ;;  %v15992_v3 = vpop.eup %15991  ;;  %v4550_v4 = vmul.f32 1.442695, %v29411_v10  ;;  %v29413_v31 = vsub.f32 %v19128_v51, %v29412_v63  ;;  %v29417_v51 = vsub.f32 %v19100_v14, %v23547_v46 }
 0x904   : >> { %4666 = vadd.xlane.f32.xlu1 %v15990_v61  ;;  %v15994_v57 = vpop.eup %15993  ;;  %v4708_v34 = vpack.c.bf16 %v15992_v3, %v15988_v23 }
 0x905   : >> { %4664 = vadd.xlane.f32.xlu0 %v15992_v3  ;;  %v4709_v39 = vpack.c.bf16 %v15994_v57, %v15990_v61  ;;  %v4544_v62 = vmul.f32 1.442695, %v29413_v31  ;;  %16003 = vpow2.f32 %v4550_v4  ;;  %v4562_v61 = vmul.f32 1.442695, %v29414_v9 }
 0x906   : >> { %v4556_v3 = vmul.f32 1.442695, %v29415_v48 }
 0x907   : >> { %16005 = vpow2.f32 %v4544_v62 }
 0x908   : >> { %v23615_v23 = vpop.eup %15995  ;;  %16007 = vpow2.f32 %v4562_v61 }
 0x909   : >> { %4668 = vadd.xlane.f32.xlu0 %v15994_v57  ;;  %v4624_v19 = vmul.f32 %v19060_v1, %v23615_v23  ;;  %16009 = vpow2.f32 %v4556_v3 }
 0x90a   : >> { %10990 = vmatmul.mubr.bf16.gmra.mrb[8].mxu1 %v4707_v26  ;;  %v23628_v57 = vpop.eup %15997 }
 0x90b   : >> { %10993 = vmatprep.mubr.bf16.mxu1 %v4708_v34  ;;  %v4558_v34 = vmul.f32 1.442695, %v29417_v51  ;;  %v4622_v16 = vmul.f32 %v19068_v35, %v23628_v57  ;;  %v23640_v7 = vpop.eup %15999 }
 0x90c   : >> { %v23642_v41 = vpop.eup %16001  ;;  %v4628_v5 = vmul.f32 %v19044_v54, %v23640_v7 }
 0x90d   : >> { %16011 = vpow2.f32 %v4558_v34  ;;  %v4625_v10 = vmul.f32 %v19056_v60, %v23642_v41 }
 0x90f   : >> { %v23651_v59 = vpop.eup %16003 }
 0x910   : >> { %v4626_v61 = vmul.f32 %v19052_v38, %v23651_v59 }
 0x911   : >> { %v23655_v63 = vpop.eup %16005 }
 0x912   : >> { %10994 = vmatmul.mubr.bf16.gmra.mrb[12].mxu1 %v4709_v39  ;;  %v29419_v39 = vld [vmem:[#allocation110_spill] sm:$0xff]  ;;  %v4623_v48 = vmul.f32 %v19064_v21, %v23655_v63 }
 0x913   : >> { %v29420_v56 = vsub.f32 %v29418_v49, %v29419_v39 }
 0x915   : >> { %v4552_v53 = vmul.f32 1.442695, %v29420_v56 }
 0x917   : >> { %16013 = vpow2.f32 %v4552_v53 }
 0x971   : >> { %v4643_v26 = vpop.xlane.xlu1 %4642 }
 0x972   : >> { %v23630_v1 = vadd.f32 %v4643_v26, %v4624_v19   ;;  %v23669_v19 = vpop.eup %16007 }
 0x973   : >> { %v23673_v3 = vpop.eup %16009  ;;  %v4632_v34 = vmul.f32 %v19028_v50, %v23669_v19 }
 0x974   : >> { %29416 = vst [vmem:[#allocation117_spill] sm:$0xff] %v23630_v1  ;;  %v29422_v1 = vsub.f32 %v19088_v0, %v23550_v37  ;;  %v29426_v0 = vsub.f32 %v19096_v36, %v29398_v12  ;;  %v29430_v36 = vsub.f32 %v19080_v18, %v29404_v11  ;;  %v23687_v49 = vpop.eup %16011 }
 0x975   : >> { %v4639_v30 = vpop.xlane.xlu1 %4638  ;;  %v16014_v56 = vpop.eup %16013  ;;  %v4630_v53 = vmul.f32 %v19036_v15, %v23687_v49 }
 0x976   : >> { %v23644_v35 = vadd.f32 %v4639_v30, %v4622_v16   ;;  %v4564_v14 = vmul.f32 1.442695, %v29422_v1  ;;  %v4560_v9 = vmul.f32 1.442695, %v29426_v0  ;;  %v4568_v51 = vmul.f32 1.442695, %v29430_v36 }
 0x977   : >> { %v4627_v16 = vmul.f32 %v19048_v20, %v16014_v56  ;;  %v29444_v36 = vld [vmem:[#allocation98_spill] sm:$0xff] }
 0x978   : >> { %29421 = vst [vmem:[#allocation118_spill] sm:$0xff] %v23644_v35  ;;  %v29424_v35 = vsub.f32 %v19084_v55, %v29400_v40  ;;  %16015 = vpow2.f32 %v4564_v14 }
 0x979   : >> { %v4651_v4 = vpop.xlane.xlu1 %4650  ;;  %v4645_v31 = vpop.xlane.xlu0 %4644 }
 0x97a   : >> { %v23657_v54 = vadd.f32 %v4651_v4, %v4628_v5   ;;  %v4566_v62 = vmul.f32 1.442695, %v29424_v35  ;;  %v23662_v60 = vadd.f32 %v4645_v31, %v4625_v10  }
 0x97c   : >> { %29423 = vst [vmem:[#allocation119_spill] sm:$0xff] %v23657_v54  ;;  %29425 = vst [vmem:[#allocation120_spill] sm:$0xff] %v23662_v60  ;;  %v29428_v60 = vsub.f32 %v19076_v27, %v29397_v6  ;;  %16017 = vpow2.f32 %v4566_v62 }
 0x97d   : >> { %v4647_v54 = vpop.xlane.xlu1 %4646  ;;  %v4641_v55 = vpop.xlane.xlu0 %4640  ;;  %16019 = vpow2.f32 %v4560_v9 }
 0x97e   : >> { %v23675_v38 = vadd.f32 %v4647_v54, %v4626_v61   ;;  %v4570_v26 = vmul.f32 1.442695, %v29428_v60  ;;  %v23680_v21 = vadd.f32 %v4641_v55, %v4623_v48  }
 0x980   : >> { %29427 = vst [vmem:[#allocation121_spill] sm:$0xff] %v23675_v38  ;;  %29429 = vst [vmem:[#allocation122_spill] sm:$0xff] %v23680_v21  ;;  %v4629_v38 = vmul.f32 %v19040_v52, %v23673_v3  ;;  %16021 = vpow2.f32 %v4570_v26  ;;  %v29433_v21 = vsub.f32 %v19072_v58, %v29402_v8 }
 0x981   : >> { %v4659_v39 = vpop.xlane.xlu1 %4658  ;;  %16023 = vpow2.f32 %v4568_v51  ;;  %v4686_v51 = vmul.f32 %v29444_v36, %v23628_v57  ;;  %v29468_v36 = vld [vmem:[#allocation87_spill] sm:$0xff] }
 0x982   : >> { %v4653_v27 = vpop.xlane.xlu0 %4652  ;;  %v23691_v50 = vadd.f32 %v4659_v39, %v4632_v34   ;;  %v4572_v18 = vmul.f32 1.442695, %v29433_v21  ;;  %v16016_v1 = vpop.eup %16015  ;;  %v29446_v39 = vld [vmem:[#allocation95_spill] sm:$0xff] }
 0x983   : >> { %v23693_v52 = vadd.f32 %v4653_v27, %v4629_v38   ;;  %v29448_v27 = vld [vmem:[#allocation97_spill] sm:$0xff] }
 0x984   : >> { %29431 = vst [vmem:[#allocation123_spill] sm:$0xff] %v23691_v50  ;;  %16025 = vpow2.f32 %v4572_v18  ;;  %v4687_v21 = vmul.f32 %v29448_v27, %v23655_v63  ;;  %v29505_v27 = vld [vmem:[#allocation113_spill] sm:$0xff] }
 0x985   : >> { %29432 = vst [vmem:[#allocation124_spill] sm:$0xff] %v23693_v52  ;;  %v4655_v30 = vpop.xlane.xlu1 %4654  ;;  %v4633_v52 = vmul.f32 %v19024_v24, %v16016_v1 }
 0x986   : >> { %v4649_v14 = vpop.xlane.xlu0 %4648  ;;  %v23701_v15 = vadd.f32 %v4655_v30, %v4630_v53   ;;  %v16018_v50 = vpop.eup %16017 }
 0x987   : >> { %v23703_v20 = vadd.f32 %v4649_v14, %v4627_v16   ;;  %v16020_v5 = vpop.eup %16019  ;;  %v4634_v10 = vmul.f32 %v19020_v22, %v16018_v50  ;;  %v29451_v16 = vld [vmem:[#allocation92_spill] sm:$0xff] }
 0x988   : >> { %29434 = vst [vmem:[#allocation125_spill] sm:$0xff] %v23701_v15  ;;  %v4631_v31 = vmul.f32 %v19032_v25, %v16020_v5  ;;  %v4692_v57 = vmul.f32 %v29451_v16, %v23640_v7  ;;  %v29459_v7 = vld [vmem:[#allocation88_spill] sm:$0xff] }
 0x989   : >> { %29435 = vst [vmem:[#allocation126_spill] sm:$0xff] %v23703_v20 }
 0x98a   : >> { %v4661_v58 = vpop.xlane.xlu0 %4660  ;;  %v16022_v4 = vpop.eup %16021 }
 0x98b   : >> { %v23706_v24 = vadd.f32 %v4661_v58, %v4633_v52   ;;  %v16024_v62 = vpop.eup %16023  ;;  %v4636_v15 = vmul.f32 %v19012_v28, %v16022_v4  ;;  %v29452_v52 = vld [vmem:[#allocation94_spill] sm:$0xff] }
 0x98c   : >> { %v4635_v20 = vmul.f32 %v19016_v43, %v16024_v62  ;;  %v4690_v58 = vmul.f32 %v29452_v52, %v23651_v59  ;;  %v29496_v52 = vld [vmem:[#allocation124_spill] sm:$0xff] }
 0x98d   : >> { %29436 = vst [vmem:[#allocation127_spill] sm:$0xff] %v23706_v24  ;;  %v4663_v35 = vpop.xlane.xlu1 %4662  ;;  %v29441_v24 = vld [vmem:[#allocation99_spill] sm:$0xff] }
 0x98e   : >> { %v4657_v0 = vpop.xlane.xlu0 %4656  ;;  %v23710_v22 = vadd.f32 %v4663_v35, %v4634_v10   ;;  %v16026_v61 = vpop.eup %16025  ;;  %v29454_v10 = vld [vmem:[#allocation91_spill] sm:$0xff]  ;;  %v29456_v35 = vld [vmem:[#allocation93_spill] sm:$0xff] }
 0x98f   : >> { %v23712_v25 = vadd.f32 %v4657_v0, %v4631_v31   ;;  %v4637_v54 = vmul.f32 %v29441_v24, %v16026_v61  ;;  %v4693_v31 = vmul.f32 %v29454_v10, %v23673_v3  ;;  %v4691_v0 = vmul.f32 %v29456_v35, %v16014_v56  ;;  %v29462_v24 = vld [vmem:[#allocation83_spill] sm:$0xff]  ;;  %v29503_v35 = vld [vmem:[#allocation118_spill] sm:$0xff] }
 0x990   : >> { %29437 = vst [vmem:[#allocation128_spill] sm:$0xff] %v23710_v22  ;;  %v29443_v22 = vld [vmem:[#allocation96_spill] sm:$0xff] }
 0x991   : >> { %29438 = vst [vmem:[#allocation129_spill] sm:$0xff] %v23712_v25  ;;  %v4667_v9 = vpop.xlane.xlu1 %4666  ;;  %v4688_v26 = vmul.f32 %v29443_v22, %v23615_v23  ;;  %v29464_v22 = vld [vmem:[#allocation89_spill] sm:$0xff] }
 0x992   : >> { %v4665_v48 = vpop.xlane.xlu0 %4664  ;;  %v23716_v28 = vadd.f32 %v4667_v9, %v4636_v15   ;;  %v4696_v15 = vmul.f32 %v29459_v7, %v23669_v19  ;;  %v29460_v9 = vld [vmem:[#allocation90_spill] sm:$0xff]  ;;  %v29467_v19 = vld [vmem:[#allocation85_spill] sm:$0xff]  ;;  %v29512_v7 = vld [vmem:[#allocation108_spill] sm:$0xff] }
 0x993   : >> { %v23718_v43 = vadd.f32 %v4665_v48, %v4635_v20   ;;  %v4694_v48 = vmul.f32 %v29460_v9, %v23687_v49  ;;  %v4698_v49 = vmul.f32 %v29468_v36, %v16018_v50  ;;  %v29493_v50 = vld [vmem:[#allocation123_spill] sm:$0xff]  ;;  %v29510_v36 = vmov %v29398_v12  ;;  %v29513_v9 = vld [vmem:[#allocation105_spill] sm:$0xff]  ;;  %v29514_v12 = vld [vmem:[#allocation110_spill] sm:$0xff] }
 0x994   : >> { %29439 = vst [vmem:[#allocation130_spill] sm:$0xff] %v23716_v28  ;;  %v4689_v28 = vmul.f32 %v29446_v39, %v23642_v41  ;;  %v29470_v39 = vld [vmem:[#allocation86_spill] sm:$0xff] }
 0x995   : >> { %29440 = vst [vmem:[#allocation131_spill] sm:$0xff] %v23718_v43 }
 0x996   : >> { %v4669_v55 = vpop.xlane.xlu0 %4668 }
 0x997   : >> { %v23721_v60 = vadd.f32 %v4669_v55, %v4637_v54   ;;  %v4697_v54 = vmul.f32 %v29462_v24, %v16016_v1  ;;  %v29492_v24 = vld [vmem:[#allocation127_spill] sm:$0xff] }
 0x999   : >> { %v29442_v8 = vmov %v23721_v60 }
 0x99a   : > { %v29537_v7 = vmov (%p23776_p0), %v29442_v8 }
 0x99b   : > { %v29538_v9 = vld [vmem:[#allocation130_spill] sm:$0xff] (%p23776_p0) }
 0x99c   : > { %v29539_v12 = vld [vmem:[#allocation131_spill] sm:$0xff] (%p23776_p0) }
 0x9cd   : >> { %v10983_v25 = vpop.f32.mrb[0].mxu1 }
 0x9ce   : >> { %v23727_v34 = vadd.f32 %v10983_v25, %v4688_v26   ;;  %v4776_v38 = vpop.f32.mrb[1].mxu1 }
 0x9cf   : >> { %v23731_v26 = vadd.f32 %v4776_v38, %v4686_v51   ;;  %v10984_v43 = vpop.f32.mrb[2].mxu1 }
 0x9d0   : >> { %v29445_v47 = vmov %v23727_v34  ;;  %v23735_v18 = vadd.f32 %v10984_v43, %v4689_v28   ;;  %v4779_v53 = vpop.f32.mrb[3].mxu1  ;;  %v4699_v28 = vmul.f32 %v29470_v39, %v16024_v62  ;;  %v29490_v43 = vld [vmem:[#allocation131_spill] sm:$0xff] }
 0x9d1   : >> { %v29447_v33 = vmov %v23731_v26  ;;  %v23737_v30 = vadd.f32 %v4779_v53, %v4687_v21   ;;  %v4700_v26 = vmul.f32 %v29467_v19, %v16022_v4  ;;  %v29502_v21 = vld [vmem:[#allocation122_spill] sm:$0xff] }
 0x9d2   : >> { %v29449_v29 = vmov %v23735_v18  ;;  %v29506_v18 = vld [vmem:[#allocation116_spill] sm:$0xff]  ;;  %v29516_v19 = vld [vmem:[#allocation106_spill] sm:$0xff] }
 0x9d3   : >> { %v29450_v23 = vmov %v23737_v30  ;;  %v29517_v4 = vld [vmem:[#allocation102_spill] sm:$0xff]  ;;  %v29541_v19 = vld [vmem:[#allocation127_spill] sm:$0xff] (%p23776_p0) }
 0x9d4   : > { %v29535_v36 = vmov (%p23776_p0), %v29450_v23  ;;  %v29542_v4 = vld [vmem:[#allocation123_spill] sm:$0xff] (%p23776_p0) }
 0x9d5   : >> { %v10987_v14 = vpop.f32.mrb[4].mxu1 }
 0x9d6   : >> { %v23743_v34 = vadd.f32 %v10987_v14, %v4692_v57   ;;  %v4792_v41 = vpop.f32.mrb[5].mxu1  ;;  %v29488_v57 = vmov %v29442_v8  ;;  %v29511_v14 = vld [vmem:[#allocation111_spill] sm:$0xff] }
 0x9d7   : >> { %v23747_v16 = vadd.f32 %v4792_v41, %v4690_v58   ;;  %v10988_v63 = vpop.f32.mrb[6].mxu1  ;;  %v29504_v58 = vld [vmem:[#allocation115_spill] sm:$0xff]  ;;  %v29536_v14 = vmov (%p23776_p0), %v29447_v33 }
 0x9d8   : >> { %v29453_v2 = vmov %v23743_v34  ;;  %v23750_v56 = vadd.f32 %v10988_v63, %v4693_v31   ;;  %v4795_v30 = vpop.f32.mrb[7].mxu1  ;;  %v29469_v34 = vld [vmem:[#allocation84_spill] sm:$0xff] }
 0x9d9   : >> { %v29455_v42 = vmov %v23747_v16  ;;  %v23752_v59 = vadd.f32 %v4795_v30, %v4691_v0   ;;  %v4701_v38 = vmul.f32 %v29469_v34, %v16026_v61  ;;  %v29481_v34 = vmov %v29453_v2  ;;  %v29508_v0 = vld [vmem:[#allocation112_spill] sm:$0xff] }
 0x9da   : >> { %v29457_v46 = vmov %v23750_v56  ;;  %v4695_v56 = vmul.f32 %v29464_v22, %v16020_v5  ;;  %v29483_v16 = vmov %v29455_v42  ;;  %v29484_v61 = vmov %v29449_v29  ;;  %v29491_v22 = vld [vmem:[#allocation128_spill] sm:$0xff] }
 0x9db   : >> { %v29458_v45 = vmov %v23752_v59  ;;  %v29486_v30 = vmov %v29450_v23  ;;  %v29519_v31 = vld [vmem:[#allocation104_spill] sm:$0xff]  ;;  %v29529_v58 = vmov (%p23776_p0), %v29457_v46  ;;  %v29530_v27 = vmov (%p23776_p0), %v29453_v2  ;;  %v29548_v23 = vld [vmem:[#allocation121_spill] sm:$0xff] (%p23776_p0) }
 0x9dc   : > { %v29531_v18 = vmov (%p23776_p0), %v29458_v45  ;;  %v29533_v0 = vmov (%p23776_p0), %v29449_v29  ;;  %v29544_v31 = vld [vmem:[#allocation125_spill] sm:$0xff] (%p23776_p0)  ;;  %v29551_v29 = vld [vmem:[#allocation122_spill] sm:$0xff] (%p23776_p0) }
 0x9dd   : >> { %v10991_v20 = vpop.f32.mrb[8].mxu1 }
 0x9de   : >> { %v23758_v41 = vadd.f32 %v10991_v20, %v4696_v15   ;;  %v4808_v3 = vpop.f32.mrb[9].mxu1  ;;  %v29495_v15 = vld [vmem:[#allocation125_spill] sm:$0xff]  ;;  %v29498_v20 = vld [vmem:[#allocation126_spill] sm:$0xff] }
 0x9df   : >> { %v23761_v55 = vadd.f32 %v4808_v3, %v4694_v48   ;;  %v10992_v60 = vpop.f32.mrb[10].mxu1  ;;  %v29485_v3 = vmov %v29445_v47  ;;  %v29515_v48 = vld [vmem:[#allocation107_spill] sm:$0xff] }
 0x9e0   : >> { %v29461_v17 = vmov %v23758_v41  ;;  %v23764_v60 = vadd.f32 %v10992_v60, %v4697_v54   ;;  %v4811_v59 = vpop.f32.mrb[11].mxu1  ;;  %v29497_v54 = vld [vmem:[#allocation119_spill] sm:$0xff]  ;;  %v29540_v48 = vld [vmem:[#allocation128_spill] sm:$0xff] (%p23776_p0) }
 0x9e1   : >> { %v29463_v44 = vmov %v23761_v55  ;;  %v23766_v63 = vadd.f32 %v4811_v59, %v4695_v56   ;;  %v29477_v41 = vmov %v29461_v17  ;;  %v29480_v56 = vmov %v29457_v46  ;;  %v29507_v55 = vld [vmem:[#allocation114_spill] sm:$0xff] }
 0x9e2   : >> { %v29465_v40 = vmov %v23764_v60  ;;  %v29479_v62 = vmov %v29463_v44  ;;  %v29482_v59 = vmov %v29458_v45  ;;  %v29500_v60 = vld [vmem:[#allocation120_spill] sm:$0xff]  ;;  %v29528_v35 = vmov (%p23776_p0), %v29463_v44  ;;  %v29552_v44 = vld [vmem:[#allocation118_spill] sm:$0xff] (%p23776_p0) }
 0x9e3   : >> { %v29466_v32 = vmov %v23766_v63  ;;  %29476 = vst [vmem:[#allocation83_spill] sm:$0xff] %v29465_v40  ;;  %v29525_v60 = vmov (%p23776_p0), %v29465_v40  ;;  %v29532_v55 = vmov (%p23776_p0), %v29455_v42  ;;  %v29549_v45 = vld [vmem:[#allocation120_spill] sm:$0xff] (%p23776_p0)  ;;  %v29550_v40 = vld [vmem:[#allocation117_spill] sm:$0xff] (%p23776_p0) }
 0x9e4   : >> { %v29478_v63 = vmov %v29466_v32  ;;  %v29527_v21 = vmov (%p23776_p0), %v29466_v32  ;;  %v29547_v32 = vld [vmem:[#allocation126_spill] sm:$0xff] (%p23776_p0) }
 0x9e5   : >> { %v10995_v25 = vpop.f32.mrb[12].mxu1 }
 0x9e6   : >> { %v4853_v13 = vadd.f32 %v10995_v25, %v4700_v26   ;;  %v4824_v51 = vpop.f32.mrb[13].mxu1  ;;  %v29487_v26 = vmov %v29447_v33  ;;  %v29494_v25 = vld [vmem:[#allocation129_spill] sm:$0xff] }
 0x9e7   : >> { %v4851_v37 = vadd.f32 %v4824_v51, %v4698_v49   ;;  %v10996_v1 = vpop.f32.mrb[14].mxu1  ;;  %v29509_v49 = vld [vmem:[#allocation109_spill] sm:$0xff]  ;;  %v29518_v51 = vld [vmem:[#allocation103_spill] sm:$0xff] }
 0x9e8   : >> { %v4854_v6 = vadd.f32 %v10996_v1, %v4701_v38   ;;  %v4827_v5 = vpop.f32.mrb[15].mxu1  ;;  %v29473_v10 = vmov %v4853_v13  ;;  %v29499_v38 = vld [vmem:[#allocation121_spill] sm:$0xff]  ;;  %4178 = sbr.rel (!%p23776_p0) target bundleno = 1718 (0x6b6), region = 171  ;;  %v29522_v54 = vmov (%p23776_p0), %v4853_v13  ;;  %v29534_v49 = vmov (%p23776_p0), %v29445_v47 }
 0x9e9   : >> { %v4852_v11 = vadd.f32 %v4827_v5, %v4699_v28   ;;  %v29475_v5 = vmov %v4851_v37  ;;  %v29489_v28 = vld [vmem:[#allocation130_spill] sm:$0xff]  ;;  %v29501_v1 = vld [vmem:[#allocation117_spill] sm:$0xff]  ;;  %v29524_v38 = vmov (%p23776_p0), %v4851_v37 }
 0x9ea   : >> { %v29472_v39 = vmov %v4854_v6  ;;  %v29521_v52 = vmov (%p23776_p0), %v4854_v6  ;;  %v29526_v1 = vmov (%p23776_p0), %v29461_v17  ;;  %v29543_v51 = vld [vmem:[#allocation129_spill] sm:$0xff] (%p23776_p0)  ;;  %v29546_v17 = vld [vmem:[#allocation119_spill] sm:$0xff] (%p23776_p0) }
 0x9eb   : >> { %v29474_v53 = vmov %v4852_v11  ;;  %v29523_v20 = vmov (%p23776_p0), %v4852_v11  ;;  %v29545_v11 = vld [vmem:[#allocation124_spill] sm:$0xff] (%p23776_p0) }
 0x9ef PF: > { %16027 = vrcp.f32 %v19248_v23  ;;  %s20566_s13 = smov 64   ;;  %v24069_v62 = vld [vmem:[#allocation2 + $0x20] sm:$0xff]  ;;  %v24071_v61 = vld [vmem:[#allocation2 + $0x38] sm:$0xff]  ;;  %v24076_v53 = vld [vmem:[#allocation2 + $0x68] sm:$0xff]  ;;  %vm4927_vm3 = vcmask 1048064   ;;  %v24110_v34 = vmov 0.0   ;;  %v19264_v44 = vphi %v23095_v44, %v29552_v44   ;;  %v19260_v29 = vphi %v23093_v29, %v29551_v29   ;;  %v19256_v40 = vphi %v23091_v40, %v29550_v40   ;;  %v19252_v45 = vphi %v23089_v45, %v29549_v45   ;;  %v19248_v23 = vphi %v23087_v23, %v29548_v23   ;;  %v19244_v32 = vphi %v23085_v32, %v29547_v32   ;;  %v19240_v17 = vphi %v23083_v17, %v29546_v17   ;;  %v19236_v11 = vphi %v23081_v11, %v29545_v11   ;;  %v19232_v31 = vphi %v23079_v31, %v29544_v31   ;;  %v19228_v51 = vphi %v23077_v51, %v29543_v51   ;;  %v19224_v4 = vphi %v23075_v4, %v29542_v4   ;;  %v19220_v19 = vphi %v23073_v19, %v29541_v19   ;;  %v19216_v48 = vphi %v23071_v48, %v29540_v48   ;;  %v19212_v12 = vphi %v23069_v12, %v29539_v12   ;;  %v19208_v9 = vphi %v23067_v9, %v29538_v9   ;;  %v19204_v7 = vphi %v23065_v7, %v29537_v7   ;;  %v19200_v14 = vphi %v23063_v14, %v29536_v14   ;;  %v19196_v36 = vphi %v23061_v36, %v29535_v36   ;;  %v19192_v49 = vphi %v23059_v49, %v29534_v49   ;;  %v19188_v0 = vphi %v23057_v0, %v29533_v0   ;;  %v19184_v55 = vphi %v23055_v55, %v29532_v55   ;;  %v19180_v18 = vphi %v23053_v18, %v29531_v18   ;;  %v19176_v27 = vphi %v23051_v27, %v29530_v27   ;;  %v19172_v58 = vphi %v23049_v58, %v29529_v58   ;;  %v19168_v35 = vphi %v23047_v35, %v29528_v35   ;;  %v19164_v21 = vphi %v23045_v21, %v29527_v21   ;;  %v19160_v1 = vphi %v23043_v1, %v29526_v1   ;;  %v19156_v60 = vphi %v23041_v60, %v29525_v60   ;;  %v19152_v38 = vphi %v23039_v38, %v29524_v38   ;;  %v19148_v20 = vphi %v23037_v20, %v29523_v20   ;;  %v19144_v54 = vphi %v23035_v54, %v29522_v54   ;;  %v19140_v52 = vphi %v23033_v52, %v29521_v52  }
 0x9f0   : > { %16029 = vrcp.f32 %v19244_v32  ;;  %29554 = vst [vmem:[#allocation15_spill] sm:$0xff] %v24069_v62  ;;  %29555 = vst [vmem:[#allocation16_spill] sm:$0xff] %v24071_v61  ;;  %v24078_v23 = vld [vmem:[#allocation2 + $0x80] sm:$0xff]  ;;  %v24116_v39 = vmov 0.0   ;;  %v24118_v28 = vmov 0.0   ;;  %v24120_v5 = vmov 0.0  }
 0x9f1   : > { %16031 = vrcp.f32 %v19264_v44  ;;  %29557 = vst [vmem:[#allocation18_spill] sm:$0xff] %v24076_v53  ;;  %29558 = vst [vmem:[#allocation19_spill] sm:$0xff] %v24078_v23 }
 0x9f2   : > { %16033 = vrcp.f32 %v19260_v29 }
 0x9f3   : > { %16035 = vrcp.f32 %v19240_v17 }
 0x9f4   : > { %16037 = vrcp.f32 %v19236_v11 }
 0x9f5   : > { %16039 = vrcp.f32 %v19256_v40 }
 0x9f6   : > { %16041 = vrcp.f32 %v19252_v45 }
 0x9f7   : > { %16043 = vrcp.f32 %v19224_v4  ;;  %v24067_v4 = vld [vmem:[#allocation2 + $0x8] sm:$0xff] }
 0x9f8   : > { %16045 = vrcp.f32 %v19220_v19  ;;  %29553 = vst [vmem:[#allocation14_spill] sm:$0xff] %v24067_v4 }
 0x9f9   : > { %v16028_v6 = vpop.eup %16027  ;;  %16047 = vrcp.f32 %v19232_v31 }
 0x9fa   : > { %v16030_v42 = vpop.eup %16029  ;;  %v4875_v37 = vmul.f32 %v19184_v55, %v16028_v6  ;;  %16049 = vrcp.f32 %v19228_v51  ;;  %v24108_v51 = vmov 0.0   ;;  %v24122_v6 = vmov 0.0  }
 0x9fb   : > { %v16032_v13 = vpop.eup %16031  ;;  %v4876_v46 = vmul.f32 %v19180_v18, %v16030_v42  ;;  %16051 = vrcp.f32 %v19208_v9  ;;  %v24124_v42 = vmov 0.0  }
 0x9fc   : > { %v16034_v8 = vpop.eup %16033  ;;  %v4871_v47 = vmul.f32 %v19200_v14, %v16032_v13  ;;  %16053 = vrcp.f32 %v19204_v7  ;;  %v24081_v14 = vld [vmem:[#allocation2 + $0x98] sm:$0xff]  ;;  %v24128_v13 = vmov 0.0  }
 0x9fd   : > { %v16036_v32 = vpop.eup %16035  ;;  %v4889_v44 = vpack.c.bf16 %v4876_v46, %v4875_v37  ;;  %v4872_v2 = vmul.f32 %v19196_v36, %v16034_v8  ;;  %16055 = vrcp.f32 %v19216_v48  ;;  %29559 = vst [vmem:[#allocation22_spill] sm:$0xff] %v24081_v14  ;;  %v24126_v37 = vmov 0.0  }
 0x9fe   : > { %v16038_v17 = vpop.eup %16037  ;;  %v4877_v40 = vmul.f32 %v19176_v27, %v16036_v32  ;;  %16057 = vrcp.f32 %v19212_v12  ;;  %v24074_v12 = vld [vmem:[#allocation2 + $0x50] sm:$0xff]  ;;  %v24130_v46 = vmov 0.0   ;;  %v24132_v8 = vmov 0.0  }
 0x9ff   : > { %v16040_v45 = vpop.eup %16039  ;;  %4907 = vrot.lane.b32.xlu1 %v4889_v44, %s20566_s13  ;;  %v4887_v11 = vpack.c.bf16 %v4872_v2, %v4871_v47  ;;  %v4878_v29 = vmul.f32 %v19172_v58, %v16038_v17  ;;  %29556 = vst [vmem:[#allocation17_spill] sm:$0xff] %v24074_v12  ;;  %v24083_v58 = vld [vmem:[#allocation2 + $0xb0] sm:$0xff]  ;;  %v24134_v47 = vmov 0.0   ;;  %v24136_v32 = vmov 0.0  }
 0xa00   : > { %v16042_v33 = vpop.eup %16041  ;;  %v4873_v50 = vmul.f32 %v19192_v49, %v16040_v45  ;;  %29560 = vst [vmem:[#allocation23_spill] sm:$0xff] %v24083_v58  ;;  %v24106_v49 = vmov 0.0   ;;  %v24138_v44 = vmov 0.0   ;;  %v24140_v2 = vmov 0.0  }
 0xa01   : > { %v16044_v43 = vpop.eup %16043  ;;  %4903 = vrot.lane.b32.xlu0 %v4887_v11, %s20566_s13  ;;  %v4890_v18 = vpack.c.bf16 %v4878_v29, %v4877_v40  ;;  %v4874_v27 = vmul.f32 %v19188_v0, %v16042_v33  ;;  %v24142_v17 = vmov 0.0   ;;  %v24144_v40 = vmov 0.0  }
 0xa02   : > { %v16046_v16 = vpop.eup %16045  ;;  %v4881_v57 = vmul.f32 %v19160_v1, %v16044_v43  ;;  %v24114_v1 = vmov 0.0   ;;  %v24146_v45 = vmov 0.0   ;;  %v24148_v11 = vmov 0.0  }
 0xa03   : > { %v16048_v41 = vpop.eup %16047  ;;  %4909 = vrot.lane.b32.xlu1 %v4890_v18, %s20566_s13  ;;  %v4888_v10 = vpack.c.bf16 %v4874_v27, %v4873_v50  ;;  %v4882_v31 = vmul.f32 %v19156_v60, %v16046_v16  ;;  %v24150_v29 = vmov 0.0   ;;  %v24152_v33 = vmov 0.0  }
 0xa04   : > { %v16050_v63 = vpop.eup %16049  ;;  %v4879_v0 = vmul.f32 %v19168_v35, %v16048_v41  ;;  %v24154_v50 = vmov 0.0   ;;  %v24156_v43 = vmov 0.0   ;;  %v24158_v18 = vmov 0.0  }
 0xa05   : > { %v16052_v30 = vpop.eup %16051  ;;  %4905 = vrot.lane.b32.xlu0 %v4888_v10, %s20566_s13  ;;  %v4892_v7 = vpack.c.bf16 %v4882_v31, %v4881_v57  ;;  %v4880_v15 = vmul.f32 %v19164_v21, %v16050_v63  ;;  %v24160_v27 = vmov 0.0   ;;  %v24162_v16 = vmov 0.0  }
 0xa06   : > { %v16054_v9 = vpop.eup %16053  ;;  %v4885_v48 = vmul.f32 %v19144_v54, %v16052_v30  ;;  %29561 = vst [vmem:[#allocation132_spill] sm:$0xff] %v24162_v16  ;;  %v24164_v57 = vmov 0.0   ;;  %v24166_v41 = vmov 0.0   ;;  %v24168_v10 = vmov 0.0  }
 0xa07   : > { %v16056_v3 = vpop.eup %16055  ;;  %4913 = vrot.lane.b32.xlu1 %v4892_v7, %s20566_s13  ;;  %v4891_v24 = vpack.c.bf16 %v4880_v15, %v4879_v0  ;;  %v4886_v55 = vmul.f32 %v19140_v52, %v16054_v9 }
 0xa08   : > { %v16058_v22 = vpop.eup %16057  ;;  %v4883_v60 = vmul.f32 %v19152_v38, %v16056_v3  ;;  %v24112_v38 = vmov 0.0  }
 0xa09   : > { %4911 = vrot.lane.b32.xlu0 %v4891_v24, %s20566_s13  ;;  %v4894_v35 = vpack.c.bf16 %v4886_v55, %v4885_v48  ;;  %v4884_v56 = vmul.f32 %v19148_v20, %v16058_v22 }
 0xa0b   : > { %4917 = vrot.lane.b32.xlu1 %v4894_v35, %s20566_s13  ;;  %v4893_v21 = vpack.c.bf16 %v4884_v56, %v4883_v60 }
 0xa0d   : > { %4915 = vrot.lane.b32.xlu0 %v4893_v21, %s20566_s13 }
 0xa71   : > { %v4908_v54 = vpop.permute.xlu1 %4907 }
 0xa72   : > { %4930 = vst.msk [vmem:[#allocation5 + $0x30] sm:$0xff] %vm4927_vm3, %v4908_v54 }
 0xa73   : > { %v4904_v59 = vpop.permute.xlu0 %4903 }
 0xa74   : > { %4928 = vst.msk [vmem:[#allocation5] sm:$0xff] %vm4927_vm3, %v4904_v59 }
 0xa75   : > { %v4910_v52 = vpop.permute.xlu1 %4909 }
 0xa76   : > { %4931 = vst.msk [vmem:[#allocation5 + $0x48] sm:$0xff] %vm4927_vm3, %v4910_v52 }
 0xa77   : > { %v4906_v19 = vpop.permute.xlu0 %4905 }
 0xa78   : > { %4929 = vst.msk [vmem:[#allocation5 + $0x18] sm:$0xff] %vm4927_vm3, %v4906_v19 }
 0xa79   : > { %v4914_v26 = vpop.permute.xlu1 %4913 }
 0xa7a   : > { %4933 = vst.msk [vmem:[#allocation5 + $0x78] sm:$0xff] %vm4927_vm3, %v4914_v26  ;;  %9230 = sbr.rel (%p9923_p8) target bundleno = 3398 (0xd46), region = 176 }
 0xa7b   : > { %v4912_v20 = vpop.permute.xlu0 %4911 }
 0xa7c   : > { %4932 = vst.msk [vmem:[#allocation5 + $0x60] sm:$0xff] %vm4927_vm3, %v4912_v20 }
 0xa7d   : > { %v4918_v25 = vpop.permute.xlu1 %4917 }
 0xa7e   : > { %4935 = vst.msk [vmem:[#allocation5 + $0xa8] sm:$0xff] %vm4927_vm3, %v4918_v25 }
 0xa7f   : > { %v4916_v36 = vpop.permute.xlu0 %4915 }
 0xa80   : > { %4934 = vst.msk [vmem:[#allocation5 + $0x90] sm:$0xff] %vm4927_vm3, %v4916_v36 }
 0xa81   : > { %v24172_v31 = vmov 0.0   ;;  %v24174_v63 = vmov 0.0   ;;  %v24176_v0 = vmov 0.0   ;;  %v24178_v30 = vmov 0.0   ;;  %s24268_s14 = smov 0  }
 0xa82   : > { %v24180_v7 = vmov 0.0   ;;  %v24182_v15 = vmov 0.0   ;;  %v24184_v9 = vmov 0.0   ;;  %v24186_v48 = vmov 0.0  }
 0xa83   : > { %v24188_v3 = vmov 0.0   ;;  %v24190_v24 = vmov 0.0   ;;  %v24192_v55 = vmov 0.0   ;;  %v24194_v22 = vmov 0.0  }
 0xa84   : > { %29562 = vst [vmem:[#allocation132_spill] sm:$0xff] %v24192_v55  ;;  %v24196_v60 = vmov 0.0   ;;  %v24198_v35 = vmov 0.0   ;;  %v24200_v56 = vmov 0.0   ;;  %v24202_v21 = vmov 0.0  }
 0xa85   : > { %v24204_v54 = vmov 0.0   ;;  %v24206_v59 = vmov 0.0   ;;  %v24208_v52 = vmov 0.0   ;;  %v24210_v19 = vmov 0.0  }
 0xa86   : > { %v24212_v26 = vmov 0.0   ;;  %v24214_v20 = vmov 0.0   ;;  %v24216_v25 = vmov 0.0   ;;  %v24218_v36 = vmov 0.0  }
 0xa87   : > { %v24220_v49 = vmov 0.0   ;;  %v24222_v51 = vmov 0.0   ;;  %v24224_v34 = vmov 0.0   ;;  %v24226_v38 = vmov 0.0  }
 0xa88   : > { %v24228_v1 = vmov 0.0   ;;  %v24230_v39 = vmov 0.0   ;;  %v24232_v28 = vmov 0.0   ;;  %v24234_v5 = vmov 0.0  }
 0xa89   : > { %v24236_v6 = vmov -1e+30   ;;  %v24238_v42 = vmov -1e+30   ;;  %v24240_v37 = vmov -1e+30  }
 0xa8a   : > { %v24242_v13 = vmov -1e+30   ;;  %v24244_v46 = vmov -1e+30   ;;  %v24246_v8 = vmov -1e+30  }
 0xa8b   : > { %v24248_v47 = vmov -1e+30   ;;  %v24250_v32 = vmov -1e+30   ;;  %v24252_v44 = vmov -1e+30  }
 0xa8c   : > { %v24254_v2 = vmov -1e+30   ;;  %v24256_v17 = vmov -1e+30   ;;  %v24258_v40 = vmov -1e+30  }
 0xa8d   : > { %v24260_v45 = vmov -1e+30   ;;  %v24262_v11 = vmov -1e+30   ;;  %v24264_v29 = vmov -1e+30  }
 0xa8e   : > { %v24266_v33 = vmov -1e+30  }
 0xa8f LB: >> { %29564 = vst [vmem:[#allocation133_spill] sm:$0xff] %v19268_v31  ;;  %29565 = vst [vmem:[#allocation134_spill] sm:$0xff] %v19272_v63  ;;  %v29574_v55 = vld [vmem:[#allocation132_spill] sm:$0xff]  ;;  %v29581_v4 = vld [vmem:[#allocation14_spill] sm:$0xff]  ;;  %s10121_s7 = sshll.u32 %s19460_s14, 7  ;;  %s4947_s20 = sadd.s32 1, %s19460_s14   ;;  %s19460_s14 = sphi %s24268_s14, %s29748_s14   ;;  %v19456_v33 = vphi %v24266_v33, %v29747_v33   ;;  %v19452_v29 = vphi %v24264_v29, %v29746_v29   ;;  %v19448_v11 = vphi %v24262_v11, %v29745_v11   ;;  %v19444_v45 = vphi %v24260_v45, %v29744_v45   ;;  %v19440_v40 = vphi %v24258_v40, %v29743_v40   ;;  %v19436_v17 = vphi %v24256_v17, %v29742_v17   ;;  %v19432_v2 = vphi %v24254_v2, %v29741_v2   ;;  %v19428_v44 = vphi %v24252_v44, %v29740_v44   ;;  %v19424_v32 = vphi %v24250_v32, %v29739_v32   ;;  %v19420_v47 = vphi %v24248_v47, %v29738_v47   ;;  %v19416_v8 = vphi %v24246_v8, %v29737_v8   ;;  %v19412_v46 = vphi %v24244_v46, %v29736_v46   ;;  %v19408_v13 = vphi %v24242_v13, %v29735_v13   ;;  %v19404_v37 = vphi %v24240_v37, %v29734_v37   ;;  %v19400_v42 = vphi %v24238_v42, %v29733_v42   ;;  %v19396_v6 = vphi %v24236_v6, %v29732_v6   ;;  %v19392_v5 = vphi %v24234_v5, %v29731_v5   ;;  %v19388_v28 = vphi %v24232_v28, %v29730_v28   ;;  %v19384_v39 = vphi %v24230_v39, %v29729_v39   ;;  %v19380_v1 = vphi %v24228_v1, %v29728_v1   ;;  %v19376_v38 = vphi %v24226_v38, %v29727_v38   ;;  %v19372_v34 = vphi %v24224_v34, %v29726_v34   ;;  %v19368_v51 = vphi %v24222_v51, %v29725_v51   ;;  %v19364_v49 = vphi %v24220_v49, %v29724_v49   ;;  %v19360_v36 = vphi %v24218_v36, %v29723_v36   ;;  %v19356_v25 = vphi %v24216_v25, %v29722_v25   ;;  %v19352_v20 = vphi %v24214_v20, %v29721_v20   ;;  %v19348_v26 = vphi %v24212_v26, %v29720_v26   ;;  %v19344_v19 = vphi %v24210_v19, %v29719_v19   ;;  %v19340_v52 = vphi %v24208_v52, %v29718_v52   ;;  %v19336_v59 = vphi %v24206_v59, %v29717_v59   ;;  %v19332_v54 = vphi %v24204_v54, %v29716_v54   ;;  %v19328_v21 = vphi %v24202_v21, %v29715_v21   ;;  %v19324_v56 = vphi %v24200_v56, %v29714_v56   ;;  %v19320_v35 = vphi %v24198_v35, %v29713_v35   ;;  %v19316_v60 = vphi %v24196_v60, %v29712_v60   ;;  %v19312_v22 = vphi %v24194_v22, %v29711_v22   ;;  %v19304_v24 = vphi %v24190_v24, %v29709_v24   ;;  %v19300_v3 = vphi %v24188_v3, %v29708_v3   ;;  %v19296_v48 = vphi %v24186_v48, %v29707_v48   ;;  %v19292_v9 = vphi %v24184_v9, %v29706_v9   ;;  %v19288_v15 = vphi %v24182_v15, %v29705_v15   ;;  %v19284_v7 = vphi %v24180_v7, %v29704_v7   ;;  %v19280_v30 = vphi %v24178_v30, %v29703_v30   ;;  %v19276_v0 = vphi %v24176_v0, %v29702_v0   ;;  %v19272_v63 = vphi %v24174_v63, %v29701_v63   ;;  %v19268_v31 = vphi %v24172_v31, %v29700_v31  }
 0xa90   : >> { %29566 = vst [vmem:[#allocation135_spill] sm:$0xff] %v19276_v0  ;;  %29567 = vst [vmem:[#allocation136_spill] sm:$0xff] %v19280_v30  ;;  %11013 = vmatprep.mubr.msk.bf16.mxu0 %vm4156_vm1, %v29581_v4  ;;  %s24422_s8 = sshra.s32 %s10121_s7, 4  ;;  %v29582_v62 = vld [vmem:[#allocation15_spill] sm:$0xff]  ;;  %v29583_v61 = vld [vmem:[#allocation16_spill] sm:$0xff]  ;;  %p24846_p2 = scmp.ge.s32.totalorder %s4947_s20, %s20718_s29 }
 0xa91   : >> { %29568 = vst [vmem:[#allocation137_spill] sm:$0xff] %v19284_v7  ;;  %29569 = vst [vmem:[#allocation138_spill] sm:$0xff] %v19288_v15  ;;  %s10253_s19 = smul.u32 24, %s24422_s8  ;;  %v29584_v12 = vld [vmem:[#allocation17_spill] sm:$0xff]  ;;  %v29585_v53 = vld [vmem:[#allocation18_spill] sm:$0xff]  ;;  %s29748_s14 = smov %s4947_s20 }
 0xa92   : >> { %29570 = vst [vmem:[#allocation139_spill] sm:$0xff] %v19292_v9  ;;  %29571 = vst [vmem:[#allocation140_spill] sm:$0xff] %v19296_v48  ;;  %v29586_v23 = vld [vmem:[#allocation19_spill] sm:$0xff]  ;;  %v29587_v14 = vld [vmem:[#allocation22_spill] sm:$0xff] }
 0xa93   : >> { %29572 = vst [vmem:[#allocation141_spill] sm:$0xff] %v19300_v3  ;;  %29573 = vst [vmem:[#allocation142_spill] sm:$0xff] %v19304_v24  ;;  %s5003_s10 = scalar_lea.vmem [#allocation3], %s10253_s19  ;;  %v29588_v58 = vld [vmem:[#allocation23_spill] sm:$0xff]  ;;  %s24459_s15 = scalar_lea.vmem [#allocation4], %s10253_s19  ;;  %v29603_v63 = vld [vmem:[#allocation38_spill] sm:$0xff] }
 0xa94   : >> { %29575 = vst [vmem:[#allocation132_spill] sm:$0xff] %v29574_v55  ;;  %29576 = vst [vmem:[#allocation143_spill] sm:$0xff] %v19312_v22  ;;  %v5004_v50 = vld [vmem:[%s5003_s10 + $0x8] sm:$0xff]  ;;  %v5005_v43 = vld [vmem:[%s5003_s10 + $0x20] sm:$0xff] }
 0xa95   : >> { %29577 = vst [vmem:[#allocation144_spill] sm:$0xff] %v19316_v60  ;;  %29578 = vst [vmem:[#allocation145_spill] sm:$0xff] %v19324_v56  ;;  %11493 = vmatprep.subr.msk.bf16.mxu0 %vm4156_vm1, %v5004_v50  ;;  %v5047_v18 = vsel %vm4156_vm1, %v5004_v50, 0  ;;  %v5050_v27 = vsel %vm4156_vm1, %v5005_v43, 0  ;;  %v5006_v16 = vld [vmem:[%s5003_s10 + $0x38] sm:$0xff]  ;;  %v5007_v41 = vld [vmem:[%s5003_s10 + $0x50] sm:$0xff] }
 0xa96   : >> { %29579 = vst [vmem:[#allocation146_spill] sm:$0xff] %v19328_v21  ;;  %29580 = vst [vmem:[#allocation147_spill] sm:$0xff] %v19404_v37  ;;  %10998 = vmatpush3.bf16.xpose.msra.mxu0 %v5047_v18  ;;  %v5053_v57 = vsel %vm4156_vm1, %v5006_v16, 0  ;;  %v5056_v10 = vsel %vm4156_vm1, %v5007_v41, 0  ;;  %v5008_v4 = vld [vmem:[%s5003_s10 + $0x68] sm:$0xff]  ;;  %v5009_v18 = vld [vmem:[%s5003_s10 + $0x80] sm:$0xff] }
 0xa97   : >> { %11494 = vmatprep.subr.msk.bf16.mxu0 %vm4156_vm1, %v5005_v43  ;;  %v5059_v50 = vsel %vm4156_vm1, %v5008_v4, 0  ;;  %v5062_v43 = vsel %vm4156_vm1, %v5009_v18, 0  ;;  %v5016_v31 = vld [vmem:[%s24459_s15 + $0x38] sm:$0xff] }
 0xa9e   : >> { %11000 = vmatpush3.bf16.xpose.msra.mxu0 %v5050_v27  ;;  %v5010_v27 = vld [vmem:[%s5003_s10 + $0x98] sm:$0xff] }
 0xa9f   : >> { %11495 = vmatprep.subr.msk.bf16.mxu0 %vm4156_vm1, %v5006_v16  ;;  %v5065_v16 = vsel %vm4156_vm1, %v5010_v27, 0 }
 0xaa6   : >> { %11002 = vmatpush3.bf16.xpose.msra.mxu0 %v5053_v57  ;;  %v5011_v57 = vld [vmem:[%s5003_s10 + $0xb0] sm:$0xff] }
 0xaa7   : >> { %11496 = vmatprep.subr.msk.bf16.mxu0 %vm4156_vm1, %v5007_v41  ;;  %v5068_v41 = vsel %vm4156_vm1, %v5011_v57, 0 }
 0xaae   : >> { %11004 = vmatpush3.bf16.xpose.msra.mxu0 %v5056_v10  ;;  %v5015_v10 = vld [vmem:[%s24459_s15 + $0x20] sm:$0xff] }
 0xaaf   : >> { %11497 = vmatprep.subr.msk.bf16.mxu0 %vm4156_vm1, %v5008_v4  ;;  %v5014_v4 = vld [vmem:[%s24459_s15 + $0x8] sm:$0xff] }
 0xab0   : >> { %11029 = vmatprep.subr.bf16.mxu1 %v5014_v4 }
 0xab1   : >> { %11030 = vmatpush3.bf16.msra.mxu1 %v5014_v4  ;;  %v29593_v4 = vld [vmem:[#allocation25_spill] sm:$0xff] }
 0xab2   : >> { %11031 = vmatprep.subr.bf16.mxu1 %v5015_v10 }
 0xab5   : >> { %11032 = vmatpush3.bf16.msra.mxu1 %v5015_v10 }
 0xab6   : >> { %11006 = vmatpush3.bf16.xpose.msra.mxu0 %v5059_v50  ;;  %v5167_v50 = vstv %s10121_s7  ;;  %11033 = vmatprep.subr.bf16.mxu1 %v5016_v31 }
 0xab7   : >> { %11498 = vmatprep.subr.msk.bf16.mxu0 %vm4156_vm1, %v5009_v18  ;;  %v29589_v18 = vld [vmem:[#allocation21_spill] sm:$0xff] }
 0xab9   : >> { %11034 = vmatpush3.bf16.msra.mxu1 %v5016_v31 }
 0xabe   : >> { %11008 = vmatpush3.bf16.xpose.msra.mxu0 %v5062_v43  ;;  %v24466_v43 = vadd.s32 %v5167_v50, %v29589_v18 }
 0xabf   : >> { %11499 = vmatprep.subr.msk.bf16.mxu0 %vm4156_vm1, %v5010_v27  ;;  %v29590_v27 = vld [vmem:[#allocation26_spill] sm:$0xff] }
 0xac0   : >> { %vm5171_vm4 = vcmp.le.s32.totalorder %v24466_v43, %v29590_v27  ;;  %vm5170_vm7 = vcmp.le.s32.totalorder %v24466_v43, %v29593_v4  ;;  %vm5183_vm0 = vcmp.le.s32.totalorder %v24466_v43, %v29603_v63 }
 0xac6   : >> { %11010 = vmatpush3.bf16.xpose.msra.mxu0 %v5065_v16  ;;  %v29591_v16 = vld [vmem:[#allocation24_spill] sm:$0xff] }
 0xac7   : >> { %11500 = vmatprep.subr.msk.bf16.mxu0 %vm4156_vm1, %v5011_v57  ;;  %vm5169_vm5 = vcmp.le.s32.totalorder %v24466_v43, %v29591_v16 }
 0xace   : >> { %11012 = vmatpush3.bf16.xpose.msra.mxu0 %v5068_v41  ;;  %v29592_v41 = vld [vmem:[#allocation27_spill] sm:$0xff] }
 0xacf   : >> { %vm5172_vm6 = vcmp.le.s32.totalorder %v24466_v43, %v29592_v41  ;;  %v29594_v41 = vld [vmem:[#allocation30_spill] sm:$0xff] }
 0xad0   : >> { %vm5175_vm8 = vcmp.le.s32.totalorder %v24466_v43, %v29594_v41 }
 0xad5   : >> { %11014 = vmatmul.mubr.msk.bf16.vlgmr.msra.gmra.mrb[0].mxu0 %vm4156_vm1, %v29582_v62 }
 0xad6   : >> { %11017 = vmatprep.mubr.msk.bf16.mxu0 %vm4156_vm1, %v29583_v61 }
 0xadd   : >> { %11018 = vmatmul.mubr.msk.bf16.gmra.mrb[4].mxu0 %vm4156_vm1, %v29584_v12 }
 0xade   : >> { %11021 = vmatprep.mubr.msk.bf16.mxu0 %vm4156_vm1, %v29585_v53  ;;  %v29597_v53 = vld [vmem:[#allocation29_spill] sm:$0xff] }
 0xadf   : >> { %vm5174_vm11 = vcmp.le.s32.totalorder %v24466_v43, %v29597_v53  ;;  %v29599_v53 = vld [vmem:[#allocation32_spill] sm:$0xff] }
 0xae0   : >> { %vm5177_vm13 = vcmp.le.s32.totalorder %v24466_v43, %v29599_v53 }
 0xae5   : >> { %11022 = vmatmul.mubr.msk.bf16.gmra.mrb[8].mxu0 %vm4156_vm1, %v29586_v23 }
 0xae6   : >> { %11025 = vmatprep.mubr.msk.bf16.mxu0 %vm4156_vm1, %v29587_v14 }
 0xaed   : >> { %11026 = vmatmul.mubr.msk.bf16.gmra.mrb[12].mxu0 %vm4156_vm1, %v29588_v58 }
 0xba8   : >> { %v11015_v57 = vpop.f32.mrb[0].mxu0 }
 0xba9   : >> { %v5104_v12 = vpop.f32.mrb[1].mxu0  ;;  %v24474_v14 = vsel %vm5171_vm4, %v11015_v57, -1e+30  ;;  %v29595_v57 = vld [vmem:[#allocation28_spill] sm:$0xff] }
 0xbaa   : >> { %5205 = vmax.xlane.f32.xlu1 %v24474_v14  ;;  %v11016_v10 = vpop.f32.mrb[2].mxu0  ;;  %v24479_v50 = vsel %vm5169_vm5, %v5104_v12, -1e+30  ;;  %vm5173_vm9 = vcmp.le.s32.totalorder %v24466_v43, %v29595_v57  ;;  %v29596_v12 = vld [vmem:[#allocation31_spill] sm:$0xff] }
 0xbab   : >> { %5201 = vmax.xlane.f32.xlu0 %v24479_v50  ;;  %v5107_v18 = vpop.f32.mrb[3].mxu0  ;;  %v24482_v27 = vsel %vm5172_vm6, %v11016_v10, -1e+30  ;;  %vm5176_vm10 = vcmp.le.s32.totalorder %v24466_v43, %v29596_v12  ;;  %v29598_v12 = vld [vmem:[#allocation34_spill] sm:$0xff] }
 0xbac   : >> { %v24484_v16 = vsel %vm5170_vm7, %v5107_v18, -1e+30  ;;  %vm5179_vm12 = vcmp.le.s32.totalorder %v24466_v43, %v29598_v12 }
 0xbae   : >> { %5207 = vmax.xlane.f32.xlu1 %v24482_v27 }
 0xbaf   : >> { %5203 = vmax.xlane.f32.xlu0 %v24484_v16 }
 0xbb0   : >> { %v11019_v4 = vpop.f32.mrb[4].mxu0 }
 0xbb1   : >> { %v5120_v23 = vpop.f32.mrb[5].mxu0  ;;  %v24496_v10 = vsel %vm5175_vm8, %v11019_v4, -1e+30  ;;  %v29600_v4 = vld [vmem:[#allocation35_spill] sm:$0xff] }
 0xbb2   : >> { %v11020_v18 = vpop.f32.mrb[6].mxu0  ;;  %v24498_v58 = vsel %vm5173_vm9, %v5120_v23, -1e+30  ;;  %vm5180_vm14 = vcmp.le.s32.totalorder %v24466_v43, %v29600_v4 }
 0xbb3   : >> { %5209 = vmax.xlane.f32.xlu0 %v24498_v58  ;;  %v5123_v41 = vpop.f32.mrb[7].mxu0  ;;  %v24501_v61 = vsel %vm5176_vm10, %v11020_v18, -1e+30 }
 0xbb4   : >> { %v24503_v57 = vsel %vm5174_vm11, %v5123_v41, -1e+30  ;;  %v29601_v41 = vld [vmem:[#allocation33_spill] sm:$0xff] }
 0xbb5   : >> { %5211 = vmax.xlane.f32.xlu1 %v24503_v57  ;;  %vm5178_vm15 = vcmp.le.s32.totalorder %v24466_v43, %v29601_v41 }
 0xbb7   : >> { %5213 = vmax.xlane.f32.xlu0 %v24496_v10 }
 0xbb8   : >> { %v11023_v23 = vpop.f32.mrb[8].mxu0 }
 0xbb9   : >> { %5215 = vmax.xlane.f32.xlu1 %v24501_v61  ;;  %v5136_v18 = vpop.f32.mrb[9].mxu0  ;;  %v24516_v62 = vsel %vm5179_vm12, %v11023_v23, -1e+30  ;;  %v5017_v23 = vld [vmem:[%s24459_s15 + $0x50] sm:$0xff] }
 0xbba   : >> { %29602 = vst [vmem:[#allocation148_spill] sm:$0xff] %v24516_v62  ;;  %v11024_v0 = vpop.f32.mrb[10].mxu0  ;;  %v24518_v12 = vsel %vm5177_vm13, %v5136_v18, -1e+30  ;;  %v29604_v18 = vld [vmem:[#allocation36_spill] sm:$0xff]  ;;  %11035 = vmatprep.subr.bf16.mxu1 %v5017_v23 }
 0xbbb   : >> { %5217 = vmax.xlane.f32.xlu0 %v24518_v12  ;;  %v5139_v53 = vpop.f32.mrb[11].mxu0  ;;  %v24522_v30 = vsel %vm5180_vm14, %v11024_v0, -1e+30  ;;  %vm5181_vm2 = vcmp.le.s32.totalorder %v24466_v43, %v29604_v18  ;;  %v29605_v0 = vld [vmem:[#allocation39_spill] sm:$0xff]  ;;  %11036 = vmatpush3.bf16.msra.mxu1 %v5017_v23 }
 0xbbc   : >> { %v24524_v4 = vsel %vm5178_vm15, %v5139_v53, -1e+30  ;;  %vm5184_vm4 = vcmp.le.s32.totalorder %v24466_v43, %v29605_v0  ;;  %v29606_v53 = vld [vmem:[#allocation37_spill] sm:$0xff]  ;;  %v5018_v18 = vld [vmem:[%s24459_s15 + $0x68] sm:$0xff] }
 0xbbd   : >> { %5219 = vmax.xlane.f32.xlu1 %v24524_v4  ;;  %vm5182_vm5 = vcmp.le.s32.totalorder %v24466_v43, %v29606_v53  ;;  %11037 = vmatprep.subr.bf16.mxu1 %v5018_v18  ;;  %v5019_v43 = vld [vmem:[%s24459_s15 + $0x80] sm:$0xff] }
 0xbbf   : >> { %5221 = vmax.xlane.f32.xlu0 %v24516_v62  ;;  %11038 = vmatpush3.bf16.msra.mxu1 %v5018_v18 }
 0xbc0   : >> { %v11027_v41 = vpop.f32.mrb[12].mxu0  ;;  %11039 = vmatprep.subr.bf16.mxu1 %v5019_v43 }
 0xbc1   : >> { %5223 = vmax.xlane.f32.xlu1 %v24522_v30  ;;  %v5152_v31 = vpop.f32.mrb[13].mxu0  ;;  %v24538_v63 = vsel %vm5183_vm0, %v11027_v41, -1e+30  ;;  %v5020_v41 = vld [vmem:[%s24459_s15 + $0x98] sm:$0xff] }
 0xbc2   : >> { %v11028_v9 = vpop.f32.mrb[14].mxu0  ;;  %v24540_v7 = vsel %vm5181_vm2, %v5152_v31, -1e+30  ;;  %v5021_v31 = vld [vmem:[%s24459_s15 + $0xb0] sm:$0xff] }
 0xbc3   : >> { %5225 = vmax.xlane.f32.xlu0 %v24540_v7  ;;  %v5155_v48 = vpop.f32.mrb[15].mxu0  ;;  %v24544_v0 = vsel %vm5184_vm4, %v11028_v9, -1e+30  ;;  %11040 = vmatpush3.bf16.msra.mxu1 %v5019_v43 }
 0xbc4   : >> { %v24546_v23 = vsel %vm5182_vm5, %v5155_v48, -1e+30  ;;  %11041 = vmatprep.subr.bf16.mxu1 %v5020_v41 }
 0xbc5   : >> { %29607 = vst [vmem:[#allocation149_spill] sm:$0xff] %v24546_v23  ;;  %5227 = vmax.xlane.f32.xlu1 %v24546_v23 }
 0xbc7   : >> { %5229 = vmax.xlane.f32.xlu0 %v24538_v63  ;;  %11042 = vmatpush3.bf16.msra.mxu1 %v5020_v41 }
 0xbc8   : >> { %11043 = vmatprep.subr.bf16.mxu1 %v5021_v31 }
 0xbc9   : >> { %5231 = vmax.xlane.f32.xlu1 %v24544_v0 }
 0xbcb   : >> { %11044 = vmatpush3.bf16.msra.mxu1 %v5021_v31 }
 0xc37   : >> { %v5206_v9 = vpop.xlane.xlu1 %5205 }
 0xc38   : >> { %v24555_v48 = vmax.f32 %v19448_v11, %v5206_v9   ;;  %v5202_v18 = vpop.xlane.xlu0 %5201 }
 0xc39   : >> { %v24558_v15 = vmax.f32 %v19456_v33, %v5202_v18  }
 0xc3a   : >> { %29608 = vst [vmem:[#allocation150_spill] sm:$0xff] %v24555_v48  ;;  %v29609_v53 = vmov %v24555_v48 }
 0xc3b   : >> { %29610 = vst [vmem:[#allocation151_spill] sm:$0xff] %v24558_v15  ;;  %v29611_v23 = vmov %v24558_v15  ;;  %v5299_v43 = vsub.f32 %v24474_v14, %v29609_v53  ;;  %v5208_v3 = vpop.xlane.xlu1 %5207 }
 0xc3c   : >> { %v5297_v31 = vsub.f32 %v24479_v50, %v29611_v23  ;;  %v24569_v9 = vmax.f32 %v19444_v45, %v5208_v3   ;;  %v5204_v48 = vpop.xlane.xlu0 %5203 }
 0xc3d   : >> { %v5317_v22 = vmul.f32 1.442695, %v5299_v43  ;;  %v24572_v15 = vmax.f32 %v19452_v29, %v5204_v48  }
 0xc3e   : >> { %29612 = vst [vmem:[#allocation152_spill] sm:$0xff] %v24569_v9  ;;  %v29613_v62 = vmov %v24569_v9  ;;  %v5313_v24 = vmul.f32 1.442695, %v5297_v31 }
 0xc3f   : >> { %29614 = vst [vmem:[#allocation153_spill] sm:$0xff] %v24572_v15  ;;  %v29615_v18 = vmov %v24572_v15  ;;  %v5300_v14 = vsub.f32 %v24482_v27, %v29613_v62  ;;  %16059 = vpow2.f32 %v5317_v22 }
 0xc40   : >> { %v5298_v43 = vsub.f32 %v24484_v16, %v29615_v18  ;;  %v5210_v9 = vpop.xlane.xlu0 %5209  ;;  %16061 = vpow2.f32 %v5313_v24 }
 0xc41   : >> { %v5319_v3 = vmul.f32 1.442695, %v5300_v14  ;;  %v24583_v48 = vmax.f32 %v19440_v40, %v5210_v9  }
 0xc42   : >> { %v5315_v41 = vmul.f32 1.442695, %v5298_v43  ;;  %v5212_v31 = vpop.xlane.xlu1 %5211 }
 0xc43   : >> { %29616 = vst [vmem:[#allocation154_spill] sm:$0xff] %v24583_v48  ;;  %v29617_v23 = vmov %v24583_v48  ;;  %16063 = vpow2.f32 %v5319_v3  ;;  %v24590_v27 = vmax.f32 %v19436_v17, %v5212_v31  }
 0xc44   : >> { %v5301_v22 = vsub.f32 %v24498_v58, %v29617_v23  ;;  %v5214_v50 = vpop.xlane.xlu0 %5213  ;;  %16065 = vpow2.f32 %v5315_v41 }
 0xc45   : >> { %29618 = vst [vmem:[#allocation155_spill] sm:$0xff] %v24590_v27  ;;  %v5302_v14 = vsub.f32 %v24503_v57, %v24590_v27  ;;  %v24597_v24 = vmax.f32 %v19432_v2, %v5214_v50  }
 0xc46   : >> { %v5216_v3 = vpop.xlane.xlu1 %5215  ;;  %v5321_v9 = vmul.f32 1.442695, %v5301_v22 }
 0xc47   : >> { %29619 = vst [vmem:[#allocation156_spill] sm:$0xff] %v24597_v24  ;;  %v29620_v43 = vmov %v24597_v24  ;;  %v24600_v48 = vmax.f32 %v19428_v44, %v5216_v3   ;;  %v5323_v58 = vmul.f32 1.442695, %v5302_v14 }
 0xc48   : >> { %v5303_v41 = vsub.f32 %v24496_v10, %v29620_v43  ;;  %v5218_v15 = vpop.xlane.xlu0 %5217 }
 0xc49   : >> { %29621 = vst [vmem:[#allocation157_spill] sm:$0xff] %v24600_v48  ;;  %v29622_v55 = vmov %v24600_v48  ;;  %v16060_v16 = vpop.eup %16059  ;;  %v24611_v22 = vmax.f32 %v19424_v32, %v5218_v15   ;;  %16067 = vpow2.f32 %v5323_v58 }
 0xc4a   : >> { %v5304_v50 = vsub.f32 %v24501_v61, %v29622_v55  ;;  %v5325_v24 = vmul.f32 1.442695, %v5303_v41  ;;  %5365 = vadd.xlane.f32.xlu0 %v16060_v16  ;;  %v5220_v14 = vpop.xlane.xlu1 %5219  ;;  %16069 = vpow2.f32 %v5321_v9  ;;  %v16062_v31 = vpop.eup %16061 }
 0xc4b   : >> { %29623 = vst [vmem:[#allocation158_spill] sm:$0xff] %v24611_v22  ;;  %v29624_v27 = vmov %v24611_v22  ;;  %v24618_v57 = vmax.f32 %v19420_v47, %v5220_v14  }
 0xc4c   : >> { %v5327_v3 = vmul.f32 1.442695, %v5304_v50  ;;  %v5305_v48 = vsub.f32 %v24518_v12, %v29624_v27  ;;  %v5222_v61 = vpop.xlane.xlu0 %5221  ;;  %16071 = vpow2.f32 %v5325_v24  ;;  %v29628_v24 = vld [vmem:[#allocation148_spill] sm:$0xff] }
 0xc4d   : >> { %29625 = vst [vmem:[#allocation159_spill] sm:$0xff] %v24618_v57  ;;  %v16064_v56 = vpop.eup %16063  ;;  %v24621_v15 = vmax.f32 %v19416_v8, %v5222_v61   ;;  %v5306_v50 = vsub.f32 %v24524_v4, %v24618_v57 }
 0xc4e   : >> { %v5329_v41 = vmul.f32 1.442695, %v5305_v48  ;;  %5361 = vadd.xlane.f32.xlu0 %v16062_v31  ;;  %5367 = vadd.xlane.f32.xlu1 %v16064_v56  ;;  %v5224_v12 = vpop.xlane.xlu1 %5223  ;;  %v16066_v22 = vpop.eup %16065  ;;  %16073 = vpow2.f32 %v5327_v3  ;;  %v5426_v21 = vpack.c.bf16 %v16064_v56, %v16060_v16 }
 0xc4f   : >> { %29626 = vst [vmem:[#allocation160_spill] sm:$0xff] %v24621_v15  ;;  %v29627_v58 = vmov %v24621_v15  ;;  %v24632_v61 = vmax.f32 %v19412_v46, %v5224_v12   ;;  %v5331_v48 = vmul.f32 1.442695, %v5306_v50  ;;  %v5425_v9 = vpack.c.bf16 %v16066_v22, %v16062_v31  ;;  %v29632_v12 = vld [vmem:[#allocation149_spill] sm:$0xff] }
 0xc50   : >> { %v5307_v10 = vsub.f32 %v29628_v24, %v29627_v58  ;;  %v5226_v15 = vpop.xlane.xlu0 %5225  ;;  %16075 = vpow2.f32 %v5329_v41 }
 0xc51   : >> { %29629 = vst [vmem:[#allocation161_spill] sm:$0xff] %v24632_v61  ;;  %v5308_v3 = vsub.f32 %v24522_v30, %v24632_v61  ;;  %v24639_v14 = vmax.f32 %v19408_v13, %v5226_v15   ;;  %11045 = vmatprep.mubr.bf16.mxu1 %v5425_v9  ;;  %16077 = vpow2.f32 %v5331_v48 }
 0xc52   : >> { %v5333_v60 = vmul.f32 1.442695, %v5307_v10  ;;  %5363 = vadd.xlane.f32.xlu1 %v16066_v22  ;;  %v5228_v24 = vpop.xlane.xlu1 %5227  ;;  %11046 = vmatmul.mubr.bf16.vlgmr.msra.gmra.mrb[0].mxu1 %v5426_v21 }
 0xc53   : >> { %29630 = vst [vmem:[#allocation162_spill] sm:$0xff] %v24639_v14  ;;  %v24642_v50 = vmax.f32 %v19404_v37, %v5228_v24   ;;  %v16068_v31 = vpop.eup %16067  ;;  %v5335_v10 = vmul.f32 1.442695, %v5308_v3  ;;  %v5309_v16 = vsub.f32 %v24540_v7, %v24639_v14 }
 0xc54   : >> { %v5230_v30 = vpop.xlane.xlu0 %5229  ;;  %v16070_v41 = vpop.eup %16069  ;;  %16079 = vpow2.f32 %v5333_v60 }
 0xc55   : >> { %29631 = vst [vmem:[#allocation163_spill] sm:$0xff] %v24642_v50  ;;  %v5310_v21 = vsub.f32 %v29632_v12, %v24642_v50  ;;  %v24653_v22 = vmax.f32 %v19400_v42, %v5230_v30   ;;  %v5337_v48 = vmul.f32 1.442695, %v5309_v16  ;;  %v5427_v3 = vpack.c.bf16 %v16068_v31, %v16070_v41 }
 0xc56   : >> { %v5232_v15 = vpop.xlane.xlu1 %5231  ;;  %v16072_v24 = vpop.eup %16071  ;;  %16081 = vpow2.f32 %v5335_v10 }
 0xc57   : >> { %29633 = vst [vmem:[#allocation164_spill] sm:$0xff] %v24653_v22  ;;  %v29634_v4 = vmov %v24653_v22  ;;  %v5339_v56 = vmul.f32 1.442695, %v5310_v21  ;;  %v24660_v9 = vmax.f32 %v19396_v6, %v5232_v15   ;;  %11049 = vmatprep.mubr.bf16.mxu1 %v5427_v3  ;;  %5373 = vadd.xlane.f32.xlu0 %v16072_v24  ;;  %16083 = vpow2.f32 %v5337_v48 }
 0xc58   : >> { %v5311_v60 = vsub.f32 %v24538_v63, %v29634_v4  ;;  %v16074_v12 = vpop.eup %16073 }
 0xc59   : >> { %v29635_v37 = vmov %v24660_v9  ;;  %5375 = vadd.xlane.f32.xlu1 %v16074_v12  ;;  %16085 = vpow2.f32 %v5339_v56  ;;  %v5428_v21 = vpack.c.bf16 %v16074_v12, %v16072_v24 }
 0xc5a   : >> { %v5341_v30 = vmul.f32 1.442695, %v5311_v60  ;;  %v5312_v10 = vsub.f32 %v24544_v0, %v29635_v37  ;;  %v16076_v22 = vpop.eup %16075 }
 0xc5b   : >> { %5369 = vadd.xlane.f32.xlu0 %v16070_v41  ;;  %v16078_v63 = vpop.eup %16077  ;;  %11050 = vmatmul.mubr.bf16.gmra.mrb[4].mxu1 %v5428_v21 }
 0xc5c   : >> { %v5343_v7 = vmul.f32 1.442695, %v5312_v10  ;;  %16087 = vpow2.f32 %v5341_v30  ;;  %v5429_v9 = vpack.c.bf16 %v16078_v63, %v16076_v22  ;;  %v29637_v30 = vld [vmem:[#allocation151_spill] sm:$0xff] }
 0xc5d   : >> { %5371 = vadd.xlane.f32.xlu1 %v16068_v31  ;;  %v29638_v21 = vsub.f32 %v19456_v33, %v29637_v30  ;;  %v29642_v33 = vsub.f32 %v19428_v44, %v29622_v55 }
 0xc5e   : >> { %v16080_v15 = vpop.eup %16079  ;;  %16089 = vpow2.f32 %v5343_v7  ;;  %11053 = vmatprep.mubr.bf16.mxu1 %v5429_v9  ;;  %v29636_v7 = vsub.f32 %v19448_v11, %v29609_v53  ;;  %v29641_v11 = vsub.f32 %v19432_v2, %v29620_v43  ;;  %v29645_v2 = vld [vmem:[#allocation155_spill] sm:$0xff] }
 0xc5f   : >> { %5381 = vadd.xlane.f32.xlu0 %v16080_v15 }
 0xc60   : >> { %v16082_v48 = vpop.eup %16081  ;;  %v5269_v12 = vmul.f32 1.442695, %v29636_v7  ;;  %v29647_v7 = vsub.f32 %v19436_v17, %v29645_v2  ;;  %v29651_v17 = vsub.f32 %v19412_v46, %v24632_v61 }
 0xc61   : >> { %5383 = vadd.xlane.f32.xlu1 %v16082_v48  ;;  %v5430_v3 = vpack.c.bf16 %v16082_v48, %v16080_v15  ;;  %v16084_v60 = vpop.eup %16083  ;;  %v29640_v15 = vsub.f32 %v19452_v29, %v29615_v18  ;;  %v29643_v29 = vsub.f32 %v19440_v40, %v29617_v23  ;;  %v29648_v40 = vsub.f32 %v19416_v8, %v29627_v58 }
 0xc62   : >> { %16091 = vpow2.f32 %v5269_v12  ;;  %v5275_v44 = vmul.f32 1.442695, %v29647_v7 }
 0xc63   : >> { %5377 = vadd.xlane.f32.xlu0 %v16076_v22  ;;  %v16086_v0 = vpop.eup %16085  ;;  %11054 = vmatmul.mubr.bf16.gmra.mrb[8].mxu1 %v5430_v3  ;;  %v5265_v22 = vmul.f32 1.442695, %v29638_v21  ;;  %v5267_v48 = vmul.f32 1.442695, %v29640_v15  ;;  %v5287_v15 = vmul.f32 1.442695, %v29651_v17 }
 0xc64   : >> { %v5431_v56 = vpack.c.bf16 %v16086_v0, %v16084_v60 }
 0xc65   : >> { %5379 = vadd.xlane.f32.xlu1 %v16078_v63  ;;  %v29639_v63 = vsub.f32 %v19444_v45, %v29613_v62  ;;  %16093 = vpow2.f32 %v5265_v22 }
 0xc66   : >> { %v16088_v24 = vpop.eup %16087  ;;  %11057 = vmatprep.mubr.bf16.mxu1 %v5431_v56 }
 0xc67   : >> { %5385 = vadd.xlane.f32.xlu0 %v16084_v60  ;;  %v5271_v9 = vmul.f32 1.442695, %v29639_v63  ;;  %v5277_v60 = vmul.f32 1.442695, %v29641_v11  ;;  %v29646_v11 = vmov %v29645_v2  ;;  %v5285_v63 = vmul.f32 1.442695, %v29648_v40 }
 0xc68   : >> { %v16090_v41 = vpop.eup %16089 }
 0xc69   : >> { %5387 = vadd.xlane.f32.xlu1 %v16086_v0  ;;  %v5432_v31 = vpack.c.bf16 %v16090_v41, %v16088_v24  ;;  %16095 = vpow2.f32 %v5271_v9  ;;  %v5279_v0 = vmul.f32 1.442695, %v29642_v33 }
 0xc6a   : >> { %16097 = vpow2.f32 %v5267_v48 }
 0xc6b   : >> { %5389 = vadd.xlane.f32.xlu0 %v16088_v24  ;;  %11058 = vmatmul.mubr.bf16.gmra.mrb[12].mxu1 %v5432_v31  ;;  %16099 = vpow2.f32 %v5277_v60  ;;  %v29652_v60 = vsub.f32 %v19424_v32, %v29624_v27 }
 0xc6c   : >> { %v24678_v3 = vpop.eup %16091  ;;  %16101 = vpow2.f32 %v5279_v0 }
 0xc6d   : >> { %5391 = vadd.xlane.f32.xlu1 %v16090_v41  ;;  %v5347_v45 = vmul.f32 %v19384_v39, %v24678_v3  ;;  %v5273_v41 = vmul.f32 1.442695, %v29643_v29  ;;  %v5281_v33 = vmul.f32 1.442695, %v29652_v60 }
 0xc6f   : >> { %v24686_v56 = vpop.eup %16093  ;;  %16103 = vpow2.f32 %v5273_v41 }
 0xc70   : >> { %v5345_v30 = vmul.f32 %v19392_v5, %v24686_v56  ;;  %16105 = vpow2.f32 %v5275_v44 }
 0xc71   : >> { %16107 = vpow2.f32 %v5285_v63 }
 0xc72   : >> { %16109 = vpow2.f32 %v5287_v15 }
 0xc73   : >> { %v24690_v24 = vpop.eup %16095  ;;  %16111 = vpow2.f32 %v5281_v33 }
 0xc74   : >> { %v5348_v21 = vmul.f32 %v19380_v1, %v24690_v24  ;;  %v24704_v22 = vpop.eup %16097 }
 0xc75   : >> { %v5346_v48 = vmul.f32 %v19388_v28, %v24704_v22  ;;  %v24723_v0 = vpop.eup %16099 }
 0xc76   : >> { %v24728_v46 = vpop.eup %16101  ;;  %v5351_v32 = vmul.f32 %v19368_v51, %v24723_v0 }
 0xc77   : >> { %v5352_v44 = vmul.f32 %v19364_v49, %v24728_v46 }
 0xcd7   : >> { %v5366_v31 = vpop.xlane.xlu0 %5365 }
 0xcd8   : >> { %v24695_v39 = vadd.f32 %v5366_v31, %v5347_v45   ;;  %v29655_v45 = vsub.f32 %v19408_v13, %v24639_v14  ;;  %v24735_v31 = vpop.eup %16103  ;;  %v29659_v13 = vsub.f32 %v19400_v42, %v29634_v4 }
 0xcd9   : >> { %v5349_v63 = vmul.f32 %v19376_v38, %v24735_v31 }
 0xcda   : >> { %29644 = vst [vmem:[#allocation165_spill] sm:$0xff] %v24695_v39  ;;  %v5289_v29 = vmul.f32 1.442695, %v29655_v45 }
 0xcdb   : >> { %v5362_v9 = vpop.xlane.xlu0 %5361  ;;  %v5368_v39 = vpop.xlane.xlu1 %5367 }
 0xcdc   : >> { %v24709_v5 = vadd.f32 %v5362_v9, %v5345_v30   ;;  %v24711_v1 = vadd.f32 %v5368_v39, %v5348_v21   ;;  %v24744_v30 = vpop.eup %16105  ;;  %v5293_v21 = vmul.f32 1.442695, %v29659_v13 }
 0xcdd   : >> { %v24753_v9 = vpop.eup %16107  ;;  %v5350_v42 = vmul.f32 %v19372_v34, %v24744_v30 }
 0xcde   : >> { %29649 = vst [vmem:[#allocation166_spill] sm:$0xff] %v24709_v5  ;;  %29650 = vst [vmem:[#allocation167_spill] sm:$0xff] %v24711_v1  ;;  %v29654_v1 = vsub.f32 %v19420_v47, %v24618_v57  ;;  %v24762_v15 = vpop.eup %16109 }
 0xcdf   : >> { %v5364_v8 = vpop.xlane.xlu1 %5363  ;;  %v16112_v60 = vpop.eup %16111 }
 0xce0   : >> { %v24721_v28 = vadd.f32 %v5364_v8, %v5346_v48   ;;  %v5283_v5 = vmul.f32 1.442695, %v29654_v1  ;;  %v5355_v48 = vmul.f32 %v19352_v20, %v24753_v9  ;;  %v5353_v1 = vmul.f32 %v19360_v36, %v16112_v60 }
 0xce2   : >> { %29653 = vst [vmem:[#allocation168_spill] sm:$0xff] %v24721_v28  ;;  %16113 = vpow2.f32 %v5283_v5  ;;  %v29656_v28 = vld [vmem:[#allocation147_spill] sm:$0xff] }
 0xce3   : >> { %v29657_v2 = vsub.f32 %v29656_v28, %v24642_v50  ;;  %16115 = vpow2.f32 %v5289_v29 }
 0xce4   : >> { %v5374_v47 = vpop.xlane.xlu0 %5373 }
 0xce5   : >> { %v5291_v7 = vmul.f32 1.442695, %v29657_v2  ;;  %v24740_v51 = vadd.f32 %v5374_v47, %v5351_v32  }
 0xce6   : >> { %v5376_v40 = vpop.xlane.xlu1 %5375 }
 0xce7   : >> { %29658 = vst [vmem:[#allocation169_spill] sm:$0xff] %v24740_v51  ;;  %v24749_v49 = vadd.f32 %v5376_v40, %v5352_v44   ;;  %16117 = vpow2.f32 %v5291_v7  ;;  %v29661_v51 = vsub.f32 %v19396_v6, %v29635_v37  ;;  %v29672_v40 = vld [vmem:[#allocation146_spill] sm:$0xff] }
 0xce8   : >> { %v5370_v17 = vpop.xlane.xlu0 %5369  ;;  %16119 = vpow2.f32 %v5293_v21  ;;  %v5411_v21 = vmul.f32 %v19320_v35, %v24678_v3  ;;  %v29679_v3 = vld [vmem:[#allocation142_spill] sm:$0xff] }
 0xce9   : >> { %29660 = vst [vmem:[#allocation170_spill] sm:$0xff] %v24749_v49  ;;  %v5295_v39 = vmul.f32 1.442695, %v29661_v51  ;;  %v24758_v38 = vadd.f32 %v5370_v17, %v5349_v63   ;;  %v5409_v63 = vmul.f32 %v29672_v40, %v24686_v56  ;;  %v29674_v51 = vld [vmem:[#allocation144_spill] sm:$0xff]  ;;  %v29676_v17 = vld [vmem:[#allocation145_spill] sm:$0xff]  ;;  %v29695_v40 = vld [vmem:[#allocation134_spill] sm:$0xff] }
 0xcea   : >> { %v5372_v49 = vpop.xlane.xlu1 %5371 }
 0xceb   : >> { %29662 = vst [vmem:[#allocation171_spill] sm:$0xff] %v24758_v38  ;;  %v24764_v34 = vadd.f32 %v5372_v49, %v5350_v42   ;;  %16121 = vpow2.f32 %v5295_v39  ;;  %v5356_v38 = vmul.f32 %v19348_v26, %v24762_v15  ;;  %v5412_v39 = vmul.f32 %v29674_v51, %v24690_v24 }
 0xcec   : >> { %v5382_v33 = vpop.xlane.xlu0 %5381  ;;  %v16114_v6 = vpop.eup %16113  ;;  %v5410_v42 = vmul.f32 %v29676_v17, %v24704_v22 }
 0xced   : >> { %29663 = vst [vmem:[#allocation172_spill] sm:$0xff] %v24764_v34  ;;  %v24768_v20 = vadd.f32 %v5382_v33, %v5355_v48   ;;  %v16116_v5 = vpop.eup %16115  ;;  %v5354_v34 = vmul.f32 %v19356_v25, %v16114_v6  ;;  %v5415_v48 = vmul.f32 %v29679_v3, %v24723_v0 }
 0xcee   : >> { %v5384_v8 = vpop.xlane.xlu1 %5383 }
 0xcef   : >> { %29664 = vst [vmem:[#allocation173_spill] sm:$0xff] %v24768_v20  ;;  %v24772_v26 = vadd.f32 %v5384_v8, %v5356_v38   ;;  %v5357_v20 = vmul.f32 %v19344_v19, %v16116_v5 }
 0xcf0   : >> { %v5378_v45 = vpop.xlane.xlu0 %5377 }
 0xcf1   : >> { %29665 = vst [vmem:[#allocation174_spill] sm:$0xff] %v24772_v26  ;;  %v24775_v36 = vadd.f32 %v5378_v45, %v5353_v1   ;;  %v16118_v29 = vpop.eup %16117  ;;  %v29682_v1 = vld [vmem:[#allocation141_spill] sm:$0xff] }
 0xcf2   : >> { %v5380_v32 = vpop.xlane.xlu1 %5379  ;;  %v16120_v28 = vpop.eup %16119  ;;  %v5358_v26 = vmul.f32 %v19340_v52, %v16118_v29  ;;  %v5416_v45 = vmul.f32 %v29682_v1, %v24728_v46  ;;  %v29728_v1 = vld [vmem:[#allocation167_spill] sm:$0xff] }
 0xcf3   : >> { %29666 = vst [vmem:[#allocation175_spill] sm:$0xff] %v24775_v36  ;;  %v24778_v25 = vadd.f32 %v5380_v32, %v5354_v34   ;;  %v5359_v36 = vmul.f32 %v19336_v59, %v16120_v28  ;;  %v29684_v32 = vld [vmem:[#allocation132_spill] sm:$0xff] }
 0xcf4   : >> { %v5386_v2 = vpop.xlane.xlu0 %5385 }
 0xcf5   : >> { %29667 = vst [vmem:[#allocation176_spill] sm:$0xff] %v24778_v25  ;;  %v24781_v19 = vadd.f32 %v5386_v2, %v5357_v20   ;;  %v16122_v7 = vpop.eup %16121  ;;  %v5414_v20 = vmul.f32 %v29684_v32, %v24744_v30  ;;  %v29687_v2 = vld [vmem:[#allocation138_spill] sm:$0xff]  ;;  %v29739_v32 = vld [vmem:[#allocation158_spill] sm:$0xff] }
 0xcf6   : >> { %v5388_v47 = vpop.xlane.xlu1 %5387  ;;  %v5360_v13 = vmul.f32 %v19332_v54, %v16122_v7 }
 0xcf7   : >> { %29668 = vst [vmem:[#allocation177_spill] sm:$0xff] %v24781_v19  ;;  %v24784_v52 = vadd.f32 %v5388_v47, %v5358_v26  }
 0xcf8   : >> { %v5390_v44 = vpop.xlane.xlu0 %5389 }
 0xcf9   : >> { %29669 = vst [vmem:[#allocation178_spill] sm:$0xff] %v24784_v52  ;;  %v24787_v59 = vadd.f32 %v5390_v44, %v5359_v36  }
 0xcfa   : >> { %v5392_v25 = vpop.xlane.xlu1 %5391 }
 0xcfb   : >> { %29670 = vst [vmem:[#allocation179_spill] sm:$0xff] %v24787_v59  ;;  %v24790_v54 = vadd.f32 %v5392_v25, %v5360_v13   ;;  %v29692_v13 = vld [vmem:[#allocation139_spill] sm:$0xff] }
 0xcfc   : >> { %v5418_v25 = vmul.f32 %v29692_v13, %v16114_v6  ;;  %v29735_v13 = vld [vmem:[#allocation162_spill] sm:$0xff] }
 0xcfd   : >> { %v29671_v50 = vmov %v24790_v54 }
 0xd25   : >> { %v11047_v19 = vpop.f32.mrb[0].mxu1 }
 0xd26   : >> { %v24796_v35 = vadd.f32 %v11047_v19, %v5411_v21   ;;  %v5467_v52 = vpop.f32.mrb[1].mxu1 }
 0xd27   : >> { %v24800_v21 = vadd.f32 %v5467_v52, %v5409_v63   ;;  %v11048_v59 = vpop.f32.mrb[2].mxu1  ;;  %v5423_v63 = vmul.f32 %v29695_v40, %v16120_v28  ;;  %v29730_v28 = vld [vmem:[#allocation168_spill] sm:$0xff]  ;;  %v29743_v40 = vld [vmem:[#allocation154_spill] sm:$0xff] }
 0xd28   : >> { %v29673_v4 = vmov %v24796_v35  ;;  %v24804_v54 = vadd.f32 %v11048_v59, %v5412_v39   ;;  %v5470_v49 = vpop.f32.mrb[3].mxu1  ;;  %v29680_v35 = vld [vmem:[#allocation143_spill] sm:$0xff]  ;;  %v29697_v59 = vld [vmem:[#allocation133_spill] sm:$0xff]  ;;  %v29768_v40 = vld [vmem:[#allocation177_spill] sm:$0xff] (%p24846_p2) }
 0xd29   : >> { %v29675_v16 = vmov %v24800_v21  ;;  %v24806_v56 = vadd.f32 %v5470_v49, %v5410_v42   ;;  %v5413_v38 = vmul.f32 %v29680_v35, %v24735_v31  ;;  %v5419_v31 = vmul.f32 %v29687_v2, %v24753_v9  ;;  %v29698_v42 = vld [vmem:[#allocation135_spill] sm:$0xff]  ;;  %v29741_v2 = vld [vmem:[#allocation156_spill] sm:$0xff] }
 0xd2a   : >> { %v29677_v41 = vmov %v24804_v54  ;;  %v5424_v17 = vmul.f32 %v29697_v59, %v16122_v7  ;;  %v5422_v54 = vmul.f32 %v29698_v42, %v16118_v29  ;;  %v29713_v35 = vmov %v29673_v4  ;;  %v29717_v59 = vld [vmem:[#allocation179_spill] sm:$0xff]  ;;  %v29724_v49 = vld [vmem:[#allocation170_spill] sm:$0xff]  ;;  %v29733_v42 = vld [vmem:[#allocation164_spill] sm:$0xff] }
 0xd2b   : >> { %v29678_v12 = vmov %v24806_v56  ;;  %v29746_v29 = vld [vmem:[#allocation153_spill] sm:$0xff]  ;;  %v29764_v32 = vmov (%p24846_p2), %v29675_v16  ;;  %v29766_v2 = vld [vmem:[#allocation179_spill] sm:$0xff] (%p24846_p2) }
 0xd2c   : > { %v29771_v29 = vld [vmem:[#allocation176_spill] sm:$0xff] (%p24846_p2) }
 0xd2e   : >> { %v11051_v33 = vpop.f32.mrb[4].mxu1 }
 0xd2f   : >> { %v24812_v24 = vadd.f32 %v11051_v33, %v5415_v48   ;;  %v5483_v8 = vpop.f32.mrb[5].mxu1  ;;  %v29747_v33 = vld [vmem:[#allocation151_spill] sm:$0xff] }
 0xd30   : >> { %v24816_v22 = vadd.f32 %v5483_v8, %v5413_v38   ;;  %v11052_v34 = vpop.f32.mrb[6].mxu1  ;;  %v29727_v38 = vld [vmem:[#allocation171_spill] sm:$0xff]  ;;  %v29737_v8 = vld [vmem:[#allocation160_spill] sm:$0xff] }
 0xd31   : >> { %v29681_v10 = vmov %v24812_v24  ;;  %v24820_v3 = vadd.f32 %v11052_v34, %v5416_v45   ;;  %v5486_v56 = vpop.f32.mrb[7].mxu1  ;;  %v29688_v24 = vld [vmem:[#allocation140_spill] sm:$0xff]  ;;  %v29726_v34 = vld [vmem:[#allocation172_spill] sm:$0xff]  ;;  %v29744_v45 = vld [vmem:[#allocation152_spill] sm:$0xff]  ;;  %v29762_v8 = vmov (%p24846_p2), %v29673_v4 }
 0xd32   : >> { %v29683_v62 = vmov %v24816_v22  ;;  %v24822_v0 = vadd.f32 %v5486_v56, %v5414_v20   ;;  %v5417_v47 = vmul.f32 %v29688_v24, %v16112_v60  ;;  %v29690_v22 = vld [vmem:[#allocation137_spill] sm:$0xff]  ;;  %v29696_v60 = vld [vmem:[#allocation136_spill] sm:$0xff]  ;;  %v29709_v24 = vmov %v29681_v10  ;;  %v29721_v20 = vld [vmem:[#allocation173_spill] sm:$0xff] }
 0xd33   : >> { %v29685_v23 = vmov %v24820_v3  ;;  %v5420_v44 = vmul.f32 %v29690_v22, %v24762_v15  ;;  %v5421_v51 = vmul.f32 %v29696_v60, %v16116_v5  ;;  %v29711_v22 = vmov %v29683_v62  ;;  %v29731_v5 = vld [vmem:[#allocation166_spill] sm:$0xff]  ;;  %v29772_v33 = vld [vmem:[#allocation175_spill] sm:$0xff] (%p24846_p2) }
 0xd34   : >> { %v29686_v18 = vmov %v24822_v0  ;;  %v29708_v3 = vmov %v29685_v23  ;;  %v29712_v60 = vmov %v29677_v41  ;;  %v29714_v56 = vmov %v29678_v12  ;;  %v29769_v45 = vld [vmem:[#allocation174_spill] sm:$0xff] (%p24846_p2) }
 0xd35   : >> { %29710 = vst [vmem:[#allocation132_spill] sm:$0xff] %v29686_v18  ;;  %v29758_v42 = vmov (%p24846_p2), %v29681_v10  ;;  %v29760_v13 = vmov (%p24846_p2), %v29683_v62  ;;  %v29777_v62 = vld [vmem:[#allocation167_spill] sm:$0xff] (%p24846_p2)  ;;  %v29781_v10 = vld [vmem:[#allocation166_spill] sm:$0xff] (%p24846_p2) }
 0xd36   : >> { %v11055_v26 = vpop.f32.mrb[8].mxu1  ;;  %29778 = vst [vmem:[#allocation132_spill] sm:$0xff] (%p24846_p2), %v29777_v62 }
 0xd37   : >> { %v24827_v36 = vadd.f32 %v11055_v26, %v5419_v31   ;;  %v5499_v46 = vpop.f32.mrb[9].mxu1  ;;  %v29720_v26 = vld [vmem:[#allocation174_spill] sm:$0xff] }
 0xd38   : >> { %v24831_v48 = vadd.f32 %v5499_v46, %v5417_v47   ;;  %v11056_v30 = vpop.f32.mrb[10].mxu1  ;;  %v29736_v46 = vld [vmem:[#allocation161_spill] sm:$0xff]  ;;  %v29738_v47 = vld [vmem:[#allocation159_spill] sm:$0xff] }
 0xd39   : >> { %v29689_v53 = vmov %v24827_v36  ;;  %v24834_v21 = vadd.f32 %v11056_v30, %v5420_v44   ;;  %v5502_v19 = vpop.f32.mrb[11].mxu1  ;;  %v29723_v36 = vld [vmem:[#allocation175_spill] sm:$0xff]  ;;  %v29740_v44 = vld [vmem:[#allocation157_spill] sm:$0xff]  ;;  %v29761_v46 = vmov (%p24846_p2), %v29677_v41  ;;  %v29763_v47 = vmov (%p24846_p2), %v29678_v12  ;;  %v29780_v41 = vld [vmem:[#allocation168_spill] sm:$0xff] (%p24846_p2) }
 0xd3a   : >> { %v29691_v27 = vmov %v24831_v48  ;;  %v24836_v9 = vadd.f32 %v5502_v19, %v5418_v25   ;;  %v29719_v19 = vld [vmem:[#allocation177_spill] sm:$0xff]  ;;  %v29722_v25 = vld [vmem:[#allocation176_spill] sm:$0xff]  ;;  %v29765_v44 = vmov (%p24846_p2), %v29671_v50 }
 0xd3b   : >> { %v29693_v57 = vmov %v24834_v21  ;;  %v29707_v48 = vmov %v29691_v27  ;;  %v29715_v21 = vmov %v29675_v16  ;;  %v29756_v5 = vmov (%p24846_p2), %v29691_v27  ;;  %v29776_v27 = vld [vmem:[#allocation171_spill] sm:$0xff] (%p24846_p2) }
 0xd3c   : >> { %v29694_v43 = vmov %v24836_v9  ;;  %v29704_v7 = vmov %v29693_v57  ;;  %v29753_v1 = vmov (%p24846_p2), %v29693_v57  ;;  %v29779_v57 = vld [vmem:[#allocation165_spill] sm:$0xff] (%p24846_p2) }
 0xd3d   : >> { %v29706_v9 = vmov %v29694_v43  ;;  %v29755_v28 = vmov (%p24846_p2), %v29694_v43  ;;  %v29774_v43 = vld [vmem:[#allocation169_spill] sm:$0xff] (%p24846_p2) }
 0xd3e   : >> { %v11059_v52 = vpop.f32.mrb[12].mxu1  ;;  %4949 = sbr.rel (!%p24846_p2) target bundleno = 2703 (0xa8f), region = 182 }
 0xd3f   : >> { %v5544_v55 = vadd.f32 %v11059_v52, %v5423_v63   ;;  %v5515_v39 = vpop.f32.mrb[13].mxu1  ;;  %v29718_v52 = vld [vmem:[#allocation178_spill] sm:$0xff] }
 0xd40   : >> { %v5542_v58 = vadd.f32 %v5515_v39, %v5421_v51   ;;  %v11060_v15 = vpop.f32.mrb[14].mxu1  ;;  %v29725_v51 = vld [vmem:[#allocation169_spill] sm:$0xff] }
 0xd41   : >> { %v5545_v61 = vadd.f32 %v11060_v15, %v5424_v17   ;;  %v5518_v6 = vpop.f32.mrb[15].mxu1  ;;  %v29701_v63 = vmov %v5544_v55  ;;  %v29705_v15 = vmov %v29689_v53  ;;  %v29729_v39 = vld [vmem:[#allocation165_spill] sm:$0xff]  ;;  %v29742_v17 = vmov %v29646_v11  ;;  %v29745_v11 = vld [vmem:[#allocation150_spill] sm:$0xff] }
 0xd42   : >> { %v5543_v14 = vadd.f32 %v5518_v6, %v5422_v54   ;;  %v29703_v30 = vmov %v5542_v58  ;;  %v29716_v54 = vmov %v29671_v50  ;;  %v29732_v6 = vmov %v29635_v37  ;;  %v29734_v37 = vld [vmem:[#allocation163_spill] sm:$0xff]  ;;  %v29767_v17 = vld [vmem:[#allocation178_spill] sm:$0xff] (%p24846_p2)  ;;  %v29770_v11 = vld [vmem:[#allocation173_spill] sm:$0xff] (%p24846_p2) }
 0xd43   : >> { %v29700_v31 = vmov %v5545_v61  ;;  %v29749_v49 = vmov (%p24846_p2), %v5545_v61  ;;  %v29750_v51 = vmov (%p24846_p2), %v5544_v55  ;;  %v29752_v38 = vmov (%p24846_p2), %v5542_v58  ;;  %v29773_v50 = vld [vmem:[#allocation170_spill] sm:$0xff] (%p24846_p2) }
 0xd44   : >> { %v29702_v0 = vmov %v5543_v14  ;;  %v29751_v34 = vmov (%p24846_p2), %v5543_v14  ;;  %v29754_v39 = vmov (%p24846_p2), %v29689_v53  ;;  %v29757_v6 = vmov (%p24846_p2), %v29685_v23 }
 0xd45   : > { %v29759_v37 = vmov %v29686_v18  ;;  %v29775_v18 = vld [vmem:[#allocation172_spill] sm:$0xff] }
 0xd46 PF: > { %v29783_v55 = vld [vmem:[#allocation132_spill] sm:$0xff]  ;;  %16123 = vrcp.f32 %v19588_v10  ;;  %v25140_v23 = vld [vmem:[#allocation2 + $0x8] sm:$0xff]  ;;  %v25142_v53 = vld [vmem:[#allocation2 + $0x20] sm:$0xff]  ;;  %v25176_v63 = vmov 0.0   ;;  %v25178_v52 = vmov 0.0   ;;  %v25182_v60 = vmov 0.0   ;;  %v19588_v10 = vphi %v24168_v10, %v29781_v10   ;;  %v19584_v41 = vphi %v24166_v41, %v29780_v41   ;;  %v19580_v57 = vphi %v24164_v57, %v29779_v57   ;;  %v19572_v27 = vphi %v24160_v27, %v29776_v27   ;;  %v19568_v18 = vphi %v24158_v18, %v29775_v18   ;;  %v19564_v43 = vphi %v24156_v43, %v29774_v43   ;;  %v19560_v50 = vphi %v24154_v50, %v29773_v50   ;;  %v19556_v33 = vphi %v24152_v33, %v29772_v33   ;;  %v19552_v29 = vphi %v24150_v29, %v29771_v29   ;;  %v19548_v11 = vphi %v24148_v11, %v29770_v11   ;;  %v19544_v45 = vphi %v24146_v45, %v29769_v45   ;;  %v19540_v40 = vphi %v24144_v40, %v29768_v40   ;;  %v19536_v17 = vphi %v24142_v17, %v29767_v17   ;;  %v19532_v2 = vphi %v24140_v2, %v29766_v2   ;;  %v19528_v44 = vphi %v24138_v44, %v29765_v44   ;;  %v19524_v32 = vphi %v24136_v32, %v29764_v32   ;;  %v19520_v47 = vphi %v24134_v47, %v29763_v47   ;;  %v19516_v8 = vphi %v24132_v8, %v29762_v8   ;;  %v19512_v46 = vphi %v24130_v46, %v29761_v46   ;;  %v19508_v13 = vphi %v24128_v13, %v29760_v13   ;;  %v19504_v37 = vphi %v24126_v37, %v29759_v37   ;;  %v19500_v42 = vphi %v24124_v42, %v29758_v42   ;;  %v19496_v6 = vphi %v24122_v6, %v29757_v6   ;;  %v19492_v5 = vphi %v24120_v5, %v29756_v5   ;;  %v19488_v28 = vphi %v24118_v28, %v29755_v28   ;;  %v19484_v39 = vphi %v24116_v39, %v29754_v39   ;;  %v19480_v1 = vphi %v24114_v1, %v29753_v1   ;;  %v19476_v38 = vphi %v24112_v38, %v29752_v38   ;;  %v19472_v34 = vphi %v24110_v34, %v29751_v34   ;;  %v19468_v51 = vphi %v24108_v51, %v29750_v51   ;;  %v19464_v49 = vphi %v24106_v49, %v29749_v49  }
 0xd47   : > { %29784 = vst [vmem:[#allocation14_spill] sm:$0xff] %v25140_v23  ;;  %29785 = vst [vmem:[#allocation15_spill] sm:$0xff] %v25142_v53  ;;  %v25144_v58 = vld [vmem:[#allocation2 + $0x38] sm:$0xff]  ;;  %16125 = vrcp.f32 %v19584_v41  ;;  %v25146_v14 = vld [vmem:[#allocation2 + $0x50] sm:$0xff]  ;;  %v25190_v59 = vmov 0.0   ;;  %v25194_v15 = vmov 0.0  }
 0xd48   : > { %29786 = vst [vmem:[#allocation16_spill] sm:$0xff] %v25144_v58  ;;  %29787 = vst [vmem:[#allocation17_spill] sm:$0xff] %v25146_v14  ;;  %v25148_v61 = vld [vmem:[#allocation2 + $0x68] sm:$0xff]  ;;  %v25150_v4 = vld [vmem:[#allocation2 + $0x80] sm:$0xff]  ;;  %16127 = vrcp.f32 %v19580_v57  ;;  %v25198_v54 = vmov 0.0   ;;  %v25202_v62 = vmov 0.0  }
 0xd49   : > { %29788 = vst [vmem:[#allocation18_spill] sm:$0xff] %v25148_v61  ;;  %29789 = vst [vmem:[#allocation19_spill] sm:$0xff] %v25150_v4  ;;  %v25152_v16 = vld [vmem:[#allocation2 + $0x98] sm:$0xff]  ;;  %v25154_v12 = vld [vmem:[#allocation2 + $0xb0] sm:$0xff]  ;;  %16129 = vrcp.f32 %v29783_v55  ;;  %v25204_v55 = vmov 0.0  }
 0xd4a   : > { %29790 = vst [vmem:[#allocation22_spill] sm:$0xff] %v25152_v16  ;;  %29791 = vst [vmem:[#allocation23_spill] sm:$0xff] %v25154_v12  ;;  %16131 = vrcp.f32 %v19572_v27 }
 0xd4b   : > { %16133 = vrcp.f32 %v19568_v18 }
 0xd4c   : > { %16135 = vrcp.f32 %v19564_v43 }
 0xd4d   : > { %16137 = vrcp.f32 %v19560_v50 }
 0xd4e   : > { %16139 = vrcp.f32 %v19556_v33 }
 0xd4f   : > { %16141 = vrcp.f32 %v19552_v29 }
 0xd50   : > { %v16124_v10 = vpop.eup %16123  ;;  %16143 = vrcp.f32 %v19548_v11 }
 0xd51   : > { %v16126_v41 = vpop.eup %16125  ;;  %v5562_v9 = vmul.f32 %v19524_v32, %v16124_v10  ;;  %16145 = vrcp.f32 %v19544_v45  ;;  %v25206_v10 = vmov 0.0  }
 0xd52   : > { %v16128_v7 = vpop.eup %16127  ;;  %v5563_v3 = vmul.f32 %v19520_v47, %v16126_v41  ;;  %16147 = vrcp.f32 %v19540_v40  ;;  %v25208_v41 = vmov 0.0  }
 0xd53   : > { %v16130_v57 = vpop.eup %16129  ;;  %v5564_v48 = vmul.f32 %v19516_v8, %v16128_v7  ;;  %16149 = vrcp.f32 %v19536_v17  ;;  %v25192_v17 = vmov 0.0   ;;  %v25212_v7 = vmov 0.0  }
 0xd54   : > { %v16132_v35 = vpop.eup %16131  ;;  %v5578_v20 = vpack.c.bf16 %v5563_v3, %v5562_v9  ;;  %v5565_v56 = vmul.f32 %v19512_v46, %v16130_v57  ;;  %16151 = vrcp.f32 %v19532_v2  ;;  %v25210_v9 = vmov 0.0  }
 0xd55   : > { %v16134_v18 = vpop.eup %16133  ;;  %v5566_v27 = vmul.f32 %v19508_v13, %v16132_v35  ;;  %16153 = vrcp.f32 %v19528_v44  ;;  %v25214_v3 = vmov 0.0   ;;  %v25216_v57 = vmov 0.0  }
 0xd56   : > { %v16136_v43 = vpop.eup %16135  ;;  %5586 = vst.msk [vmem:[#allocation5 + $0x8] sm:$0xff] %vm4156_vm1, %v5578_v20  ;;  %v5579_v50 = vpack.c.bf16 %v5565_v56, %v5564_v48  ;;  %v5567_v11 = vmul.f32 %v19504_v37, %v16134_v18  ;;  %v25218_v48 = vmov 0.0   ;;  %v25220_v35 = vmov 0.0  }
 0xd57   : > { %v16138_v29 = vpop.eup %16137  ;;  %v5568_v33 = vmul.f32 %v19500_v42, %v16136_v43  ;;  %v25196_v42 = vmov 0.0   ;;  %v25222_v20 = vmov 0.0   ;;  %v25224_v56 = vmov 0.0  }
 0xd58   : > { %v16140_v45 = vpop.eup %16139  ;;  %5587 = vst.msk [vmem:[#allocation5 + $0x20] sm:$0xff] %vm4156_vm1, %v5579_v50  ;;  %v5580_v8 = vpack.c.bf16 %v5567_v11, %v5566_v27  ;;  %v5569_v32 = vmul.f32 %v19496_v6, %v16138_v29  ;;  %v25200_v6 = vmov 0.0   ;;  %v25226_v18 = vmov 0.0  }
 0xd59   : > { %v16142_v0 = vpop.eup %16141  ;;  %v5570_v2 = vmul.f32 %v19492_v5, %v16140_v45  ;;  %v25228_v27 = vmov 0.0   ;;  %v25230_v43 = vmov 0.0   ;;  %v25232_v50 = vmov 0.0  }
 0xd5a   : > { %v16144_v31 = vpop.eup %16143  ;;  %5588 = vst.msk [vmem:[#allocation5 + $0x38] sm:$0xff] %vm4156_vm1, %v5580_v8  ;;  %v5581_v26 = vpack.c.bf16 %v5569_v32, %v5568_v33  ;;  %v5571_v24 = vmul.f32 %v19488_v28, %v16142_v0  ;;  %v25234_v11 = vmov 0.0   ;;  %v25236_v29 = vmov 0.0  }
 0xd5b   : > { %v16146_v47 = vpop.eup %16145  ;;  %v5572_v37 = vmul.f32 %v19484_v39, %v16144_v31  ;;  %v25186_v39 = vmov 0.0  }
 0xd5c   : > { %v16148_v36 = vpop.eup %16147  ;;  %5589 = vst.msk [vmem:[#allocation5 + $0x50] sm:$0xff] %vm4156_vm1, %v5581_v26  ;;  %v5582_v46 = vpack.c.bf16 %v5571_v24, %v5570_v2  ;;  %v5573_v22 = vmul.f32 %v19480_v1, %v16146_v47 }
 0xd5d   : > { %v16150_v44 = vpop.eup %16149  ;;  %v5574_v30 = vmul.f32 %v19476_v38, %v16148_v36  ;;  %v25174_v38 = vmov 0.0  }
 0xd5e   : > { %v16152_v13 = vpop.eup %16151  ;;  %5590 = vst.msk [vmem:[#allocation5 + $0x68] sm:$0xff] %vm4156_vm1, %v5582_v46  ;;  %v5583_v5 = vpack.c.bf16 %v5573_v22, %v5572_v37  ;;  %v5575_v25 = vmul.f32 %v19472_v34, %v16150_v44  ;;  %v25180_v34 = vmov 0.0   ;;  %9379 = sbr.rel (%p9923_p8) target bundleno = 4268 (0x10ac), region = 187 }
 0xd5f   : > { %v16154_v21 = vpop.eup %16153  ;;  %v5576_v28 = vmul.f32 %v19468_v51, %v16152_v13  ;;  %v25184_v51 = vmov 0.0  }
 0xd60   : > { %5591 = vst.msk [vmem:[#allocation5 + $0x80] sm:$0xff] %vm4156_vm1, %v5583_v5  ;;  %v5584_v19 = vpack.c.bf16 %v5575_v25, %v5574_v30  ;;  %v5577_v40 = vmul.f32 %v19464_v49, %v16154_v21  ;;  %v25188_v49 = vmov 0.0  }
 0xd62   : > { %5592 = vst.msk [vmem:[#allocation5 + $0x98] sm:$0xff] %vm4156_vm1, %v5584_v19  ;;  %v5585_v1 = vpack.c.bf16 %v5577_v40, %v5576_v28 }
 0xd64   : > { %5593 = vst.msk [vmem:[#allocation5 + $0xb0] sm:$0xff] %vm4156_vm1, %v5585_v1 }
 0xd65   : > { %v25240_v33 = vmov 0.0   ;;  %v25242_v45 = vmov 0.0   ;;  %v25244_v8 = vmov 0.0   ;;  %v25246_v32 = vmov 0.0   ;;  %s25336_s30 = smov 0  }
 0xd66   : > { %v25248_v0 = vmov 0.0   ;;  %v25250_v2 = vmov 0.0   ;;  %v25252_v31 = vmov 0.0   ;;  %v25254_v26 = vmov 0.0  }
 0xd67   : > { %29792 = vst [vmem:[#allocation180_spill] sm:$0xff] %v25248_v0  ;;  %v25256_v24 = vmov 0.0   ;;  %v25258_v47 = vmov 0.0   ;;  %v25260_v37 = vmov 0.0   ;;  %v25262_v36 = vmov 0.0  }
 0xd68   : > { %v25264_v46 = vmov 0.0   ;;  %v25266_v22 = vmov 0.0   ;;  %v25268_v44 = vmov 0.0   ;;  %v25270_v30 = vmov 0.0  }
 0xd69   : > { %v25272_v13 = vmov 0.0   ;;  %v25274_v5 = vmov 0.0   ;;  %v25276_v25 = vmov 0.0   ;;  %v25278_v21 = vmov 0.0  }
 0xd6a   : > { %v25280_v28 = vmov 0.0   ;;  %v25282_v19 = vmov 0.0   ;;  %v25284_v40 = vmov 0.0   ;;  %v25286_v1 = vmov 0.0  }
 0xd6b   : > { %v25288_v38 = vmov 0.0   ;;  %v25290_v63 = vmov 0.0   ;;  %v25292_v52 = vmov 0.0   ;;  %v25294_v34 = vmov 0.0  }
 0xd6c   : > { %v25296_v60 = vmov 0.0   ;;  %v25298_v51 = vmov 0.0   ;;  %v25300_v39 = vmov 0.0   ;;  %v25302_v49 = vmov 0.0  }
 0xd6d   : > { %v25304_v59 = vmov -1e+30   ;;  %v25306_v17 = vmov -1e+30   ;;  %v25308_v15 = vmov -1e+30  }
 0xd6e   : > { %v25310_v42 = vmov -1e+30   ;;  %v25312_v54 = vmov -1e+30   ;;  %v25314_v6 = vmov -1e+30  }
 0xd6f   : > { %v25316_v62 = vmov -1e+30   ;;  %v25318_v55 = vmov -1e+30   ;;  %v25320_v10 = vmov -1e+30  }
 0xd70   : > { %v25322_v41 = vmov -1e+30   ;;  %v25324_v9 = vmov -1e+30   ;;  %v25326_v7 = vmov -1e+30  }
 0xd71   : > { %v25328_v3 = vmov -1e+30   ;;  %v25330_v57 = vmov -1e+30   ;;  %v25332_v48 = vmov -1e+30  }
 0xd72   : > { %v25334_v35 = vmov -1e+30  }
 0xd73 LB: >> { %29794 = vst [vmem:[#allocation181_spill] sm:$0xff] %v19592_v33  ;;  %29795 = vst [vmem:[#allocation182_spill] sm:$0xff] %v19596_v45  ;;  %v29798_v0 = vld [vmem:[#allocation180_spill] sm:$0xff]  ;;  %s10133_s16 = sshll.u32 %s19784_s30, 7  ;;  %s20567_s7 = smov 64   ;;  %v29813_v23 = vld [vmem:[#allocation14_spill] sm:$0xff]  ;;  %s19784_s30 = sphi %s25336_s30, %s29981_s30   ;;  %v19780_v35 = vphi %v25334_v35, %v29980_v35   ;;  %v19776_v48 = vphi %v25332_v48, %v29979_v48   ;;  %v19772_v57 = vphi %v25330_v57, %v29978_v57   ;;  %v19768_v3 = vphi %v25328_v3, %v29977_v3   ;;  %v19764_v7 = vphi %v25326_v7, %v29976_v7   ;;  %v19760_v9 = vphi %v25324_v9, %v29975_v9   ;;  %v19756_v41 = vphi %v25322_v41, %v29974_v41   ;;  %v19752_v10 = vphi %v25320_v10, %v29973_v10   ;;  %v19748_v55 = vphi %v25318_v55, %v29972_v55   ;;  %v19744_v62 = vphi %v25316_v62, %v29971_v62   ;;  %v19740_v6 = vphi %v25314_v6, %v29970_v6   ;;  %v19736_v54 = vphi %v25312_v54, %v29969_v54   ;;  %v19732_v42 = vphi %v25310_v42, %v29968_v42   ;;  %v19728_v15 = vphi %v25308_v15, %v29967_v15   ;;  %v19724_v17 = vphi %v25306_v17, %v29966_v17   ;;  %v19720_v59 = vphi %v25304_v59, %v29965_v59   ;;  %v19716_v49 = vphi %v25302_v49, %v29964_v49   ;;  %v19712_v39 = vphi %v25300_v39, %v29963_v39   ;;  %v19708_v51 = vphi %v25298_v51, %v29962_v51   ;;  %v19704_v60 = vphi %v25296_v60, %v29961_v60   ;;  %v19700_v34 = vphi %v25294_v34, %v29960_v34   ;;  %v19696_v52 = vphi %v25292_v52, %v29959_v52   ;;  %v19692_v63 = vphi %v25290_v63, %v29958_v63   ;;  %v19688_v38 = vphi %v25288_v38, %v29957_v38   ;;  %v19684_v1 = vphi %v25286_v1, %v29956_v1   ;;  %v19680_v40 = vphi %v25284_v40, %v29955_v40   ;;  %v19676_v19 = vphi %v25282_v19, %v29954_v19   ;;  %v19672_v28 = vphi %v25280_v28, %v29953_v28   ;;  %v19668_v21 = vphi %v25278_v21, %v29952_v21   ;;  %v19664_v25 = vphi %v25276_v25, %v29951_v25   ;;  %v19660_v5 = vphi %v25274_v5, %v29950_v5   ;;  %v19656_v13 = vphi %v25272_v13, %v29949_v13   ;;  %v19652_v30 = vphi %v25270_v30, %v29948_v30   ;;  %v19648_v44 = vphi %v25268_v44, %v29947_v44   ;;  %v19644_v22 = vphi %v25266_v22, %v29946_v22   ;;  %v19640_v46 = vphi %v25264_v46, %v29945_v46   ;;  %v19636_v36 = vphi %v25262_v36, %v29944_v36   ;;  %v19632_v37 = vphi %v25260_v37, %v29943_v37   ;;  %v19628_v47 = vphi %v25258_v47, %v29942_v47   ;;  %v19624_v24 = vphi %v25256_v24, %v29941_v24   ;;  %v19620_v26 = vphi %v25254_v26, %v29940_v26   ;;  %v19616_v31 = vphi %v25252_v31, %v29939_v31   ;;  %v19612_v2 = vphi %v25250_v2, %v29938_v2   ;;  %v19604_v32 = vphi %v25246_v32, %v29936_v32   ;;  %v19600_v8 = vphi %v25244_v8, %v29935_v8   ;;  %v19596_v45 = vphi %v25242_v45, %v29934_v45   ;;  %v19592_v33 = vphi %v25240_v33, %v29933_v33  }
 0xd74   : >> { %29796 = vst [vmem:[#allocation183_spill] sm:$0xff] %v19600_v8  ;;  %29797 = vst [vmem:[#allocation184_spill] sm:$0xff] %v19604_v32  ;;  %s5657_s0 = sshra.s32 %s10133_s16, 4  ;;  %v29814_v53 = vld [vmem:[#allocation15_spill] sm:$0xff]  ;;  %v29815_v58 = vld [vmem:[#allocation16_spill] sm:$0xff]  ;;  %s5605_s19 = sadd.s32 1, %s19784_s30  }
 0xd75   : >> { %29799 = vst [vmem:[#allocation180_spill] sm:$0xff] %v29798_v0  ;;  %29800 = vst [vmem:[#allocation185_spill] sm:$0xff] %v19612_v2  ;;  %s10255_s5 = smul.u32 24, %s5657_s0  ;;  %v29816_v14 = vld [vmem:[#allocation17_spill] sm:$0xff]  ;;  %v29817_v61 = vld [vmem:[#allocation18_spill] sm:$0xff]  ;;  %p25917_p5 = scmp.ge.s32.totalorder %s5605_s19, %s20718_s29 }
 0xd76   : >> { %29801 = vst [vmem:[#allocation186_spill] sm:$0xff] %v19616_v31  ;;  %29802 = vst [vmem:[#allocation187_spill] sm:$0xff] %v19620_v26  ;;  %v29818_v4 = vld [vmem:[#allocation19_spill] sm:$0xff]  ;;  %v29819_v16 = vld [vmem:[#allocation22_spill] sm:$0xff]  ;;  %s29981_s30 = smov %s5605_s19 }
 0xd77   : >> { %29803 = vst [vmem:[#allocation188_spill] sm:$0xff] %v19624_v24  ;;  %29804 = vst [vmem:[#allocation189_spill] sm:$0xff] %v19628_v47  ;;  %s5661_s14 = scalar_lea.vmem [#allocation3], %s10255_s5  ;;  %v29820_v12 = vld [vmem:[#allocation23_spill] sm:$0xff]  ;;  %s25512_s8 = scalar_lea.vmem [#allocation4], %s10255_s5 }
 0xd78   : >> { %29805 = vst [vmem:[#allocation190_spill] sm:$0xff] %v19632_v37  ;;  %29806 = vst [vmem:[#allocation191_spill] sm:$0xff] %v19636_v36  ;;  %v5662_v20 = vld [vmem:[%s5661_s14 + $0x8] sm:$0xff]  ;;  %v5664_v56 = vld [vmem:[%s5661_s14 + $0x38] sm:$0xff] }
 0xd79   : >> { %29807 = vst [vmem:[#allocation192_spill] sm:$0xff] %v19640_v46  ;;  %29808 = vst [vmem:[#allocation193_spill] sm:$0xff] %v19644_v22  ;;  %5712 = vrot.lane.b32.xlu0 %v5662_v20, %s20567_s7  ;;  %5716 = vrot.lane.b32.xlu1 %v5664_v56, %s20567_s7  ;;  %v5663_v18 = vld [vmem:[%s5661_s14 + $0x20] sm:$0xff]  ;;  %v5665_v27 = vld [vmem:[%s5661_s14 + $0x50] sm:$0xff] }
 0xd7a   : >> { %29809 = vst [vmem:[#allocation194_spill] sm:$0xff] %v19648_v44  ;;  %29810 = vst [vmem:[#allocation195_spill] sm:$0xff] %v19652_v30  ;;  %v5666_v43 = vld [vmem:[%s5661_s14 + $0x68] sm:$0xff]  ;;  %v5667_v50 = vld [vmem:[%s5661_s14 + $0x80] sm:$0xff] }
 0xd7b   : >> { %29811 = vst [vmem:[#allocation196_spill] sm:$0xff] %v19656_v13  ;;  %29812 = vst [vmem:[#allocation197_spill] sm:$0xff] %v19760_v9  ;;  %v5668_v11 = vld [vmem:[%s5661_s14 + $0x98] sm:$0xff]  ;;  %v5669_v29 = vld [vmem:[%s5661_s14 + $0xb0] sm:$0xff] }
 0xd7c   : >> { %v5672_v20 = vld [vmem:[%s25512_s8 + $0x8] sm:$0xff]  ;;  %v5673_v56 = vld [vmem:[%s25512_s8 + $0x20] sm:$0xff] }
 0xd7d   : >> { %5714 = vrot.lane.b32.xlu0 %v5663_v18, %s20567_s7  ;;  %5718 = vrot.lane.b32.xlu1 %v5665_v27, %s20567_s7  ;;  %v5674_v18 = vld [vmem:[%s25512_s8 + $0x38] sm:$0xff]  ;;  %v5675_v27 = vld [vmem:[%s25512_s8 + $0x50] sm:$0xff] }
 0xd81   : >> { %5720 = vrot.lane.b32.xlu0 %v5666_v43, %s20567_s7  ;;  %5722 = vrot.lane.b32.xlu1 %v5667_v50, %s20567_s7  ;;  %v5676_v43 = vld [vmem:[%s25512_s8 + $0x68] sm:$0xff]  ;;  %v5677_v50 = vld [vmem:[%s25512_s8 + $0x80] sm:$0xff] }
 0xd85   : >> { %5724 = vrot.lane.b32.xlu0 %v5668_v11, %s20567_s7  ;;  %5726 = vrot.lane.b32.xlu1 %v5669_v29, %s20567_s7 }
 0xd89   : >> { %5688 = vrot.lane.b32.xlu0 %v29813_v23, %s20567_s7  ;;  %5690 = vrot.lane.b32.xlu1 %v29814_v53, %s20567_s7 }
 0xd8d   : >> { %5692 = vrot.lane.b32.xlu0 %v29815_v58, %s20567_s7  ;;  %5694 = vrot.lane.b32.xlu1 %v29816_v14, %s20567_s7  ;;  %v29824_v14 = vld [vmem:[#allocation27_spill] sm:$0xff] }
 0xd91   : >> { %5696 = vrot.lane.b32.xlu0 %v29817_v61, %s20567_s7  ;;  %5698 = vrot.lane.b32.xlu1 %v29818_v4, %s20567_s7 }
 0xd95   : >> { %5700 = vrot.lane.b32.xlu0 %v29819_v16, %s20567_s7  ;;  %5702 = vrot.lane.b32.xlu1 %v29820_v12, %s20567_s7 }
 0xd99   : >> { %6147 = vrot.lane.b32.xlu1 %v5672_v20, %s20567_s7  ;;  %6149 = vrot.lane.b32.xlu0 %v5673_v56, %s20567_s7 }
 0xd9d   : >> { %6151 = vrot.lane.b32.xlu1 %v5674_v18, %s20567_s7  ;;  %6153 = vrot.lane.b32.xlu0 %v5675_v27, %s20567_s7 }
 0xda1   : >> { %6155 = vrot.lane.b32.xlu1 %v5676_v43, %s20567_s7  ;;  %6157 = vrot.lane.b32.xlu0 %v5677_v50, %s20567_s7 }
 0xdeb   : >> { %v5713_v11 = vpop.permute.xlu0 %5712  ;;  %v5717_v18 = vpop.permute.xlu1 %5716 }
 0xdec   : >> { %11501 = vmatprep.subr.msk.bf16.mxu0 %vm4156_vm1, %v5713_v11  ;;  %v5753_v29 = vsel %vm4156_vm1, %v5713_v11, 0  ;;  %v5759_v43 = vsel %vm4156_vm1, %v5717_v18, 0 }
 0xded   : >> { %11062 = vmatpush3.bf16.xpose.msra.mxu0 %v5753_v29 }
 0xdef   : >> { %v5715_v20 = vpop.permute.xlu0 %5714  ;;  %v5719_v50 = vpop.permute.xlu1 %5718 }
 0xdf0   : >> { %11502 = vmatprep.subr.msk.bf16.mxu0 %vm4156_vm1, %v5715_v20  ;;  %v5756_v56 = vsel %vm4156_vm1, %v5715_v20, 0  ;;  %v5762_v11 = vsel %vm4156_vm1, %v5719_v50, 0 }
 0xdf3   : >> { %v5721_v4 = vpop.permute.xlu0 %5720  ;;  %v5723_v20 = vpop.permute.xlu1 %5722 }
 0xdf4   : >> { %v5765_v29 = vsel %vm4156_vm1, %v5721_v4, 0 }
 0xdf5   : >> { %11064 = vmatpush3.bf16.xpose.msra.mxu0 %v5756_v56  ;;  %v5768_v56 = vsel %vm4156_vm1, %v5723_v20, 0 }
 0xdf6   : >> { %11503 = vmatprep.subr.msk.bf16.mxu0 %vm4156_vm1, %v5717_v18 }
 0xdf7   : >> { %v5725_v27 = vpop.permute.xlu0 %5724  ;;  %v5727_v18 = vpop.permute.xlu1 %5726 }
 0xdfb   : >> { %v5689_v12 = vpop.permute.xlu0 %5688 }
 0xdfc   : >> { %11077 = vmatprep.mubr.msk.bf16.mxu0 %vm4156_vm1, %v5689_v12  ;;  %v5771_v12 = vsel %vm4156_vm1, %v5725_v27, 0 }
 0xdfd   : >> { %11066 = vmatpush3.bf16.xpose.msra.mxu0 %v5759_v43  ;;  %v5774_v43 = vsel %vm4156_vm1, %v5727_v18, 0 }
 0xdfe   : >> { %11504 = vmatprep.subr.msk.bf16.mxu0 %vm4156_vm1, %v5719_v50  ;;  %v5691_v50 = vpop.permute.xlu1 %5690 }
 0xe05   : >> { %11068 = vmatpush3.bf16.xpose.msra.mxu0 %v5762_v11  ;;  %v5695_v11 = vpop.permute.xlu1 %5694 }
 0xe06   : >> { %11505 = vmatprep.subr.msk.bf16.mxu0 %vm4156_vm1, %v5721_v4  ;;  %v5693_v4 = vpop.permute.xlu0 %5692 }
 0xe0d   : >> { %11070 = vmatpush3.bf16.xpose.msra.mxu0 %v5765_v29  ;;  %v5697_v29 = vpop.permute.xlu0 %5696 }
 0xe0e   : >> { %11506 = vmatprep.subr.msk.bf16.mxu0 %vm4156_vm1, %v5723_v20 }
 0xe11   : >> { %v5701_v20 = vpop.permute.xlu0 %5700 }
 0xe15   : >> { %11072 = vmatpush3.bf16.xpose.msra.mxu0 %v5768_v56 }
 0xe16   : >> { %11507 = vmatprep.subr.msk.bf16.mxu0 %vm4156_vm1, %v5725_v27  ;;  %v5699_v27 = vpop.permute.xlu1 %5698 }
 0xe1a   : >> { %v5703_v56 = vpop.permute.xlu1 %5702 }
 0xe1d   : >> { %11074 = vmatpush3.bf16.xpose.msra.mxu0 %v5771_v12 }
 0xe1e   : >> { %11508 = vmatprep.subr.msk.bf16.mxu0 %vm4156_vm1, %v5727_v18  ;;  %v6148_v12 = vpop.permute.xlu1 %6147  ;;  %v6150_v18 = vpop.permute.xlu0 %6149 }
 0xe1f   : >> { %11093 = vmatprep.subr.bf16.mxu1 %v6148_v12 }
 0xe20   : >> { %11094 = vmatpush3.bf16.msra.mxu1 %v6148_v12  ;;  %v29823_v12 = vld [vmem:[#allocation24_spill] sm:$0xff] }
 0xe21   : >> { %11095 = vmatprep.subr.bf16.mxu1 %v6150_v18 }
 0xe24   : >> { %11096 = vmatpush3.bf16.msra.mxu1 %v6150_v18 }
 0xe25   : >> { %11076 = vmatpush3.bf16.xpose.msra.mxu0 %v5774_v43  ;;  %v6152_v43 = vpop.permute.xlu1 %6151 }
 0xe26   : >> { %11097 = vmatprep.subr.bf16.mxu1 %v6152_v43 }
 0xe28   : >> { %11098 = vmatpush3.bf16.msra.mxu1 %v6152_v43 }
 0xe2c   : >> { %11078 = vmatmul.mubr.msk.bf16.vlgmr.msra.gmra.mrb[0].mxu0 %vm4156_vm1, %v5691_v50  ;;  %v6154_v50 = vpop.permute.xlu0 %6153 }
 0xe2d   : >> { %11081 = vmatprep.mubr.msk.bf16.mxu0 %vm4156_vm1, %v5693_v4  ;;  %11099 = vmatprep.subr.bf16.mxu1 %v6154_v50  ;;  %v6156_v4 = vpop.permute.xlu1 %6155 }
 0xe2e   : >> { %11100 = vmatpush3.bf16.msra.mxu1 %v6154_v50  ;;  %v29825_v50 = vld [vmem:[#allocation25_spill] sm:$0xff] }
 0xe2f   : >> { %11101 = vmatprep.subr.bf16.mxu1 %v6156_v4 }
 0xe32   : >> { %11102 = vmatpush3.bf16.msra.mxu1 %v6156_v4 }
 0xe34   : >> { %11082 = vmatmul.mubr.msk.bf16.gmra.mrb[4].mxu0 %vm4156_vm1, %v5695_v11  ;;  %v6158_v11 = vpop.permute.xlu0 %6157 }
 0xe35   : >> { %11085 = vmatprep.mubr.msk.bf16.mxu0 %vm4156_vm1, %v5697_v29  ;;  %11103 = vmatprep.subr.bf16.mxu1 %v6158_v11  ;;  %v5873_v29 = vstv %s10133_s16 }
 0xe36   : >> { %11104 = vmatpush3.bf16.msra.mxu1 %v6158_v11 }
 0xe3c   : >> { %11086 = vmatmul.mubr.msk.bf16.gmra.mrb[8].mxu0 %vm4156_vm1, %v5699_v27  ;;  %v29821_v27 = vld [vmem:[#allocation21_spill] sm:$0xff] }
 0xe3d   : >> { %11089 = vmatprep.mubr.msk.bf16.mxu0 %vm4156_vm1, %v5701_v20  ;;  %v5874_v20 = vadd.s32 %v5873_v29, %v29821_v27  ;;  %v29827_v27 = vld [vmem:[#allocation28_spill] sm:$0xff] }
 0xe3f   : >> { %vm5875_vm7 = vcmp.le.s32.totalorder %v5874_v20, %v29823_v12  ;;  %vm5878_vm8 = vcmp.le.s32.totalorder %v5874_v20, %v29824_v14  ;;  %vm5876_vm9 = vcmp.le.s32.totalorder %v5874_v20, %v29825_v50  ;;  %v29826_v14 = vld [vmem:[#allocation30_spill] sm:$0xff]  ;;  %vm5879_vm11 = vcmp.le.s32.totalorder %v5874_v20, %v29827_v27  ;;  %v29828_v12 = vld [vmem:[#allocation31_spill] sm:$0xff] }
 0xe40   : >> { %vm5881_vm10 = vcmp.le.s32.totalorder %v5874_v20, %v29826_v14  ;;  %vm5882_vm12 = vcmp.le.s32.totalorder %v5874_v20, %v29828_v12  ;;  %v29830_v27 = vld [vmem:[#allocation34_spill] sm:$0xff] }
 0xe41   : >> { %vm5885_vm14 = vcmp.le.s32.totalorder %v5874_v20, %v29830_v27 }
 0xe44   : >> { %11090 = vmatmul.mubr.msk.bf16.gmra.mrb[12].mxu0 %vm4156_vm1, %v5703_v56  ;;  %v29822_v56 = vld [vmem:[#allocation26_spill] sm:$0xff] }
 0xe45   : >> { %vm5877_vm6 = vcmp.le.s32.totalorder %v5874_v20, %v29822_v56 }
 0xeff   : >> { %v11079_v18 = vpop.f32.mrb[0].mxu0 }
 0xf00   : >> { %v5810_v43 = vpop.f32.mrb[1].mxu0  ;;  %v25556_v16 = vsel %vm5877_vm6, %v11079_v18, -1e+30 }
 0xf01   : >> { %5911 = vmax.xlane.f32.xlu0 %v25556_v16  ;;  %v11080_v4 = vpop.f32.mrb[2].mxu0  ;;  %v25560_v11 = vsel %vm5875_vm7, %v5810_v43, -1e+30  ;;  %v29829_v43 = vld [vmem:[#allocation29_spill] sm:$0xff] }
 0xf02   : >> { %v5813_v23 = vpop.f32.mrb[3].mxu0  ;;  %v25562_v53 = vsel %vm5878_vm8, %v11080_v4, -1e+30  ;;  %vm5880_vm13 = vcmp.le.s32.totalorder %v5874_v20, %v29829_v43  ;;  %v29832_v43 = vld [vmem:[#allocation35_spill] sm:$0xff] }
 0xf03   : >> { %v25564_v29 = vsel %vm5876_vm9, %v5813_v23, -1e+30  ;;  %vm5886_vm0 = vcmp.le.s32.totalorder %v5874_v20, %v29832_v43 }
 0xf04   : >> { %5909 = vmax.xlane.f32.xlu1 %v25564_v29 }
 0xf05   : >> { %5907 = vmax.xlane.f32.xlu0 %v25560_v11 }
 0xf07   : >> { %v11083_v56 = vpop.f32.mrb[4].mxu0 }
 0xf08   : >> { %v5826_v18 = vpop.f32.mrb[5].mxu0  ;;  %v25571_v50 = vsel %vm5881_vm10, %v11083_v56, -1e+30  ;;  %v29831_v56 = vld [vmem:[#allocation32_spill] sm:$0xff] }
 0xf09   : >> { %5913 = vmax.xlane.f32.xlu0 %v25562_v53  ;;  %5919 = vmax.xlane.f32.xlu1 %v25571_v50  ;;  %v11084_v23 = vpop.f32.mrb[6].mxu0  ;;  %v25576_v4 = vsel %vm5879_vm11, %v5826_v18, -1e+30  ;;  %vm5883_vm15 = vcmp.le.s32.totalorder %v5874_v20, %v29831_v56  ;;  %v29833_v18 = vld [vmem:[#allocation33_spill] sm:$0xff]  ;;  %v29834_v56 = vld [vmem:[#allocation38_spill] sm:$0xff] }
 0xf0a   : >> { %v5829_v58 = vpop.f32.mrb[7].mxu0  ;;  %v25578_v61 = vsel %vm5882_vm12, %v11084_v23, -1e+30  ;;  %vm5884_vm2 = vcmp.le.s32.totalorder %v5874_v20, %v29833_v18  ;;  %vm5889_vm4 = vcmp.le.s32.totalorder %v5874_v20, %v29834_v56  ;;  %v29836_v18 = vld [vmem:[#allocation39_spill] sm:$0xff] }
 0xf0b   : >> { %v25580_v14 = vsel %vm5880_vm13, %v5829_v58, -1e+30  ;;  %vm5890_vm6 = vcmp.le.s32.totalorder %v5874_v20, %v29836_v18 }
 0xf0d   : >> { %5915 = vmax.xlane.f32.xlu1 %v25576_v4  ;;  %5921 = vmax.xlane.f32.xlu0 %v25578_v61 }
 0xf0f   : >> { %v11087_v12 = vpop.f32.mrb[8].mxu0 }
 0xf10   : >> { %v5842_v8 = vpop.f32.mrb[9].mxu0  ;;  %v25587_v33 = vsel %vm5885_vm14, %v11087_v12, -1e+30  ;;  %v29835_v12 = vld [vmem:[#allocation36_spill] sm:$0xff] }
 0xf11   : >> { %5917 = vmax.xlane.f32.xlu0 %v25580_v14  ;;  %5927 = vmax.xlane.f32.xlu1 %v25587_v33  ;;  %v11088_v58 = vpop.f32.mrb[10].mxu0  ;;  %v25592_v23 = vsel %vm5883_vm15, %v5842_v8, -1e+30  ;;  %vm5887_vm5 = vcmp.le.s32.totalorder %v5874_v20, %v29835_v12 }
 0xf12   : >> { %v5845_v32 = vpop.f32.mrb[11].mxu0  ;;  %v25594_v45 = vsel %vm5886_vm0, %v11088_v58, -1e+30  ;;  %v29837_v58 = vld [vmem:[#allocation37_spill] sm:$0xff] }
 0xf13   : >> { %v25596_v27 = vsel %vm5884_vm2, %v5845_v32, -1e+30  ;;  %vm5888_vm7 = vcmp.le.s32.totalorder %v5874_v20, %v29837_v58  ;;  %v5679_v20 = vld [vmem:[%s25512_s8 + $0xb0] sm:$0xff] }
 0xf15   : >> { %5923 = vmax.xlane.f32.xlu1 %v25592_v23  ;;  %5929 = vmax.xlane.f32.xlu0 %v25594_v45 }
 0xf17   : >> { %v11091_v43 = vpop.f32.mrb[12].mxu0 }
 0xf18   : >> { %v5858_v8 = vpop.f32.mrb[13].mxu0  ;;  %v25603_v31 = vsel %vm5889_vm4, %v11091_v43, -1e+30  ;;  %v5678_v43 = vld [vmem:[%s25512_s8 + $0x98] sm:$0xff] }
 0xf19   : >> { %5925 = vmax.xlane.f32.xlu0 %v25596_v27  ;;  %5935 = vmax.xlane.f32.xlu1 %v25603_v31  ;;  %v11092_v32 = vpop.f32.mrb[14].mxu0  ;;  %v25608_v0 = vsel %vm5887_vm5, %v5858_v8, -1e+30 }
 0xf1a   : >> { %v5861_v56 = vpop.f32.mrb[15].mxu0  ;;  %v25610_v26 = vsel %vm5890_vm6, %v11092_v32, -1e+30 }
 0xf1b   : >> { %v25612_v12 = vsel %vm5888_vm7, %v5861_v56, -1e+30 }
 0xf1c   : >> { %29838 = vst [vmem:[#allocation198_spill] sm:$0xff] %v25612_v12 }
 0xf1d   : >> { %5931 = vmax.xlane.f32.xlu1 %v25608_v0  ;;  %5937 = vmax.xlane.f32.xlu0 %v25610_v26 }
 0xf21   : >> { %5933 = vmax.xlane.f32.xlu0 %v25612_v12 }
 0xf2e   : >> { %6159 = vrot.lane.b32.xlu1 %v5678_v43, %s20567_s7 }
 0xf37   : >> { %6161 = vrot.lane.b32.xlu0 %v5679_v20, %s20567_s7 }
 0xf8e   : >> { %v5912_v18 = vpop.xlane.xlu0 %5911 }
 0xf8f   : >> { %v25622_v8 = vmax.f32 %v19772_v57, %v5912_v18  }
 0xf91   : >> { %29839 = vst [vmem:[#allocation199_spill] sm:$0xff] %v25622_v8  ;;  %v29840_v58 = vmov %v25622_v8  ;;  %v5910_v2 = vpop.xlane.xlu1 %5909 }
 0xf92   : >> { %v6005_v56 = vsub.f32 %v25556_v16, %v29840_v58  ;;  %v25629_v37 = vmax.f32 %v19776_v48, %v5910_v2   ;;  %v5908_v24 = vpop.xlane.xlu0 %5907 }
 0xf93   : >> { %v25632_v43 = vmax.f32 %v19780_v35, %v5908_v24  }
 0xf94   : >> { %29841 = vst [vmem:[#allocation200_spill] sm:$0xff] %v25629_v37  ;;  %v29842_v12 = vmov %v25629_v37  ;;  %v6023_v36 = vmul.f32 1.442695, %v6005_v56 }
 0xf95   : >> { %29843 = vst [vmem:[#allocation201_spill] sm:$0xff] %v25632_v43  ;;  %v6004_v18 = vsub.f32 %v25564_v29, %v29842_v12  ;;  %v6003_v16 = vsub.f32 %v25560_v11, %v25632_v43 }
 0xf96   : >> { %16155 = vpow2.f32 %v6023_v36  ;;  %v5920_v2 = vpop.xlane.xlu1 %5919  ;;  %v5914_v37 = vpop.xlane.xlu0 %5913 }
 0xf97   : >> { %v6019_v32 = vmul.f32 1.442695, %v6003_v16  ;;  %v25643_v56 = vmax.f32 %v19756_v41, %v5920_v2   ;;  %v25646_v24 = vmax.f32 %v19768_v3, %v5914_v37   ;;  %v6021_v20 = vmul.f32 1.442695, %v6004_v18 }
 0xf99   : >> { %29844 = vst [vmem:[#allocation202_spill] sm:$0xff] %v25643_v56  ;;  %29845 = vst [vmem:[#allocation203_spill] sm:$0xff] %v25646_v24  ;;  %v29846_v58 = vmov %v25646_v24  ;;  %v6009_v8 = vsub.f32 %v25571_v50, %v25643_v56  ;;  %16157 = vpow2.f32 %v6019_v32 }
 0xf9a   : >> { %v6006_v36 = vsub.f32 %v25562_v53, %v29846_v58  ;;  %v5916_v16 = vpop.xlane.xlu1 %5915  ;;  %v5922_v47 = vpop.xlane.xlu0 %5921  ;;  %16159 = vpow2.f32 %v6021_v20 }
 0xf9b   : >> { %v6031_v2 = vmul.f32 1.442695, %v6009_v8  ;;  %v25657_v37 = vmax.f32 %v19764_v7, %v5916_v16   ;;  %v25660_v24 = vmax.f32 %v19752_v10, %v5922_v47  }
 0xf9c   : >> { %v6025_v44 = vmul.f32 1.442695, %v6006_v36 }
 0xf9d   : >> { %29847 = vst [vmem:[#allocation204_spill] sm:$0xff] %v25657_v37  ;;  %v29848_v18 = vmov %v25657_v37  ;;  %29849 = vst [vmem:[#allocation205_spill] sm:$0xff] %v25660_v24  ;;  %v29850_v29 = vmov %v25660_v24  ;;  %16161 = vpow2.f32 %v6031_v2 }
 0xf9e   : >> { %v6007_v11 = vsub.f32 %v25576_v4, %v29848_v18  ;;  %v5928_v32 = vpop.xlane.xlu1 %5927  ;;  %v5918_v8 = vpop.xlane.xlu0 %5917  ;;  %16163 = vpow2.f32 %v6025_v44  ;;  %v6010_v2 = vsub.f32 %v25578_v61, %v29850_v29 }
 0xf9f   : >> { %v25669_v36 = vmax.f32 %v19740_v6, %v5928_v32   ;;  %v25672_v37 = vmax.f32 %v19760_v9, %v5918_v8  }
 0xfa0   : >> { %v25674_v47 = vpop.eup %16155  ;;  %v6027_v20 = vmul.f32 1.442695, %v6007_v11 }
 0xfa1   : >> { %29851 = vst [vmem:[#allocation206_spill] sm:$0xff] %v25669_v36  ;;  %v29852_v16 = vmov %v25669_v36  ;;  %29853 = vst [vmem:[#allocation207_spill] sm:$0xff] %v25672_v37  ;;  %v29854_v12 = vmov %v25672_v37  ;;  %6071 = vadd.xlane.f32.xlu1 %v25674_v47  ;;  %v6033_v37 = vmul.f32 1.442695, %v6010_v2 }
 0xfa2   : >> { %v6013_v24 = vsub.f32 %v25587_v33, %v29852_v16  ;;  %v6008_v8 = vsub.f32 %v25580_v14, %v29854_v12  ;;  %v5924_v36 = vpop.xlane.xlu1 %5923  ;;  %v5930_v44 = vpop.xlane.xlu0 %5929  ;;  %16165 = vpow2.f32 %v6027_v20 }
 0xfa3   : >> { %v25688_v61 = vmax.f32 %v19748_v55, %v5924_v36   ;;  %v25691_v53 = vmax.f32 %v19736_v54, %v5930_v44   ;;  %v16158_v33 = vpop.eup %16157 }
 0xfa4   : >> { %v6039_v11 = vmul.f32 1.442695, %v6013_v24  ;;  %v6029_v4 = vmul.f32 1.442695, %v6008_v8  ;;  %v16160_v24 = vpop.eup %16159 }
 0xfa5   : >> { %29855 = vst [vmem:[#allocation208_spill] sm:$0xff] %v25688_v61  ;;  %29856 = vst [vmem:[#allocation209_spill] sm:$0xff] %v25691_v53  ;;  %v6011_v50 = vsub.f32 %v25592_v23, %v25688_v61  ;;  %6067 = vadd.xlane.f32.xlu1 %v16158_v33  ;;  %v6014_v23 = vsub.f32 %v25594_v45, %v25691_v53 }
 0xfa6   : >> { %v5936_v20 = vpop.xlane.xlu1 %5935  ;;  %v5926_v2 = vpop.xlane.xlu0 %5925  ;;  %16167 = vpow2.f32 %v6039_v11 }
 0xfa7   : >> { %v25700_v36 = vmax.f32 %v19724_v17, %v5936_v20   ;;  %v25703_v44 = vmax.f32 %v19744_v62, %v5926_v2   ;;  %v25705_v8 = vpop.eup %16161  ;;  %16169 = vpow2.f32 %v6033_v37  ;;  %v6035_v32 = vmul.f32 1.442695, %v6011_v50 }
 0xfa8   : >> { %16171 = vpow2.f32 %v6029_v4  ;;  %v16164_v46 = vpop.eup %16163  ;;  %v6131_v2 = vpack.c.bf16 %v16160_v24, %v16158_v33  ;;  %v6041_v4 = vmul.f32 1.442695, %v6014_v23 }
 0xfa9   : >> { %29857 = vst [vmem:[#allocation210_spill] sm:$0xff] %v25700_v36  ;;  %v29858_v12 = vmov %v25700_v36  ;;  %v29859_v9 = vmov %v25703_v44  ;;  %6079 = vadd.xlane.f32.xlu1 %v25705_v8  ;;  %16173 = vpow2.f32 %v6035_v32  ;;  %6073 = vadd.xlane.f32.xlu0 %v16164_v46 }
 0xfaa   : >> { %v6012_v20 = vsub.f32 %v25596_v27, %v29859_v9  ;;  %v5932_v36 = vpop.xlane.xlu1 %5931  ;;  %v5938_v37 = vpop.xlane.xlu0 %5937  ;;  %11109 = vmatprep.mubr.bf16.mxu1 %v6131_v2  ;;  %v6017_v32 = vsub.f32 %v25603_v31, %v29858_v12  ;;  %16175 = vpow2.f32 %v6041_v4  ;;  %v29866_v31 = vld [vmem:[#allocation198_spill] sm:$0xff] }
 0xfab   : >> { %v25717_v45 = vmax.f32 %v19732_v42, %v5932_v36   ;;  %v25720_v44 = vmax.f32 %v19720_v59, %v5938_v37  }
 0xfac   : >> { %v16166_v30 = vpop.eup %16165  ;;  %v6037_v11 = vmul.f32 1.442695, %v6012_v20  ;;  %v6047_v22 = vmul.f32 1.442695, %v6017_v32 }
 0xfad   : >> { %29860 = vst [vmem:[#allocation211_spill] sm:$0xff] %v25717_v45  ;;  %v29861_v50 = vmov %v25717_v45  ;;  %29862 = vst [vmem:[#allocation212_spill] sm:$0xff] %v25720_v44  ;;  %v29863_v14 = vmov %v25720_v44  ;;  %6075 = vadd.xlane.f32.xlu1 %v16166_v30  ;;  %6069 = vadd.xlane.f32.xlu0 %v16160_v24 }
 0xfae   : >> { %v6015_v33 = vsub.f32 %v25608_v0, %v29861_v50  ;;  %v6160_v23 = vpop.permute.xlu1 %6159  ;;  %v5934_v2 = vpop.xlane.xlu0 %5933  ;;  %16177 = vpow2.f32 %v6037_v11  ;;  %v6018_v4 = vsub.f32 %v25610_v26, %v29863_v14 }
 0xfaf   : >> { %v25731_v37 = vmax.f32 %v19728_v15, %v5934_v2   ;;  %11105 = vmatprep.subr.bf16.mxu1 %v6160_v23 }
 0xfb0   : >> { %v6043_v45 = vmul.f32 1.442695, %v6015_v33  ;;  %11106 = vmatpush3.bf16.msra.mxu1 %v6160_v23  ;;  %v16168_v44 = vpop.eup %16167  ;;  %v6132_v23 = vpack.c.bf16 %v16164_v46, %v25674_v47  ;;  %v6049_v32 = vmul.f32 1.442695, %v6018_v4 }
 0xfb1   : >> { %29864 = vst [vmem:[#allocation213_spill] sm:$0xff] %v25731_v37  ;;  %v29865_v20 = vmov %v25731_v37  ;;  %v16170_v36 = vpop.eup %16169  ;;  %6087 = vadd.xlane.f32.xlu1 %v16168_v44 }
 0xfb2   : >> { %v6016_v27 = vsub.f32 %v29866_v31, %v29865_v20  ;;  %v6162_v13 = vpop.permute.xlu0 %6161  ;;  %v16172_v33 = vpop.eup %16171  ;;  %16179 = vpow2.f32 %v6043_v45  ;;  %6081 = vadd.xlane.f32.xlu0 %v16170_v36  ;;  %v6134_v31 = vpack.c.bf16 %v16170_v36, %v25705_v8 }
 0xfb3   : >> { %11107 = vmatprep.subr.bf16.mxu1 %v6162_v13  ;;  %v16174_v11 = vpop.eup %16173  ;;  %16181 = vpow2.f32 %v6047_v22  ;;  %v6133_v2 = vpack.c.bf16 %v16172_v33, %v16166_v30 }
 0xfb4   : >> { %v6045_v24 = vmul.f32 1.442695, %v6016_v27  ;;  %11108 = vmatpush3.bf16.msra.mxu1 %v6162_v13  ;;  %v16176_v37 = vpop.eup %16175 }
 0xfb5   : >> { %6083 = vadd.xlane.f32.xlu1 %v16174_v11  ;;  %v6136_v30 = vpack.c.bf16 %v16176_v37, %v16168_v44  ;;  %v29870_v44 = vsub.f32 %v19756_v41, %v25643_v56  ;;  %v29875_v41 = vsub.f32 %v19740_v6, %v29852_v16  ;;  %v29879_v6 = vld [vmem:[#allocation197_spill] sm:$0xff] }
 0xfb6   : >> { %16183 = vpow2.f32 %v6045_v24  ;;  %6077 = vadd.xlane.f32.xlu0 %v16172_v33  ;;  %v29867_v24 = vld [vmem:[#allocation199_spill] sm:$0xff] }
 0xfb7   : >> { %11110 = vmatmul.mubr.bf16.vlgmr.msra.gmra.mrb[0].mxu1 %v6132_v23  ;;  %16185 = vpow2.f32 %v6049_v32  ;;  %v29868_v8 = vsub.f32 %v19772_v57, %v29867_v24  ;;  %v29871_v32 = vsub.f32 %v19768_v3, %v29846_v58 }
 0xfb8   : >> { %11113 = vmatprep.mubr.bf16.mxu1 %v6133_v2  ;;  %v16178_v45 = vpop.eup %16177  ;;  %v5983_v2 = vmul.f32 1.442695, %v29870_v44 }
 0xfb9   : >> { %v6135_v26 = vpack.c.bf16 %v16178_v45, %v16174_v11  ;;  %v5975_v36 = vmul.f32 1.442695, %v29868_v8  ;;  %v29869_v11 = vsub.f32 %v19780_v35, %v25632_v43 }
 0xfba   : >> { %6089 = vadd.xlane.f32.xlu0 %v16176_v37  ;;  %v5977_v37 = vmul.f32 1.442695, %v29871_v32 }
 0xfbb   : >> { %16187 = vpow2.f32 %v5975_v36  ;;  %v5971_v23 = vmul.f32 1.442695, %v29869_v11 }
 0xfbc   : >> { %v16180_v27 = vpop.eup %16179 }
 0xfbd   : >> { %6091 = vadd.xlane.f32.xlu1 %v16180_v27  ;;  %v16182_v46 = vpop.eup %16181  ;;  %16189 = vpow2.f32 %v5971_v23 }
 0xfbe   : >> { %6085 = vadd.xlane.f32.xlu0 %v16178_v45  ;;  %16191 = vpow2.f32 %v5983_v2  ;;  %v29872_v45 = vsub.f32 %v19764_v7, %v29848_v18  ;;  %v29876_v7 = vsub.f32 %v19752_v10, %v29850_v29 }
 0xfbf   : >> { %11114 = vmatmul.mubr.bf16.gmra.mrb[4].mxu1 %v6134_v31  ;;  %v29873_v31 = vld [vmem:[#allocation200_spill] sm:$0xff]  ;;  %16193 = vpow2.f32 %v5977_v37 }
 0xfc0   : >> { %11117 = vmatprep.mubr.bf16.mxu1 %v6135_v26  ;;  %v16184_v22 = vpop.eup %16183  ;;  %v5979_v57 = vmul.f32 1.442695, %v29872_v45  ;;  %v29874_v35 = vsub.f32 %v19776_v48, %v29873_v31  ;;  %v29878_v48 = vsub.f32 %v19748_v55, %v25688_v61 }
 0xfc1   : >> { %6095 = vadd.xlane.f32.xlu1 %v16182_v46  ;;  %v16186_v13 = vpop.eup %16185  ;;  %v6137_v47 = vpack.c.bf16 %v16184_v22, %v16180_v27 }
 0xfc2   : >> { %6093 = vadd.xlane.f32.xlu0 %v16184_v22  ;;  %v6138_v33 = vpack.c.bf16 %v16186_v13, %v16182_v46  ;;  %v5973_v26 = vmul.f32 1.442695, %v29874_v35  ;;  %16195 = vpow2.f32 %v5979_v57  ;;  %v5991_v46 = vmul.f32 1.442695, %v29875_v41 }
 0xfc3   : >> { %v5985_v22 = vmul.f32 1.442695, %v29876_v7 }
 0xfc4   : >> { %16197 = vpow2.f32 %v5973_v26 }
 0xfc5   : >> { %v25756_v27 = vpop.eup %16187  ;;  %16199 = vpow2.f32 %v5991_v46 }
 0xfc6   : >> { %6097 = vadd.xlane.f32.xlu0 %v16186_v13  ;;  %v6053_v3 = vmul.f32 %v19708_v51, %v25756_v27  ;;  %16201 = vpow2.f32 %v5985_v22 }
 0xfc7   : >> { %11118 = vmatmul.mubr.bf16.gmra.mrb[8].mxu1 %v6136_v30  ;;  %v25769_v13 = vpop.eup %16189 }
 0xfc8   : >> { %11121 = vmatprep.mubr.bf16.mxu1 %v6137_v47  ;;  %v5987_v47 = vmul.f32 1.442695, %v29878_v48  ;;  %v6051_v36 = vmul.f32 %v19716_v49, %v25769_v13  ;;  %v25781_v10 = vpop.eup %16191 }
 0xfc9   : >> { %v25783_v2 = vpop.eup %16193  ;;  %v6057_v32 = vmul.f32 %v19692_v63, %v25781_v10 }
 0xfca   : >> { %16203 = vpow2.f32 %v5987_v47  ;;  %v6054_v45 = vmul.f32 %v19704_v60, %v25783_v2 }
 0xfcc   : >> { %v25792_v37 = vpop.eup %16195 }
 0xfcd   : >> { %v6055_v46 = vmul.f32 %v19700_v34, %v25792_v37 }
 0xfce   : >> { %v25796_v31 = vpop.eup %16197 }
 0xfcf   : >> { %11122 = vmatmul.mubr.bf16.gmra.mrb[12].mxu1 %v6138_v33  ;;  %v29880_v33 = vld [vmem:[#allocation207_spill] sm:$0xff]  ;;  %v6052_v7 = vmul.f32 %v19712_v39, %v25796_v31 }
 0xfd0   : >> { %v29881_v24 = vsub.f32 %v29879_v6, %v29880_v33 }
 0xfd2   : >> { %v5981_v8 = vmul.f32 1.442695, %v29881_v24 }
 0xfd4   : >> { %16205 = vpow2.f32 %v5981_v8 }
0x102e   : >> { %v6072_v30 = vpop.xlane.xlu1 %6071 }
0x102f   : >> { %v25771_v51 = vadd.f32 %v6072_v30, %v6053_v3   ;;  %v25810_v3 = vpop.eup %16199 }
0x1030   : >> { %v25814_v22 = vpop.eup %16201  ;;  %v6061_v47 = vmul.f32 %v19676_v19, %v25810_v3 }
0x1031   : >> { %29877 = vst [vmem:[#allocation214_spill] sm:$0xff] %v25771_v51  ;;  %v29883_v51 = vsub.f32 %v19736_v54, %v25691_v53  ;;  %v29887_v54 = vsub.f32 %v19744_v62, %v29859_v9  ;;  %v29891_v62 = vsub.f32 %v19728_v15, %v29865_v20  ;;  %v25828_v6 = vpop.eup %16203 }
0x1032   : >> { %v6068_v44 = vpop.xlane.xlu1 %6067  ;;  %v16206_v24 = vpop.eup %16205  ;;  %v6059_v8 = vmul.f32 %v19684_v1, %v25828_v6 }
0x1033   : >> { %v25785_v49 = vadd.f32 %v6068_v44, %v6051_v36   ;;  %v5993_v55 = vmul.f32 1.442695, %v29883_v51  ;;  %v5989_v41 = vmul.f32 1.442695, %v29887_v54  ;;  %v5997_v48 = vmul.f32 1.442695, %v29891_v62 }
0x1034   : >> { %v6056_v36 = vmul.f32 %v19696_v52, %v16206_v24  ;;  %v29905_v62 = vld [vmem:[#allocation195_spill] sm:$0xff] }
0x1035   : >> { %29882 = vst [vmem:[#allocation215_spill] sm:$0xff] %v25785_v49  ;;  %v29885_v49 = vsub.f32 %v19732_v42, %v29861_v50  ;;  %16207 = vpow2.f32 %v5993_v55 }
0x1036   : >> { %v6080_v57 = vpop.xlane.xlu1 %6079  ;;  %v6074_v35 = vpop.xlane.xlu0 %6073 }
0x1037   : >> { %v25798_v63 = vadd.f32 %v6080_v57, %v6057_v32   ;;  %v5995_v26 = vmul.f32 1.442695, %v29885_v49  ;;  %v25803_v60 = vadd.f32 %v6074_v35, %v6054_v45  }
0x1039   : >> { %29884 = vst [vmem:[#allocation216_spill] sm:$0xff] %v25798_v63  ;;  %29886 = vst [vmem:[#allocation217_spill] sm:$0xff] %v25803_v60  ;;  %v29889_v60 = vsub.f32 %v19724_v17, %v29858_v12  ;;  %16209 = vpow2.f32 %v5995_v26 }
0x103a   : >> { %v6076_v63 = vpop.xlane.xlu1 %6075  ;;  %v6070_v42 = vpop.xlane.xlu0 %6069  ;;  %16211 = vpow2.f32 %v5989_v41 }
0x103b   : >> { %v25816_v34 = vadd.f32 %v6076_v63, %v6055_v46   ;;  %v5999_v30 = vmul.f32 1.442695, %v29889_v60  ;;  %v25821_v39 = vadd.f32 %v6070_v42, %v6052_v7  }
0x103d   : >> { %29888 = vst [vmem:[#allocation218_spill] sm:$0xff] %v25816_v34  ;;  %29890 = vst [vmem:[#allocation219_spill] sm:$0xff] %v25821_v39  ;;  %v6058_v34 = vmul.f32 %v19688_v38, %v25814_v22  ;;  %16213 = vpow2.f32 %v5999_v30  ;;  %v29894_v39 = vsub.f32 %v19720_v59, %v29863_v14 }
0x103e   : >> { %v6088_v33 = vpop.xlane.xlu1 %6087  ;;  %16215 = vpow2.f32 %v5997_v48  ;;  %v6115_v48 = vmul.f32 %v29905_v62, %v25769_v13  ;;  %v29929_v62 = vld [vmem:[#allocation184_spill] sm:$0xff] }
0x103f   : >> { %v6082_v17 = vpop.xlane.xlu0 %6081  ;;  %v25832_v19 = vadd.f32 %v6088_v33, %v6061_v47   ;;  %v6001_v15 = vmul.f32 1.442695, %v29894_v39  ;;  %v16208_v51 = vpop.eup %16207  ;;  %v29907_v33 = vld [vmem:[#allocation192_spill] sm:$0xff] }
0x1040   : >> { %v25834_v38 = vadd.f32 %v6082_v17, %v6058_v34   ;;  %v29909_v17 = vld [vmem:[#allocation194_spill] sm:$0xff] }
0x1041   : >> { %29892 = vst [vmem:[#allocation220_spill] sm:$0xff] %v25832_v19  ;;  %16217 = vpow2.f32 %v6001_v15  ;;  %v6116_v39 = vmul.f32 %v29909_v17, %v25796_v31  ;;  %v29966_v17 = vld [vmem:[#allocation210_spill] sm:$0xff] }
0x1042   : >> { %29893 = vst [vmem:[#allocation221_spill] sm:$0xff] %v25834_v38  ;;  %v6084_v44 = vpop.xlane.xlu1 %6083  ;;  %v6062_v38 = vmul.f32 %v19672_v28, %v16208_v51 }
0x1043   : >> { %v6078_v55 = vpop.xlane.xlu0 %6077  ;;  %v25842_v1 = vadd.f32 %v6084_v44, %v6059_v8   ;;  %v16210_v19 = vpop.eup %16209 }
0x1044   : >> { %v25844_v52 = vadd.f32 %v6078_v55, %v6056_v36   ;;  %v16212_v32 = vpop.eup %16211  ;;  %v6063_v45 = vmul.f32 %v19668_v21, %v16210_v19  ;;  %v29912_v36 = vld [vmem:[#allocation189_spill] sm:$0xff] }
0x1045   : >> { %29895 = vst [vmem:[#allocation222_spill] sm:$0xff] %v25842_v1  ;;  %v6060_v35 = vmul.f32 %v19680_v40, %v16212_v32  ;;  %v6121_v13 = vmul.f32 %v29912_v36, %v25781_v10  ;;  %v29920_v10 = vld [vmem:[#allocation185_spill] sm:$0xff] }
0x1046   : >> { %29896 = vst [vmem:[#allocation223_spill] sm:$0xff] %v25844_v52 }
0x1047   : >> { %v6090_v59 = vpop.xlane.xlu0 %6089  ;;  %v16214_v57 = vpop.eup %16213 }
0x1048   : >> { %v25847_v28 = vadd.f32 %v6090_v59, %v6062_v38   ;;  %v16216_v26 = vpop.eup %16215  ;;  %v6065_v1 = vmul.f32 %v19660_v5, %v16214_v57  ;;  %v29913_v38 = vld [vmem:[#allocation191_spill] sm:$0xff] }
0x1049   : >> { %v6064_v52 = vmul.f32 %v19664_v25, %v16216_v26  ;;  %v6119_v59 = vmul.f32 %v29913_v38, %v25792_v37  ;;  %v29957_v38 = vld [vmem:[#allocation221_spill] sm:$0xff] }
0x104a   : >> { %29897 = vst [vmem:[#allocation224_spill] sm:$0xff] %v25847_v28  ;;  %v6092_v49 = vpop.xlane.xlu1 %6091  ;;  %v29902_v28 = vld [vmem:[#allocation196_spill] sm:$0xff] }
0x104b   : >> { %v6086_v54 = vpop.xlane.xlu0 %6085  ;;  %v25851_v21 = vadd.f32 %v6092_v49, %v6063_v45   ;;  %v16218_v46 = vpop.eup %16217  ;;  %v29915_v45 = vld [vmem:[#allocation188_spill] sm:$0xff]  ;;  %v29917_v49 = vld [vmem:[#allocation190_spill] sm:$0xff] }
0x104c   : >> { %v25853_v40 = vadd.f32 %v6086_v54, %v6060_v35   ;;  %v6066_v63 = vmul.f32 %v29902_v28, %v16218_v46  ;;  %v6122_v35 = vmul.f32 %v29915_v45, %v25814_v22  ;;  %v6120_v54 = vmul.f32 %v29917_v49, %v16206_v24  ;;  %v29923_v28 = vld [vmem:[#allocation180_spill] sm:$0xff]  ;;  %v29964_v49 = vld [vmem:[#allocation215_spill] sm:$0xff] }
0x104d   : >> { %29898 = vst [vmem:[#allocation225_spill] sm:$0xff] %v25851_v21  ;;  %v29904_v21 = vld [vmem:[#allocation193_spill] sm:$0xff] }
0x104e   : >> { %29899 = vst [vmem:[#allocation226_spill] sm:$0xff] %v25853_v40  ;;  %v6096_v41 = vpop.xlane.xlu1 %6095  ;;  %v6117_v30 = vmul.f32 %v29904_v21, %v25756_v27  ;;  %v29925_v21 = vld [vmem:[#allocation186_spill] sm:$0xff] }
0x104f   : >> { %v6094_v7 = vpop.xlane.xlu0 %6093  ;;  %v25857_v5 = vadd.f32 %v6096_v41, %v6065_v1   ;;  %v6125_v1 = vmul.f32 %v29920_v10, %v25810_v3  ;;  %v29921_v41 = vld [vmem:[#allocation187_spill] sm:$0xff]  ;;  %v29928_v3 = vld [vmem:[#allocation182_spill] sm:$0xff]  ;;  %v29973_v10 = vld [vmem:[#allocation205_spill] sm:$0xff] }
0x1050   : >> { %v25859_v25 = vadd.f32 %v6094_v7, %v6064_v52   ;;  %v6123_v7 = vmul.f32 %v29921_v41, %v25828_v6  ;;  %v6127_v6 = vmul.f32 %v29929_v62, %v16210_v19  ;;  %v29954_v19 = vld [vmem:[#allocation220_spill] sm:$0xff]  ;;  %v29971_v62 = vmov %v29859_v9  ;;  %v29974_v41 = vld [vmem:[#allocation202_spill] sm:$0xff]  ;;  %v29975_v9 = vld [vmem:[#allocation207_spill] sm:$0xff] }
0x1051   : >> { %29900 = vst [vmem:[#allocation227_spill] sm:$0xff] %v25857_v5  ;;  %v6118_v5 = vmul.f32 %v29907_v33, %v25783_v2  ;;  %v29931_v33 = vld [vmem:[#allocation183_spill] sm:$0xff] }
0x1052   : >> { %29901 = vst [vmem:[#allocation228_spill] sm:$0xff] %v25859_v25 }
0x1053   : >> { %v6098_v42 = vpop.xlane.xlu0 %6097 }
0x1054   : >> { %v25862_v60 = vadd.f32 %v6098_v42, %v6066_v63   ;;  %v6126_v63 = vmul.f32 %v29923_v28, %v16208_v51  ;;  %v29953_v28 = vld [vmem:[#allocation224_spill] sm:$0xff] }
0x1056   : >> { %v29903_v14 = vmov %v25862_v60 }
0x1057   : > { %v29998_v10 = vmov (%p25917_p5), %v29903_v14 }
0x1058   : > { %v29999_v41 = vld [vmem:[#allocation227_spill] sm:$0xff] (%p25917_p5) }
0x1059   : > { %v30000_v9 = vld [vmem:[#allocation228_spill] sm:$0xff] (%p25917_p5) }
0x108a   : >> { %v11111_v40 = vpop.f32.mrb[0].mxu1 }
0x108b   : >> { %v25868_v47 = vadd.f32 %v11111_v40, %v6117_v30   ;;  %v6205_v34 = vpop.f32.mrb[1].mxu1 }
0x108c   : >> { %v25872_v30 = vadd.f32 %v6205_v34, %v6115_v48   ;;  %v11112_v25 = vpop.f32.mrb[2].mxu1 }
0x108d   : >> { %v29906_v0 = vmov %v25868_v47  ;;  %v25876_v15 = vadd.f32 %v11112_v25, %v6118_v5   ;;  %v6208_v8 = vpop.f32.mrb[3].mxu1  ;;  %v6128_v5 = vmul.f32 %v29931_v33, %v16216_v26  ;;  %v29951_v25 = vld [vmem:[#allocation228_spill] sm:$0xff] }
0x108e   : >> { %v29908_v23 = vmov %v25872_v30  ;;  %v25878_v44 = vadd.f32 %v6208_v8, %v6116_v39   ;;  %v6129_v30 = vmul.f32 %v29928_v3, %v16214_v57  ;;  %v29963_v39 = vld [vmem:[#allocation219_spill] sm:$0xff] }
0x108f   : >> { %v29910_v11 = vmov %v25876_v15  ;;  %v29967_v15 = vld [vmem:[#allocation213_spill] sm:$0xff]  ;;  %v29977_v3 = vld [vmem:[#allocation203_spill] sm:$0xff] }
0x1090   : >> { %v29911_v27 = vmov %v25878_v44  ;;  %v29978_v57 = vld [vmem:[#allocation199_spill] sm:$0xff]  ;;  %v30002_v3 = vld [vmem:[#allocation224_spill] sm:$0xff] (%p25917_p5) }
0x1091   : > { %v29996_v62 = vmov (%p25917_p5), %v29911_v27  ;;  %v30003_v57 = vld [vmem:[#allocation220_spill] sm:$0xff] (%p25917_p5) }
0x1092   : >> { %v11115_v55 = vpop.f32.mrb[4].mxu1 }
0x1093   : >> { %v25884_v47 = vadd.f32 %v11115_v55, %v6121_v13   ;;  %v6221_v2 = vpop.f32.mrb[5].mxu1  ;;  %v29949_v13 = vmov %v29903_v14  ;;  %v29972_v55 = vld [vmem:[#allocation208_spill] sm:$0xff] }
0x1094   : >> { %v25888_v36 = vadd.f32 %v6221_v2, %v6119_v59   ;;  %v11116_v31 = vpop.f32.mrb[6].mxu1  ;;  %v29965_v59 = vld [vmem:[#allocation212_spill] sm:$0xff]  ;;  %v29997_v55 = vmov (%p25917_p5), %v29908_v23 }
0x1095   : >> { %v29914_v4 = vmov %v25884_v47  ;;  %v25891_v24 = vadd.f32 %v11116_v31, %v6122_v35   ;;  %v6224_v44 = vpop.f32.mrb[7].mxu1  ;;  %v29930_v47 = vld [vmem:[#allocation181_spill] sm:$0xff] }
0x1096   : >> { %v29916_v58 = vmov %v25888_v36  ;;  %v25893_v37 = vadd.f32 %v6224_v44, %v6120_v54   ;;  %v6130_v34 = vmul.f32 %v29930_v47, %v16218_v46  ;;  %v29942_v47 = vmov %v29914_v4  ;;  %v29969_v54 = vld [vmem:[#allocation209_spill] sm:$0xff] }
0x1097   : >> { %v29918_v61 = vmov %v25891_v24  ;;  %v6124_v24 = vmul.f32 %v29925_v21, %v16212_v32  ;;  %v29944_v36 = vmov %v29916_v58  ;;  %v29945_v46 = vmov %v29910_v11  ;;  %v29952_v21 = vld [vmem:[#allocation225_spill] sm:$0xff] }
0x1098   : >> { %v29919_v43 = vmov %v25893_v37  ;;  %v29947_v44 = vmov %v29911_v27  ;;  %v29980_v35 = vld [vmem:[#allocation201_spill] sm:$0xff]  ;;  %v29990_v59 = vmov (%p25917_p5), %v29918_v61  ;;  %v29991_v17 = vmov (%p25917_p5), %v29914_v4  ;;  %v30009_v27 = vld [vmem:[#allocation218_spill] sm:$0xff] (%p25917_p5) }
0x1099   : > { %v29992_v15 = vmov (%p25917_p5), %v29919_v43  ;;  %v29994_v54 = vmov (%p25917_p5), %v29910_v11  ;;  %v30005_v35 = vld [vmem:[#allocation222_spill] sm:$0xff] (%p25917_p5)  ;;  %v30012_v11 = vld [vmem:[#allocation219_spill] sm:$0xff] (%p25917_p5) }
0x109a   : >> { %v11119_v52 = vpop.f32.mrb[8].mxu1 }
0x109b   : >> { %v25899_v2 = vadd.f32 %v11119_v52, %v6125_v1   ;;  %v6237_v22 = vpop.f32.mrb[9].mxu1  ;;  %v29956_v1 = vld [vmem:[#allocation222_spill] sm:$0xff]  ;;  %v29959_v52 = vld [vmem:[#allocation223_spill] sm:$0xff] }
0x109c   : >> { %v25902_v42 = vadd.f32 %v6237_v22, %v6123_v7   ;;  %v11120_v60 = vpop.f32.mrb[10].mxu1  ;;  %v29946_v22 = vmov %v29906_v0  ;;  %v29976_v7 = vld [vmem:[#allocation204_spill] sm:$0xff] }
0x109d   : >> { %v29922_v56 = vmov %v25899_v2  ;;  %v25905_v60 = vadd.f32 %v11120_v60, %v6126_v63   ;;  %v6240_v37 = vpop.f32.mrb[11].mxu1  ;;  %v29958_v63 = vld [vmem:[#allocation216_spill] sm:$0xff]  ;;  %v30001_v7 = vld [vmem:[#allocation225_spill] sm:$0xff] (%p25917_p5) }
0x109e   : >> { %v29924_v29 = vmov %v25902_v42  ;;  %v25907_v31 = vadd.f32 %v6240_v37, %v6124_v24   ;;  %v29938_v2 = vmov %v29922_v56  ;;  %v29941_v24 = vmov %v29918_v61  ;;  %v29968_v42 = vld [vmem:[#allocation211_spill] sm:$0xff] }
0x109f   : >> { %v29926_v50 = vmov %v25905_v60  ;;  %v29940_v26 = vmov %v29924_v29  ;;  %v29943_v37 = vmov %v29919_v43  ;;  %v29961_v60 = vld [vmem:[#allocation217_spill] sm:$0xff]  ;;  %v29989_v49 = vmov (%p25917_p5), %v29924_v29  ;;  %v30013_v29 = vld [vmem:[#allocation215_spill] sm:$0xff] (%p25917_p5) }
0x10a0   : >> { %v29927_v18 = vmov %v25907_v31  ;;  %29937 = vst [vmem:[#allocation180_spill] sm:$0xff] %v29926_v50  ;;  %v29986_v60 = vmov (%p25917_p5), %v29926_v50  ;;  %v29993_v42 = vmov (%p25917_p5), %v29916_v58  ;;  %v30010_v43 = vld [vmem:[#allocation217_spill] sm:$0xff] (%p25917_p5)  ;;  %v30011_v50 = vld [vmem:[#allocation214_spill] sm:$0xff] (%p25917_p5) }
0x10a1   : >> { %v29939_v31 = vmov %v29927_v18  ;;  %v29988_v39 = vmov (%p25917_p5), %v29927_v18  ;;  %v30008_v18 = vld [vmem:[#allocation223_spill] sm:$0xff] (%p25917_p5) }
0x10a2   : >> { %v11123_v40 = vpop.f32.mrb[12].mxu1 }
0x10a3   : >> { %v6282_v16 = vadd.f32 %v11123_v40, %v6129_v30   ;;  %v6253_v48 = vpop.f32.mrb[13].mxu1  ;;  %v29948_v30 = vmov %v29908_v23  ;;  %v29955_v40 = vld [vmem:[#allocation226_spill] sm:$0xff] }
0x10a4   : >> { %v6280_v53 = vadd.f32 %v6253_v48, %v6127_v6   ;;  %v11124_v51 = vpop.f32.mrb[14].mxu1  ;;  %v29970_v6 = vld [vmem:[#allocation206_spill] sm:$0xff]  ;;  %v29979_v48 = vld [vmem:[#allocation200_spill] sm:$0xff] }
0x10a5   : >> { %v6283_v12 = vadd.f32 %v11124_v51, %v6130_v34   ;;  %v6256_v32 = vpop.f32.mrb[15].mxu1  ;;  %v29934_v45 = vmov %v6282_v16  ;;  %v29960_v34 = vld [vmem:[#allocation218_spill] sm:$0xff]  ;;  %5607 = sbr.rel (!%p25917_p5) target bundleno = 3443 (0xd73), region = 193  ;;  %v29983_v63 = vmov (%p25917_p5), %v6282_v16  ;;  %v29995_v6 = vmov (%p25917_p5), %v29906_v0 }
0x10a6   : >> { %v6281_v20 = vadd.f32 %v6256_v32, %v6128_v5   ;;  %v29936_v32 = vmov %v6280_v53  ;;  %v29950_v5 = vld [vmem:[#allocation227_spill] sm:$0xff]  ;;  %v29962_v51 = vld [vmem:[#allocation214_spill] sm:$0xff]  ;;  %v29985_v34 = vmov (%p25917_p5), %v6280_v53 }
0x10a7   : >> { %v29933_v33 = vmov %v6283_v12  ;;  %v29982_v38 = vmov (%p25917_p5), %v6283_v12  ;;  %v29987_v51 = vmov (%p25917_p5), %v29922_v56  ;;  %v30004_v48 = vld [vmem:[#allocation226_spill] sm:$0xff] (%p25917_p5)  ;;  %v30007_v56 = vld [vmem:[#allocation216_spill] sm:$0xff] (%p25917_p5) }
0x10a8   : >> { %v29935_v8 = vmov %v6281_v20  ;;  %v29984_v52 = vmov (%p25917_p5), %v6281_v20  ;;  %v30006_v20 = vld [vmem:[#allocation221_spill] sm:$0xff] (%p25917_p5) }
0x10ac PF: > { %16219 = vrcp.f32 %v19896_v27  ;;  %v26210_v26 = vld [vmem:[#allocation2 + $0x28] sm:$0xff]  ;;  %v26212_v46 = vld [vmem:[#allocation2 + $0x40] sm:$0xff]  ;;  %v26251_v47 = vmov 0.0   ;;  %v26257_v33 = vmov 0.0   ;;  %v26259_v5 = vmov 0.0   ;;  %v19912_v29 = vphi %v25236_v29, %v30013_v29   ;;  %v19908_v11 = vphi %v25234_v11, %v30012_v11   ;;  %v19904_v50 = vphi %v25232_v50, %v30011_v50   ;;  %v19900_v43 = vphi %v25230_v43, %v30010_v43   ;;  %v19896_v27 = vphi %v25228_v27, %v30009_v27   ;;  %v19892_v18 = vphi %v25226_v18, %v30008_v18   ;;  %v19888_v56 = vphi %v25224_v56, %v30007_v56   ;;  %v19884_v20 = vphi %v25222_v20, %v30006_v20   ;;  %v19880_v35 = vphi %v25220_v35, %v30005_v35   ;;  %v19876_v48 = vphi %v25218_v48, %v30004_v48   ;;  %v19872_v57 = vphi %v25216_v57, %v30003_v57   ;;  %v19868_v3 = vphi %v25214_v3, %v30002_v3   ;;  %v19864_v7 = vphi %v25212_v7, %v30001_v7   ;;  %v19860_v9 = vphi %v25210_v9, %v30000_v9   ;;  %v19856_v41 = vphi %v25208_v41, %v29999_v41   ;;  %v19852_v10 = vphi %v25206_v10, %v29998_v10   ;;  %v19848_v55 = vphi %v25204_v55, %v29997_v55   ;;  %v19844_v62 = vphi %v25202_v62, %v29996_v62   ;;  %v19840_v6 = vphi %v25200_v6, %v29995_v6   ;;  %v19836_v54 = vphi %v25198_v54, %v29994_v54   ;;  %v19832_v42 = vphi %v25196_v42, %v29993_v42   ;;  %v19828_v15 = vphi %v25194_v15, %v29992_v15   ;;  %v19824_v17 = vphi %v25192_v17, %v29991_v17   ;;  %v19820_v59 = vphi %v25190_v59, %v29990_v59   ;;  %v19816_v49 = vphi %v25188_v49, %v29989_v49   ;;  %v19812_v39 = vphi %v25186_v39, %v29988_v39   ;;  %v19808_v51 = vphi %v25184_v51, %v29987_v51   ;;  %v19804_v60 = vphi %v25182_v60, %v29986_v60   ;;  %v19800_v34 = vphi %v25180_v34, %v29985_v34   ;;  %v19796_v52 = vphi %v25178_v52, %v29984_v52   ;;  %v19792_v63 = vphi %v25176_v63, %v29983_v63   ;;  %v19788_v38 = vphi %v25174_v38, %v29982_v38  }
0x10ad   : > { %16221 = vrcp.f32 %v19892_v18  ;;  %30015 = vst [vmem:[#allocation14_spill] sm:$0xff] %v26210_v26  ;;  %30016 = vst [vmem:[#allocation15_spill] sm:$0xff] %v26212_v46  ;;  %v26219_v27 = vld [vmem:[#allocation2 + $0x88] sm:$0xff]  ;;  %v26261_v32 = vmov 0.0  }
0x10ae   : > { %16223 = vrcp.f32 %v19912_v29  ;;  %30019 = vst [vmem:[#allocation18_spill] sm:$0xff] %v26219_v27 }
0x10af   : > { %16225 = vrcp.f32 %v19908_v11 }
0x10b0   : > { %16227 = vrcp.f32 %v19888_v56 }
0x10b1   : > { %16229 = vrcp.f32 %v19884_v20 }
0x10b2   : > { %16231 = vrcp.f32 %v19904_v50 }
0x10b3   : > { %16233 = vrcp.f32 %v19900_v43 }
0x10b4   : > { %16235 = vrcp.f32 %v19872_v57  ;;  %v26208_v57 = vld [vmem:[#allocation2 + $0x10] sm:$0xff] }
0x10b5   : > { %16237 = vrcp.f32 %v19868_v3  ;;  %30014 = vst [vmem:[#allocation132_spill] sm:$0xff] %v26208_v57 }
0x10b6   : > { %v16220_v12 = vpop.eup %16219  ;;  %16239 = vrcp.f32 %v19880_v35 }
0x10b7   : > { %v16222_v58 = vpop.eup %16221  ;;  %v6304_v53 = vmul.f32 %v19832_v42, %v16220_v12  ;;  %16241 = vrcp.f32 %v19876_v48  ;;  %v26249_v48 = vmov 0.0   ;;  %v26263_v12 = vmov 0.0  }
0x10b8   : > { %v16224_v16 = vpop.eup %16223  ;;  %v6305_v61 = vmul.f32 %v19828_v15, %v16222_v58  ;;  %16243 = vrcp.f32 %v19856_v41  ;;  %v26265_v58 = vmov 0.0  }
0x10b9   : > { %v16226_v14 = vpop.eup %16225  ;;  %v6300_v0 = vmul.f32 %v19848_v55, %v16224_v16  ;;  %16245 = vrcp.f32 %v19852_v10  ;;  %v26222_v55 = vld [vmem:[#allocation2 + $0xa0] sm:$0xff]  ;;  %v26269_v16 = vmov 0.0  }
0x10ba   : > { %v16228_v18 = vpop.eup %16227  ;;  %v6318_v29 = vpack.c.bf16 %v6305_v61, %v6304_v53  ;;  %v6301_v4 = vmul.f32 %v19844_v62, %v16226_v14  ;;  %16247 = vrcp.f32 %v19864_v7  ;;  %30020 = vst [vmem:[#allocation19_spill] sm:$0xff] %v26222_v55  ;;  %v26267_v53 = vmov 0.0  }
0x10bb   : > { %v16230_v56 = vpop.eup %16229  ;;  %v6306_v50 = vmul.f32 %v19824_v17, %v16228_v18  ;;  %16249 = vrcp.f32 %v19860_v9  ;;  %v26215_v17 = vld [vmem:[#allocation2 + $0x58] sm:$0xff]  ;;  %v26217_v9 = vld [vmem:[#allocation2 + $0x70] sm:$0xff]  ;;  %v26271_v61 = vmov 0.0   ;;  %v26273_v14 = vmov 0.0  }
0x10bc   : > { %v16232_v43 = vpop.eup %16231  ;;  %6336 = vrot.lane.b32.xlu1 %v6318_v29, %s20566_s13  ;;  %v6316_v20 = vpack.c.bf16 %v6301_v4, %v6300_v0  ;;  %v6307_v11 = vmul.f32 %v19820_v59, %v16230_v56  ;;  %30017 = vst [vmem:[#allocation16_spill] sm:$0xff] %v26215_v17  ;;  %30018 = vst [vmem:[#allocation17_spill] sm:$0xff] %v26217_v9  ;;  %v26224_v59 = vld [vmem:[#allocation2 + $0xb8] sm:$0xff]  ;;  %v26275_v0 = vmov 0.0   ;;  %v26277_v18 = vmov 0.0  }
0x10bd   : > { %v16234_v23 = vpop.eup %16233  ;;  %v6302_v19 = vmul.f32 %v19840_v6, %v16232_v43  ;;  %30021 = vst [vmem:[#allocation22_spill] sm:$0xff] %v26224_v59  ;;  %v26247_v6 = vmov 0.0   ;;  %v26279_v29 = vmov 0.0   ;;  %v26281_v4 = vmov 0.0  }
0x10be   : > { %v16236_v25 = vpop.eup %16235  ;;  %6332 = vrot.lane.b32.xlu0 %v6316_v20, %s20566_s13  ;;  %v6319_v15 = vpack.c.bf16 %v6307_v11, %v6306_v50  ;;  %v6303_v8 = vmul.f32 %v19836_v54, %v16234_v23  ;;  %v26283_v56 = vmov 0.0   ;;  %v26285_v50 = vmov 0.0  }
0x10bf   : > { %v16238_v36 = vpop.eup %16237  ;;  %v6310_v13 = vmul.f32 %v19808_v51, %v16236_v25  ;;  %v26255_v51 = vmov 0.0   ;;  %v26287_v43 = vmov 0.0   ;;  %v26289_v20 = vmov 0.0  }
0x10c0   : > { %v16240_v2 = vpop.eup %16239  ;;  %6338 = vrot.lane.b32.xlu1 %v6319_v15, %s20566_s13  ;;  %v6317_v45 = vpack.c.bf16 %v6303_v8, %v6302_v19  ;;  %v6311_v35 = vmul.f32 %v19804_v60, %v16238_v36  ;;  %v26291_v11 = vmov 0.0   ;;  %v26293_v23 = vmov 0.0  }
0x10c1   : > { %v16242_v31 = vpop.eup %16241  ;;  %v6308_v54 = vmul.f32 %v19816_v49, %v16240_v2  ;;  %v26295_v19 = vmov 0.0   ;;  %v26297_v25 = vmov 0.0   ;;  %v26299_v15 = vmov 0.0  }
0x10c2   : > { %v16244_v44 = vpop.eup %16243  ;;  %6334 = vrot.lane.b32.xlu0 %v6317_v45, %s20566_s13  ;;  %v6321_v10 = vpack.c.bf16 %v6311_v35, %v6310_v13  ;;  %v6309_v1 = vmul.f32 %v19812_v39, %v16242_v31  ;;  %v26301_v8 = vmov 0.0   ;;  %v26303_v36 = vmov 0.0  }
0x10c3   : > { %v16246_v41 = vpop.eup %16245  ;;  %v6314_v7 = vmul.f32 %v19792_v63, %v16244_v44  ;;  %30022 = vst [vmem:[#allocation23_spill] sm:$0xff] %v26303_v36  ;;  %v26305_v13 = vmov 0.0   ;;  %v26307_v2 = vmov 0.0   ;;  %v26309_v45 = vmov 0.0  }
0x10c4   : > { %v16248_v22 = vpop.eup %16247  ;;  %6342 = vrot.lane.b32.xlu1 %v6321_v10, %s20566_s13  ;;  %v6320_v28 = vpack.c.bf16 %v6309_v1, %v6308_v54  ;;  %v6315_v42 = vmul.f32 %v19788_v38, %v16246_v41 }
0x10c5   : > { %v16250_v21 = vpop.eup %16249  ;;  %v6312_v60 = vmul.f32 %v19800_v34, %v16248_v22  ;;  %v26253_v34 = vmov 0.0  }
0x10c6   : > { %6340 = vrot.lane.b32.xlu0 %v6320_v28, %s20566_s13  ;;  %v6323_v49 = vpack.c.bf16 %v6315_v42, %v6314_v7  ;;  %v6313_v24 = vmul.f32 %v19796_v52, %v16250_v21 }
0x10c8   : > { %6346 = vrot.lane.b32.xlu1 %v6323_v49, %s20566_s13  ;;  %v6322_v39 = vpack.c.bf16 %v6313_v24, %v6312_v60 }
0x10ca   : > { %6344 = vrot.lane.b32.xlu0 %v6322_v39, %s20566_s13 }
0x112e   : > { %v6337_v63 = vpop.permute.xlu1 %6336 }
0x112f   : > { %6358 = vst.msk [vmem:[#allocation5 + $0x38] sm:$0xff] %vm4927_vm3, %v6337_v63 }
0x1130   : > { %v6333_v37 = vpop.permute.xlu0 %6332 }
0x1131   : > { %6356 = vst.msk [vmem:[#allocation5 + $0x8] sm:$0xff] %vm4927_vm3, %v6333_v37 }
0x1132   : > { %v6339_v38 = vpop.permute.xlu1 %6338 }
0x1133   : > { %6359 = vst.msk [vmem:[#allocation5 + $0x50] sm:$0xff] %vm4927_vm3, %v6339_v38 }
0x1134   : > { %v6335_v3 = vpop.permute.xlu0 %6334 }
0x1135   : > { %6357 = vst.msk [vmem:[#allocation5 + $0x20] sm:$0xff] %vm4927_vm3, %v6335_v3 }
0x1136   : > { %v6343_v30 = vpop.permute.xlu1 %6342 }
0x1137   : > { %6361 = vst.msk [vmem:[#allocation5 + $0x80] sm:$0xff] %vm4927_vm3, %v6343_v30  ;;  %9528 = sbr.rel (%p9923_p8) target bundleno = 5123 (0x1403), region = 198 }
0x1138   : > { %v6341_v52 = vpop.permute.xlu0 %6340 }
0x1139   : > { %6360 = vst.msk [vmem:[#allocation5 + $0x68] sm:$0xff] %vm4927_vm3, %v6341_v52 }
0x113a   : > { %v6347_v40 = vpop.permute.xlu1 %6346 }
0x113b   : > { %6363 = vst.msk [vmem:[#allocation5 + $0xb0] sm:$0xff] %vm4927_vm3, %v6347_v40 }
0x113c   : > { %v6345_v62 = vpop.permute.xlu0 %6344 }
0x113d   : > { %6362 = vst.msk [vmem:[#allocation5 + $0x98] sm:$0xff] %vm4927_vm3, %v6345_v62 }
0x113e   : > { %v26313_v35 = vmov 0.0   ;;  %v26315_v31 = vmov 0.0   ;;  %v26317_v54 = vmov 0.0   ;;  %v26319_v44 = vmov 0.0   ;;  %s26409_s15 = smov 0  }
0x113f   : > { %v26321_v10 = vmov 0.0   ;;  %v26323_v1 = vmov 0.0   ;;  %v26325_v41 = vmov 0.0   ;;  %v26327_v7 = vmov 0.0  }
0x1140   : > { %v26329_v22 = vmov 0.0   ;;  %v26331_v28 = vmov 0.0   ;;  %v26333_v42 = vmov 0.0   ;;  %v26335_v21 = vmov 0.0  }
0x1141   : > { %30023 = vst [vmem:[#allocation23_spill] sm:$0xff] %v26333_v42  ;;  %v26337_v60 = vmov 0.0   ;;  %v26339_v49 = vmov 0.0   ;;  %v26341_v24 = vmov 0.0   ;;  %v26343_v39 = vmov 0.0  }
0x1142   : > { %v26345_v63 = vmov 0.0   ;;  %v26347_v37 = vmov 0.0   ;;  %v26349_v38 = vmov 0.0   ;;  %v26351_v3 = vmov 0.0  }
0x1143   : > { %v26353_v30 = vmov 0.0   ;;  %v26355_v52 = vmov 0.0   ;;  %v26357_v40 = vmov 0.0   ;;  %v26359_v62 = vmov 0.0  }
0x1144   : > { %v26361_v6 = vmov 0.0   ;;  %v26363_v48 = vmov 0.0   ;;  %v26365_v47 = vmov 0.0   ;;  %v26367_v34 = vmov 0.0  }
0x1145   : > { %v26369_v51 = vmov 0.0   ;;  %v26371_v33 = vmov 0.0   ;;  %v26373_v5 = vmov 0.0   ;;  %v26375_v32 = vmov 0.0  }
0x1146   : > { %v26377_v12 = vmov -1e+30   ;;  %v26379_v58 = vmov -1e+30   ;;  %v26381_v53 = vmov -1e+30  }
0x1147   : > { %v26383_v16 = vmov -1e+30   ;;  %v26385_v61 = vmov -1e+30   ;;  %v26387_v14 = vmov -1e+30  }
0x1148   : > { %v26389_v0 = vmov -1e+30   ;;  %v26391_v18 = vmov -1e+30   ;;  %v26393_v29 = vmov -1e+30  }
0x1149   : > { %v26395_v4 = vmov -1e+30   ;;  %v26397_v56 = vmov -1e+30   ;;  %v26399_v50 = vmov -1e+30  }
0x114a   : > { %v26401_v43 = vmov -1e+30   ;;  %v26403_v20 = vmov -1e+30   ;;  %v26405_v11 = vmov -1e+30  }
0x114b   : > { %v26407_v23 = vmov -1e+30  }
0x114c LB: >> { %30025 = vst [vmem:[#allocation229_spill] sm:$0xff] %v19916_v35  ;;  %30026 = vst [vmem:[#allocation230_spill] sm:$0xff] %v19920_v31  ;;  %v30035_v42 = vld [vmem:[#allocation23_spill] sm:$0xff]  ;;  %v30042_v57 = vld [vmem:[#allocation132_spill] sm:$0xff]  ;;  %s10145_s20 = sshll.u32 %s20108_s15, 7  ;;  %s6375_s5 = sadd.s32 1, %s20108_s15   ;;  %s20108_s15 = sphi %s26409_s15, %s30209_s15   ;;  %v20104_v23 = vphi %v26407_v23, %v30208_v23   ;;  %v20100_v11 = vphi %v26405_v11, %v30207_v11   ;;  %v20096_v20 = vphi %v26403_v20, %v30206_v20   ;;  %v20092_v43 = vphi %v26401_v43, %v30205_v43   ;;  %v20088_v50 = vphi %v26399_v50, %v30204_v50   ;;  %v20084_v56 = vphi %v26397_v56, %v30203_v56   ;;  %v20080_v4 = vphi %v26395_v4, %v30202_v4   ;;  %v20076_v29 = vphi %v26393_v29, %v30201_v29   ;;  %v20072_v18 = vphi %v26391_v18, %v30200_v18   ;;  %v20068_v0 = vphi %v26389_v0, %v30199_v0   ;;  %v20064_v14 = vphi %v26387_v14, %v30198_v14   ;;  %v20060_v61 = vphi %v26385_v61, %v30197_v61   ;;  %v20056_v16 = vphi %v26383_v16, %v30196_v16   ;;  %v20052_v53 = vphi %v26381_v53, %v30195_v53   ;;  %v20048_v58 = vphi %v26379_v58, %v30194_v58   ;;  %v20044_v12 = vphi %v26377_v12, %v30193_v12   ;;  %v20040_v32 = vphi %v26375_v32, %v30192_v32   ;;  %v20036_v5 = vphi %v26373_v5, %v30191_v5   ;;  %v20032_v33 = vphi %v26371_v33, %v30190_v33   ;;  %v20028_v51 = vphi %v26369_v51, %v30189_v51   ;;  %v20024_v34 = vphi %v26367_v34, %v30188_v34   ;;  %v20020_v47 = vphi %v26365_v47, %v30187_v47   ;;  %v20016_v48 = vphi %v26363_v48, %v30186_v48   ;;  %v20012_v6 = vphi %v26361_v6, %v30185_v6   ;;  %v20008_v62 = vphi %v26359_v62, %v30184_v62   ;;  %v20004_v40 = vphi %v26357_v40, %v30183_v40   ;;  %v20000_v52 = vphi %v26355_v52, %v30182_v52   ;;  %v19996_v30 = vphi %v26353_v30, %v30181_v30   ;;  %v19992_v3 = vphi %v26351_v3, %v30180_v3   ;;  %v19988_v38 = vphi %v26349_v38, %v30179_v38   ;;  %v19984_v37 = vphi %v26347_v37, %v30178_v37   ;;  %v19980_v63 = vphi %v26345_v63, %v30177_v63   ;;  %v19976_v39 = vphi %v26343_v39, %v30176_v39   ;;  %v19972_v24 = vphi %v26341_v24, %v30175_v24   ;;  %v19968_v49 = vphi %v26339_v49, %v30174_v49   ;;  %v19964_v60 = vphi %v26337_v60, %v30173_v60   ;;  %v19960_v21 = vphi %v26335_v21, %v30172_v21   ;;  %v19952_v28 = vphi %v26331_v28, %v30170_v28   ;;  %v19948_v22 = vphi %v26329_v22, %v30169_v22   ;;  %v19944_v7 = vphi %v26327_v7, %v30168_v7   ;;  %v19940_v41 = vphi %v26325_v41, %v30167_v41   ;;  %v19936_v1 = vphi %v26323_v1, %v30166_v1   ;;  %v19932_v10 = vphi %v26321_v10, %v30165_v10   ;;  %v19928_v44 = vphi %v26319_v44, %v30164_v44   ;;  %v19924_v54 = vphi %v26317_v54, %v30163_v54   ;;  %v19920_v31 = vphi %v26315_v31, %v30162_v31   ;;  %v19916_v35 = vphi %v26313_v35, %v30161_v35  }
0x114d   : >> { %30027 = vst [vmem:[#allocation231_spill] sm:$0xff] %v19924_v54  ;;  %30028 = vst [vmem:[#allocation232_spill] sm:$0xff] %v19928_v44  ;;  %11141 = vmatprep.mubr.msk.bf16.mxu0 %vm4156_vm1, %v30042_v57  ;;  %s26563_s18 = sshra.s32 %s10145_s20, 4  ;;  %v30043_v26 = vld [vmem:[#allocation14_spill] sm:$0xff]  ;;  %v30044_v46 = vld [vmem:[#allocation15_spill] sm:$0xff]  ;;  %p26987_p6 = scmp.ge.s32.totalorder %s6375_s5, %s20718_s29 }
0x114e   : >> { %30029 = vst [vmem:[#allocation233_spill] sm:$0xff] %v19932_v10  ;;  %30030 = vst [vmem:[#allocation234_spill] sm:$0xff] %v19936_v1  ;;  %s10257_s30 = smul.u32 24, %s26563_s18  ;;  %v30045_v17 = vld [vmem:[#allocation16_spill] sm:$0xff]  ;;  %v30046_v9 = vld [vmem:[#allocation17_spill] sm:$0xff]  ;;  %s30209_s15 = smov %s6375_s5 }
0x114f   : >> { %30031 = vst [vmem:[#allocation235_spill] sm:$0xff] %v19940_v41  ;;  %30032 = vst [vmem:[#allocation236_spill] sm:$0xff] %v19944_v7  ;;  %v30047_v27 = vld [vmem:[#allocation18_spill] sm:$0xff]  ;;  %v30048_v55 = vld [vmem:[#allocation19_spill] sm:$0xff] }
0x1150   : >> { %30033 = vst [vmem:[#allocation237_spill] sm:$0xff] %v19948_v22  ;;  %30034 = vst [vmem:[#allocation238_spill] sm:$0xff] %v19952_v28  ;;  %s6431_s16 = scalar_lea.vmem [#allocation3], %s10257_s30  ;;  %v30049_v59 = vld [vmem:[#allocation22_spill] sm:$0xff]  ;;  %s26600_s0 = scalar_lea.vmem [#allocation4], %s10257_s30 }
0x1151   : >> { %30036 = vst [vmem:[#allocation23_spill] sm:$0xff] %v30035_v42  ;;  %30037 = vst [vmem:[#allocation239_spill] sm:$0xff] %v19960_v21  ;;  %v6432_v19 = vld [vmem:[%s6431_s16 + $0x10] sm:$0xff]  ;;  %v6433_v25 = vld [vmem:[%s6431_s16 + $0x28] sm:$0xff] }
0x1152   : >> { %30038 = vst [vmem:[#allocation240_spill] sm:$0xff] %v19964_v60  ;;  %30039 = vst [vmem:[#allocation241_spill] sm:$0xff] %v19972_v24  ;;  %11509 = vmatprep.subr.msk.bf16.mxu0 %vm4156_vm1, %v6432_v19  ;;  %v6475_v15 = vsel %vm4156_vm1, %v6432_v19, 0  ;;  %v6478_v8 = vsel %vm4156_vm1, %v6433_v25, 0  ;;  %v6434_v36 = vld [vmem:[%s6431_s16 + $0x40] sm:$0xff]  ;;  %v6435_v2 = vld [vmem:[%s6431_s16 + $0x58] sm:$0xff] }
0x1153   : >> { %30040 = vst [vmem:[#allocation242_spill] sm:$0xff] %v19976_v39  ;;  %30041 = vst [vmem:[#allocation243_spill] sm:$0xff] %v20052_v53  ;;  %11126 = vmatpush3.bf16.xpose.msra.mxu0 %v6475_v15  ;;  %v6481_v13 = vsel %vm4156_vm1, %v6434_v36, 0  ;;  %v6484_v45 = vsel %vm4156_vm1, %v6435_v2, 0  ;;  %v6436_v57 = vld [vmem:[%s6431_s16 + $0x70] sm:$0xff]  ;;  %v6437_v15 = vld [vmem:[%s6431_s16 + $0x88] sm:$0xff] }
0x1154   : >> { %11510 = vmatprep.subr.msk.bf16.mxu0 %vm4156_vm1, %v6433_v25  ;;  %v6487_v19 = vsel %vm4156_vm1, %v6436_v57, 0  ;;  %v6490_v25 = vsel %vm4156_vm1, %v6437_v15, 0  ;;  %v6444_v35 = vld [vmem:[%s26600_s0 + $0x40] sm:$0xff] }
0x1155   : >> { %v30064_v31 = vld [vmem:[#allocation38_spill] sm:$0xff] }
0x115b   : >> { %11128 = vmatpush3.bf16.xpose.msra.mxu0 %v6478_v8  ;;  %v6438_v8 = vld [vmem:[%s6431_s16 + $0xa0] sm:$0xff] }
0x115c   : >> { %11511 = vmatprep.subr.msk.bf16.mxu0 %vm4156_vm1, %v6434_v36  ;;  %v6493_v36 = vsel %vm4156_vm1, %v6438_v8, 0 }
0x1163   : >> { %11130 = vmatpush3.bf16.xpose.msra.mxu0 %v6481_v13  ;;  %v6439_v13 = vld [vmem:[%s6431_s16 + $0xb8] sm:$0xff] }
0x1164   : >> { %11512 = vmatprep.subr.msk.bf16.mxu0 %vm4156_vm1, %v6435_v2  ;;  %v6496_v2 = vsel %vm4156_vm1, %v6439_v13, 0 }
0x116b   : >> { %11132 = vmatpush3.bf16.xpose.msra.mxu0 %v6484_v45  ;;  %v6443_v45 = vld [vmem:[%s26600_s0 + $0x28] sm:$0xff] }
0x116c   : >> { %11513 = vmatprep.subr.msk.bf16.mxu0 %vm4156_vm1, %v6436_v57  ;;  %v6442_v57 = vld [vmem:[%s26600_s0 + $0x10] sm:$0xff] }
0x116d   : >> { %11157 = vmatprep.subr.bf16.mxu1 %v6442_v57 }
0x116e   : >> { %11158 = vmatpush3.bf16.msra.mxu1 %v6442_v57  ;;  %v30054_v57 = vld [vmem:[#allocation25_spill] sm:$0xff] }
0x116f   : >> { %11159 = vmatprep.subr.bf16.mxu1 %v6443_v45 }
0x1172   : >> { %11160 = vmatpush3.bf16.msra.mxu1 %v6443_v45 }
0x1173   : >> { %11134 = vmatpush3.bf16.xpose.msra.mxu0 %v6487_v19  ;;  %v6595_v19 = vstv %s10145_s20  ;;  %11161 = vmatprep.subr.bf16.mxu1 %v6444_v35 }
0x1174   : >> { %11514 = vmatprep.subr.msk.bf16.mxu0 %vm4156_vm1, %v6437_v15  ;;  %v30050_v15 = vld [vmem:[#allocation21_spill] sm:$0xff] }
0x1176   : >> { %11162 = vmatpush3.bf16.msra.mxu1 %v6444_v35 }
0x117b   : >> { %11136 = vmatpush3.bf16.xpose.msra.mxu0 %v6490_v25  ;;  %v26607_v25 = vadd.s32 %v6595_v19, %v30050_v15 }
0x117c   : >> { %11515 = vmatprep.subr.msk.bf16.mxu0 %vm4156_vm1, %v6438_v8  ;;  %v30051_v8 = vld [vmem:[#allocation26_spill] sm:$0xff] }
0x117d   : >> { %vm6599_vm8 = vcmp.le.s32.totalorder %v26607_v25, %v30051_v8  ;;  %vm6598_vm11 = vcmp.le.s32.totalorder %v26607_v25, %v30054_v57  ;;  %vm6611_vm6 = vcmp.le.s32.totalorder %v26607_v25, %v30064_v31 }
0x1183   : >> { %11138 = vmatpush3.bf16.xpose.msra.mxu0 %v6493_v36  ;;  %v30052_v36 = vld [vmem:[#allocation24_spill] sm:$0xff] }
0x1184   : >> { %11516 = vmatprep.subr.msk.bf16.mxu0 %vm4156_vm1, %v6439_v13  ;;  %vm6597_vm9 = vcmp.le.s32.totalorder %v26607_v25, %v30052_v36 }
0x118b   : >> { %11140 = vmatpush3.bf16.xpose.msra.mxu0 %v6496_v2  ;;  %v30053_v2 = vld [vmem:[#allocation27_spill] sm:$0xff] }
0x118c   : >> { %vm6600_vm10 = vcmp.le.s32.totalorder %v26607_v25, %v30053_v2  ;;  %v30055_v2 = vld [vmem:[#allocation30_spill] sm:$0xff] }
0x118d   : >> { %vm6603_vm12 = vcmp.le.s32.totalorder %v26607_v25, %v30055_v2 }
0x1192   : >> { %11142 = vmatmul.mubr.msk.bf16.vlgmr.msra.gmra.mrb[0].mxu0 %vm4156_vm1, %v30043_v26 }
0x1193   : >> { %11145 = vmatprep.mubr.msk.bf16.mxu0 %vm4156_vm1, %v30044_v46 }
0x119a   : >> { %11146 = vmatmul.mubr.msk.bf16.gmra.mrb[4].mxu0 %vm4156_vm1, %v30045_v17 }
0x119b   : >> { %11149 = vmatprep.mubr.msk.bf16.mxu0 %vm4156_vm1, %v30046_v9 }
0x11a2   : >> { %11150 = vmatmul.mubr.msk.bf16.gmra.mrb[8].mxu0 %vm4156_vm1, %v30047_v27  ;;  %v30058_v27 = vld [vmem:[#allocation29_spill] sm:$0xff] }
0x11a3   : >> { %11153 = vmatprep.mubr.msk.bf16.mxu0 %vm4156_vm1, %v30048_v55  ;;  %vm6602_vm15 = vcmp.le.s32.totalorder %v26607_v25, %v30058_v27  ;;  %v30060_v27 = vld [vmem:[#allocation32_spill] sm:$0xff] }
0x11a4   : >> { %vm6605_vm2 = vcmp.le.s32.totalorder %v26607_v25, %v30060_v27 }
0x11aa   : >> { %11154 = vmatmul.mubr.msk.bf16.gmra.mrb[12].mxu0 %vm4156_vm1, %v30049_v59 }
0x1265   : >> { %v11143_v13 = vpop.f32.mrb[0].mxu0 }
0x1266   : >> { %v6532_v9 = vpop.f32.mrb[1].mxu0  ;;  %v26615_v17 = vsel %vm6599_vm8, %v11143_v13, -1e+30  ;;  %v30056_v13 = vld [vmem:[#allocation28_spill] sm:$0xff] }
0x1267   : >> { %6633 = vmax.xlane.f32.xlu1 %v26615_v17  ;;  %v11144_v45 = vpop.f32.mrb[2].mxu0  ;;  %v26620_v19 = vsel %vm6597_vm9, %v6532_v9, -1e+30  ;;  %vm6601_vm13 = vcmp.le.s32.totalorder %v26607_v25, %v30056_v13  ;;  %v30057_v9 = vld [vmem:[#allocation31_spill] sm:$0xff] }
0x1268   : >> { %6629 = vmax.xlane.f32.xlu0 %v26620_v19  ;;  %v6535_v15 = vpop.f32.mrb[3].mxu0  ;;  %v26623_v8 = vsel %vm6600_vm10, %v11144_v45, -1e+30  ;;  %vm6604_vm14 = vcmp.le.s32.totalorder %v26607_v25, %v30057_v9  ;;  %v30059_v9 = vld [vmem:[#allocation34_spill] sm:$0xff] }
0x1269   : >> { %v26625_v36 = vsel %vm6598_vm11, %v6535_v15, -1e+30  ;;  %vm6607_vm0 = vcmp.le.s32.totalorder %v26607_v25, %v30059_v9 }
0x126b   : >> { %6635 = vmax.xlane.f32.xlu1 %v26623_v8 }
0x126c   : >> { %6631 = vmax.xlane.f32.xlu0 %v26625_v36 }
0x126d   : >> { %v11147_v57 = vpop.f32.mrb[4].mxu0 }
0x126e   : >> { %v6548_v26 = vpop.f32.mrb[5].mxu0  ;;  %v26637_v45 = vsel %vm6603_vm12, %v11147_v57, -1e+30  ;;  %v30061_v57 = vld [vmem:[#allocation35_spill] sm:$0xff] }
0x126f   : >> { %v11148_v15 = vpop.f32.mrb[6].mxu0  ;;  %v26639_v46 = vsel %vm6601_vm13, %v6548_v26, -1e+30  ;;  %vm6608_vm4 = vcmp.le.s32.totalorder %v26607_v25, %v30061_v57 }
0x1270   : >> { %6637 = vmax.xlane.f32.xlu0 %v26639_v46  ;;  %v6551_v2 = vpop.f32.mrb[7].mxu0  ;;  %v26642_v55 = vsel %vm6604_vm14, %v11148_v15, -1e+30 }
0x1271   : >> { %v26644_v13 = vsel %vm6602_vm15, %v6551_v2, -1e+30  ;;  %v30062_v2 = vld [vmem:[#allocation33_spill] sm:$0xff] }
0x1272   : >> { %6639 = vmax.xlane.f32.xlu1 %v26644_v13  ;;  %vm6606_vm5 = vcmp.le.s32.totalorder %v26607_v25, %v30062_v2 }
0x1274   : >> { %6641 = vmax.xlane.f32.xlu0 %v26637_v45 }
0x1275   : >> { %v11151_v26 = vpop.f32.mrb[8].mxu0 }
0x1276   : >> { %6643 = vmax.xlane.f32.xlu1 %v26642_v55  ;;  %v6564_v15 = vpop.f32.mrb[9].mxu0  ;;  %v26657_v59 = vsel %vm6607_vm0, %v11151_v26, -1e+30  ;;  %v6445_v26 = vld [vmem:[%s26600_s0 + $0x58] sm:$0xff] }
0x1277   : >> { %30063 = vst [vmem:[#allocation244_spill] sm:$0xff] %v26657_v59  ;;  %v11152_v54 = vpop.f32.mrb[10].mxu0  ;;  %v26659_v9 = vsel %vm6605_vm2, %v6564_v15, -1e+30  ;;  %v30065_v15 = vld [vmem:[#allocation36_spill] sm:$0xff]  ;;  %11163 = vmatprep.subr.bf16.mxu1 %v6445_v26 }
0x1278   : >> { %6645 = vmax.xlane.f32.xlu0 %v26659_v9  ;;  %v6567_v27 = vpop.f32.mrb[11].mxu0  ;;  %v26663_v44 = vsel %vm6608_vm4, %v11152_v54, -1e+30  ;;  %vm6609_vm7 = vcmp.le.s32.totalorder %v26607_v25, %v30065_v15  ;;  %v30066_v54 = vld [vmem:[#allocation39_spill] sm:$0xff]  ;;  %11164 = vmatpush3.bf16.msra.mxu1 %v6445_v26 }
0x1279   : >> { %v26665_v57 = vsel %vm6606_vm5, %v6567_v27, -1e+30  ;;  %vm6612_vm8 = vcmp.le.s32.totalorder %v26607_v25, %v30066_v54  ;;  %v30067_v27 = vld [vmem:[#allocation37_spill] sm:$0xff]  ;;  %v6446_v15 = vld [vmem:[%s26600_s0 + $0x70] sm:$0xff] }
0x127a   : >> { %6647 = vmax.xlane.f32.xlu1 %v26665_v57  ;;  %vm6610_vm9 = vcmp.le.s32.totalorder %v26607_v25, %v30067_v27  ;;  %11165 = vmatprep.subr.bf16.mxu1 %v6446_v15  ;;  %v6447_v25 = vld [vmem:[%s26600_s0 + $0x88] sm:$0xff] }
0x127c   : >> { %6649 = vmax.xlane.f32.xlu0 %v26657_v59  ;;  %11166 = vmatpush3.bf16.msra.mxu1 %v6446_v15 }
0x127d   : >> { %v11155_v2 = vpop.f32.mrb[12].mxu0  ;;  %11167 = vmatprep.subr.bf16.mxu1 %v6447_v25 }
0x127e   : >> { %6651 = vmax.xlane.f32.xlu1 %v26663_v44  ;;  %v6580_v35 = vpop.f32.mrb[13].mxu0  ;;  %v26679_v31 = vsel %vm6611_vm6, %v11155_v2, -1e+30  ;;  %v6448_v2 = vld [vmem:[%s26600_s0 + $0xa0] sm:$0xff] }
0x127f   : >> { %v11156_v41 = vpop.f32.mrb[14].mxu0  ;;  %v26681_v10 = vsel %vm6609_vm7, %v6580_v35, -1e+30  ;;  %v6449_v35 = vld [vmem:[%s26600_s0 + $0xb8] sm:$0xff] }
0x1280   : >> { %6653 = vmax.xlane.f32.xlu0 %v26681_v10  ;;  %v6583_v7 = vpop.f32.mrb[15].mxu0  ;;  %v26685_v54 = vsel %vm6612_vm8, %v11156_v41, -1e+30  ;;  %11168 = vmatpush3.bf16.msra.mxu1 %v6447_v25 }
0x1281   : >> { %v26687_v26 = vsel %vm6610_vm9, %v6583_v7, -1e+30  ;;  %11169 = vmatprep.subr.bf16.mxu1 %v6448_v2 }
0x1282   : >> { %30068 = vst [vmem:[#allocation245_spill] sm:$0xff] %v26687_v26  ;;  %6655 = vmax.xlane.f32.xlu1 %v26687_v26 }
0x1284   : >> { %6657 = vmax.xlane.f32.xlu0 %v26679_v31  ;;  %11170 = vmatpush3.bf16.msra.mxu1 %v6448_v2 }
0x1285   : >> { %11171 = vmatprep.subr.bf16.mxu1 %v6449_v35 }
0x1286   : >> { %6659 = vmax.xlane.f32.xlu1 %v26685_v54 }
0x1288   : >> { %11172 = vmatpush3.bf16.msra.mxu1 %v6449_v35 }
0x12f4   : >> { %v6634_v41 = vpop.xlane.xlu1 %6633 }
0x12f5   : >> { %v26696_v7 = vmax.f32 %v20096_v20, %v6634_v41   ;;  %v6630_v15 = vpop.xlane.xlu0 %6629 }
0x12f6   : >> { %v26699_v1 = vmax.f32 %v20104_v23, %v6630_v15  }
0x12f7   : >> { %30069 = vst [vmem:[#allocation246_spill] sm:$0xff] %v26696_v7  ;;  %v30070_v27 = vmov %v26696_v7 }
0x12f8   : >> { %30071 = vst [vmem:[#allocation247_spill] sm:$0xff] %v26699_v1  ;;  %v30072_v26 = vmov %v26699_v1  ;;  %v6727_v25 = vsub.f32 %v26615_v17, %v30070_v27  ;;  %v6636_v22 = vpop.xlane.xlu1 %6635 }
0x12f9   : >> { %v6725_v35 = vsub.f32 %v26620_v19, %v30072_v26  ;;  %v26710_v41 = vmax.f32 %v20092_v43, %v6636_v22   ;;  %v6632_v7 = vpop.xlane.xlu0 %6631 }
0x12fa   : >> { %v6745_v21 = vmul.f32 1.442695, %v6727_v25  ;;  %v26713_v1 = vmax.f32 %v20100_v11, %v6632_v7  }
0x12fb   : >> { %30073 = vst [vmem:[#allocation248_spill] sm:$0xff] %v26710_v41  ;;  %v30074_v59 = vmov %v26710_v41  ;;  %v6741_v28 = vmul.f32 1.442695, %v6725_v35 }
0x12fc   : >> { %30075 = vst [vmem:[#allocation249_spill] sm:$0xff] %v26713_v1  ;;  %v30076_v15 = vmov %v26713_v1  ;;  %v6728_v17 = vsub.f32 %v26623_v8, %v30074_v59  ;;  %16251 = vpow2.f32 %v6745_v21 }
0x12fd   : >> { %v6726_v25 = vsub.f32 %v26625_v36, %v30076_v15  ;;  %v6638_v41 = vpop.xlane.xlu0 %6637  ;;  %16253 = vpow2.f32 %v6741_v28 }
0x12fe   : >> { %v6747_v22 = vmul.f32 1.442695, %v6728_v17  ;;  %v26724_v7 = vmax.f32 %v20088_v50, %v6638_v41  }
0x12ff   : >> { %v6743_v2 = vmul.f32 1.442695, %v6726_v25  ;;  %v6640_v35 = vpop.xlane.xlu1 %6639 }
0x1300   : >> { %30077 = vst [vmem:[#allocation250_spill] sm:$0xff] %v26724_v7  ;;  %v30078_v26 = vmov %v26724_v7  ;;  %16255 = vpow2.f32 %v6747_v22  ;;  %v26731_v8 = vmax.f32 %v20084_v56, %v6640_v35  }
0x1301   : >> { %v6729_v21 = vsub.f32 %v26639_v46, %v30078_v26  ;;  %v6642_v19 = vpop.xlane.xlu0 %6641  ;;  %16257 = vpow2.f32 %v6743_v2 }
0x1302   : >> { %30079 = vst [vmem:[#allocation251_spill] sm:$0xff] %v26731_v8  ;;  %v6730_v17 = vsub.f32 %v26644_v13, %v26731_v8  ;;  %v26738_v28 = vmax.f32 %v20080_v4, %v6642_v19  }
0x1303   : >> { %v6644_v22 = vpop.xlane.xlu1 %6643  ;;  %v6749_v41 = vmul.f32 1.442695, %v6729_v21 }
0x1304   : >> { %30080 = vst [vmem:[#allocation252_spill] sm:$0xff] %v26738_v28  ;;  %v30081_v25 = vmov %v26738_v28  ;;  %v26741_v7 = vmax.f32 %v20076_v29, %v6644_v22   ;;  %v6751_v46 = vmul.f32 1.442695, %v6730_v17 }
0x1305   : >> { %v6731_v2 = vsub.f32 %v26637_v45, %v30081_v25  ;;  %v6646_v1 = vpop.xlane.xlu0 %6645 }
0x1306   : >> { %30082 = vst [vmem:[#allocation253_spill] sm:$0xff] %v26741_v7  ;;  %v30083_v42 = vmov %v26741_v7  ;;  %v16252_v36 = vpop.eup %16251  ;;  %v26752_v21 = vmax.f32 %v20072_v18, %v6646_v1   ;;  %16259 = vpow2.f32 %v6751_v46 }
0x1307   : >> { %v6732_v19 = vsub.f32 %v26642_v55, %v30083_v42  ;;  %v6753_v28 = vmul.f32 1.442695, %v6731_v2  ;;  %6793 = vadd.xlane.f32.xlu0 %v16252_v36  ;;  %v6648_v17 = vpop.xlane.xlu1 %6647  ;;  %16261 = vpow2.f32 %v6749_v41  ;;  %v16254_v35 = vpop.eup %16253 }
0x1308   : >> { %30084 = vst [vmem:[#allocation254_spill] sm:$0xff] %v26752_v21  ;;  %v30085_v8 = vmov %v26752_v21  ;;  %v26759_v13 = vmax.f32 %v20068_v0, %v6648_v17  }
0x1309   : >> { %v6755_v22 = vmul.f32 1.442695, %v6732_v19  ;;  %v6733_v7 = vsub.f32 %v26659_v9, %v30085_v8  ;;  %v6650_v55 = vpop.xlane.xlu0 %6649  ;;  %16263 = vpow2.f32 %v6753_v28  ;;  %v30089_v28 = vld [vmem:[#allocation244_spill] sm:$0xff] }
0x130a   : >> { %30086 = vst [vmem:[#allocation255_spill] sm:$0xff] %v26759_v13  ;;  %v16256_v24 = vpop.eup %16255  ;;  %v26762_v1 = vmax.f32 %v20064_v14, %v6650_v55   ;;  %v6734_v19 = vsub.f32 %v26665_v57, %v26759_v13 }
0x130b   : >> { %v6757_v2 = vmul.f32 1.442695, %v6733_v7  ;;  %6789 = vadd.xlane.f32.xlu0 %v16254_v35  ;;  %6795 = vadd.xlane.f32.xlu1 %v16256_v24  ;;  %v6652_v9 = vpop.xlane.xlu1 %6651  ;;  %v16258_v21 = vpop.eup %16257  ;;  %16265 = vpow2.f32 %v6755_v22  ;;  %v6854_v39 = vpack.c.bf16 %v16256_v24, %v16252_v36 }
0x130c   : >> { %30087 = vst [vmem:[#allocation256_spill] sm:$0xff] %v26762_v1  ;;  %v30088_v46 = vmov %v26762_v1  ;;  %v26773_v55 = vmax.f32 %v20060_v61, %v6652_v9   ;;  %v6759_v7 = vmul.f32 1.442695, %v6734_v19  ;;  %v6853_v41 = vpack.c.bf16 %v16258_v21, %v16254_v35  ;;  %v30093_v9 = vld [vmem:[#allocation245_spill] sm:$0xff] }
0x130d   : >> { %v6735_v45 = vsub.f32 %v30089_v28, %v30088_v46  ;;  %v6654_v1 = vpop.xlane.xlu0 %6653  ;;  %16267 = vpow2.f32 %v6757_v2 }
0x130e   : >> { %30090 = vst [vmem:[#allocation257_spill] sm:$0xff] %v26773_v55  ;;  %v6736_v22 = vsub.f32 %v26663_v44, %v26773_v55  ;;  %v26780_v17 = vmax.f32 %v20056_v16, %v6654_v1   ;;  %11173 = vmatprep.mubr.bf16.mxu1 %v6853_v41  ;;  %16269 = vpow2.f32 %v6759_v7 }
0x130f   : >> { %v6761_v60 = vmul.f32 1.442695, %v6735_v45  ;;  %6791 = vadd.xlane.f32.xlu1 %v16258_v21  ;;  %v6656_v28 = vpop.xlane.xlu1 %6655  ;;  %11174 = vmatmul.mubr.bf16.vlgmr.msra.gmra.mrb[0].mxu1 %v6854_v39 }
0x1310   : >> { %30091 = vst [vmem:[#allocation258_spill] sm:$0xff] %v26780_v17  ;;  %v26783_v19 = vmax.f32 %v20052_v53, %v6656_v28   ;;  %v16260_v35 = vpop.eup %16259  ;;  %v6763_v45 = vmul.f32 1.442695, %v6736_v22  ;;  %v6737_v36 = vsub.f32 %v26681_v10, %v26780_v17 }
0x1311   : >> { %v6658_v44 = vpop.xlane.xlu0 %6657  ;;  %v16262_v2 = vpop.eup %16261  ;;  %16271 = vpow2.f32 %v6761_v60 }
0x1312   : >> { %30092 = vst [vmem:[#allocation259_spill] sm:$0xff] %v26783_v19  ;;  %v6738_v39 = vsub.f32 %v30093_v9, %v26783_v19  ;;  %v26794_v21 = vmax.f32 %v20048_v58, %v6658_v44   ;;  %v6765_v7 = vmul.f32 1.442695, %v6737_v36  ;;  %v6855_v22 = vpack.c.bf16 %v16260_v35, %v16262_v2 }
0x1313   : >> { %v6660_v1 = vpop.xlane.xlu1 %6659  ;;  %v16264_v28 = vpop.eup %16263  ;;  %16273 = vpow2.f32 %v6763_v45 }
0x1314   : >> { %30094 = vst [vmem:[#allocation260_spill] sm:$0xff] %v26794_v21  ;;  %v30095_v57 = vmov %v26794_v21  ;;  %v6767_v24 = vmul.f32 1.442695, %v6738_v39  ;;  %v26801_v41 = vmax.f32 %v20044_v12, %v6660_v1   ;;  %11177 = vmatprep.mubr.bf16.mxu1 %v6855_v22  ;;  %6801 = vadd.xlane.f32.xlu0 %v16264_v28  ;;  %16275 = vpow2.f32 %v6765_v7 }
0x1315   : >> { %v6739_v60 = vsub.f32 %v26679_v31, %v30095_v57  ;;  %v16266_v9 = vpop.eup %16265 }
0x1316   : >> { %v30096_v53 = vmov %v26801_v41  ;;  %6803 = vadd.xlane.f32.xlu1 %v16266_v9  ;;  %16277 = vpow2.f32 %v6767_v24  ;;  %v6856_v39 = vpack.c.bf16 %v16266_v9, %v16264_v28 }
0x1317   : >> { %v6769_v44 = vmul.f32 1.442695, %v6739_v60  ;;  %v6740_v45 = vsub.f32 %v26685_v54, %v30096_v53  ;;  %v16268_v21 = vpop.eup %16267 }
0x1318   : >> { %6797 = vadd.xlane.f32.xlu0 %v16262_v2  ;;  %v16270_v31 = vpop.eup %16269  ;;  %11178 = vmatmul.mubr.bf16.gmra.mrb[4].mxu1 %v6856_v39 }
0x1319   : >> { %v6771_v10 = vmul.f32 1.442695, %v6740_v45  ;;  %16279 = vpow2.f32 %v6769_v44  ;;  %v6857_v41 = vpack.c.bf16 %v16270_v31, %v16268_v21  ;;  %v30098_v44 = vld [vmem:[#allocation247_spill] sm:$0xff] }
0x131a   : >> { %6799 = vadd.xlane.f32.xlu1 %v16260_v35  ;;  %v30099_v39 = vsub.f32 %v20104_v23, %v30098_v44  ;;  %v30103_v23 = vsub.f32 %v20076_v29, %v30083_v42 }
0x131b   : >> { %v16272_v1 = vpop.eup %16271  ;;  %16281 = vpow2.f32 %v6771_v10  ;;  %11181 = vmatprep.mubr.bf16.mxu1 %v6857_v41  ;;  %v30097_v10 = vsub.f32 %v20096_v20, %v30070_v27  ;;  %v30102_v20 = vsub.f32 %v20080_v4, %v30081_v25  ;;  %v30106_v4 = vld [vmem:[#allocation251_spill] sm:$0xff] }
0x131c   : >> { %6809 = vadd.xlane.f32.xlu0 %v16272_v1 }
0x131d   : >> { %v16274_v7 = vpop.eup %16273  ;;  %v6697_v9 = vmul.f32 1.442695, %v30097_v10  ;;  %v30108_v10 = vsub.f32 %v20084_v56, %v30106_v4  ;;  %v30112_v56 = vsub.f32 %v20060_v61, %v26773_v55 }
0x131e   : >> { %6811 = vadd.xlane.f32.xlu1 %v16274_v7  ;;  %v6858_v22 = vpack.c.bf16 %v16274_v7, %v16272_v1  ;;  %v16276_v60 = vpop.eup %16275  ;;  %v30101_v1 = vsub.f32 %v20100_v11, %v30076_v15  ;;  %v30104_v11 = vsub.f32 %v20088_v50, %v30078_v26  ;;  %v30109_v50 = vsub.f32 %v20064_v14, %v30088_v46 }
0x131f   : >> { %16283 = vpow2.f32 %v6697_v9  ;;  %v6703_v29 = vmul.f32 1.442695, %v30108_v10 }
0x1320   : >> { %6805 = vadd.xlane.f32.xlu0 %v16268_v21  ;;  %v16278_v54 = vpop.eup %16277  ;;  %11182 = vmatmul.mubr.bf16.gmra.mrb[8].mxu1 %v6858_v22  ;;  %v6693_v21 = vmul.f32 1.442695, %v30099_v39  ;;  %v6695_v7 = vmul.f32 1.442695, %v30101_v1  ;;  %v6715_v1 = vmul.f32 1.442695, %v30112_v56 }
0x1321   : >> { %v6859_v24 = vpack.c.bf16 %v16278_v54, %v16276_v60 }
0x1322   : >> { %6807 = vadd.xlane.f32.xlu1 %v16270_v31  ;;  %v30100_v31 = vsub.f32 %v20092_v43, %v30074_v59  ;;  %16285 = vpow2.f32 %v6693_v21 }
0x1323   : >> { %v16280_v28 = vpop.eup %16279  ;;  %11185 = vmatprep.mubr.bf16.mxu1 %v6859_v24 }
0x1324   : >> { %6813 = vadd.xlane.f32.xlu0 %v16276_v60  ;;  %v6699_v41 = vmul.f32 1.442695, %v30100_v31  ;;  %v6705_v60 = vmul.f32 1.442695, %v30102_v20  ;;  %v30107_v20 = vmov %v30106_v4  ;;  %v6713_v31 = vmul.f32 1.442695, %v30109_v50 }
0x1325   : >> { %v16282_v2 = vpop.eup %16281 }
0x1326   : >> { %6815 = vadd.xlane.f32.xlu1 %v16278_v54  ;;  %v6860_v35 = vpack.c.bf16 %v16282_v2, %v16280_v28  ;;  %16287 = vpow2.f32 %v6699_v41  ;;  %v6707_v54 = vmul.f32 1.442695, %v30103_v23 }
0x1327   : >> { %16289 = vpow2.f32 %v6695_v7 }
0x1328   : >> { %6817 = vadd.xlane.f32.xlu0 %v16280_v28  ;;  %11186 = vmatmul.mubr.bf16.gmra.mrb[12].mxu1 %v6860_v35  ;;  %16291 = vpow2.f32 %v6705_v60  ;;  %v30113_v60 = vsub.f32 %v20072_v18, %v30085_v8 }
0x1329   : >> { %v26819_v22 = vpop.eup %16283  ;;  %16293 = vpow2.f32 %v6707_v54 }
0x132a   : >> { %6819 = vadd.xlane.f32.xlu1 %v16282_v2  ;;  %v6775_v43 = vmul.f32 %v20032_v33, %v26819_v22  ;;  %v6701_v2 = vmul.f32 1.442695, %v30104_v11  ;;  %v6709_v23 = vmul.f32 1.442695, %v30113_v60 }
0x132c   : >> { %v26827_v24 = vpop.eup %16285  ;;  %16295 = vpow2.f32 %v6701_v2 }
0x132d   : >> { %v6773_v44 = vmul.f32 %v20040_v32, %v26827_v24  ;;  %16297 = vpow2.f32 %v6703_v29 }
0x132e   : >> { %16299 = vpow2.f32 %v6713_v31 }
0x132f   : >> { %16301 = vpow2.f32 %v6715_v1 }
0x1330   : >> { %v26831_v28 = vpop.eup %16287  ;;  %16303 = vpow2.f32 %v6709_v23 }
0x1331   : >> { %v6776_v39 = vmul.f32 %v20028_v51, %v26831_v28  ;;  %v26845_v21 = vpop.eup %16289 }
0x1332   : >> { %v6774_v7 = vmul.f32 %v20036_v5, %v26845_v21  ;;  %v26864_v54 = vpop.eup %16291 }
0x1333   : >> { %v26869_v61 = vpop.eup %16293  ;;  %v6779_v18 = vmul.f32 %v20016_v48, %v26864_v54 }
0x1334   : >> { %v6780_v29 = vmul.f32 %v20012_v6, %v26869_v61 }
0x1394   : >> { %v6794_v35 = vpop.xlane.xlu0 %6793 }
0x1395   : >> { %v26836_v33 = vadd.f32 %v6794_v35, %v6775_v43   ;;  %v30116_v43 = vsub.f32 %v20056_v16, %v26780_v17  ;;  %v26876_v35 = vpop.eup %16295  ;;  %v30120_v16 = vsub.f32 %v20048_v58, %v30095_v57 }
0x1396   : >> { %v6777_v31 = vmul.f32 %v20024_v34, %v26876_v35 }
0x1397   : >> { %30105 = vst [vmem:[#allocation261_spill] sm:$0xff] %v26836_v33  ;;  %v6717_v11 = vmul.f32 1.442695, %v30116_v43 }
0x1398   : >> { %v6790_v41 = vpop.xlane.xlu0 %6789  ;;  %v6796_v33 = vpop.xlane.xlu1 %6795 }
0x1399   : >> { %v26850_v32 = vadd.f32 %v6790_v41, %v6773_v44   ;;  %v26852_v51 = vadd.f32 %v6796_v33, %v6776_v39   ;;  %v26885_v44 = vpop.eup %16297  ;;  %v6721_v39 = vmul.f32 1.442695, %v30120_v16 }
0x139a   : >> { %v26894_v41 = vpop.eup %16299  ;;  %v6778_v58 = vmul.f32 %v20020_v47, %v26885_v44 }
0x139b   : >> { %30110 = vst [vmem:[#allocation262_spill] sm:$0xff] %v26850_v32  ;;  %30111 = vst [vmem:[#allocation263_spill] sm:$0xff] %v26852_v51  ;;  %v30115_v51 = vsub.f32 %v20068_v0, %v26759_v13  ;;  %v26903_v1 = vpop.eup %16301 }
0x139c   : >> { %v6792_v14 = vpop.xlane.xlu1 %6791  ;;  %v16304_v60 = vpop.eup %16303 }
0x139d   : >> { %v26862_v5 = vadd.f32 %v6792_v14, %v6774_v7   ;;  %v6711_v32 = vmul.f32 1.442695, %v30115_v51  ;;  %v6783_v7 = vmul.f32 %v20000_v52, %v26894_v41  ;;  %v6781_v51 = vmul.f32 %v20008_v62, %v16304_v60 }
0x139f   : >> { %30114 = vst [vmem:[#allocation264_spill] sm:$0xff] %v26862_v5  ;;  %16305 = vpow2.f32 %v6711_v32  ;;  %v30117_v5 = vld [vmem:[#allocation243_spill] sm:$0xff] }
0x13a0   : >> { %v30118_v4 = vsub.f32 %v30117_v5, %v26783_v19  ;;  %16307 = vpow2.f32 %v6717_v11 }
0x13a1   : >> { %v6802_v0 = vpop.xlane.xlu0 %6801 }
0x13a2   : >> { %v6719_v10 = vmul.f32 1.442695, %v30118_v4  ;;  %v26881_v48 = vadd.f32 %v6802_v0, %v6779_v18  }
0x13a3   : >> { %v6804_v50 = vpop.xlane.xlu1 %6803 }
0x13a4   : >> { %30119 = vst [vmem:[#allocation265_spill] sm:$0xff] %v26881_v48  ;;  %v26890_v6 = vadd.f32 %v6804_v50, %v6780_v29   ;;  %16309 = vpow2.f32 %v6719_v10  ;;  %v30122_v48 = vsub.f32 %v20044_v12, %v30096_v53  ;;  %v30133_v50 = vld [vmem:[#allocation242_spill] sm:$0xff] }
0x13a5   : >> { %v6798_v56 = vpop.xlane.xlu0 %6797  ;;  %16311 = vpow2.f32 %v6721_v39  ;;  %v6839_v39 = vmul.f32 %v19968_v49, %v26819_v22  ;;  %v30140_v22 = vld [vmem:[#allocation238_spill] sm:$0xff] }
0x13a6   : >> { %30121 = vst [vmem:[#allocation266_spill] sm:$0xff] %v26890_v6  ;;  %v6723_v33 = vmul.f32 1.442695, %v30122_v48  ;;  %v26899_v34 = vadd.f32 %v6798_v56, %v6777_v31   ;;  %v6837_v31 = vmul.f32 %v30133_v50, %v26827_v24  ;;  %v30135_v48 = vld [vmem:[#allocation240_spill] sm:$0xff]  ;;  %v30137_v56 = vld [vmem:[#allocation241_spill] sm:$0xff]  ;;  %v30156_v50 = vld [vmem:[#allocation230_spill] sm:$0xff] }
0x13a7   : >> { %v6800_v6 = vpop.xlane.xlu1 %6799 }
0x13a8   : >> { %30123 = vst [vmem:[#allocation267_spill] sm:$0xff] %v26899_v34  ;;  %v26905_v47 = vadd.f32 %v6800_v6, %v6778_v58   ;;  %16313 = vpow2.f32 %v6723_v33  ;;  %v6784_v34 = vmul.f32 %v19996_v30, %v26903_v1  ;;  %v6840_v33 = vmul.f32 %v30135_v48, %v26831_v28 }
0x13a9   : >> { %v6810_v23 = vpop.xlane.xlu0 %6809  ;;  %v16306_v12 = vpop.eup %16305  ;;  %v6838_v58 = vmul.f32 %v30137_v56, %v26845_v21 }
0x13aa   : >> { %30124 = vst [vmem:[#allocation268_spill] sm:$0xff] %v26905_v47  ;;  %v26909_v52 = vadd.f32 %v6810_v23, %v6783_v7   ;;  %v16308_v32 = vpop.eup %16307  ;;  %v6782_v47 = vmul.f32 %v20004_v40, %v16306_v12  ;;  %v6843_v7 = vmul.f32 %v30140_v22, %v26864_v54 }
0x13ab   : >> { %v6812_v14 = vpop.xlane.xlu1 %6811 }
0x13ac   : >> { %30125 = vst [vmem:[#allocation269_spill] sm:$0xff] %v26909_v52  ;;  %v26913_v30 = vadd.f32 %v6812_v14, %v6784_v34   ;;  %v6785_v52 = vmul.f32 %v19992_v3, %v16308_v32 }
0x13ad   : >> { %v6806_v43 = vpop.xlane.xlu0 %6805 }
0x13ae   : >> { %30126 = vst [vmem:[#allocation270_spill] sm:$0xff] %v26913_v30  ;;  %v26916_v62 = vadd.f32 %v6806_v43, %v6781_v51   ;;  %v16310_v11 = vpop.eup %16309  ;;  %v30143_v51 = vld [vmem:[#allocation237_spill] sm:$0xff] }
0x13af   : >> { %v6808_v18 = vpop.xlane.xlu1 %6807  ;;  %v16312_v5 = vpop.eup %16311  ;;  %v6786_v30 = vmul.f32 %v19988_v38, %v16310_v11  ;;  %v6844_v43 = vmul.f32 %v30143_v51, %v26869_v61  ;;  %v30189_v51 = vld [vmem:[#allocation263_spill] sm:$0xff] }
0x13b0   : >> { %30127 = vst [vmem:[#allocation271_spill] sm:$0xff] %v26916_v62  ;;  %v26919_v40 = vadd.f32 %v6808_v18, %v6782_v47   ;;  %v6787_v62 = vmul.f32 %v19984_v37, %v16312_v5  ;;  %v30145_v18 = vld [vmem:[#allocation23_spill] sm:$0xff] }
0x13b1   : >> { %v6814_v4 = vpop.xlane.xlu0 %6813 }
0x13b2   : >> { %30128 = vst [vmem:[#allocation272_spill] sm:$0xff] %v26919_v40  ;;  %v26922_v3 = vadd.f32 %v6814_v4, %v6785_v52   ;;  %v16314_v10 = vpop.eup %16313  ;;  %v6842_v52 = vmul.f32 %v30145_v18, %v26885_v44  ;;  %v30148_v4 = vld [vmem:[#allocation234_spill] sm:$0xff]  ;;  %v30200_v18 = vld [vmem:[#allocation254_spill] sm:$0xff] }
0x13b3   : >> { %v6816_v0 = vpop.xlane.xlu1 %6815  ;;  %v6788_v16 = vmul.f32 %v19980_v63, %v16314_v10 }
0x13b4   : >> { %30129 = vst [vmem:[#allocation273_spill] sm:$0xff] %v26922_v3  ;;  %v26925_v38 = vadd.f32 %v6816_v0, %v6786_v30  }
0x13b5   : >> { %v6818_v29 = vpop.xlane.xlu0 %6817 }
0x13b6   : >> { %30130 = vst [vmem:[#allocation274_spill] sm:$0xff] %v26925_v38  ;;  %v26928_v37 = vadd.f32 %v6818_v29, %v6787_v62  }
0x13b7   : >> { %v6820_v40 = vpop.xlane.xlu1 %6819 }
0x13b8   : >> { %30131 = vst [vmem:[#allocation275_spill] sm:$0xff] %v26928_v37  ;;  %v26931_v63 = vadd.f32 %v6820_v40, %v6788_v16   ;;  %v30153_v16 = vld [vmem:[#allocation235_spill] sm:$0xff] }
0x13b9   : >> { %v6846_v40 = vmul.f32 %v30153_v16, %v16306_v12  ;;  %v30196_v16 = vld [vmem:[#allocation258_spill] sm:$0xff] }
0x13ba   : >> { %v30132_v19 = vmov %v26931_v63 }
0x13e2   : >> { %v11175_v3 = vpop.f32.mrb[0].mxu1 }
0x13e3   : >> { %v26937_v49 = vadd.f32 %v11175_v3, %v6839_v39   ;;  %v6895_v38 = vpop.f32.mrb[1].mxu1 }
0x13e4   : >> { %v26941_v39 = vadd.f32 %v6895_v38, %v6837_v31   ;;  %v11176_v37 = vpop.f32.mrb[2].mxu1  ;;  %v6851_v31 = vmul.f32 %v30156_v50, %v16312_v5  ;;  %v30191_v5 = vld [vmem:[#allocation264_spill] sm:$0xff]  ;;  %v30204_v50 = vld [vmem:[#allocation250_spill] sm:$0xff] }
0x13e5   : >> { %v30134_v57 = vmov %v26937_v49  ;;  %v26945_v63 = vadd.f32 %v11176_v37, %v6840_v33   ;;  %v6898_v6 = vpop.f32.mrb[3].mxu1  ;;  %v30141_v49 = vld [vmem:[#allocation239_spill] sm:$0xff]  ;;  %v30158_v37 = vld [vmem:[#allocation229_spill] sm:$0xff]  ;;  %v30229_v50 = vld [vmem:[#allocation273_spill] sm:$0xff] (%p26987_p6) }
0x13e6   : >> { %v30136_v36 = vmov %v26941_v39  ;;  %v26947_v24 = vadd.f32 %v6898_v6, %v6838_v58   ;;  %v6841_v34 = vmul.f32 %v30141_v49, %v26876_v35  ;;  %v6847_v35 = vmul.f32 %v30148_v4, %v26894_v41  ;;  %v30159_v58 = vld [vmem:[#allocation231_spill] sm:$0xff]  ;;  %v30202_v4 = vld [vmem:[#allocation252_spill] sm:$0xff] }
0x13e7   : >> { %v30138_v2 = vmov %v26945_v63  ;;  %v6852_v56 = vmul.f32 %v30158_v37, %v16314_v10  ;;  %v6850_v63 = vmul.f32 %v30159_v58, %v16310_v11  ;;  %v30174_v49 = vmov %v30134_v57  ;;  %v30178_v37 = vld [vmem:[#allocation275_spill] sm:$0xff]  ;;  %v30185_v6 = vld [vmem:[#allocation266_spill] sm:$0xff]  ;;  %v30194_v58 = vld [vmem:[#allocation260_spill] sm:$0xff] }
0x13e8   : >> { %v30139_v9 = vmov %v26947_v24  ;;  %v30207_v11 = vld [vmem:[#allocation249_spill] sm:$0xff]  ;;  %v30225_v18 = vmov (%p26987_p6), %v30136_v36  ;;  %v30227_v4 = vld [vmem:[#allocation275_spill] sm:$0xff] (%p26987_p6) }
0x13e9   : > { %v30232_v11 = vld [vmem:[#allocation272_spill] sm:$0xff] (%p26987_p6) }
0x13eb   : >> { %v11179_v23 = vpop.f32.mrb[4].mxu1 }
0x13ec   : >> { %v26953_v28 = vadd.f32 %v11179_v23, %v6843_v7   ;;  %v6911_v14 = vpop.f32.mrb[5].mxu1  ;;  %v30208_v23 = vld [vmem:[#allocation247_spill] sm:$0xff] }
0x13ed   : >> { %v26957_v21 = vadd.f32 %v6911_v14, %v6841_v34   ;;  %v11180_v47 = vpop.f32.mrb[6].mxu1  ;;  %v30188_v34 = vld [vmem:[#allocation267_spill] sm:$0xff]  ;;  %v30198_v14 = vld [vmem:[#allocation256_spill] sm:$0xff] }
0x13ee   : >> { %v30142_v45 = vmov %v26953_v28  ;;  %v26961_v22 = vadd.f32 %v11180_v47, %v6844_v43   ;;  %v6914_v24 = vpop.f32.mrb[7].mxu1  ;;  %v30149_v28 = vld [vmem:[#allocation236_spill] sm:$0xff]  ;;  %v30187_v47 = vld [vmem:[#allocation268_spill] sm:$0xff]  ;;  %v30205_v43 = vld [vmem:[#allocation248_spill] sm:$0xff]  ;;  %v30223_v14 = vmov (%p26987_p6), %v30134_v57 }
0x13ef   : >> { %v30144_v59 = vmov %v26957_v21  ;;  %v26963_v54 = vadd.f32 %v6914_v24, %v6842_v52   ;;  %v6845_v0 = vmul.f32 %v30149_v28, %v16304_v60  ;;  %v30151_v21 = vld [vmem:[#allocation233_spill] sm:$0xff]  ;;  %v30157_v60 = vld [vmem:[#allocation232_spill] sm:$0xff]  ;;  %v30170_v28 = vmov %v30142_v45  ;;  %v30182_v52 = vld [vmem:[#allocation269_spill] sm:$0xff] }
0x13f0   : >> { %v30146_v26 = vmov %v26961_v22  ;;  %v6848_v29 = vmul.f32 %v30151_v21, %v26903_v1  ;;  %v6849_v48 = vmul.f32 %v30157_v60, %v16308_v32  ;;  %v30172_v21 = vmov %v30144_v59  ;;  %v30192_v32 = vld [vmem:[#allocation262_spill] sm:$0xff]  ;;  %v30233_v23 = vld [vmem:[#allocation271_spill] sm:$0xff] (%p26987_p6) }
0x13f1   : >> { %v30147_v15 = vmov %v26963_v54  ;;  %v30169_v22 = vmov %v30146_v26  ;;  %v30173_v60 = vmov %v30138_v2  ;;  %v30175_v24 = vmov %v30139_v9  ;;  %v30230_v43 = vld [vmem:[#allocation270_spill] sm:$0xff] (%p26987_p6) }
0x13f2   : >> { %30171 = vst [vmem:[#allocation23_spill] sm:$0xff] %v30147_v15  ;;  %v30219_v58 = vmov (%p26987_p6), %v30142_v45  ;;  %v30221_v16 = vmov (%p26987_p6), %v30144_v59  ;;  %v30238_v59 = vld [vmem:[#allocation263_spill] sm:$0xff] (%p26987_p6)  ;;  %v30242_v45 = vld [vmem:[#allocation262_spill] sm:$0xff] (%p26987_p6) }
0x13f3   : >> { %v11183_v30 = vpop.f32.mrb[8].mxu1  ;;  %30239 = vst [vmem:[#allocation23_spill] sm:$0xff] (%p26987_p6), %v30238_v59 }
0x13f4   : >> { %v26968_v62 = vadd.f32 %v11183_v30, %v6847_v35   ;;  %v6927_v61 = vpop.f32.mrb[9].mxu1  ;;  %v30181_v30 = vld [vmem:[#allocation270_spill] sm:$0xff] }
0x13f5   : >> { %v26972_v7 = vadd.f32 %v6927_v61, %v6845_v0   ;;  %v11184_v44 = vpop.f32.mrb[10].mxu1  ;;  %v30197_v61 = vld [vmem:[#allocation257_spill] sm:$0xff]  ;;  %v30199_v0 = vld [vmem:[#allocation255_spill] sm:$0xff] }
0x13f6   : >> { %v30150_v27 = vmov %v26968_v62  ;;  %v26975_v39 = vadd.f32 %v11184_v44, %v6848_v29   ;;  %v6930_v3 = vpop.f32.mrb[11].mxu1  ;;  %v30184_v62 = vld [vmem:[#allocation271_spill] sm:$0xff]  ;;  %v30201_v29 = vld [vmem:[#allocation253_spill] sm:$0xff]  ;;  %v30222_v61 = vmov (%p26987_p6), %v30138_v2  ;;  %v30224_v0 = vmov (%p26987_p6), %v30139_v9  ;;  %v30241_v2 = vld [vmem:[#allocation264_spill] sm:$0xff] (%p26987_p6) }
0x13f7   : >> { %v30152_v8 = vmov %v26972_v7  ;;  %v26977_v41 = vadd.f32 %v6930_v3, %v6846_v40   ;;  %v30180_v3 = vld [vmem:[#allocation273_spill] sm:$0xff]  ;;  %v30183_v40 = vld [vmem:[#allocation272_spill] sm:$0xff]  ;;  %v30226_v29 = vmov (%p26987_p6), %v30132_v19 }
0x13f8   : >> { %v30154_v13 = vmov %v26975_v39  ;;  %v30168_v7 = vmov %v30152_v8  ;;  %v30176_v39 = vmov %v30136_v36  ;;  %v30217_v32 = vmov (%p26987_p6), %v30152_v8  ;;  %v30237_v8 = vld [vmem:[#allocation267_spill] sm:$0xff] (%p26987_p6) }
0x13f9   : >> { %v30155_v25 = vmov %v26977_v41  ;;  %v30165_v10 = vmov %v30154_v13  ;;  %v30214_v51 = vmov (%p26987_p6), %v30154_v13  ;;  %v30240_v13 = vld [vmem:[#allocation261_spill] sm:$0xff] (%p26987_p6) }
0x13fa   : >> { %v30167_v41 = vmov %v30155_v25  ;;  %v30216_v5 = vmov (%p26987_p6), %v30155_v25  ;;  %v30235_v25 = vld [vmem:[#allocation265_spill] sm:$0xff] (%p26987_p6) }
0x13fb   : >> { %v11187_v38 = vpop.f32.mrb[12].mxu1  ;;  %6377 = sbr.rel (!%p26987_p6) target bundleno = 4428 (0x114c), region = 204 }
0x13fc   : >> { %v6972_v42 = vadd.f32 %v11187_v38, %v6851_v31   ;;  %v6943_v33 = vpop.f32.mrb[13].mxu1  ;;  %v30179_v38 = vld [vmem:[#allocation274_spill] sm:$0xff] }
0x13fd   : >> { %v6970_v46 = vadd.f32 %v6943_v33, %v6849_v48   ;;  %v11188_v1 = vpop.f32.mrb[14].mxu1  ;;  %v30186_v48 = vld [vmem:[#allocation265_spill] sm:$0xff] }
0x13fe   : >> { %v6973_v55 = vadd.f32 %v11188_v1, %v6852_v56   ;;  %v6946_v12 = vpop.f32.mrb[15].mxu1  ;;  %v30162_v31 = vmov %v6972_v42  ;;  %v30166_v1 = vmov %v30150_v27  ;;  %v30190_v33 = vld [vmem:[#allocation261_spill] sm:$0xff]  ;;  %v30203_v56 = vmov %v30107_v20  ;;  %v30206_v20 = vld [vmem:[#allocation246_spill] sm:$0xff] }
0x13ff   : >> { %v6971_v17 = vadd.f32 %v6946_v12, %v6850_v63   ;;  %v30164_v44 = vmov %v6970_v46  ;;  %v30177_v63 = vmov %v30132_v19  ;;  %v30193_v12 = vmov %v30096_v53  ;;  %v30195_v53 = vld [vmem:[#allocation259_spill] sm:$0xff]  ;;  %v30228_v56 = vld [vmem:[#allocation274_spill] sm:$0xff] (%p26987_p6)  ;;  %v30231_v20 = vld [vmem:[#allocation269_spill] sm:$0xff] (%p26987_p6) }
0x1400   : >> { %v30161_v35 = vmov %v6973_v55  ;;  %v30210_v6 = vmov (%p26987_p6), %v6973_v55  ;;  %v30211_v48 = vmov (%p26987_p6), %v6972_v42  ;;  %v30213_v34 = vmov (%p26987_p6), %v6970_v46  ;;  %v30234_v19 = vld [vmem:[#allocation266_spill] sm:$0xff] (%p26987_p6) }
0x1401   : >> { %v30163_v54 = vmov %v6971_v17  ;;  %v30212_v47 = vmov (%p26987_p6), %v6971_v17  ;;  %v30215_v33 = vmov (%p26987_p6), %v30150_v27  ;;  %v30218_v12 = vmov (%p26987_p6), %v30146_v26 }
0x1402   : > { %v30220_v53 = vmov %v30147_v15  ;;  %v30236_v15 = vld [vmem:[#allocation268_spill] sm:$0xff] }
0x1403 PF: > { %v30244_v42 = vld [vmem:[#allocation23_spill] sm:$0xff]  ;;  %16315 = vrcp.f32 %v20236_v45  ;;  %v27285_v46 = vld [vmem:[#allocation2 + $0x40] sm:$0xff]  ;;  %v27287_v17 = vld [vmem:[#allocation2 + $0x58] sm:$0xff]  ;;  %v27317_v31 = vmov 0.0   ;;  %v27319_v38 = vmov 0.0   ;;  %v27323_v60 = vmov 0.0   ;;  %v20236_v45 = vphi %v26309_v45, %v30242_v45   ;;  %v20232_v2 = vphi %v26307_v2, %v30241_v2   ;;  %v20228_v13 = vphi %v26305_v13, %v30240_v13   ;;  %v20220_v8 = vphi %v26301_v8, %v30237_v8   ;;  %v20216_v15 = vphi %v26299_v15, %v30236_v15   ;;  %v20212_v25 = vphi %v26297_v25, %v30235_v25   ;;  %v20208_v19 = vphi %v26295_v19, %v30234_v19   ;;  %v20204_v23 = vphi %v26293_v23, %v30233_v23   ;;  %v20200_v11 = vphi %v26291_v11, %v30232_v11   ;;  %v20196_v20 = vphi %v26289_v20, %v30231_v20   ;;  %v20192_v43 = vphi %v26287_v43, %v30230_v43   ;;  %v20188_v50 = vphi %v26285_v50, %v30229_v50   ;;  %v20184_v56 = vphi %v26283_v56, %v30228_v56   ;;  %v20180_v4 = vphi %v26281_v4, %v30227_v4   ;;  %v20176_v29 = vphi %v26279_v29, %v30226_v29   ;;  %v20172_v18 = vphi %v26277_v18, %v30225_v18   ;;  %v20168_v0 = vphi %v26275_v0, %v30224_v0   ;;  %v20164_v14 = vphi %v26273_v14, %v30223_v14   ;;  %v20160_v61 = vphi %v26271_v61, %v30222_v61   ;;  %v20156_v16 = vphi %v26269_v16, %v30221_v16   ;;  %v20152_v53 = vphi %v26267_v53, %v30220_v53   ;;  %v20148_v58 = vphi %v26265_v58, %v30219_v58   ;;  %v20144_v12 = vphi %v26263_v12, %v30218_v12   ;;  %v20140_v32 = vphi %v26261_v32, %v30217_v32   ;;  %v20136_v5 = vphi %v26259_v5, %v30216_v5   ;;  %v20132_v33 = vphi %v26257_v33, %v30215_v33   ;;  %v20128_v51 = vphi %v26255_v51, %v30214_v51   ;;  %v20124_v34 = vphi %v26253_v34, %v30213_v34   ;;  %v20120_v47 = vphi %v26251_v47, %v30212_v47   ;;  %v20116_v48 = vphi %v26249_v48, %v30211_v48   ;;  %v20112_v6 = vphi %v26247_v6, %v30210_v6  }
0x1404   : > { %v27281_v26 = vld [vmem:[#allocation2 + $0x10] sm:$0xff]  ;;  %v27283_v27 = vld [vmem:[#allocation2 + $0x28] sm:$0xff]  ;;  %30247 = vst [vmem:[#allocation16_spill] sm:$0xff] %v27285_v46  ;;  %16317 = vrcp.f32 %v20232_v2  ;;  %30248 = vst [vmem:[#allocation17_spill] sm:$0xff] %v27287_v17  ;;  %v27331_v37 = vmov 0.0   ;;  %v27335_v1 = vmov 0.0  }
0x1405   : > { %30245 = vst [vmem:[#allocation14_spill] sm:$0xff] %v27281_v26  ;;  %30246 = vst [vmem:[#allocation15_spill] sm:$0xff] %v27283_v27  ;;  %v27289_v55 = vld [vmem:[#allocation2 + $0x70] sm:$0xff]  ;;  %v27291_v57 = vld [vmem:[#allocation2 + $0x88] sm:$0xff]  ;;  %16319 = vrcp.f32 %v20228_v13  ;;  %v27339_v63 = vmov 0.0   ;;  %v27343_v59 = vmov 0.0  }
0x1406   : > { %30249 = vst [vmem:[#allocation18_spill] sm:$0xff] %v27289_v55  ;;  %30250 = vst [vmem:[#allocation19_spill] sm:$0xff] %v27291_v57  ;;  %v27293_v36 = vld [vmem:[#allocation2 + $0xa0] sm:$0xff]  ;;  %v27295_v9 = vld [vmem:[#allocation2 + $0xb8] sm:$0xff]  ;;  %16321 = vrcp.f32 %v30244_v42  ;;  %v27345_v42 = vmov 0.0  }
0x1407   : > { %30251 = vst [vmem:[#allocation22_spill] sm:$0xff] %v27293_v36  ;;  %30252 = vst [vmem:[#allocation132_spill] sm:$0xff] %v27295_v9  ;;  %16323 = vrcp.f32 %v20220_v8 }
0x1408   : > { %16325 = vrcp.f32 %v20216_v15 }
0x1409   : > { %16327 = vrcp.f32 %v20212_v25 }
0x140a   : > { %16329 = vrcp.f32 %v20208_v19 }
0x140b   : > { %16331 = vrcp.f32 %v20204_v23 }
0x140c   : > { %16333 = vrcp.f32 %v20200_v11 }
0x140d   : > { %v16316_v45 = vpop.eup %16315  ;;  %16335 = vrcp.f32 %v20196_v20 }
0x140e   : > { %v16318_v2 = vpop.eup %16317  ;;  %v6990_v41 = vmul.f32 %v20172_v18, %v16316_v45  ;;  %16337 = vrcp.f32 %v20192_v43  ;;  %v27347_v45 = vmov 0.0  }
0x140f   : > { %v16320_v10 = vpop.eup %16319  ;;  %v6991_v22 = vmul.f32 %v20168_v0, %v16318_v2  ;;  %16339 = vrcp.f32 %v20188_v50  ;;  %v27349_v2 = vmov 0.0  }
0x1410   : > { %v16322_v13 = vpop.eup %16321  ;;  %v6992_v7 = vmul.f32 %v20164_v14, %v16320_v10  ;;  %16341 = vrcp.f32 %v20184_v56  ;;  %v27333_v56 = vmov 0.0   ;;  %v27353_v10 = vmov 0.0  }
0x1411   : > { %v16324_v49 = vpop.eup %16323  ;;  %v7006_v52 = vpack.c.bf16 %v6991_v22, %v6990_v41  ;;  %v6993_v24 = vmul.f32 %v20160_v61, %v16322_v13  ;;  %16343 = vrcp.f32 %v20180_v4  ;;  %v27351_v41 = vmov 0.0  }
0x1412   : > { %v16326_v15 = vpop.eup %16325  ;;  %v6994_v8 = vmul.f32 %v20156_v16, %v16324_v49  ;;  %16345 = vrcp.f32 %v20176_v29  ;;  %v27355_v22 = vmov 0.0   ;;  %v27357_v13 = vmov 0.0  }
0x1413   : > { %v16328_v25 = vpop.eup %16327  ;;  %7014 = vst.msk [vmem:[#allocation5 + $0x10] sm:$0xff] %vm4156_vm1, %v7006_v52  ;;  %v7007_v19 = vpack.c.bf16 %v6993_v24, %v6992_v7  ;;  %v6995_v20 = vmul.f32 %v20152_v53, %v16326_v15  ;;  %v27359_v7 = vmov 0.0   ;;  %v27361_v49 = vmov 0.0  }
0x1414   : > { %v16330_v11 = vpop.eup %16329  ;;  %v6996_v23 = vmul.f32 %v20148_v58, %v16328_v25  ;;  %v27337_v58 = vmov 0.0   ;;  %v27363_v52 = vmov 0.0   ;;  %v27365_v24 = vmov 0.0  }
0x1415   : > { %v16332_v43 = vpop.eup %16331  ;;  %7015 = vst.msk [vmem:[#allocation5 + $0x28] sm:$0xff] %vm4156_vm1, %v7007_v19  ;;  %v7008_v14 = vpack.c.bf16 %v6995_v20, %v6994_v8  ;;  %v6997_v18 = vmul.f32 %v20144_v12, %v16330_v11  ;;  %v27341_v12 = vmov 0.0   ;;  %v27367_v15 = vmov 0.0  }
0x1416   : > { %v16334_v54 = vpop.eup %16333  ;;  %v6998_v4 = vmul.f32 %v20140_v32, %v16332_v43  ;;  %v27369_v8 = vmov 0.0   ;;  %v27371_v25 = vmov 0.0   ;;  %v27373_v19 = vmov 0.0  }
0x1417   : > { %v16336_v35 = vpop.eup %16335  ;;  %7016 = vst.msk [vmem:[#allocation5 + $0x40] sm:$0xff] %vm4156_vm1, %v7008_v14  ;;  %v7009_v30 = vpack.c.bf16 %v6997_v18, %v6996_v23  ;;  %v6999_v28 = vmul.f32 %v20136_v5, %v16334_v54  ;;  %v27375_v20 = vmov 0.0   ;;  %v27377_v11 = vmov 0.0  }
0x1418   : > { %v16338_v0 = vpop.eup %16337  ;;  %v7000_v53 = vmul.f32 %v20132_v33, %v16336_v35  ;;  %v27327_v33 = vmov 0.0  }
0x1419   : > { %v16340_v62 = vpop.eup %16339  ;;  %7017 = vst.msk [vmem:[#allocation5 + $0x58] sm:$0xff] %vm4156_vm1, %v7009_v30  ;;  %v7010_v61 = vpack.c.bf16 %v6999_v28, %v6998_v4  ;;  %v7001_v21 = vmul.f32 %v20128_v51, %v16338_v0 }
0x141a   : > { %v16342_v29 = vpop.eup %16341  ;;  %v7002_v44 = vmul.f32 %v20124_v34, %v16340_v62  ;;  %v27315_v34 = vmov 0.0  }
0x141b   : > { %v16344_v16 = vpop.eup %16343  ;;  %7018 = vst.msk [vmem:[#allocation5 + $0x70] sm:$0xff] %vm4156_vm1, %v7010_v61  ;;  %v7011_v32 = vpack.c.bf16 %v7001_v21, %v7000_v53  ;;  %v7003_v40 = vmul.f32 %v20120_v47, %v16342_v29  ;;  %v27321_v47 = vmov 0.0   ;;  %9677 = sbr.rel (%p9923_p8) target bundleno = 5993 (0x1769), region = 209 }
0x141c   : > { %v16346_v39 = vpop.eup %16345  ;;  %v7004_v5 = vmul.f32 %v20116_v48, %v16344_v16  ;;  %v27325_v48 = vmov 0.0  }
0x141d   : > { %7019 = vst.msk [vmem:[#allocation5 + $0x88] sm:$0xff] %vm4156_vm1, %v7011_v32  ;;  %v7012_v3 = vpack.c.bf16 %v7003_v40, %v7002_v44  ;;  %v7005_v50 = vmul.f32 %v20112_v6, %v16346_v39  ;;  %v27329_v6 = vmov 0.0  }
0x141f   : > { %7020 = vst.msk [vmem:[#allocation5 + $0xa0] sm:$0xff] %vm4156_vm1, %v7012_v3  ;;  %v7013_v51 = vpack.c.bf16 %v7005_v50, %v7004_v5 }
0x1421   : > { %7021 = vst.msk [vmem:[#allocation5 + $0xb8] sm:$0xff] %vm4156_vm1, %v7013_v51 }
0x1422   : > { %v27381_v23 = vmov 0.0   ;;  %v27383_v43 = vmov 0.0   ;;  %v27385_v14 = vmov 0.0   ;;  %v27387_v18 = vmov 0.0   ;;  %s27477_s7 = smov 0  }
0x1423   : > { %v27389_v54 = vmov 0.0   ;;  %v27391_v4 = vmov 0.0   ;;  %v27393_v35 = vmov 0.0   ;;  %v27395_v30 = vmov 0.0  }
0x1424   : > { %30253 = vst [vmem:[#allocation276_spill] sm:$0xff] %v27389_v54  ;;  %v27397_v28 = vmov 0.0   ;;  %v27399_v0 = vmov 0.0   ;;  %v27401_v53 = vmov 0.0   ;;  %v27403_v62 = vmov 0.0  }
0x1425   : > { %v27405_v61 = vmov 0.0   ;;  %v27407_v21 = vmov 0.0   ;;  %v27409_v29 = vmov 0.0   ;;  %v27411_v44 = vmov 0.0  }
0x1426   : > { %v27413_v16 = vmov 0.0   ;;  %v27415_v32 = vmov 0.0   ;;  %v27417_v40 = vmov 0.0   ;;  %v27419_v39 = vmov 0.0  }
0x1427   : > { %v27421_v5 = vmov 0.0   ;;  %v27423_v3 = vmov 0.0   ;;  %v27425_v50 = vmov 0.0   ;;  %v27427_v51 = vmov 0.0  }
0x1428   : > { %v27429_v34 = vmov 0.0   ;;  %v27431_v31 = vmov 0.0   ;;  %v27433_v38 = vmov 0.0   ;;  %v27435_v47 = vmov 0.0  }
0x1429   : > { %v27437_v60 = vmov 0.0   ;;  %v27439_v48 = vmov 0.0   ;;  %v27441_v33 = vmov 0.0   ;;  %v27443_v6 = vmov 0.0  }
0x142a   : > { %v27445_v37 = vmov -1e+30   ;;  %v27447_v56 = vmov -1e+30   ;;  %v27449_v1 = vmov -1e+30  }
0x142b   : > { %v27451_v58 = vmov -1e+30   ;;  %v27453_v63 = vmov -1e+30   ;;  %v27455_v12 = vmov -1e+30  }
0x142c   : > { %v27457_v59 = vmov -1e+30   ;;  %v27459_v42 = vmov -1e+30   ;;  %v27461_v45 = vmov -1e+30  }
0x142d   : > { %v27463_v2 = vmov -1e+30   ;;  %v27465_v41 = vmov -1e+30   ;;  %v27467_v10 = vmov -1e+30  }
0x142e   : > { %v27469_v22 = vmov -1e+30   ;;  %v27471_v13 = vmov -1e+30   ;;  %v27473_v7 = vmov -1e+30  }
0x142f   : > { %v27475_v49 = vmov -1e+30  }
0x1430 LB: >> { %30255 = vst [vmem:[#allocation277_spill] sm:$0xff] %v20240_v23  ;;  %30256 = vst [vmem:[#allocation278_spill] sm:$0xff] %v20244_v43  ;;  %v30259_v54 = vld [vmem:[#allocation276_spill] sm:$0xff]  ;;  %s10157_s8 = sshll.u32 %s20432_s7, 7  ;;  %s20568_s20 = smov 64   ;;  %v30274_v26 = vld [vmem:[#allocation14_spill] sm:$0xff]  ;;  %s20432_s7 = sphi %s27477_s7, %s30442_s7   ;;  %v20428_v49 = vphi %v27475_v49, %v30441_v49   ;;  %v20424_v7 = vphi %v27473_v7, %v30440_v7   ;;  %v20420_v13 = vphi %v27471_v13, %v30439_v13   ;;  %v20416_v22 = vphi %v27469_v22, %v30438_v22   ;;  %v20412_v10 = vphi %v27467_v10, %v30437_v10   ;;  %v20408_v41 = vphi %v27465_v41, %v30436_v41   ;;  %v20404_v2 = vphi %v27463_v2, %v30435_v2   ;;  %v20400_v45 = vphi %v27461_v45, %v30434_v45   ;;  %v20396_v42 = vphi %v27459_v42, %v30433_v42   ;;  %v20392_v59 = vphi %v27457_v59, %v30432_v59   ;;  %v20388_v12 = vphi %v27455_v12, %v30431_v12   ;;  %v20384_v63 = vphi %v27453_v63, %v30430_v63   ;;  %v20380_v58 = vphi %v27451_v58, %v30429_v58   ;;  %v20376_v1 = vphi %v27449_v1, %v30428_v1   ;;  %v20372_v56 = vphi %v27447_v56, %v30427_v56   ;;  %v20368_v37 = vphi %v27445_v37, %v30426_v37   ;;  %v20364_v6 = vphi %v27443_v6, %v30425_v6   ;;  %v20360_v33 = vphi %v27441_v33, %v30424_v33   ;;  %v20356_v48 = vphi %v27439_v48, %v30423_v48   ;;  %v20352_v60 = vphi %v27437_v60, %v30422_v60   ;;  %v20348_v47 = vphi %v27435_v47, %v30421_v47   ;;  %v20344_v38 = vphi %v27433_v38, %v30420_v38   ;;  %v20340_v31 = vphi %v27431_v31, %v30419_v31   ;;  %v20336_v34 = vphi %v27429_v34, %v30418_v34   ;;  %v20332_v51 = vphi %v27427_v51, %v30417_v51   ;;  %v20328_v50 = vphi %v27425_v50, %v30416_v50   ;;  %v20324_v3 = vphi %v27423_v3, %v30415_v3   ;;  %v20320_v5 = vphi %v27421_v5, %v30414_v5   ;;  %v20316_v39 = vphi %v27419_v39, %v30413_v39   ;;  %v20312_v40 = vphi %v27417_v40, %v30412_v40   ;;  %v20308_v32 = vphi %v27415_v32, %v30411_v32   ;;  %v20304_v16 = vphi %v27413_v16, %v30410_v16   ;;  %v20300_v44 = vphi %v27411_v44, %v30409_v44   ;;  %v20296_v29 = vphi %v27409_v29, %v30408_v29   ;;  %v20292_v21 = vphi %v27407_v21, %v30407_v21   ;;  %v20288_v61 = vphi %v27405_v61, %v30406_v61   ;;  %v20284_v62 = vphi %v27403_v62, %v30405_v62   ;;  %v20280_v53 = vphi %v27401_v53, %v30404_v53   ;;  %v20276_v0 = vphi %v27399_v0, %v30403_v0   ;;  %v20272_v28 = vphi %v27397_v28, %v30402_v28   ;;  %v20268_v30 = vphi %v27395_v30, %v30401_v30   ;;  %v20264_v35 = vphi %v27393_v35, %v30400_v35   ;;  %v20260_v4 = vphi %v27391_v4, %v30399_v4   ;;  %v20252_v18 = vphi %v27387_v18, %v30397_v18   ;;  %v20248_v14 = vphi %v27385_v14, %v30396_v14   ;;  %v20244_v43 = vphi %v27383_v43, %v30395_v43   ;;  %v20240_v23 = vphi %v27381_v23, %v30394_v23  }
0x1431   : >> { %30257 = vst [vmem:[#allocation279_spill] sm:$0xff] %v20248_v14  ;;  %30258 = vst [vmem:[#allocation280_spill] sm:$0xff] %v20252_v18  ;;  %s7085_s19 = sshra.s32 %s10157_s8, 4  ;;  %v30275_v27 = vld [vmem:[#allocation15_spill] sm:$0xff]  ;;  %v30276_v46 = vld [vmem:[#allocation16_spill] sm:$0xff]  ;;  %s7033_s30 = sadd.s32 1, %s20432_s7  }
0x1432   : >> { %30260 = vst [vmem:[#allocation276_spill] sm:$0xff] %v30259_v54  ;;  %30261 = vst [vmem:[#allocation281_spill] sm:$0xff] %v20260_v4  ;;  %s10259_s10 = smul.u32 24, %s7085_s19  ;;  %v30277_v17 = vld [vmem:[#allocation17_spill] sm:$0xff]  ;;  %v30278_v55 = vld [vmem:[#allocation18_spill] sm:$0xff]  ;;  %p28058_p7 = scmp.ge.s32.totalorder %s7033_s30, %s20718_s29 }
0x1433   : >> { %30262 = vst [vmem:[#allocation282_spill] sm:$0xff] %v20264_v35  ;;  %30263 = vst [vmem:[#allocation283_spill] sm:$0xff] %v20268_v30  ;;  %v30279_v57 = vld [vmem:[#allocation19_spill] sm:$0xff]  ;;  %v30280_v36 = vld [vmem:[#allocation22_spill] sm:$0xff]  ;;  %s30442_s7 = smov %s7033_s30 }
0x1434   : >> { %30264 = vst [vmem:[#allocation284_spill] sm:$0xff] %v20272_v28  ;;  %30265 = vst [vmem:[#allocation285_spill] sm:$0xff] %v20276_v0  ;;  %s7089_s15 = scalar_lea.vmem [#allocation3], %s10259_s10  ;;  %v30281_v9 = vld [vmem:[#allocation132_spill] sm:$0xff]  ;;  %s27653_s18 = scalar_lea.vmem [#allocation4], %s10259_s10 }
0x1435   : >> { %30266 = vst [vmem:[#allocation286_spill] sm:$0xff] %v20280_v53  ;;  %30267 = vst [vmem:[#allocation287_spill] sm:$0xff] %v20284_v62  ;;  %v7090_v52 = vld [vmem:[%s7089_s15 + $0x10] sm:$0xff]  ;;  %v7092_v24 = vld [vmem:[%s7089_s15 + $0x40] sm:$0xff] }
0x1436   : >> { %30268 = vst [vmem:[#allocation288_spill] sm:$0xff] %v20288_v61  ;;  %30269 = vst [vmem:[#allocation289_spill] sm:$0xff] %v20292_v21  ;;  %7140 = vrot.lane.b32.xlu0 %v7090_v52, %s20568_s20  ;;  %7144 = vrot.lane.b32.xlu1 %v7092_v24, %s20568_s20  ;;  %v7091_v15 = vld [vmem:[%s7089_s15 + $0x28] sm:$0xff]  ;;  %v7093_v8 = vld [vmem:[%s7089_s15 + $0x58] sm:$0xff] }
0x1437   : >> { %30270 = vst [vmem:[#allocation290_spill] sm:$0xff] %v20296_v29  ;;  %30271 = vst [vmem:[#allocation291_spill] sm:$0xff] %v20300_v44  ;;  %v7094_v25 = vld [vmem:[%s7089_s15 + $0x70] sm:$0xff]  ;;  %v7095_v19 = vld [vmem:[%s7089_s15 + $0x88] sm:$0xff] }
0x1438   : >> { %30272 = vst [vmem:[#allocation292_spill] sm:$0xff] %v20304_v16  ;;  %30273 = vst [vmem:[#allocation293_spill] sm:$0xff] %v20408_v41  ;;  %v7096_v20 = vld [vmem:[%s7089_s15 + $0xa0] sm:$0xff]  ;;  %v7097_v11 = vld [vmem:[%s7089_s15 + $0xb8] sm:$0xff] }
0x1439   : >> { %v7100_v52 = vld [vmem:[%s27653_s18 + $0x10] sm:$0xff]  ;;  %v7101_v24 = vld [vmem:[%s27653_s18 + $0x28] sm:$0xff] }
0x143a   : >> { %7142 = vrot.lane.b32.xlu0 %v7091_v15, %s20568_s20  ;;  %7146 = vrot.lane.b32.xlu1 %v7093_v8, %s20568_s20  ;;  %v7102_v15 = vld [vmem:[%s27653_s18 + $0x40] sm:$0xff]  ;;  %v7103_v8 = vld [vmem:[%s27653_s18 + $0x58] sm:$0xff] }
0x143e   : >> { %7148 = vrot.lane.b32.xlu0 %v7094_v25, %s20568_s20  ;;  %7150 = vrot.lane.b32.xlu1 %v7095_v19, %s20568_s20  ;;  %v7104_v25 = vld [vmem:[%s27653_s18 + $0x70] sm:$0xff]  ;;  %v7105_v19 = vld [vmem:[%s27653_s18 + $0x88] sm:$0xff] }
0x1442   : >> { %7152 = vrot.lane.b32.xlu0 %v7096_v20, %s20568_s20  ;;  %7154 = vrot.lane.b32.xlu1 %v7097_v11, %s20568_s20 }
0x1446   : >> { %7116 = vrot.lane.b32.xlu0 %v30274_v26, %s20568_s20  ;;  %7118 = vrot.lane.b32.xlu1 %v30275_v27, %s20568_s20  ;;  %v30285_v26 = vld [vmem:[#allocation27_spill] sm:$0xff] }
0x144a   : >> { %7120 = vrot.lane.b32.xlu0 %v30276_v46, %s20568_s20  ;;  %7122 = vrot.lane.b32.xlu1 %v30277_v17, %s20568_s20 }
0x144e   : >> { %7124 = vrot.lane.b32.xlu0 %v30278_v55, %s20568_s20  ;;  %7126 = vrot.lane.b32.xlu1 %v30279_v57, %s20568_s20 }
0x1452   : >> { %7128 = vrot.lane.b32.xlu0 %v30280_v36, %s20568_s20  ;;  %7130 = vrot.lane.b32.xlu1 %v30281_v9, %s20568_s20 }
0x1456   : >> { %7575 = vrot.lane.b32.xlu1 %v7100_v52, %s20568_s20  ;;  %7577 = vrot.lane.b32.xlu0 %v7101_v24, %s20568_s20 }
0x145a   : >> { %7579 = vrot.lane.b32.xlu1 %v7102_v15, %s20568_s20  ;;  %7581 = vrot.lane.b32.xlu0 %v7103_v8, %s20568_s20 }
0x145e   : >> { %7583 = vrot.lane.b32.xlu1 %v7104_v25, %s20568_s20  ;;  %7585 = vrot.lane.b32.xlu0 %v7105_v19, %s20568_s20 }
0x14a8   : >> { %v7141_v20 = vpop.permute.xlu0 %7140  ;;  %v7145_v15 = vpop.permute.xlu1 %7144 }
0x14a9   : >> { %11517 = vmatprep.subr.msk.bf16.mxu0 %vm4156_vm1, %v7141_v20  ;;  %v7181_v11 = vsel %vm4156_vm1, %v7141_v20, 0  ;;  %v7187_v25 = vsel %vm4156_vm1, %v7145_v15, 0 }
0x14aa   : >> { %11190 = vmatpush3.bf16.xpose.msra.mxu0 %v7181_v11 }
0x14ac   : >> { %v7143_v52 = vpop.permute.xlu0 %7142  ;;  %v7147_v19 = vpop.permute.xlu1 %7146 }
0x14ad   : >> { %11518 = vmatprep.subr.msk.bf16.mxu0 %vm4156_vm1, %v7143_v52  ;;  %v7184_v24 = vsel %vm4156_vm1, %v7143_v52, 0  ;;  %v7190_v20 = vsel %vm4156_vm1, %v7147_v19, 0 }
0x14b0   : >> { %v7149_v9 = vpop.permute.xlu0 %7148  ;;  %v7151_v52 = vpop.permute.xlu1 %7150 }
0x14b1   : >> { %v7193_v11 = vsel %vm4156_vm1, %v7149_v9, 0 }
0x14b2   : >> { %11192 = vmatpush3.bf16.xpose.msra.mxu0 %v7184_v24  ;;  %v7196_v24 = vsel %vm4156_vm1, %v7151_v52, 0 }
0x14b3   : >> { %11519 = vmatprep.subr.msk.bf16.mxu0 %vm4156_vm1, %v7145_v15 }
0x14b4   : >> { %v7153_v8 = vpop.permute.xlu0 %7152  ;;  %v7155_v15 = vpop.permute.xlu1 %7154 }
0x14b8   : >> { %v7117_v17 = vpop.permute.xlu0 %7116 }
0x14b9   : >> { %11205 = vmatprep.mubr.msk.bf16.mxu0 %vm4156_vm1, %v7117_v17  ;;  %v7199_v17 = vsel %vm4156_vm1, %v7153_v8, 0 }
0x14ba   : >> { %11194 = vmatpush3.bf16.xpose.msra.mxu0 %v7187_v25  ;;  %v7202_v25 = vsel %vm4156_vm1, %v7155_v15, 0 }
0x14bb   : >> { %11520 = vmatprep.subr.msk.bf16.mxu0 %vm4156_vm1, %v7147_v19  ;;  %v7119_v19 = vpop.permute.xlu1 %7118 }
0x14c2   : >> { %11196 = vmatpush3.bf16.xpose.msra.mxu0 %v7190_v20  ;;  %v7123_v20 = vpop.permute.xlu1 %7122 }
0x14c3   : >> { %11521 = vmatprep.subr.msk.bf16.mxu0 %vm4156_vm1, %v7149_v9  ;;  %v7121_v9 = vpop.permute.xlu0 %7120 }
0x14ca   : >> { %11198 = vmatpush3.bf16.xpose.msra.mxu0 %v7193_v11  ;;  %v7125_v11 = vpop.permute.xlu0 %7124 }
0x14cb   : >> { %11522 = vmatprep.subr.msk.bf16.mxu0 %vm4156_vm1, %v7151_v52 }
0x14ce   : >> { %v7129_v52 = vpop.permute.xlu0 %7128 }
0x14d2   : >> { %11200 = vmatpush3.bf16.xpose.msra.mxu0 %v7196_v24 }
0x14d3   : >> { %11523 = vmatprep.subr.msk.bf16.mxu0 %vm4156_vm1, %v7153_v8  ;;  %v7127_v8 = vpop.permute.xlu1 %7126 }
0x14d7   : >> { %v7131_v24 = vpop.permute.xlu1 %7130 }
0x14da   : >> { %11202 = vmatpush3.bf16.xpose.msra.mxu0 %v7199_v17 }
0x14db   : >> { %11524 = vmatprep.subr.msk.bf16.mxu0 %vm4156_vm1, %v7155_v15  ;;  %v7576_v17 = vpop.permute.xlu1 %7575  ;;  %v7578_v15 = vpop.permute.xlu0 %7577 }
0x14dc   : >> { %11221 = vmatprep.subr.bf16.mxu1 %v7576_v17 }
0x14dd   : >> { %11222 = vmatpush3.bf16.msra.mxu1 %v7576_v17  ;;  %v30284_v17 = vld [vmem:[#allocation24_spill] sm:$0xff] }
0x14de   : >> { %11223 = vmatprep.subr.bf16.mxu1 %v7578_v15 }
0x14e1   : >> { %11224 = vmatpush3.bf16.msra.mxu1 %v7578_v15 }
0x14e2   : >> { %11204 = vmatpush3.bf16.xpose.msra.mxu0 %v7202_v25  ;;  %v7580_v25 = vpop.permute.xlu1 %7579 }
0x14e3   : >> { %11225 = vmatprep.subr.bf16.mxu1 %v7580_v25 }
0x14e5   : >> { %11226 = vmatpush3.bf16.msra.mxu1 %v7580_v25 }
0x14e9   : >> { %11206 = vmatmul.mubr.msk.bf16.vlgmr.msra.gmra.mrb[0].mxu0 %vm4156_vm1, %v7119_v19  ;;  %v7582_v19 = vpop.permute.xlu0 %7581 }
0x14ea   : >> { %11209 = vmatprep.mubr.msk.bf16.mxu0 %vm4156_vm1, %v7121_v9  ;;  %11227 = vmatprep.subr.bf16.mxu1 %v7582_v19  ;;  %v7584_v9 = vpop.permute.xlu1 %7583 }
0x14eb   : >> { %11228 = vmatpush3.bf16.msra.mxu1 %v7582_v19  ;;  %v30286_v19 = vld [vmem:[#allocation25_spill] sm:$0xff] }
0x14ec   : >> { %11229 = vmatprep.subr.bf16.mxu1 %v7584_v9 }
0x14ef   : >> { %11230 = vmatpush3.bf16.msra.mxu1 %v7584_v9 }
0x14f1   : >> { %11210 = vmatmul.mubr.msk.bf16.gmra.mrb[4].mxu0 %vm4156_vm1, %v7123_v20  ;;  %v7586_v20 = vpop.permute.xlu0 %7585 }
0x14f2   : >> { %11213 = vmatprep.mubr.msk.bf16.mxu0 %vm4156_vm1, %v7125_v11  ;;  %11231 = vmatprep.subr.bf16.mxu1 %v7586_v20  ;;  %v7301_v11 = vstv %s10157_s8 }
0x14f3   : >> { %11232 = vmatpush3.bf16.msra.mxu1 %v7586_v20 }
0x14f9   : >> { %11214 = vmatmul.mubr.msk.bf16.gmra.mrb[8].mxu0 %vm4156_vm1, %v7127_v8  ;;  %v30282_v8 = vld [vmem:[#allocation21_spill] sm:$0xff] }
0x14fa   : >> { %11217 = vmatprep.mubr.msk.bf16.mxu0 %vm4156_vm1, %v7129_v52  ;;  %v7302_v52 = vadd.s32 %v7301_v11, %v30282_v8  ;;  %v30288_v8 = vld [vmem:[#allocation28_spill] sm:$0xff] }
0x14fc   : >> { %vm7303_vm11 = vcmp.le.s32.totalorder %v7302_v52, %v30284_v17  ;;  %vm7306_vm12 = vcmp.le.s32.totalorder %v7302_v52, %v30285_v26  ;;  %vm7304_vm13 = vcmp.le.s32.totalorder %v7302_v52, %v30286_v19  ;;  %v30287_v26 = vld [vmem:[#allocation30_spill] sm:$0xff]  ;;  %vm7307_vm15 = vcmp.le.s32.totalorder %v7302_v52, %v30288_v8  ;;  %v30289_v17 = vld [vmem:[#allocation31_spill] sm:$0xff] }
0x14fd   : >> { %vm7309_vm14 = vcmp.le.s32.totalorder %v7302_v52, %v30287_v26  ;;  %vm7310_vm0 = vcmp.le.s32.totalorder %v7302_v52, %v30289_v17  ;;  %v30291_v8 = vld [vmem:[#allocation34_spill] sm:$0xff] }
0x14fe   : >> { %vm7313_vm4 = vcmp.le.s32.totalorder %v7302_v52, %v30291_v8 }
0x1501   : >> { %11218 = vmatmul.mubr.msk.bf16.gmra.mrb[12].mxu0 %vm4156_vm1, %v7131_v24  ;;  %v30283_v24 = vld [vmem:[#allocation26_spill] sm:$0xff] }
0x1502   : >> { %vm7305_vm10 = vcmp.le.s32.totalorder %v7302_v52, %v30283_v24 }
0x15bc   : >> { %v11207_v15 = vpop.f32.mrb[0].mxu0 }
0x15bd   : >> { %v7238_v25 = vpop.f32.mrb[1].mxu0  ;;  %v27697_v27 = vsel %vm7305_vm10, %v11207_v15, -1e+30 }
0x15be   : >> { %7339 = vmax.xlane.f32.xlu0 %v27697_v27  ;;  %v11208_v9 = vpop.f32.mrb[2].mxu0  ;;  %v27701_v20 = vsel %vm7303_vm11, %v7238_v25, -1e+30  ;;  %v30290_v25 = vld [vmem:[#allocation29_spill] sm:$0xff] }
0x15bf   : >> { %v7241_v36 = vpop.f32.mrb[3].mxu0  ;;  %v27703_v46 = vsel %vm7306_vm12, %v11208_v9, -1e+30  ;;  %vm7308_vm2 = vcmp.le.s32.totalorder %v7302_v52, %v30290_v25  ;;  %v30293_v25 = vld [vmem:[#allocation35_spill] sm:$0xff] }
0x15c0   : >> { %v27705_v11 = vsel %vm7304_vm13, %v7241_v36, -1e+30  ;;  %vm7314_vm6 = vcmp.le.s32.totalorder %v7302_v52, %v30293_v25 }
0x15c1   : >> { %7337 = vmax.xlane.f32.xlu1 %v27705_v11 }
0x15c2   : >> { %7335 = vmax.xlane.f32.xlu0 %v27701_v20 }
0x15c4   : >> { %v11211_v24 = vpop.f32.mrb[4].mxu0 }
0x15c5   : >> { %v7254_v15 = vpop.f32.mrb[5].mxu0  ;;  %v27712_v19 = vsel %vm7309_vm14, %v11211_v24, -1e+30  ;;  %v30292_v24 = vld [vmem:[#allocation32_spill] sm:$0xff] }
0x15c6   : >> { %7341 = vmax.xlane.f32.xlu0 %v27703_v46  ;;  %7347 = vmax.xlane.f32.xlu1 %v27712_v19  ;;  %v11212_v36 = vpop.f32.mrb[6].mxu0  ;;  %v27717_v9 = vsel %vm7307_vm15, %v7254_v15, -1e+30  ;;  %vm7311_vm5 = vcmp.le.s32.totalorder %v7302_v52, %v30292_v24  ;;  %v30294_v15 = vld [vmem:[#allocation33_spill] sm:$0xff]  ;;  %v30295_v24 = vld [vmem:[#allocation38_spill] sm:$0xff] }
0x15c7   : >> { %v7257_v55 = vpop.f32.mrb[7].mxu0  ;;  %v27719_v57 = vsel %vm7310_vm0, %v11212_v36, -1e+30  ;;  %vm7312_vm7 = vcmp.le.s32.totalorder %v7302_v52, %v30294_v15  ;;  %vm7317_vm8 = vcmp.le.s32.totalorder %v7302_v52, %v30295_v24  ;;  %v30297_v15 = vld [vmem:[#allocation39_spill] sm:$0xff] }
0x15c8   : >> { %v27721_v26 = vsel %vm7308_vm2, %v7257_v55, -1e+30  ;;  %vm7318_vm10 = vcmp.le.s32.totalorder %v7302_v52, %v30297_v15 }
0x15ca   : >> { %7343 = vmax.xlane.f32.xlu1 %v27717_v9  ;;  %7349 = vmax.xlane.f32.xlu0 %v27719_v57 }
0x15cc   : >> { %v11215_v17 = vpop.f32.mrb[8].mxu0 }
0x15cd   : >> { %v7270_v14 = vpop.f32.mrb[9].mxu0  ;;  %v27728_v23 = vsel %vm7313_vm4, %v11215_v17, -1e+30  ;;  %v30296_v17 = vld [vmem:[#allocation36_spill] sm:$0xff] }
0x15ce   : >> { %7345 = vmax.xlane.f32.xlu0 %v27721_v26  ;;  %7355 = vmax.xlane.f32.xlu1 %v27728_v23  ;;  %v11216_v55 = vpop.f32.mrb[10].mxu0  ;;  %v27733_v36 = vsel %vm7311_vm5, %v7270_v14, -1e+30  ;;  %vm7315_vm9 = vcmp.le.s32.totalorder %v7302_v52, %v30296_v17 }
0x15cf   : >> { %v7273_v18 = vpop.f32.mrb[11].mxu0  ;;  %v27735_v43 = vsel %vm7314_vm6, %v11216_v55, -1e+30  ;;  %v30298_v55 = vld [vmem:[#allocation37_spill] sm:$0xff] }
0x15d0   : >> { %v27737_v8 = vsel %vm7312_vm7, %v7273_v18, -1e+30  ;;  %vm7316_vm11 = vcmp.le.s32.totalorder %v7302_v52, %v30298_v55  ;;  %v7107_v52 = vld [vmem:[%s27653_s18 + $0xb8] sm:$0xff] }
0x15d2   : >> { %7351 = vmax.xlane.f32.xlu1 %v27733_v36  ;;  %7357 = vmax.xlane.f32.xlu0 %v27735_v43 }
0x15d4   : >> { %v11219_v25 = vpop.f32.mrb[12].mxu0 }
0x15d5   : >> { %v7286_v14 = vpop.f32.mrb[13].mxu0  ;;  %v27744_v35 = vsel %vm7317_vm8, %v11219_v25, -1e+30  ;;  %v7106_v25 = vld [vmem:[%s27653_s18 + $0xa0] sm:$0xff] }
0x15d6   : >> { %7353 = vmax.xlane.f32.xlu0 %v27737_v8  ;;  %7363 = vmax.xlane.f32.xlu1 %v27744_v35  ;;  %v11220_v18 = vpop.f32.mrb[14].mxu0  ;;  %v27749_v54 = vsel %vm7315_vm9, %v7286_v14, -1e+30 }
0x15d7   : >> { %v7289_v24 = vpop.f32.mrb[15].mxu0  ;;  %v27751_v30 = vsel %vm7318_vm10, %v11220_v18, -1e+30 }
0x15d8   : >> { %v27753_v17 = vsel %vm7316_vm11, %v7289_v24, -1e+30 }
0x15d9   : >> { %30299 = vst [vmem:[#allocation294_spill] sm:$0xff] %v27753_v17 }
0x15da   : >> { %7359 = vmax.xlane.f32.xlu1 %v27749_v54  ;;  %7365 = vmax.xlane.f32.xlu0 %v27751_v30 }
0x15de   : >> { %7361 = vmax.xlane.f32.xlu0 %v27753_v17 }
0x15eb   : >> { %7587 = vrot.lane.b32.xlu1 %v7106_v25, %s20568_s20 }
0x15f4   : >> { %7589 = vrot.lane.b32.xlu0 %v7107_v52, %s20568_s20 }
0x164b   : >> { %v7340_v15 = vpop.xlane.xlu0 %7339 }
0x164c   : >> { %v27763_v14 = vmax.f32 %v20420_v13, %v7340_v15  }
0x164e   : >> { %30300 = vst [vmem:[#allocation295_spill] sm:$0xff] %v27763_v14  ;;  %v30301_v55 = vmov %v27763_v14  ;;  %v7338_v4 = vpop.xlane.xlu1 %7337 }
0x164f   : >> { %v7433_v24 = vsub.f32 %v27697_v27, %v30301_v55  ;;  %v27770_v53 = vmax.f32 %v20424_v7, %v7338_v4   ;;  %v7336_v28 = vpop.xlane.xlu0 %7335 }
0x1650   : >> { %v27773_v25 = vmax.f32 %v20428_v49, %v7336_v28  }
0x1651   : >> { %30302 = vst [vmem:[#allocation296_spill] sm:$0xff] %v27770_v53  ;;  %v30303_v17 = vmov %v27770_v53  ;;  %v7451_v62 = vmul.f32 1.442695, %v7433_v24 }
0x1652   : >> { %30304 = vst [vmem:[#allocation297_spill] sm:$0xff] %v27773_v25  ;;  %v7432_v15 = vsub.f32 %v27705_v11, %v30303_v17  ;;  %v7431_v27 = vsub.f32 %v27701_v20, %v27773_v25 }
0x1653   : >> { %16347 = vpow2.f32 %v7451_v62  ;;  %v7348_v4 = vpop.xlane.xlu1 %7347  ;;  %v7342_v53 = vpop.xlane.xlu0 %7341 }
0x1654   : >> { %v7447_v18 = vmul.f32 1.442695, %v7431_v27  ;;  %v27784_v24 = vmax.f32 %v20404_v2, %v7348_v4   ;;  %v27787_v28 = vmax.f32 %v20416_v22, %v7342_v53   ;;  %v7449_v52 = vmul.f32 1.442695, %v7432_v15 }
0x1656   : >> { %30305 = vst [vmem:[#allocation298_spill] sm:$0xff] %v27784_v24  ;;  %30306 = vst [vmem:[#allocation299_spill] sm:$0xff] %v27787_v28  ;;  %v30307_v55 = vmov %v27787_v28  ;;  %v7437_v14 = vsub.f32 %v27712_v19, %v27784_v24  ;;  %16349 = vpow2.f32 %v7447_v18 }
0x1657   : >> { %v7434_v62 = vsub.f32 %v27703_v46, %v30307_v55  ;;  %v7344_v27 = vpop.xlane.xlu1 %7343  ;;  %v7350_v0 = vpop.xlane.xlu0 %7349  ;;  %16351 = vpow2.f32 %v7449_v52 }
0x1658   : >> { %v7459_v4 = vmul.f32 1.442695, %v7437_v14  ;;  %v27798_v53 = vmax.f32 %v20412_v10, %v7344_v27   ;;  %v27801_v28 = vmax.f32 %v20400_v45, %v7350_v0  }
0x1659   : >> { %v7453_v29 = vmul.f32 1.442695, %v7434_v62 }
0x165a   : >> { %30308 = vst [vmem:[#allocation300_spill] sm:$0xff] %v27798_v53  ;;  %v30309_v15 = vmov %v27798_v53  ;;  %30310 = vst [vmem:[#allocation301_spill] sm:$0xff] %v27801_v28  ;;  %v30311_v11 = vmov %v27801_v28  ;;  %16353 = vpow2.f32 %v7459_v4 }
0x165b   : >> { %v7435_v20 = vsub.f32 %v27717_v9, %v30309_v15  ;;  %v7356_v18 = vpop.xlane.xlu1 %7355  ;;  %v7346_v14 = vpop.xlane.xlu0 %7345  ;;  %16355 = vpow2.f32 %v7453_v29  ;;  %v7438_v4 = vsub.f32 %v27719_v57, %v30311_v11 }
0x165c   : >> { %v27810_v62 = vmax.f32 %v20388_v12, %v7356_v18   ;;  %v27813_v53 = vmax.f32 %v20408_v41, %v7346_v14  }
0x165d   : >> { %v27815_v0 = vpop.eup %16347  ;;  %v7455_v52 = vmul.f32 1.442695, %v7435_v20 }
0x165e   : >> { %30312 = vst [vmem:[#allocation302_spill] sm:$0xff] %v27810_v62  ;;  %v30313_v27 = vmov %v27810_v62  ;;  %30314 = vst [vmem:[#allocation303_spill] sm:$0xff] %v27813_v53  ;;  %v30315_v17 = vmov %v27813_v53  ;;  %7499 = vadd.xlane.f32.xlu1 %v27815_v0  ;;  %v7461_v53 = vmul.f32 1.442695, %v7438_v4 }
0x165f   : >> { %v7441_v28 = vsub.f32 %v27728_v23, %v30313_v27  ;;  %v7436_v14 = vsub.f32 %v27721_v26, %v30315_v17  ;;  %v7352_v62 = vpop.xlane.xlu1 %7351  ;;  %v7358_v29 = vpop.xlane.xlu0 %7357  ;;  %16357 = vpow2.f32 %v7455_v52 }
0x1660   : >> { %v27829_v57 = vmax.f32 %v20396_v42, %v7352_v62   ;;  %v27832_v46 = vmax.f32 %v20384_v63, %v7358_v29   ;;  %v16350_v23 = vpop.eup %16349 }
0x1661   : >> { %v7467_v20 = vmul.f32 1.442695, %v7441_v28  ;;  %v7457_v9 = vmul.f32 1.442695, %v7436_v14  ;;  %v16352_v28 = vpop.eup %16351 }
0x1662   : >> { %30316 = vst [vmem:[#allocation304_spill] sm:$0xff] %v27829_v57  ;;  %30317 = vst [vmem:[#allocation305_spill] sm:$0xff] %v27832_v46  ;;  %v7439_v19 = vsub.f32 %v27733_v36, %v27829_v57  ;;  %7495 = vadd.xlane.f32.xlu1 %v16350_v23  ;;  %v7442_v36 = vsub.f32 %v27735_v43, %v27832_v46 }
0x1663   : >> { %v7364_v52 = vpop.xlane.xlu1 %7363  ;;  %v7354_v4 = vpop.xlane.xlu0 %7353  ;;  %16359 = vpow2.f32 %v7467_v20 }
0x1664   : >> { %v27841_v62 = vmax.f32 %v20372_v56, %v7364_v52   ;;  %v27844_v29 = vmax.f32 %v20392_v59, %v7354_v4   ;;  %v27846_v14 = vpop.eup %16353  ;;  %16361 = vpow2.f32 %v7461_v53  ;;  %v7463_v18 = vmul.f32 1.442695, %v7439_v19 }
0x1665   : >> { %16363 = vpow2.f32 %v7457_v9  ;;  %v16356_v61 = vpop.eup %16355  ;;  %v7559_v4 = vpack.c.bf16 %v16352_v28, %v16350_v23  ;;  %v7469_v9 = vmul.f32 1.442695, %v7442_v36 }
0x1666   : >> { %30318 = vst [vmem:[#allocation306_spill] sm:$0xff] %v27841_v62  ;;  %v30319_v17 = vmov %v27841_v62  ;;  %v30320_v41 = vmov %v27844_v29  ;;  %7507 = vadd.xlane.f32.xlu1 %v27846_v14  ;;  %16365 = vpow2.f32 %v7463_v18  ;;  %7501 = vadd.xlane.f32.xlu0 %v16356_v61 }
0x1667   : >> { %v7440_v52 = vsub.f32 %v27737_v8, %v30320_v41  ;;  %v7360_v62 = vpop.xlane.xlu1 %7359  ;;  %v7366_v53 = vpop.xlane.xlu0 %7365  ;;  %11237 = vmatprep.mubr.bf16.mxu1 %v7559_v4  ;;  %v7445_v18 = vsub.f32 %v27744_v35, %v30319_v17  ;;  %16367 = vpow2.f32 %v7469_v9  ;;  %v30327_v35 = vld [vmem:[#allocation294_spill] sm:$0xff] }
0x1668   : >> { %v27858_v43 = vmax.f32 %v20380_v58, %v7360_v62   ;;  %v27861_v29 = vmax.f32 %v20368_v37, %v7366_v53  }
0x1669   : >> { %v16358_v44 = vpop.eup %16357  ;;  %v7465_v20 = vmul.f32 1.442695, %v7440_v52  ;;  %v7475_v21 = vmul.f32 1.442695, %v7445_v18 }
0x166a   : >> { %30321 = vst [vmem:[#allocation307_spill] sm:$0xff] %v27858_v43  ;;  %v30322_v19 = vmov %v27858_v43  ;;  %30323 = vst [vmem:[#allocation308_spill] sm:$0xff] %v27861_v29  ;;  %v30324_v26 = vmov %v27861_v29  ;;  %7503 = vadd.xlane.f32.xlu1 %v16358_v44  ;;  %7497 = vadd.xlane.f32.xlu0 %v16352_v28 }
0x166b   : >> { %v7443_v23 = vsub.f32 %v27749_v54, %v30322_v19  ;;  %v7588_v36 = vpop.permute.xlu1 %7587  ;;  %v7362_v4 = vpop.xlane.xlu0 %7361  ;;  %16369 = vpow2.f32 %v7465_v20  ;;  %v7446_v9 = vsub.f32 %v27751_v30, %v30324_v26 }
0x166c   : >> { %v27872_v53 = vmax.f32 %v20376_v1, %v7362_v4   ;;  %11233 = vmatprep.subr.bf16.mxu1 %v7588_v36 }
0x166d   : >> { %v7471_v43 = vmul.f32 1.442695, %v7443_v23  ;;  %11234 = vmatpush3.bf16.msra.mxu1 %v7588_v36  ;;  %v16360_v29 = vpop.eup %16359  ;;  %v7560_v36 = vpack.c.bf16 %v16356_v61, %v27815_v0  ;;  %v7477_v18 = vmul.f32 1.442695, %v7446_v9 }
0x166e   : >> { %30325 = vst [vmem:[#allocation309_spill] sm:$0xff] %v27872_v53  ;;  %v30326_v52 = vmov %v27872_v53  ;;  %v16362_v62 = vpop.eup %16361  ;;  %7515 = vadd.xlane.f32.xlu1 %v16360_v29 }
0x166f   : >> { %v7444_v8 = vsub.f32 %v30327_v35, %v30326_v52  ;;  %v7590_v16 = vpop.permute.xlu0 %7589  ;;  %v16364_v23 = vpop.eup %16363  ;;  %16371 = vpow2.f32 %v7471_v43  ;;  %7509 = vadd.xlane.f32.xlu0 %v16362_v62  ;;  %v7562_v35 = vpack.c.bf16 %v16362_v62, %v27846_v14 }
0x1670   : >> { %11235 = vmatprep.subr.bf16.mxu1 %v7590_v16  ;;  %v16366_v20 = vpop.eup %16365  ;;  %16373 = vpow2.f32 %v7475_v21  ;;  %v7561_v4 = vpack.c.bf16 %v16364_v23, %v16358_v44 }
0x1671   : >> { %v7473_v28 = vmul.f32 1.442695, %v7444_v8  ;;  %11236 = vmatpush3.bf16.msra.mxu1 %v7590_v16  ;;  %v16368_v53 = vpop.eup %16367 }
0x1672   : >> { %7511 = vadd.xlane.f32.xlu1 %v16366_v20  ;;  %v7564_v44 = vpack.c.bf16 %v16368_v53, %v16360_v29  ;;  %v30331_v29 = vsub.f32 %v20404_v2, %v27784_v24  ;;  %v30336_v2 = vsub.f32 %v20388_v12, %v30313_v27  ;;  %v30340_v12 = vld [vmem:[#allocation293_spill] sm:$0xff] }
0x1673   : >> { %16375 = vpow2.f32 %v7473_v28  ;;  %7505 = vadd.xlane.f32.xlu0 %v16364_v23  ;;  %v30328_v28 = vld [vmem:[#allocation295_spill] sm:$0xff] }
0x1674   : >> { %11238 = vmatmul.mubr.bf16.vlgmr.msra.gmra.mrb[0].mxu1 %v7560_v36  ;;  %16377 = vpow2.f32 %v7477_v18  ;;  %v30329_v14 = vsub.f32 %v20420_v13, %v30328_v28  ;;  %v30332_v18 = vsub.f32 %v20416_v22, %v30307_v55 }
0x1675   : >> { %11241 = vmatprep.mubr.bf16.mxu1 %v7561_v4  ;;  %v16370_v43 = vpop.eup %16369  ;;  %v7411_v4 = vmul.f32 1.442695, %v30331_v29 }
0x1676   : >> { %v7563_v30 = vpack.c.bf16 %v16370_v43, %v16366_v20  ;;  %v7403_v62 = vmul.f32 1.442695, %v30329_v14  ;;  %v30330_v20 = vsub.f32 %v20428_v49, %v27773_v25 }
0x1677   : >> { %7517 = vadd.xlane.f32.xlu0 %v16368_v53  ;;  %v7405_v53 = vmul.f32 1.442695, %v30332_v18 }
0x1678   : >> { %16379 = vpow2.f32 %v7403_v62  ;;  %v7399_v36 = vmul.f32 1.442695, %v30330_v20 }
0x1679   : >> { %v16372_v8 = vpop.eup %16371 }
0x167a   : >> { %7519 = vadd.xlane.f32.xlu1 %v16372_v8  ;;  %v16374_v61 = vpop.eup %16373  ;;  %16381 = vpow2.f32 %v7399_v36 }
0x167b   : >> { %7513 = vadd.xlane.f32.xlu0 %v16370_v43  ;;  %16383 = vpow2.f32 %v7411_v4  ;;  %v30333_v43 = vsub.f32 %v20412_v10, %v30309_v15  ;;  %v30337_v10 = vsub.f32 %v20400_v45, %v30311_v11 }
0x167c   : >> { %11242 = vmatmul.mubr.bf16.gmra.mrb[4].mxu1 %v7562_v35  ;;  %v30334_v35 = vld [vmem:[#allocation296_spill] sm:$0xff]  ;;  %16385 = vpow2.f32 %v7405_v53 }
0x167d   : >> { %11245 = vmatprep.mubr.bf16.mxu1 %v7563_v30  ;;  %v16376_v21 = vpop.eup %16375  ;;  %v7407_v13 = vmul.f32 1.442695, %v30333_v43  ;;  %v30335_v49 = vsub.f32 %v20424_v7, %v30334_v35  ;;  %v30339_v7 = vsub.f32 %v20396_v42, %v27829_v57 }
0x167e   : >> { %7523 = vadd.xlane.f32.xlu1 %v16374_v61  ;;  %v16378_v16 = vpop.eup %16377  ;;  %v7565_v0 = vpack.c.bf16 %v16376_v21, %v16372_v8 }
0x167f   : >> { %7521 = vadd.xlane.f32.xlu0 %v16376_v21  ;;  %v7566_v23 = vpack.c.bf16 %v16378_v16, %v16374_v61  ;;  %v7401_v30 = vmul.f32 1.442695, %v30335_v49  ;;  %16387 = vpow2.f32 %v7407_v13  ;;  %v7419_v61 = vmul.f32 1.442695, %v30336_v2 }
0x1680   : >> { %v7413_v21 = vmul.f32 1.442695, %v30337_v10 }
0x1681   : >> { %16389 = vpow2.f32 %v7401_v30 }
0x1682   : >> { %v27897_v8 = vpop.eup %16379  ;;  %16391 = vpow2.f32 %v7419_v61 }
0x1683   : >> { %7525 = vadd.xlane.f32.xlu0 %v16378_v16  ;;  %v7481_v22 = vmul.f32 %v20356_v48, %v27897_v8  ;;  %16393 = vpow2.f32 %v7413_v21 }
0x1684   : >> { %11246 = vmatmul.mubr.bf16.gmra.mrb[8].mxu1 %v7564_v44  ;;  %v27910_v16 = vpop.eup %16381 }
0x1685   : >> { %11249 = vmatprep.mubr.bf16.mxu1 %v7565_v0  ;;  %v7415_v0 = vmul.f32 1.442695, %v30339_v7  ;;  %v7479_v62 = vmul.f32 %v20364_v6, %v27910_v16  ;;  %v27922_v45 = vpop.eup %16383 }
0x1686   : >> { %v27924_v4 = vpop.eup %16385  ;;  %v7485_v18 = vmul.f32 %v20340_v31, %v27922_v45 }
0x1687   : >> { %16395 = vpow2.f32 %v7415_v0  ;;  %v7482_v43 = vmul.f32 %v20352_v60, %v27924_v4 }
0x1689   : >> { %v27933_v53 = vpop.eup %16387 }
0x168a   : >> { %v7483_v61 = vmul.f32 %v20348_v47, %v27933_v53 }
0x168b   : >> { %v27937_v35 = vpop.eup %16389 }
0x168c   : >> { %11250 = vmatmul.mubr.bf16.gmra.mrb[12].mxu1 %v7566_v23  ;;  %v30341_v23 = vld [vmem:[#allocation303_spill] sm:$0xff]  ;;  %v7480_v10 = vmul.f32 %v20360_v33, %v27937_v35 }
0x168d   : >> { %v30342_v28 = vsub.f32 %v30340_v12, %v30341_v23 }
0x168f   : >> { %v7409_v14 = vmul.f32 1.442695, %v30342_v28 }
0x1691   : >> { %16397 = vpow2.f32 %v7409_v14 }
0x16eb   : >> { %v7500_v44 = vpop.xlane.xlu1 %7499 }
0x16ec   : >> { %v27912_v48 = vadd.f32 %v7500_v44, %v7481_v22   ;;  %v27951_v22 = vpop.eup %16391 }
0x16ed   : >> { %v27955_v21 = vpop.eup %16393  ;;  %v7489_v0 = vmul.f32 %v20324_v3, %v27951_v22 }
0x16ee   : >> { %30338 = vst [vmem:[#allocation310_spill] sm:$0xff] %v27912_v48  ;;  %v30344_v48 = vsub.f32 %v20384_v63, %v27832_v46  ;;  %v30348_v63 = vsub.f32 %v20392_v59, %v30320_v41  ;;  %v30352_v59 = vsub.f32 %v20376_v1, %v30326_v52  ;;  %v27969_v12 = vpop.eup %16395 }
0x16ef   : >> { %v7496_v29 = vpop.xlane.xlu1 %7495  ;;  %v16398_v28 = vpop.eup %16397  ;;  %v7487_v14 = vmul.f32 %v20332_v51, %v27969_v12 }
0x16f0   : >> { %v27926_v6 = vadd.f32 %v7496_v29, %v7479_v62   ;;  %v7421_v42 = vmul.f32 1.442695, %v30344_v48  ;;  %v7417_v2 = vmul.f32 1.442695, %v30348_v63  ;;  %v7425_v7 = vmul.f32 1.442695, %v30352_v59 }
0x16f1   : >> { %v7484_v62 = vmul.f32 %v20344_v38, %v16398_v28  ;;  %v30366_v59 = vld [vmem:[#allocation291_spill] sm:$0xff] }
0x16f2   : >> { %30343 = vst [vmem:[#allocation311_spill] sm:$0xff] %v27926_v6  ;;  %v30346_v6 = vsub.f32 %v20380_v58, %v30322_v19  ;;  %16399 = vpow2.f32 %v7421_v42 }
0x16f3   : >> { %v7508_v13 = vpop.xlane.xlu1 %7507  ;;  %v7502_v49 = vpop.xlane.xlu0 %7501 }
0x16f4   : >> { %v27939_v31 = vadd.f32 %v7508_v13, %v7485_v18   ;;  %v7423_v30 = vmul.f32 1.442695, %v30346_v6  ;;  %v27944_v60 = vadd.f32 %v7502_v49, %v7482_v43  }
0x16f6   : >> { %30345 = vst [vmem:[#allocation312_spill] sm:$0xff] %v27939_v31  ;;  %30347 = vst [vmem:[#allocation313_spill] sm:$0xff] %v27944_v60  ;;  %v30350_v60 = vsub.f32 %v20372_v56, %v30319_v17  ;;  %16401 = vpow2.f32 %v7423_v30 }
0x16f7   : >> { %v7504_v31 = vpop.xlane.xlu1 %7503  ;;  %v7498_v58 = vpop.xlane.xlu0 %7497  ;;  %16403 = vpow2.f32 %v7417_v2 }
0x16f8   : >> { %v27957_v47 = vadd.f32 %v7504_v31, %v7483_v61   ;;  %v7427_v44 = vmul.f32 1.442695, %v30350_v60  ;;  %v27962_v33 = vadd.f32 %v7498_v58, %v7480_v10  }
0x16fa   : >> { %30349 = vst [vmem:[#allocation314_spill] sm:$0xff] %v27957_v47  ;;  %30351 = vst [vmem:[#allocation315_spill] sm:$0xff] %v27962_v33  ;;  %v7486_v47 = vmul.f32 %v20336_v34, %v27955_v21  ;;  %16405 = vpow2.f32 %v7427_v44  ;;  %v30355_v33 = vsub.f32 %v20368_v37, %v30324_v26 }
0x16fb   : >> { %v7516_v23 = vpop.xlane.xlu1 %7515  ;;  %16407 = vpow2.f32 %v7425_v7  ;;  %v7543_v7 = vmul.f32 %v30366_v59, %v27910_v16  ;;  %v30390_v59 = vld [vmem:[#allocation280_spill] sm:$0xff] }
0x16fc   : >> { %v7510_v56 = vpop.xlane.xlu0 %7509  ;;  %v27973_v3 = vadd.f32 %v7516_v23, %v7489_v0   ;;  %v7429_v1 = vmul.f32 1.442695, %v30355_v33  ;;  %v16400_v48 = vpop.eup %16399  ;;  %v30368_v23 = vld [vmem:[#allocation288_spill] sm:$0xff] }
0x16fd   : >> { %v27975_v34 = vadd.f32 %v7510_v56, %v7486_v47   ;;  %v30370_v56 = vld [vmem:[#allocation290_spill] sm:$0xff] }
0x16fe   : >> { %30353 = vst [vmem:[#allocation316_spill] sm:$0xff] %v27973_v3  ;;  %16409 = vpow2.f32 %v7429_v1  ;;  %v7544_v33 = vmul.f32 %v30370_v56, %v27937_v35  ;;  %v30427_v56 = vld [vmem:[#allocation306_spill] sm:$0xff] }
0x16ff   : >> { %30354 = vst [vmem:[#allocation317_spill] sm:$0xff] %v27975_v34  ;;  %v7512_v29 = vpop.xlane.xlu1 %7511  ;;  %v7490_v34 = vmul.f32 %v20320_v5, %v16400_v48 }
0x1700   : >> { %v7506_v42 = vpop.xlane.xlu0 %7505  ;;  %v27983_v51 = vadd.f32 %v7512_v29, %v7487_v14   ;;  %v16402_v3 = vpop.eup %16401 }
0x1701   : >> { %v27985_v38 = vadd.f32 %v7506_v42, %v7484_v62   ;;  %v16404_v18 = vpop.eup %16403  ;;  %v7491_v43 = vmul.f32 %v20316_v39, %v16402_v3  ;;  %v30373_v62 = vld [vmem:[#allocation285_spill] sm:$0xff] }
0x1702   : >> { %30356 = vst [vmem:[#allocation318_spill] sm:$0xff] %v27983_v51  ;;  %v7488_v49 = vmul.f32 %v20328_v50, %v16404_v18  ;;  %v7549_v16 = vmul.f32 %v30373_v62, %v27922_v45  ;;  %v30381_v45 = vld [vmem:[#allocation281_spill] sm:$0xff] }
0x1703   : >> { %30357 = vst [vmem:[#allocation319_spill] sm:$0xff] %v27985_v38 }
0x1704   : >> { %v7518_v37 = vpop.xlane.xlu0 %7517  ;;  %v16406_v13 = vpop.eup %16405 }
0x1705   : >> { %v27988_v5 = vadd.f32 %v7518_v37, %v7490_v34   ;;  %v16408_v30 = vpop.eup %16407  ;;  %v7493_v51 = vmul.f32 %v20308_v32, %v16406_v13  ;;  %v30374_v34 = vld [vmem:[#allocation287_spill] sm:$0xff] }
0x1706   : >> { %v7492_v38 = vmul.f32 %v20312_v40, %v16408_v30  ;;  %v7547_v37 = vmul.f32 %v30374_v34, %v27933_v53  ;;  %v30418_v34 = vld [vmem:[#allocation317_spill] sm:$0xff] }
0x1707   : >> { %30358 = vst [vmem:[#allocation320_spill] sm:$0xff] %v27988_v5  ;;  %v7520_v6 = vpop.xlane.xlu1 %7519  ;;  %v30363_v5 = vld [vmem:[#allocation292_spill] sm:$0xff] }
0x1708   : >> { %v7514_v63 = vpop.xlane.xlu0 %7513  ;;  %v27992_v39 = vadd.f32 %v7520_v6, %v7491_v43   ;;  %v16410_v61 = vpop.eup %16409  ;;  %v30376_v43 = vld [vmem:[#allocation284_spill] sm:$0xff]  ;;  %v30378_v6 = vld [vmem:[#allocation286_spill] sm:$0xff] }
0x1709   : >> { %v27994_v50 = vadd.f32 %v7514_v63, %v7488_v49   ;;  %v7494_v31 = vmul.f32 %v30363_v5, %v16410_v61  ;;  %v7550_v49 = vmul.f32 %v30376_v43, %v27955_v21  ;;  %v7548_v63 = vmul.f32 %v30378_v6, %v16398_v28  ;;  %v30384_v5 = vld [vmem:[#allocation276_spill] sm:$0xff]  ;;  %v30425_v6 = vld [vmem:[#allocation311_spill] sm:$0xff] }
0x170a   : >> { %30359 = vst [vmem:[#allocation321_spill] sm:$0xff] %v27992_v39  ;;  %v30365_v39 = vld [vmem:[#allocation289_spill] sm:$0xff] }
0x170b   : >> { %30360 = vst [vmem:[#allocation322_spill] sm:$0xff] %v27994_v50  ;;  %v7524_v2 = vpop.xlane.xlu1 %7523  ;;  %v7545_v44 = vmul.f32 %v30365_v39, %v27897_v8  ;;  %v30386_v39 = vld [vmem:[#allocation282_spill] sm:$0xff] }
0x170c   : >> { %v7522_v10 = vpop.xlane.xlu0 %7521  ;;  %v27998_v32 = vadd.f32 %v7524_v2, %v7493_v51   ;;  %v7553_v51 = vmul.f32 %v30381_v45, %v27951_v22  ;;  %v30382_v2 = vld [vmem:[#allocation283_spill] sm:$0xff]  ;;  %v30389_v22 = vld [vmem:[#allocation278_spill] sm:$0xff]  ;;  %v30434_v45 = vld [vmem:[#allocation301_spill] sm:$0xff] }
0x170d   : >> { %v28000_v40 = vadd.f32 %v7522_v10, %v7492_v38   ;;  %v7551_v10 = vmul.f32 %v30382_v2, %v27969_v12  ;;  %v7555_v12 = vmul.f32 %v30390_v59, %v16402_v3  ;;  %v30415_v3 = vld [vmem:[#allocation316_spill] sm:$0xff]  ;;  %v30432_v59 = vmov %v30320_v41  ;;  %v30435_v2 = vld [vmem:[#allocation298_spill] sm:$0xff]  ;;  %v30436_v41 = vld [vmem:[#allocation303_spill] sm:$0xff] }
0x170e   : >> { %30361 = vst [vmem:[#allocation323_spill] sm:$0xff] %v27998_v32  ;;  %v7546_v32 = vmul.f32 %v30368_v23, %v27924_v4  ;;  %v30392_v23 = vld [vmem:[#allocation279_spill] sm:$0xff] }
0x170f   : >> { %30362 = vst [vmem:[#allocation324_spill] sm:$0xff] %v28000_v40 }
0x1710   : >> { %v7526_v58 = vpop.xlane.xlu0 %7525 }
0x1711   : >> { %v28003_v60 = vadd.f32 %v7526_v58, %v7494_v31   ;;  %v7554_v31 = vmul.f32 %v30384_v5, %v16400_v48  ;;  %v30414_v5 = vld [vmem:[#allocation320_spill] sm:$0xff] }
0x1713   : >> { %v30364_v26 = vmov %v28003_v60 }
0x1714   : > { %v30459_v45 = vmov (%p28058_p7), %v30364_v26 }
0x1715   : > { %v30460_v2 = vld [vmem:[#allocation323_spill] sm:$0xff] (%p28058_p7) }
0x1716   : > { %v30461_v41 = vld [vmem:[#allocation324_spill] sm:$0xff] (%p28058_p7) }
0x1747   : >> { %v11239_v50 = vpop.f32.mrb[0].mxu1 }
0x1748   : >> { %v28009_v0 = vadd.f32 %v11239_v50, %v7545_v44   ;;  %v7633_v47 = vpop.f32.mrb[1].mxu1 }
0x1749   : >> { %v28013_v44 = vadd.f32 %v7633_v47, %v7543_v7   ;;  %v11240_v40 = vpop.f32.mrb[2].mxu1 }
0x174a   : >> { %v30367_v54 = vmov %v28009_v0  ;;  %v28017_v1 = vadd.f32 %v11240_v40, %v7546_v32   ;;  %v7636_v14 = vpop.f32.mrb[3].mxu1  ;;  %v7556_v32 = vmul.f32 %v30392_v23, %v16408_v30  ;;  %v30412_v40 = vld [vmem:[#allocation324_spill] sm:$0xff] }
0x174b   : >> { %v30369_v36 = vmov %v28013_v44  ;;  %v28019_v29 = vadd.f32 %v7636_v14, %v7544_v33   ;;  %v7557_v44 = vmul.f32 %v30389_v22, %v16406_v13  ;;  %v30424_v33 = vld [vmem:[#allocation315_spill] sm:$0xff] }
0x174c   : >> { %v30371_v20 = vmov %v28017_v1  ;;  %v30428_v1 = vld [vmem:[#allocation309_spill] sm:$0xff]  ;;  %v30438_v22 = vld [vmem:[#allocation299_spill] sm:$0xff] }
0x174d   : >> { %v30372_v8 = vmov %v28019_v29  ;;  %v30439_v13 = vld [vmem:[#allocation295_spill] sm:$0xff]  ;;  %v30463_v22 = vld [vmem:[#allocation320_spill] sm:$0xff] (%p28058_p7) }
0x174e   : > { %v30457_v59 = vmov (%p28058_p7), %v30372_v8  ;;  %v30464_v13 = vld [vmem:[#allocation316_spill] sm:$0xff] (%p28058_p7) }
0x174f   : >> { %v11243_v42 = vpop.f32.mrb[4].mxu1 }
0x1750   : >> { %v28025_v0 = vadd.f32 %v11243_v42, %v7549_v16   ;;  %v7649_v4 = vpop.f32.mrb[5].mxu1  ;;  %v30410_v16 = vmov %v30364_v26  ;;  %v30433_v42 = vld [vmem:[#allocation304_spill] sm:$0xff] }
0x1751   : >> { %v28029_v62 = vadd.f32 %v7649_v4, %v7547_v37   ;;  %v11244_v35 = vpop.f32.mrb[6].mxu1  ;;  %v30426_v37 = vld [vmem:[#allocation308_spill] sm:$0xff]  ;;  %v30458_v42 = vmov (%p28058_p7), %v30369_v36 }
0x1752   : >> { %v30375_v9 = vmov %v28025_v0  ;;  %v28032_v28 = vadd.f32 %v11244_v35, %v7550_v49   ;;  %v7652_v29 = vpop.f32.mrb[7].mxu1  ;;  %v30391_v0 = vld [vmem:[#allocation277_spill] sm:$0xff] }
0x1753   : >> { %v30377_v55 = vmov %v28029_v62  ;;  %v28034_v53 = vadd.f32 %v7652_v29, %v7548_v63   ;;  %v7558_v47 = vmul.f32 %v30391_v0, %v16410_v61  ;;  %v30403_v0 = vmov %v30375_v9  ;;  %v30430_v63 = vld [vmem:[#allocation305_spill] sm:$0xff] }
0x1754   : >> { %v30379_v57 = vmov %v28032_v28  ;;  %v7552_v28 = vmul.f32 %v30386_v39, %v16404_v18  ;;  %v30405_v62 = vmov %v30377_v55  ;;  %v30406_v61 = vmov %v30371_v20  ;;  %v30413_v39 = vld [vmem:[#allocation321_spill] sm:$0xff] }
0x1755   : >> { %v30380_v25 = vmov %v28034_v53  ;;  %v30408_v29 = vmov %v30372_v8  ;;  %v30441_v49 = vld [vmem:[#allocation297_spill] sm:$0xff]  ;;  %v30451_v37 = vmov (%p28058_p7), %v30379_v57  ;;  %v30452_v56 = vmov (%p28058_p7), %v30375_v9  ;;  %v30470_v8 = vld [vmem:[#allocation314_spill] sm:$0xff] (%p28058_p7) }
0x1756   : > { %v30453_v1 = vmov (%p28058_p7), %v30380_v25  ;;  %v30455_v63 = vmov (%p28058_p7), %v30371_v20  ;;  %v30466_v49 = vld [vmem:[#allocation318_spill] sm:$0xff] (%p28058_p7)  ;;  %v30473_v20 = vld [vmem:[#allocation315_spill] sm:$0xff] (%p28058_p7) }
0x1757   : >> { %v11247_v38 = vpop.f32.mrb[8].mxu1 }
0x1758   : >> { %v28040_v4 = vadd.f32 %v11247_v38, %v7553_v51   ;;  %v7665_v21 = vpop.f32.mrb[9].mxu1  ;;  %v30417_v51 = vld [vmem:[#allocation318_spill] sm:$0xff]  ;;  %v30420_v38 = vld [vmem:[#allocation319_spill] sm:$0xff] }
0x1759   : >> { %v28043_v58 = vadd.f32 %v7665_v21, %v7551_v10   ;;  %v11248_v60 = vpop.f32.mrb[10].mxu1  ;;  %v30407_v21 = vmov %v30367_v54  ;;  %v30437_v10 = vld [vmem:[#allocation300_spill] sm:$0xff] }
0x175a   : >> { %v30383_v24 = vmov %v28040_v4  ;;  %v28046_v60 = vadd.f32 %v11248_v60, %v7554_v31   ;;  %v7668_v53 = vpop.f32.mrb[11].mxu1  ;;  %v30419_v31 = vld [vmem:[#allocation312_spill] sm:$0xff]  ;;  %v30462_v10 = vld [vmem:[#allocation321_spill] sm:$0xff] (%p28058_p7) }
0x175b   : >> { %v30385_v11 = vmov %v28043_v58  ;;  %v28048_v35 = vadd.f32 %v7668_v53, %v7552_v28   ;;  %v30399_v4 = vmov %v30383_v24  ;;  %v30402_v28 = vmov %v30379_v57  ;;  %v30429_v58 = vld [vmem:[#allocation307_spill] sm:$0xff] }
0x175c   : >> { %v30387_v19 = vmov %v28046_v60  ;;  %v30401_v30 = vmov %v30385_v11  ;;  %v30404_v53 = vmov %v30380_v25  ;;  %v30422_v60 = vld [vmem:[#allocation313_spill] sm:$0xff]  ;;  %v30450_v6 = vmov (%p28058_p7), %v30385_v11  ;;  %v30474_v11 = vld [vmem:[#allocation311_spill] sm:$0xff] (%p28058_p7) }
0x175d   : >> { %v30388_v15 = vmov %v28048_v35  ;;  %30398 = vst [vmem:[#allocation276_spill] sm:$0xff] %v30387_v19  ;;  %v30447_v60 = vmov (%p28058_p7), %v30387_v19  ;;  %v30454_v58 = vmov (%p28058_p7), %v30377_v55  ;;  %v30471_v25 = vld [vmem:[#allocation313_spill] sm:$0xff] (%p28058_p7)  ;;  %v30472_v19 = vld [vmem:[#allocation310_spill] sm:$0xff] (%p28058_p7) }
0x175e   : >> { %v30400_v35 = vmov %v30388_v15  ;;  %v30449_v33 = vmov (%p28058_p7), %v30388_v15  ;;  %v30469_v15 = vld [vmem:[#allocation319_spill] sm:$0xff] (%p28058_p7) }
0x175f   : >> { %v11251_v50 = vpop.f32.mrb[12].mxu1 }
0x1760   : >> { %v7710_v27 = vadd.f32 %v11251_v50, %v7557_v44   ;;  %v7681_v7 = vpop.f32.mrb[13].mxu1  ;;  %v30409_v44 = vmov %v30369_v36  ;;  %v30416_v50 = vld [vmem:[#allocation322_spill] sm:$0xff] }
0x1761   : >> { %v7708_v46 = vadd.f32 %v7681_v7, %v7555_v12   ;;  %v11252_v48 = vpop.f32.mrb[14].mxu1  ;;  %v30431_v12 = vld [vmem:[#allocation302_spill] sm:$0xff]  ;;  %v30440_v7 = vld [vmem:[#allocation296_spill] sm:$0xff] }
0x1762   : >> { %v7711_v17 = vadd.f32 %v11252_v48, %v7558_v47   ;;  %v7684_v18 = vpop.f32.mrb[15].mxu1  ;;  %v30395_v43 = vmov %v7710_v27  ;;  %v30421_v47 = vld [vmem:[#allocation314_spill] sm:$0xff]  ;;  %7035 = sbr.rel (!%p28058_p7) target bundleno = 5168 (0x1430), region = 215  ;;  %v30444_v31 = vmov (%p28058_p7), %v7710_v27  ;;  %v30456_v12 = vmov (%p28058_p7), %v30367_v54 }
0x1763   : >> { %v7709_v52 = vadd.f32 %v7684_v18, %v7556_v32   ;;  %v30397_v18 = vmov %v7708_v46  ;;  %v30411_v32 = vld [vmem:[#allocation323_spill] sm:$0xff]  ;;  %v30423_v48 = vld [vmem:[#allocation310_spill] sm:$0xff]  ;;  %v30446_v47 = vmov (%p28058_p7), %v7708_v46 }
0x1764   : >> { %v30394_v23 = vmov %v7711_v17  ;;  %v30443_v34 = vmov (%p28058_p7), %v7711_v17  ;;  %v30448_v48 = vmov (%p28058_p7), %v30383_v24  ;;  %v30465_v7 = vld [vmem:[#allocation322_spill] sm:$0xff] (%p28058_p7)  ;;  %v30468_v24 = vld [vmem:[#allocation312_spill] sm:$0xff] (%p28058_p7) }
0x1765   : >> { %v30396_v14 = vmov %v7709_v52  ;;  %v30445_v38 = vmov (%p28058_p7), %v7709_v52  ;;  %v30467_v52 = vld [vmem:[#allocation317_spill] sm:$0xff] (%p28058_p7) }
0x1769 PF: > { %16506 = vrcp.f32 %v20528_v49  ;;  %v16411_v17 = vld [vmem:[%s28922_s4 + $0x4] ss:$12 sps:$4 sm:$0xff]   ;;  %v30475_v55 = vmov 0   ;;  %v16413_v46 = vld [vmem:[%s28922_s4] ss:$12 sps:$4 sm:$0xff]   ;;  %s11527_s20 = smul.u32 48, %s18596_s24  ;;  %v20560_v11 = vphi %v27377_v11, %v30474_v11   ;;  %v20556_v20 = vphi %v27375_v20, %v30473_v20   ;;  %v20552_v19 = vphi %v27373_v19, %v30472_v19   ;;  %v20548_v25 = vphi %v27371_v25, %v30471_v25   ;;  %v20544_v8 = vphi %v27369_v8, %v30470_v8   ;;  %v20540_v15 = vphi %v27367_v15, %v30469_v15   ;;  %v20536_v24 = vphi %v27365_v24, %v30468_v24   ;;  %v20532_v52 = vphi %v27363_v52, %v30467_v52   ;;  %v20528_v49 = vphi %v27361_v49, %v30466_v49   ;;  %v20524_v7 = vphi %v27359_v7, %v30465_v7   ;;  %v20520_v13 = vphi %v27357_v13, %v30464_v13   ;;  %v20516_v22 = vphi %v27355_v22, %v30463_v22   ;;  %v20512_v10 = vphi %v27353_v10, %v30462_v10   ;;  %v20508_v41 = vphi %v27351_v41, %v30461_v41   ;;  %v20504_v2 = vphi %v27349_v2, %v30460_v2   ;;  %v20500_v45 = vphi %v27347_v45, %v30459_v45   ;;  %v20496_v42 = vphi %v27345_v42, %v30458_v42   ;;  %v20492_v59 = vphi %v27343_v59, %v30457_v59   ;;  %v20488_v12 = vphi %v27341_v12, %v30456_v12   ;;  %v20484_v63 = vphi %v27339_v63, %v30455_v63   ;;  %v20480_v58 = vphi %v27337_v58, %v30454_v58   ;;  %v20476_v1 = vphi %v27335_v1, %v30453_v1   ;;  %v20472_v56 = vphi %v27333_v56, %v30452_v56   ;;  %v20468_v37 = vphi %v27331_v37, %v30451_v37   ;;  %v20464_v6 = vphi %v27329_v6, %v30450_v6   ;;  %v20460_v33 = vphi %v27327_v33, %v30449_v33   ;;  %v20456_v48 = vphi %v27325_v48, %v30448_v48   ;;  %v20452_v60 = vphi %v27323_v60, %v30447_v60   ;;  %v20448_v47 = vphi %v27321_v47, %v30446_v47   ;;  %v20444_v38 = vphi %v27319_v38, %v30445_v38   ;;  %v20440_v31 = vphi %v27317_v31, %v30444_v31   ;;  %v20436_v34 = vphi %v27315_v34, %v30443_v34  }
0x176a   : > { %8498 = vmatprep.mubr.bf16.mxu1 %v30475_v55  ;;  %16508 = vrcp.f32 %v20524_v7  ;;  %8313 = vmatprep.subr.bf16.mxu0 %v16411_v17  ;;  %v16414_v27 = vld [vmem:[%s28922_s4 + $0x1c] ss:$12 sps:$4 sm:$0xff]   ;;  %v16416_v57 = vld [vmem:[%s28922_s4 + $0x18] ss:$12 sps:$4 sm:$0xff]   ;;  %v16417_v26 = vld [vmem:[%s28922_s4 + $0x34] ss:$12 sps:$4 sm:$0xff]  }
0x176b   : > { %16510 = vrcp.f32 %v20520_v13  ;;  %8314 = vmatpush1.bf16.msra.mxu0 %v16413_v46  ;;  %v16419_v54 = vld [vmem:[%s28922_s4 + $0x30] ss:$12 sps:$4 sm:$0xff]   ;;  %v16420_v9 = vld [vmem:[%s28922_s4 + $0x4c] ss:$12 sps:$4 sm:$0xff]   ;;  %v16434_v32 = vld [vmem:[%s28922_s4 + $0xa8] ss:$12 sps:$4 sm:$0xff]  }
0x176c   : > { %16512 = vrcp.f32 %v20516_v22  ;;  %8315 = vmatprep.subr.bf16.mxu0 %v16414_v27  ;;  %v16428_v51 = vld [vmem:[%s28922_s4 + $0x78] ss:$12 sps:$4 sm:$0xff]   ;;  %v28408_v21 = vld [vmem:[#allocation5 + $0x8] sm:$0xff]  ;;  %v28468_v17 = vld [vmem:[%s28922_s4 + $0x1b0] ss:$12 sps:$4 sm:$0xff]   ;;  %s11528_s18 = smul.u32 96, %s18600_s25 }
0x176d   : > { %16514 = vrcp.f32 %v20512_v10  ;;  %8345 = vmatprep.mubr.bf16.mxu0 %v28408_v21  ;;  %v28422_v53 = vld [vmem:[%s28922_s4 + $0x184] ss:$12 sps:$4 sm:$0xff]   ;;  %v28428_v50 = vld [vmem:[%s28922_s4 + $0x180] ss:$12 sps:$4 sm:$0xff]   ;;  %v28436_v7 = vld [vmem:[%s28922_s4 + $0x19c] ss:$12 sps:$4 sm:$0xff]  }
0x176e   : > { %16516 = vrcp.f32 %v20508_v41  ;;  %v16422_v41 = vld [vmem:[%s28922_s4 + $0x48] ss:$12 sps:$4 sm:$0xff]   ;;  %11397 = vmatprep.subr.bf16.mxu1 %v28422_v53  ;;  %v16435_v18 = vld [vmem:[%s28922_s4 + $0xc4] ss:$12 sps:$4 sm:$0xff]   ;;  %v16437_v46 = vld [vmem:[%s28922_s4 + $0xc0] ss:$12 sps:$4 sm:$0xff]   ;;  %s8795_s30 = sadd.s32 %s11528_s18, %s11527_s20 }
0x176f   : > { %16518 = vrcp.f32 %v20504_v2  ;;  %8316 = vmatpush1.bf16.msra.mxu0 %v16416_v57  ;;  %11405 = vmatpush1.bf16.msra.mxu1 %v28428_v50  ;;  %v28477_v27 = vld [vmem:[%s28922_s4 + $0x1cc] ss:$12 sps:$4 sm:$0xff]   ;;  %v16438_v57 = vld [vmem:[%s28922_s4 + $0xdc] ss:$12 sps:$4 sm:$0xff]   ;;  %s10242_s24 = sshll.u32 %s8795_s30, 7  ;;  %s8798_s25 = sshll.u32 %s21141_s9, 4  ;;  %s28859_s25 = int_to_ptr.vmem [resolvable:$true] %s8798_s25 }
0x1770   : > { %16520 = vrcp.f32 %v20500_v45  ;;  %8317 = vmatprep.subr.bf16.mxu0 %v16417_v26  ;;  %11398 = vmatprep.subr.bf16.mxu1 %v28436_v7  ;;  %v16440_v26 = vld [vmem:[%s28922_s4 + $0xd8] ss:$12 sps:$4 sm:$0xff]   ;;  %s28857_s0 = scalar_lea.hbm %s28924_s6, %s10242_s24  ;;  %s30477_s5 = sand.u32 1, %s18588_s22  }
0x1771   : > { %16522 = vrcp.f32 %v20560_v11  ;;  %v16423_v11 = vld [vmem:[%s28922_s4 + $0x64] ss:$12 sps:$4 sm:$0xff]   ;;  %s28866_s14 = scalar_lea.sflag [#allocation8], %s30477_s5  ;;  %p30478_p11 = scmp.ne.s32.totalorder %s29060_s11, 0 }
0x1772   : > { %16524 = vrcp.f32 %v20556_v20  ;;  %s20569_s7 = smov [#allocation9]  }
0x1773   : > { %v16507_v36 = vpop.eup %16506  ;;  %16526 = vrcp.f32 %v20552_v19  ;;  %8318 = vmatpush1.bf16.msra.mxu0 %v16419_v54  ;;  %v28490_v54 = vld [vmem:[%s28922_s4 + $0x1c8] ss:$12 sps:$4 sm:$0xff]   ;;  %s16570_s8 = sshll.u32 %s20569_s7, 4  ;;  %s16571_s8 = int_to_ptr.vmem [resolvable:$false] %s16570_s8 }
0x1774   : > { %v16509_v3 = vpop.eup %16508  ;;  %v7736_v13 = vmul.f32 %v20464_v6, %v16507_v36  ;;  %16528 = vrcp.f32 %v20548_v25  ;;  %8319 = vmatprep.subr.bf16.mxu0 %v16420_v9  ;;  %v28496_v9 = vld [vmem:[%s28922_s4 + $0x1e4] ss:$12 sps:$4 sm:$0xff]   ;;  %v16441_v36 = vld [vmem:[%s28922_s4 + $0xf4] ss:$12 sps:$4 sm:$0xff]   ;;  %s16572_s19 = scalar_lea.vmem %s16571_s8, 12288  ;;  %p16573_p4 = scmp.lt.s32.totalorder %s28859_s25, %s16571_s8 }
0x1775   : > { %v16511_v30 = vpop.eup %16510  ;;  %v7737_v61 = vmul.f32 %v20460_v33, %v16509_v3  ;;  %16530 = vrcp.f32 %v20544_v8  ;;  %v16425_v33 = vld [vmem:[%s28922_s4 + $0x60] ss:$12 sps:$4 sm:$0xff]  }
0x1776   : > { %v16513_v40 = vpop.eup %16512  ;;  %v7738_v20 = vmul.f32 %v20456_v48, %v16511_v30  ;;  %16532 = vrcp.f32 %v20540_v15  ;;  %v28505_v3 = vld [vmem:[%s28922_s4 + $0x1e0] ss:$12 sps:$4 sm:$0xff]  }
0x1777   : > { %v16515_v19 = vpop.eup %16514  ;;  %v7748_v14 = vpack.c.bf16 %v7737_v61, %v7736_v13  ;;  %v7739_v62 = vmul.f32 %v20452_v60, %v16513_v40  ;;  %16534 = vrcp.f32 %v20536_v24  ;;  %8320 = vmatpush1.bf16.msra.mxu0 %v16422_v41  ;;  %v16426_v24 = vld [vmem:[%s28922_s4 + $0x7c] ss:$12 sps:$4 sm:$0xff]   ;;  %v16444_v30 = vld [vmem:[%s28922_s4 + $0x10c] ss:$12 sps:$4 sm:$0xff]   ;;  %v7904_v40 = vld [vmem:[%s28922_s4 + $0x210] sm:$0xff] }
0x1778   : > { %v16517_v16 = vpop.eup %16516  ;;  %v7740_v25 = vmul.f32 %v20448_v47, %v16515_v19  ;;  %16536 = vrcp.f32 %v20532_v52  ;;  %8321 = vmatprep.subr.bf16.mxu0 %v16423_v11  ;;  %v16443_v13 = vld [vmem:[%s28922_s4 + $0xf0] ss:$12 sps:$4 sm:$0xff]   ;;  %v16446_v61 = vld [vmem:[%s28922_s4 + $0x108] ss:$12 sps:$4 sm:$0xff]   ;;  %v16476_v11 = vld [vmem:[%s28922_s4 + $0x1f8] ss:$12 sps:$4 sm:$0xff]  }
0x1779   : > { %v16519_v4 = vpop.eup %16518  ;;  %7768 = vrot.lane.b32.xlu0 %v7748_v14, %s20566_s13  ;;  %v7749_v8 = vpack.c.bf16 %v7739_v62, %v7738_v20  ;;  %v7741_v15 = vmul.f32 %v20444_v38, %v16517_v16  ;;  %v16474_v41 = vld [vmem:[%s28922_s4 + $0x1fc] ss:$12 sps:$4 sm:$0xff]   ;;  %v16477_v19 = vld [vmem:[%s28922_s4 + $0x214] ss:$12 sps:$4 sm:$0xff]   ;;  %v16447_v14 = vld [vmem:[%s28922_s4 + $0x124] ss:$12 sps:$4 sm:$0xff]  }
0x177a   : > { %v16521_v43 = vpop.eup %16520  ;;  %v7742_v49 = vmul.f32 %v20440_v31, %v16519_v4  ;;  %v16431_v31 = vld [vmem:[%s28922_s4 + $0x90] ss:$12 sps:$4 sm:$0xff]   ;;  %v16449_v16 = vld [vmem:[%s28922_s4 + $0x120] ss:$12 sps:$4 sm:$0xff]   ;;  %v16452_v4 = vld [vmem:[%s28922_s4 + $0x138] ss:$12 sps:$4 sm:$0xff]  }
0x177b   : > { %v16523_v35 = vpop.eup %16522  ;;  %v7750_v6 = vpack.c.bf16 %v7741_v15, %v7740_v25  ;;  %v7743_v29 = vmul.f32 %v20436_v34, %v16521_v43  ;;  %8322 = vmatpush1.bf16.msra.mxu0 %v16425_v33  ;;  %v7906_v20 = vld [vmem:[%s28922_s4 + $0x21c] sm:$0xff]  ;;  %v16479_v25 = vld [vmem:[%s28922_s4 + $0x22c] ss:$12 sps:$4 sm:$0xff]   ;;  %v16482_v15 = vld [vmem:[%s28922_s4 + $0xc8] ss:$12 sps:$4 sm:$0xff]  }
0x177c   : > { %v16525_v45 = vpop.eup %16524  ;;  %v7728_v52 = vmul.f32 %v20496_v42, %v16523_v35  ;;  %8323 = vmatprep.subr.bf16.mxu0 %v16426_v24  ;;  %v16429_v42 = vld [vmem:[%s28922_s4 + $0x94] ss:$12 sps:$4 sm:$0xff]   ;;  %v10234_v62 = vcombine.low %v7904_v40, %v7906_v20  ;;  %v16450_v33 = vld [vmem:[%s28922_s4 + $0x13c] ss:$12 sps:$4 sm:$0xff]   ;;  %v16456_v24 = vld [vmem:[%s28922_s4 + $0x16c] ss:$12 sps:$4 sm:$0xff]  }
0x177d   : > { %v16527_v38 = vpop.eup %16526  ;;  %7770 = vrot.lane.b32.xlu0 %v7749_v8, %s20566_s13  ;;  %7772 = vrot.lane.b32.xlu1 %v7750_v6, %s20566_s13  ;;  %v7751_v2 = vpack.c.bf16 %v7743_v29, %v7742_v49  ;;  %v7729_v10 = vmul.f32 %v20492_v59, %v16525_v45  ;;  %v16481_v8 = vld [vmem:[%s28922_s4 + $0x228] ss:$12 sps:$4 sm:$0xff]   ;;  %v16455_v49 = vld [vmem:[%s28922_s4 + $0x150] ss:$12 sps:$4 sm:$0xff]   ;;  %v28566_v6 = vld [vmem:[#allocation5] sm:$0xff] }
0x177e   : > { %v16529_v5 = vpop.eup %16528  ;;  %v7730_v34 = vmul.f32 %v20488_v12, %v16527_v38  ;;  %v16453_v43 = vld [vmem:[%s28922_s4 + $0x154] ss:$12 sps:$4 sm:$0xff]   ;;  %v28575_v45 = vld [vmem:[#allocation5 + $0x18] sm:$0xff] }
0x177f   : > { %v16531_v60 = vpop.eup %16530  ;;  %v7744_v39 = vpack.c.bf16 %v7729_v10, %v7728_v52  ;;  %v7731_v28 = vmul.f32 %v20484_v63, %v16529_v5  ;;  %8324 = vmatpush1.bf16.msra.mxu0 %v16428_v51  ;;  %v16458_v35 = vld [vmem:[%s28922_s4 + $0x168] ss:$12 sps:$4 sm:$0xff]   ;;  %v28568_v29 = vld [vmem:[#allocation5 + $0x20] sm:$0xff]  ;;  %v28578_v52 = vld [vmem:[#allocation5 + $0x38] sm:$0xff] }
0x1780   : > { %v16533_v22 = vpop.eup %16532  ;;  %v7732_v44 = vmul.f32 %v20480_v58, %v16531_v60  ;;  %8325 = vmatprep.subr.bf16.mxu0 %v16429_v42  ;;  %v16432_v58 = vld [vmem:[%s28922_s4 + $0xac] ss:$12 sps:$4 sm:$0xff]   ;;  %v28585_v51 = vld [vmem:[#allocation5 + $0x30] sm:$0xff]  ;;  %v28600_v5 = vld [vmem:[#allocation5 + $0x60] sm:$0xff] }
0x1781   : > { %v16535_v59 = vpop.eup %16534  ;;  %7774 = vrot.lane.b32.xlu1 %v7751_v2, %s20566_s13  ;;  %7760 = vrot.lane.b32.xlu0 %v7744_v39, %s20566_s13  ;;  %v7745_v63 = vpack.c.bf16 %v7731_v28, %v7730_v34  ;;  %v7733_v12 = vmul.f32 %v20476_v1, %v16533_v22  ;;  %v28448_v1 = vld [vmem:[%s28922_s4 + $0x198] ss:$12 sps:$4 sm:$0xff]   ;;  %v28588_v38 = vld [vmem:[#allocation5 + $0x50] sm:$0xff]  ;;  %v28594_v2 = vld [vmem:[#allocation5 + $0x48] sm:$0xff] }
0x1782   : > { %v16537_v0 = vpop.eup %16536  ;;  %v7734_v47 = vmul.f32 %v20472_v56, %v16535_v59  ;;  %v28457_v56 = vld [vmem:[%s28922_s4 + $0x1b4] ss:$12 sps:$4 sm:$0xff]   ;;  %11406 = vmatpush1.bf16.msra.mxu1 %v28448_v1  ;;  %v28596_v10 = vld [vmem:[#allocation5 + $0x68] sm:$0xff]  ;;  %v28606_v42 = vld [vmem:[#allocation5 + $0x78] sm:$0xff] }
0x1783   : > { %v7746_v48 = vpack.c.bf16 %v7733_v12, %v7732_v44  ;;  %v7735_v23 = vmul.f32 %v20468_v37, %v16537_v0  ;;  %8326 = vmatpush1.bf16.msra.mxu0 %v16431_v31  ;;  %11399 = vmatprep.subr.bf16.mxu1 %v28457_v56  ;;  %v28602_v34 = vld [vmem:[#allocation5 + $0x80] sm:$0xff]  ;;  %v28608_v31 = vld [vmem:[#allocation5 + $0x98] sm:$0xff]  ;;  %v28612_v60 = vld [vmem:[#allocation5 + $0x90] sm:$0xff] }
0x1784   : > { %8327 = vmatprep.subr.bf16.mxu0 %v16432_v58  ;;  %v28614_v39 = vld [vmem:[#allocation5 + $0xb0] sm:$0xff]  ;;  %v28618_v28 = vld [vmem:[#allocation5 + $0xa8] sm:$0xff]  ;;  %v16486_v58 = vld [vmem:[%s28922_s4 + $0xf8] ss:$12 sps:$4 sm:$0xff]  }
0x1785   : > { %7762 = vrot.lane.b32.xlu1 %v7745_v63, %s20566_s13  ;;  %7764 = vrot.lane.b32.xlu0 %v7746_v48, %s20566_s13  ;;  %v7747_v37 = vpack.c.bf16 %v7735_v23, %v7734_v47  ;;  %v16484_v59 = vld [vmem:[%s28922_s4 + $0xe0] ss:$12 sps:$4 sm:$0xff]   ;;  %v16502_v20 = vld [vmem:[%s28922_s4 + $0x1e8] ss:$12 sps:$4 sm:$0xff]  }
0x1786   : > { %11407 = vmatpush1.bf16.msra.mxu1 %v28468_v17  ;;  %v16485_v0 = vld [vmem:[%s28922_s4 + $0x20] ss:$12 sps:$4 sm:$0xff]  }
0x1787   : > { %8328 = vmatpush1.bf16.msra.mxu0 %v16434_v32  ;;  %11400 = vmatprep.subr.bf16.mxu1 %v28477_v27  ;;  %v16488_v32 = vld [vmem:[%s28922_s4 + $0x110] ss:$12 sps:$4 sm:$0xff]   ;;  %v16499_v40 = vld [vmem:[%s28922_s4 + $0x1a0] ss:$12 sps:$4 sm:$0xff]  }
0x1788   : > { %8329 = vmatprep.subr.bf16.mxu0 %v16435_v18  ;;  %v16489_v18 = vld [vmem:[%s28922_s4 + $0x50] ss:$12 sps:$4 sm:$0xff]  }
0x1789   : > { %7766 = vrot.lane.b32.xlu1 %v7747_v37, %s20566_s13  ;;  %s16566_s13 = scalar_lea.vmem %s28859_s25, 6144 }
0x178a   : > { %11408 = vmatpush1.bf16.msra.mxu1 %v28490_v54  ;;  %p16567_p9 = scmp.ne.s32.totalorder %s28859_s25, %s16566_s13  ;;  %p16574_p3 = scmp.lt.s32.totalorder %s16572_s19, %s16566_s13 }
0x178b   : > { %8330 = vmatpush1.bf16.msra.mxu0 %v16437_v46  ;;  %11401 = vmatprep.subr.bf16.mxu1 %v28496_v9 }
0x178c   : > { %8331 = vmatprep.subr.bf16.mxu0 %v16438_v57  ;;  %p16568_p13 = pnand %p16567_p9, %p30478_p11  ;;  %p16575_p8 = por %p16574_p3, %p16573_p4 }
0x178e   : > { %11409 = vmatpush1.bf16.msra.mxu1 %v28505_v3  ;;  %p16569_p1 = pneg %p16568_p13 }
0x178f   : > { %8332 = vmatpush1.bf16.msra.mxu0 %v16440_v26  ;;  %11402 = vmatprep.subr.bf16.mxu1 %v16474_v41  ;;  %v16492_v26 = vld [vmem:[%s28922_s4 + $0x140] ss:$12 sps:$4 sm:$0xff]  }
0x1790   : > { %8333 = vmatprep.subr.bf16.mxu0 %v16441_v36  ;;  %p16576_p10 = pnand %p16575_p8, %p16569_p1 }
0x1792   : > { %11410 = vmatpush1.bf16.msra.mxu1 %v16476_v11 }
0x1793   : > { %8334 = vmatpush1.bf16.msra.mxu0 %v16443_v13  ;;  %11403 = vmatprep.subr.bf16.mxu1 %v16477_v19 }
0x1794   : > { %8335 = vmatprep.subr.bf16.mxu0 %v16444_v30  ;;  %v16497_v30 = vld [vmem:[%s28922_s4 + $0xb0] ss:$12 sps:$4 sm:$0xff]  }
0x1796   : > { %11411 = vmatpush1.bf16.msra.mxu1 %v10234_v62 }
0x1797   : > { %8336 = vmatpush1.bf16.msra.mxu0 %v16446_v61  ;;  %11404 = vmatprep.subr.bf16.mxu1 %v16479_v25  ;;  %v16498_v61 = vld [vmem:[%s28922_s4 + $0x188] ss:$12 sps:$4 sm:$0xff]  }
0x1798   : > { %8337 = vmatprep.subr.bf16.mxu0 %v16447_v14  ;;  %v16504_v14 = vld [vmem:[%s28922_s4 + $0x218] ss:$12 sps:$4 sm:$0xff]  }
0x179a   : > { %11412 = vmatpush1.bf16.msra.mxu1 %v16481_v8 }
0x179b   : > { %8338 = vmatpush1.bf16.msra.mxu0 %v16449_v16  ;;  %10693 = vmatprep.subr.bf16.mxu1 %v16482_v15 }
0x179c   : > { %8339 = vmatprep.subr.bf16.mxu0 %v16450_v33 }
0x179f   : > { %8340 = vmatpush1.bf16.msra.mxu0 %v16452_v4 }
0x17a0   : > { %8341 = vmatprep.subr.bf16.mxu0 %v16453_v43 }
0x17a3   : > { %8342 = vmatpush1.bf16.msra.mxu0 %v16455_v49 }
0x17a4   : > { %8343 = vmatprep.subr.bf16.mxu0 %v16456_v24 }
0x17a7   : > { %8344 = vmatpush1.bf16.msra.mxu0 %v16458_v35 }
0x17a8   : > { %8426 = vmatprep.subr.bf16.mxu0 %v28422_v53 }
0x17aa   : > { %8346 = vmatmul.mubr.bf16.vlgmr.msra.gmra.mrb[0].mxu0 %v28566_v6 }
0x17ab   : > { %8355 = vmatprep.mubr.bf16.mxu0 %v28568_v29  ;;  %8427 = vmatpush1.bf16.msra.mxu0 %v28428_v50  ;;  %v16483_v50 = vld [vmem:[%s28922_s4 + $0x8] ss:$12 sps:$4 sm:$0xff]  }
0x17ac   : > { %8428 = vmatprep.subr.bf16.mxu0 %v28436_v7 }
0x17af   : > { %8429 = vmatpush1.bf16.msra.mxu0 %v28448_v1  ;;  %v16487_v1 = vld [vmem:[%s28922_s4 + $0x38] ss:$12 sps:$4 sm:$0xff]  }
0x17b0   : > { %8430 = vmatprep.subr.bf16.mxu0 %v28457_v56 }
0x17b2   : > { %8356 = vmatmul.mubr.bf16.gmra.mrb[4].mxu0 %v28575_v45 }
0x17b3   : > { %8365 = vmatprep.mubr.bf16.mxu0 %v28578_v52  ;;  %8431 = vmatpush1.bf16.msra.mxu0 %v28468_v17  ;;  %v16490_v17 = vld [vmem:[%s28922_s4 + $0x128] ss:$12 sps:$4 sm:$0xff]  }
0x17b4   : > { %8432 = vmatprep.subr.bf16.mxu0 %v28477_v27  ;;  %v16491_v27 = vld [vmem:[%s28922_s4 + $0x68] ss:$12 sps:$4 sm:$0xff]  }
0x17b7   : > { %8433 = vmatpush1.bf16.msra.mxu0 %v28490_v54  ;;  %v16493_v54 = vld [vmem:[%s28922_s4 + $0x80] ss:$12 sps:$4 sm:$0xff]  }
0x17b8   : > { %8434 = vmatprep.subr.bf16.mxu0 %v28496_v9  ;;  %v16494_v9 = vld [vmem:[%s28922_s4 + $0x158] ss:$12 sps:$4 sm:$0xff]  }
0x17ba   : > { %8366 = vmatmul.mubr.bf16.gmra.mrb[8].mxu0 %v28585_v51 }
0x17bb   : > { %8375 = vmatprep.mubr.bf16.mxu0 %v28588_v38  ;;  %8435 = vmatpush1.bf16.msra.mxu0 %v28505_v3  ;;  %v16495_v3 = vld [vmem:[%s28922_s4 + $0x98] ss:$12 sps:$4 sm:$0xff]  }
0x17bc   : > { %8436 = vmatprep.subr.bf16.mxu0 %v16474_v41  ;;  %v16496_v41 = vld [vmem:[%s28922_s4 + $0x170] ss:$12 sps:$4 sm:$0xff]  }
0x17bf   : > { %8437 = vmatpush1.bf16.msra.mxu0 %v16476_v11 }
0x17c0   : > { %8438 = vmatprep.subr.bf16.mxu0 %v16477_v19  ;;  %v16503_v19 = vld [vmem:[%s28922_s4 + $0x200] ss:$12 sps:$4 sm:$0xff]  }
0x17c2   : > { %8376 = vmatmul.mubr.bf16.gmra.mrb[12].mxu0 %v28594_v2 }
0x17c3   : > { %8385 = vmatprep.mubr.bf16.mxu0 %v28596_v10  ;;  %8439 = vmatpush1.bf16.msra.mxu0 %v10234_v62  ;;  %v16505_v62 = vld [vmem:[%s28922_s4 + $0x230] ss:$12 sps:$4 sm:$0xff]  }
0x17c4   : > { %8440 = vmatprep.subr.bf16.mxu0 %v16479_v25 }
0x17c7   : > { %8441 = vmatpush1.bf16.msra.mxu0 %v16481_v8 }
0x17ca   : > { %8386 = vmatmul.mubr.bf16.gmra.mrb[16].mxu0 %v28600_v5 }
0x17cb   : > { %8395 = vmatprep.mubr.bf16.mxu0 %v28602_v34 }
0x17d2   : > { %8396 = vmatmul.mubr.bf16.gmra.mrb[20].mxu0 %v28606_v42 }
0x17d3   : > { %8405 = vmatprep.mubr.bf16.mxu0 %v28608_v31 }
0x17da   : > { %8406 = vmatmul.mubr.bf16.gmra.mrb[24].mxu0 %v28612_v60 }
0x17db   : > { %8415 = vmatprep.mubr.bf16.mxu0 %v28614_v39 }
0x17e2   : > { %8416 = vmatmul.mubr.bf16.gmra.mrb[28].mxu0 %v28618_v28 }
0x17e3   : > { %8458 = vmatprep.mubr.bf16.mxu0 %v30475_v55 }
0x17eb   : > { %v7769_v53 = vpop.permute.xlu0 %7768 }
0x17ec   : > { %7788 = vst.msk [vmem:[#allocation5 + $0x70] sm:$0xff] %vm4927_vm3, %v7769_v53 }
0x17ef   : > { %v7771_v22 = vpop.permute.xlu0 %7770  ;;  %v7773_v44 = vpop.permute.xlu1 %7772 }
0x17f0   : > { %7789 = vst.msk [vmem:[#allocation5 + $0x88] sm:$0xff] %vm4927_vm3, %v7771_v22  ;;  %7790 = vst.msk [vmem:[#allocation5 + $0xa0] sm:$0xff] %vm4927_vm3, %v7773_v44 }
0x17f3   : > { %v28631_v63 = vld [vmem:[#allocation5 + $0x70] sm:$0xff]  ;;  %v7775_v12 = vpop.permute.xlu1 %7774  ;;  %v7761_v7 = vpop.permute.xlu0 %7760 }
0x17f4   : > { %8499 = vmatmul.mubr.bf16.vlgmr.msra.gmra.mrb[0].mxu1 %v28631_v63  ;;  %7791 = vst.msk [vmem:[#allocation5 + $0xb8] sm:$0xff] %vm4927_vm3, %v7775_v12  ;;  %7784 = vst.msk [vmem:[#allocation5 + $0x10] sm:$0xff] %vm4927_vm3, %v7761_v7 }
0x17f5   : > { %10694 = vmatpush3.bf16.msra.mxu1 %v16483_v50  ;;  %8508 = vmatprep.mubr.bf16.mxu1 %v30475_v55 }
0x17f6   : > { %10695 = vmatprep.subr.bf16.mxu1 %v16484_v59 }
0x17f7   : > { %v7763_v47 = vpop.permute.xlu1 %7762  ;;  %v7765_v48 = vpop.permute.xlu0 %7764  ;;  %v28645_v23 = vld [vmem:[#allocation5 + $0x88] sm:$0xff]  ;;  %v28666_v46 = vld [vmem:[#allocation5 + $0xa0] sm:$0xff] }
0x17f8   : > { %7785 = vst.msk [vmem:[#allocation5 + $0x28] sm:$0xff] %vm4927_vm3, %v7763_v47  ;;  %7786 = vst.msk [vmem:[#allocation5 + $0x40] sm:$0xff] %vm4927_vm3, %v7765_v48 }
0x17f9   : > { %10696 = vmatpush3.bf16.msra.mxu1 %v16485_v0 }
0x17fa   : > { %10697 = vmatprep.subr.bf16.mxu1 %v16486_v58 }
0x17fb   : > { %v28653_v56 = vld [vmem:[#allocation5 + $0x10] sm:$0xff]  ;;  %v7767_v37 = vpop.permute.xlu1 %7766  ;;  %v7815_v36 = vld [vmem:[#allocation5 + $0xb8] sm:$0xff] }
0x17fc   : > { %8509 = vmatmul.mubr.bf16.gmra.mrb[4].mxu1 %v28645_v23  ;;  %8459 = vmatmul.mubr.bf16.vlgmr.msra.gmra.mrb[0].mxu0 %v28653_v56  ;;  %7787 = vst.msk [vmem:[#allocation5 + $0x58] sm:$0xff] %vm4927_vm3, %v7767_v37 }
0x17fd   : > { %10698 = vmatpush3.bf16.msra.mxu1 %v16487_v1  ;;  %8518 = vmatprep.mubr.bf16.mxu1 %v30475_v55 }
0x17fe   : > { %10699 = vmatprep.subr.bf16.mxu1 %v16488_v32  ;;  %8468 = vmatprep.mubr.bf16.mxu0 %v30475_v55 }
0x17ff   : > { %v28671_v57 = vld [vmem:[#allocation5 + $0x28] sm:$0xff]  ;;  %v7800_v13 = vld [vmem:[#allocation5 + $0x40] sm:$0xff] }
0x1801   : > { %10700 = vmatpush3.bf16.msra.mxu1 %v16489_v18 }
0x1802   : > { %10701 = vmatprep.subr.bf16.mxu1 %v16490_v17 }
0x1803   : > { %v7803_v11 = vld [vmem:[#allocation5 + $0x58] sm:$0xff] }
0x1804   : > { %8519 = vmatmul.mubr.bf16.gmra.mrb[8].mxu1 %v28666_v46  ;;  %8469 = vmatmul.mubr.bf16.gmra.mrb[4].mxu0 %v28671_v57 }
0x1805   : > { %10702 = vmatpush3.bf16.msra.mxu1 %v16491_v27  ;;  %8528 = vmatprep.mubr.bf16.mxu1 %v30475_v55 }
0x1806   : > { %10703 = vmatprep.subr.bf16.mxu1 %v16492_v26  ;;  %8478 = vmatprep.mubr.bf16.mxu0 %v30475_v55 }
0x1809   : > { %10704 = vmatpush3.bf16.msra.mxu1 %v16493_v54 }
0x180a   : > { %10705 = vmatprep.subr.bf16.mxu1 %v16494_v9 }
0x180c   : > { %8529 = vmatmul.mubr.bf16.gmra.mrb[12].mxu1 %v7815_v36  ;;  %8479 = vmatmul.mubr.bf16.gmra.mrb[8].mxu0 %v7800_v13 }
0x180d   : > { %10706 = vmatpush3.bf16.msra.mxu1 %v16495_v3  ;;  %8571 = vmatprep.mubr.bf16.mxu1 %v28408_v21  ;;  %v16500_v21 = vld [vmem:[%s28922_s4 + $0x1b8] ss:$12 sps:$4 sm:$0xff]  }
0x180e   : > { %10707 = vmatprep.subr.bf16.mxu1 %v16496_v41  ;;  %8488 = vmatprep.mubr.bf16.mxu0 %v30475_v55  ;;  %v16501_v55 = vld [vmem:[%s28922_s4 + $0x1d0] ss:$12 sps:$4 sm:$0xff]  }
0x1811   : > { %10708 = vmatpush3.bf16.msra.mxu1 %v16497_v30 }
0x1812   : > { %11253 = vmatprep.subr.bf16.mxu1 %v16498_v61 }
0x1814   : > { %8572 = vmatmul.mubr.bf16.vlgmr.msra.gmra.mrb[16].mxu1 %v28566_v6  ;;  %8489 = vmatmul.mubr.bf16.gmra.mrb[12].mxu0 %v7803_v11 }
0x1815   : > { %11254 = vmatpush3.bf16.msra.mxu1 %v16498_v61  ;;  %8579 = vmatprep.mubr.bf16.mxu1 %v28568_v29 }
0x1816   : > { %11255 = vmatprep.subr.bf16.mxu1 %v16499_v40 }
0x1819   : > { %11256 = vmatpush3.bf16.msra.mxu1 %v16499_v40 }
0x181a   : > { %11257 = vmatprep.subr.bf16.mxu1 %v16500_v21 }
0x181c   : > { %8580 = vmatmul.mubr.bf16.gmra.mrb[20].mxu1 %v28575_v45 }
0x181d   : > { %8587 = vmatprep.mubr.bf16.mxu1 %v28578_v52  ;;  %11258 = vmatpush3.bf16.msra.mxu1 %v16500_v21 }
0x181e   : > { %11259 = vmatprep.subr.bf16.mxu1 %v16501_v55 }
0x1821   : > { %11260 = vmatpush3.bf16.msra.mxu1 %v16501_v55 }
0x1822   : > { %11261 = vmatprep.subr.bf16.mxu1 %v16502_v20 }
0x1824   : > { %8588 = vmatmul.mubr.bf16.gmra.mrb[24].mxu1 %v28585_v51 }
0x1825   : > { %8595 = vmatprep.mubr.bf16.mxu1 %v28588_v38  ;;  %11262 = vmatpush3.bf16.msra.mxu1 %v16502_v20 }
0x1826   : > { %11263 = vmatprep.subr.bf16.mxu1 %v16503_v19 }
0x1829   : > { %11264 = vmatpush3.bf16.msra.mxu1 %v16503_v19 }
0x182a   : > { %11265 = vmatprep.subr.bf16.mxu1 %v16504_v14 }
0x182c   : > { %8596 = vmatmul.mubr.bf16.gmra.mrb[28].mxu1 %v28594_v2  ;;  %v30476_v2 = vld [vmem:[#allocation20_spill] sm:$0xff] }
0x182d   : > { %8603 = vmatprep.mubr.bf16.mxu1 %v28596_v10  ;;  %11266 = vmatpush3.bf16.msra.mxu1 %v16504_v14  ;;  %v7916_v10 = vsub.s32 0, %v30476_v2 }
0x182e   : > { %11267 = vmatprep.subr.bf16.mxu1 %v16505_v62 }
0x1831   : > { %11268 = vmatpush3.bf16.msra.mxu1 %v16505_v62 }
0x1834   : > { %8604 = vmatmul.mubr.bf16.gmra.mrb[32].mxu1 %v28600_v5  ;;  %v28750_v5 = vld [vmem:[#allocation6] sm:$0x7] }
0x1835   : > { %8611 = vmatprep.mubr.bf16.mxu1 %v28602_v34  ;;  %v7920_v34 = vsub.s32 1, %v30476_v2 }
0x183c   : > { %8612 = vmatmul.mubr.bf16.gmra.mrb[36].mxu1 %v28606_v42  ;;  %v28754_v42 = vrot.slane %v28750_v5, %v7916_v10 }
0x183d   : > { %8619 = vmatprep.mubr.bf16.mxu1 %v28608_v31  ;;  %v28757_v31 = vrot.slane %v28750_v5, %v7920_v34 }
0x1844   : > { %8620 = vmatmul.mubr.bf16.gmra.mrb[40].mxu1 %v28612_v60 }
0x1845   : > { %8627 = vmatprep.mubr.bf16.mxu1 %v28614_v39 }
0x184c   : > { %8628 = vmatmul.mubr.bf16.gmra.mrb[44].mxu1 %v28618_v28 }
0x184d   : > { %11269 = vmatprep.mubr.bf16.mxu1 %v28653_v56 }
0x1854   : > { %11270 = vmatmul.mubr.bf16.vlgmr.msra.gmra.mrb[48].mxu1 %v28671_v57 }
0x1855   : > { %11273 = vmatprep.mubr.bf16.mxu1 %v7800_v13 }
0x185c   : > { %11274 = vmatmul.mubr.bf16.gmra.mrb[52].mxu1 %v7803_v11 }
0x185d   : > { %11277 = vmatprep.mubr.bf16.mxu1 %v28631_v63 }
0x1864   : > { %11278 = vmatmul.mubr.bf16.gmra.mrb[56].mxu1 %v28645_v23 }
0x1865   : > { %11281 = vmatprep.mubr.bf16.mxu1 %v28666_v46 }
0x186c   : > { %11282 = vmatmul.mubr.bf16.gmra.mrb[60].mxu1 %v7815_v36 }
0x189d   : > { %v8387_v16 = vpop.f32.mrb[16].mxu0 }
0x189e   : > { %v8389_v25 = vpop.f32.mrb[17].mxu0  ;;  %v8388_v60 = vadd.f32 %v8387_v16, %v28754_v42 }
0x189f   : > { %v8391_v33 = vpop.f32.mrb[18].mxu0  ;;  %v8390_v39 = vadd.f32 %v8389_v25, %v28757_v31 }
0x18a0   : > { %v8393_v4 = vpop.f32.mrb[19].mxu0  ;;  %v8392_v28 = vadd.f32 %v8391_v33, %v28754_v42 }
0x18a1   : > { %v8394_v22 = vadd.f32 %v8393_v4, %v28757_v31 }
0x18a5   : > { %v8397_v8 = vpop.f32.mrb[20].mxu0 }
0x18a6   : > { %v8399_v15 = vpop.f32.mrb[21].mxu0  ;;  %v8398_v58 = vadd.f32 %v8397_v8, %v28754_v42 }
0x18a7   : > { %v8401_v43 = vpop.f32.mrb[22].mxu0  ;;  %v8400_v47 = vadd.f32 %v8399_v15, %v28757_v31 }
0x18a8   : > { %v8403_v49 = vpop.f32.mrb[23].mxu0  ;;  %v8402_v48 = vadd.f32 %v8401_v43, %v28754_v42 }
0x18a9   : > { %v8404_v1 = vadd.f32 %v8403_v49, %v28757_v31 }
0x18ad   : > { %v8407_v24 = vpop.f32.mrb[24].mxu0 }
0x18ae   : > { %v8409_v35 = vpop.f32.mrb[25].mxu0  ;;  %v8408_v30 = vadd.f32 %v8407_v24, %v28754_v42 }
0x18af   : > { %v8411_v6 = vpop.f32.mrb[26].mxu0  ;;  %v8410_v61 = vadd.f32 %v8409_v35, %v28757_v31 }
0x18b0   : > { %v8413_v29 = vpop.f32.mrb[27].mxu0  ;;  %v8412_v11 = vadd.f32 %v8411_v6, %v28754_v42 }
0x18b1   : > { %v8414_v21 = vadd.f32 %v8413_v29, %v28757_v31 }
0x18b5   : > { %v28741_v45 = vpop.f32.mrb[28].mxu0 }
0x18b6   : > { %v28743_v52 = vpop.f32.mrb[29].mxu0  ;;  %v8418_v6 = vadd.f32 %v28741_v45, %v28754_v42 }
0x18b7   : > { %v28745_v51 = vpop.f32.mrb[30].mxu0  ;;  %v8420_v29 = vadd.f32 %v28743_v52, %v28757_v31 }
0x18b8   : > { %v28747_v38 = vpop.f32.mrb[31].mxu0  ;;  %v8422_v10 = vadd.f32 %v28745_v51, %v28754_v42 }
0x18c7   : > { %v8500_v53 = vpop.f32.mrb[0].mxu1 }
0x18c8   : > { %v8501_v44 = vadd.f32 %v8500_v53, %v8388_v60  ;;  %v8502_v50 = vpop.f32.mrb[1].mxu1  ;;  %v8424_v60 = vadd.f32 %v28747_v38, %v28757_v31 }
0x18c9   : > { %v8503_v59 = vadd.f32 %v8502_v50, %v8390_v39  ;;  %v8504_v63 = vpop.f32.mrb[2].mxu1 }
0x18ca   : > { %8757 = vst [vmem:[%s21141_s9 + $0xc0] sm:$0xff] %v8501_v44  ;;  %v8505_v12 = vadd.f32 %v8504_v63, %v8392_v28  ;;  %v8506_v7 = vpop.f32.mrb[3].mxu1 }
0x18cb   : > { %8758 = vst [vmem:[%s21141_s9 + $0xc8] sm:$0xff] %v8503_v59  ;;  %v8507_v0 = vadd.f32 %v8506_v7, %v8394_v22 }
0x18cc   : > { %8760 = vst [vmem:[%s21141_s9 + $0xd8] sm:$0xff] %v8505_v12 }
0x18cd   : > { %8761 = vst [vmem:[%s21141_s9 + $0xe0] sm:$0xff] %v8507_v0 }
0x18cf   : > { %v8510_v23 = vpop.f32.mrb[4].mxu1  ;;  %v8460_v32 = vpop.f32.mrb[0].mxu0 }
0x18d0   : > { %v8511_v56 = vadd.f32 %v8510_v23, %v8398_v58  ;;  %v8512_v37 = vpop.f32.mrb[5].mxu1  ;;  %v11413_v18 = vadd.f32 %v8460_v32, %v28754_v42  ;;  %v8462_v17 = vpop.f32.mrb[1].mxu0 }
0x18d1   : > { %v8513_v46 = vadd.f32 %v8512_v37, %v8400_v47  ;;  %v8514_v27 = vpop.f32.mrb[6].mxu1  ;;  %v11414_v57 = vadd.f32 %v8462_v17, %v28757_v31  ;;  %v8464_v26 = vpop.f32.mrb[2].mxu0 }
0x18d2   : > { %8763 = vst [vmem:[%s21141_s9 + $0xf0] sm:$0xff] %v8511_v56  ;;  %v8515_v54 = vadd.f32 %v8514_v27, %v8402_v48  ;;  %v8516_v9 = vpop.f32.mrb[7].mxu1  ;;  %8733 = vst [vmem:[%s21141_s9] sm:$0xff] %v11413_v18  ;;  %v11415_v36 = vadd.f32 %v8464_v26, %v28754_v42  ;;  %v8466_v3 = vpop.f32.mrb[3].mxu0 }
0x18d3   : > { %8764 = vst [vmem:[%s21141_s9 + $0xf8] sm:$0xff] %v8513_v46  ;;  %v8517_v13 = vadd.f32 %v8516_v9, %v8404_v1  ;;  %8734 = vst [vmem:[%s21141_s9 + $0x8] sm:$0xff] %v11414_v57  ;;  %v11416_v41 = vadd.f32 %v8466_v3, %v28757_v31 }
0x18d4   : > { %8766 = vst [vmem:[%s21141_s9 + $0x108] sm:$0xff] %v8515_v54  ;;  %8736 = vst [vmem:[%s21141_s9 + $0x18] sm:$0xff] %v11415_v36 }
0x18d5   : > { %8767 = vst [vmem:[%s21141_s9 + $0x110] sm:$0xff] %v8517_v13  ;;  %8737 = vst [vmem:[%s21141_s9 + $0x20] sm:$0xff] %v11416_v41 }
0x18d7   : > { %v8520_v40 = vpop.f32.mrb[8].mxu1  ;;  %v8470_v55 = vpop.f32.mrb[4].mxu0 }
0x18d8   : > { %v8521_v20 = vadd.f32 %v8520_v40, %v8408_v30  ;;  %v8522_v19 = vpop.f32.mrb[9].mxu1  ;;  %v11417_v14 = vadd.f32 %v8470_v55, %v28754_v42  ;;  %v8472_v62 = vpop.f32.mrb[5].mxu0 }
0x18d9   : > { %v8523_v16 = vadd.f32 %v8522_v19, %v8410_v61  ;;  %v8524_v25 = vpop.f32.mrb[10].mxu1  ;;  %v11418_v33 = vadd.f32 %v8472_v62, %v28757_v31  ;;  %v8474_v4 = vpop.f32.mrb[6].mxu0 }
0x18da   : > { %8769 = vst [vmem:[%s21141_s9 + $0x120] sm:$0xff] %v8521_v20  ;;  %v8525_v8 = vadd.f32 %v8524_v25, %v8412_v11  ;;  %v8526_v15 = vpop.f32.mrb[11].mxu1  ;;  %8739 = vst [vmem:[%s21141_s9 + $0x30] sm:$0xff] %v11417_v14  ;;  %v11419_v43 = vadd.f32 %v8474_v4, %v28754_v42  ;;  %v8476_v49 = vpop.f32.mrb[7].mxu0 }
0x18db   : > { %8770 = vst [vmem:[%s21141_s9 + $0x128] sm:$0xff] %v8523_v16  ;;  %v8527_v24 = vadd.f32 %v8526_v15, %v8414_v21  ;;  %8740 = vst [vmem:[%s21141_s9 + $0x38] sm:$0xff] %v11418_v33  ;;  %v11420_v35 = vadd.f32 %v8476_v49, %v28757_v31 }
0x18dc   : > { %8772 = vst [vmem:[%s21141_s9 + $0x138] sm:$0xff] %v8525_v8  ;;  %8742 = vst [vmem:[%s21141_s9 + $0x48] sm:$0xff] %v11419_v43 }
0x18dd   : > { %8773 = vst [vmem:[%s21141_s9 + $0x140] sm:$0xff] %v8527_v24  ;;  %8743 = vst [vmem:[%s21141_s9 + $0x50] sm:$0xff] %v11420_v35 }
0x18df   : > { %v8530_v34 = vpop.f32.mrb[12].mxu1  ;;  %v8480_v39 = vpop.f32.mrb[8].mxu0 }
0x18e0   : > { %v8531_v28 = vadd.f32 %v8530_v34, %v8418_v6  ;;  %v8532_v45 = vpop.f32.mrb[13].mxu1  ;;  %v11421_v53 = vadd.f32 %v8480_v39, %v28754_v42  ;;  %v8482_v22 = vpop.f32.mrb[9].mxu0 }
0x18e1   : > { %v8533_v52 = vadd.f32 %v8532_v45, %v8420_v29  ;;  %v8534_v44 = vpop.f32.mrb[14].mxu1  ;;  %v11422_v51 = vadd.f32 %v8482_v22, %v28757_v31  ;;  %v8484_v50 = vpop.f32.mrb[10].mxu0  ;;  %v7924_v22 = vsub.s32 2, %v30476_v2 }
0x18e2   : > { %8775 = vst [vmem:[%s21141_s9 + $0x150] sm:$0xff] %v8531_v28  ;;  %v8535_v59 = vadd.f32 %v8534_v44, %v8422_v10  ;;  %v8536_v38 = vpop.f32.mrb[15].mxu1  ;;  %8745 = vst [vmem:[%s21141_s9 + $0x60] sm:$0xff] %v11421_v53  ;;  %v11423_v63 = vadd.f32 %v8484_v50, %v28754_v42  ;;  %v8486_v12 = vpop.f32.mrb[11].mxu0 }
0x18e3   : > { %8776 = vst [vmem:[%s21141_s9 + $0x158] sm:$0xff] %v8533_v52  ;;  %v8537_v7 = vadd.f32 %v8536_v38, %v8424_v60  ;;  %8746 = vst [vmem:[%s21141_s9 + $0x68] sm:$0xff] %v11422_v51  ;;  %v11424_v0 = vadd.f32 %v8486_v12, %v28757_v31  ;;  %v7925_v38 = vrot.slane %v28750_v5, %v7924_v22 }
0x18e4   : > { %8778 = vst [vmem:[%s21141_s9 + $0x168] sm:$0xff] %v8535_v59  ;;  %8748 = vst [vmem:[%s21141_s9 + $0x78] sm:$0xff] %v11423_v63 }
0x18e5   : > { %8779 = vst [vmem:[%s21141_s9 + $0x170] sm:$0xff] %v8537_v7  ;;  %8749 = vst [vmem:[%s21141_s9 + $0x80] sm:$0xff] %v11424_v0 }
0x18e7   : > { %v10709_v58 = vpop.f32.mrb[16].mxu1  ;;  %v8490_v47 = vpop.f32.mrb[12].mxu0 }
0x18e8   : > { %v10710_v48 = vpop.f32.mrb[17].mxu1  ;;  %v11425_v23 = vadd.f32 %v8490_v47, %v28754_v42  ;;  %v8492_v1 = vpop.f32.mrb[13].mxu0 }
0x18e9   : > { %v10711_v32 = vadd.f32 %v10710_v48, %v10709_v58  ;;  %v10712_v56 = vpop.f32.mrb[18].mxu1  ;;  %v11426_v37 = vadd.f32 %v8492_v1, %v28757_v31  ;;  %v8494_v18 = vpop.f32.mrb[14].mxu0 }
0x18ea   : > { %v10713_v17 = vpop.f32.mrb[19].mxu1  ;;  %8751 = vst [vmem:[%s21141_s9 + $0x90] sm:$0xff] %v11425_v23  ;;  %v11427_v46 = vadd.f32 %v8494_v18, %v28754_v42  ;;  %v8496_v27 = vpop.f32.mrb[15].mxu0 }
0x18eb   : > { %v10714_v57 = vadd.f32 %v10713_v17, %v10712_v56  ;;  %8752 = vst [vmem:[%s21141_s9 + $0x98] sm:$0xff] %v11426_v37  ;;  %v11428_v26 = vadd.f32 %v8496_v27, %v28757_v31  ;;  %v8574_v7 = vadd.f32 %v10711_v32, %v7925_v38 }
0x18ec   : > { %8754 = vst [vmem:[%s21141_s9 + $0xa8] sm:$0xff] %v11427_v46 }
0x18ed   : > { %8755 = vst [vmem:[%s21141_s9 + $0xb0] sm:$0xff] %v11428_v26  ;;  %v8577_v2 = vadd.f32 %v10714_v57, %v7925_v38 }
0x18ef   : > { %v10715_v54 = vpop.f32.mrb[20].mxu1 }
0x18f0   : > { %v10716_v9 = vpop.f32.mrb[21].mxu1 }
0x18f1   : > { %v10717_v36 = vadd.f32 %v10716_v9, %v10715_v54  ;;  %v10718_v3 = vpop.f32.mrb[22].mxu1 }
0x18f2   : > { %v10719_v13 = vpop.f32.mrb[23].mxu1 }
0x18f3   : > { %v10720_v41 = vadd.f32 %v10719_v13, %v10718_v3  ;;  %v8582_v63 = vadd.f32 %v10717_v36, %v7925_v38 }
0x18f5   : > { %v8585_v47 = vadd.f32 %v10720_v41, %v7925_v38 }
0x18f7   : > { %v10721_v30 = vpop.f32.mrb[24].mxu1 }
0x18f8   : > { %v10722_v61 = vpop.f32.mrb[25].mxu1 }
0x18f9   : > { %v10723_v11 = vadd.f32 %v10722_v61, %v10721_v30  ;;  %v10724_v40 = vpop.f32.mrb[26].mxu1 }
0x18fa   : > { %v10725_v21 = vpop.f32.mrb[27].mxu1 }
0x18fb   : > { %v10726_v55 = vadd.f32 %v10725_v21, %v10724_v40  ;;  %v8590_v32 = vadd.f32 %v10723_v11, %v7925_v38 }
0x18fd   : > { %v8593_v54 = vadd.f32 %v10726_v55, %v7925_v38 }
0x18ff   : > { %v10727_v42 = vpop.f32.mrb[28].mxu1 }
0x1900   : > { %v10728_v20 = vpop.f32.mrb[29].mxu1 }
0x1901   : > { %v10729_v19 = vadd.f32 %v10728_v20, %v10727_v42  ;;  %v10730_v14 = vpop.f32.mrb[30].mxu1 }
0x1902   : > { %v10731_v62 = vpop.f32.mrb[31].mxu1 }
0x1903   : > { %v10732_v31 = vadd.f32 %v10731_v62, %v10730_v14  ;;  %v8598_v5 = vadd.f32 %v10729_v19, %v7925_v38 }
0x1905   : > { %v8601_v27 = vadd.f32 %v10732_v31, %v7925_v38 }
0x1907   : > { %v10733_v16 = vpop.f32.mrb[32].mxu1 }
0x1908   : > { %v10734_v25 = vpop.f32.mrb[33].mxu1 }
0x1909   : > { %v10735_v33 = vadd.f32 %v10734_v25, %v10733_v16  ;;  %v10736_v4 = vpop.f32.mrb[34].mxu1 }
0x190a   : > { %v10737_v8 = vpop.f32.mrb[35].mxu1 }
0x190b   : > { %v28827_v15 = vadd.f32 %v10737_v8, %v10736_v4  ;;  %v8606_v30 = vadd.f32 %v10735_v33, %v7925_v38 }
0x190d   : > { %v8609_v42 = vadd.f32 %v28827_v15, %v7925_v38 }
0x190f   : > { %v10739_v43 = vpop.f32.mrb[36].mxu1 }
0x1910   : > { %v10740_v49 = vpop.f32.mrb[37].mxu1 }
0x1911   : > { %v10741_v24 = vadd.f32 %v10740_v49, %v10739_v43  ;;  %v10742_v35 = vpop.f32.mrb[38].mxu1 }
0x1912   : > { %v10743_v6 = vpop.f32.mrb[39].mxu1 }
0x1913   : > { %v10744_v29 = vadd.f32 %v10743_v6, %v10742_v35  ;;  %v8614_v13 = vadd.f32 %v10741_v24, %v7925_v38 }
0x1915   : > { %v8617_v40 = vadd.f32 %v10744_v29, %v7925_v38 }
0x1917   : > { %v10745_v10 = vpop.f32.mrb[40].mxu1 }
0x1918   : > { %v10746_v34 = vpop.f32.mrb[41].mxu1 }
0x1919   : > { %v28829_v60 = vadd.f32 %v10746_v34, %v10745_v10  ;;  %v10748_v39 = vpop.f32.mrb[42].mxu1 }
0x191a   : > { %v10749_v28 = vpop.f32.mrb[43].mxu1 }
0x191b   : > { %v28831_v45 = vadd.f32 %v10749_v28, %v10748_v39  ;;  %v8622_v16 = vadd.f32 %v28829_v60, %v7925_v38 }
0x191d   : > { %v8625_v43 = vadd.f32 %v28831_v45, %v7925_v38 }
0x191f   : > { %v10751_v53 = vpop.f32.mrb[44].mxu1 }
0x1920   : > { %v10752_v52 = vpop.f32.mrb[45].mxu1 }
0x1921   : > { %v10753_v44 = vadd.f32 %v10752_v52, %v10751_v53  ;;  %v10754_v51 = vpop.f32.mrb[46].mxu1 }
0x1922   : > { %v10755_v50 = vpop.f32.mrb[47].mxu1 }
0x1923   : > { %v10756_v59 = vadd.f32 %v10755_v50, %v10754_v51  ;;  %v8630_v62 = vadd.f32 %v10753_v44, %v7925_v38 }
0x1925   : > { %v8633_v4 = vadd.f32 %v10756_v59, %v7925_v38 }
0x1927   : > { %v11271_v12 = vpop.f32.mrb[48].mxu1 }
0x1928   : > { %v8679_v0 = vadd.f32 %v11271_v12, %v8582_v63  ;;  %v8670_v58 = vpop.f32.mrb[49].mxu1 }
0x1929   : > { %v8671_v48 = vadd.f32 %v8670_v58, %v8574_v7  ;;  %v11272_v23 = vpop.f32.mrb[50].mxu1 }
0x192a   : > { %8741 = vst [vmem:[%s21141_s9 + $0x40] sm:$0xff] %v8679_v0  ;;  %v8682_v1 = vadd.f32 %v11272_v23, %v8585_v47  ;;  %v8673_v56 = vpop.f32.mrb[51].mxu1 }
0x192b   : > { %8735 = vst [vmem:[%s21141_s9 + $0x10] sm:$0xff] %v8671_v48  ;;  %v8674_v37 = vadd.f32 %v8673_v56, %v8577_v2 }
0x192c   : > { %8744 = vst [vmem:[%s21141_s9 + $0x58] sm:$0xff] %v8682_v1 }
0x192d   : > { %8738 = vst [vmem:[%s21141_s9 + $0x28] sm:$0xff] %v8674_v37 }
0x192f   : > { %v11275_v18 = vpop.f32.mrb[52].mxu1 }
0x1930   : > { %v8695_v17 = vadd.f32 %v11275_v18, %v8598_v5  ;;  %v8686_v46 = vpop.f32.mrb[53].mxu1 }
0x1931   : > { %v8687_v26 = vadd.f32 %v8686_v46, %v8590_v32  ;;  %v11276_v57 = vpop.f32.mrb[54].mxu1 }
0x1932   : > { %8753 = vst [vmem:[%s21141_s9 + $0xa0] sm:$0xff] %v8695_v17  ;;  %v8698_v9 = vadd.f32 %v11276_v57, %v8601_v27  ;;  %v8689_v36 = vpop.f32.mrb[55].mxu1 }
0x1933   : > { %8747 = vst [vmem:[%s21141_s9 + $0x70] sm:$0xff] %v8687_v26  ;;  %v8690_v3 = vadd.f32 %v8689_v36, %v8593_v54 }
0x1934   : > { %8756 = vst [vmem:[%s21141_s9 + $0xb8] sm:$0xff] %v8698_v9 }
0x1935   : > { %8750 = vst [vmem:[%s21141_s9 + $0x88] sm:$0xff] %v8690_v3 }
0x1937   : > { %v11279_v41 = vpop.f32.mrb[56].mxu1 }
0x1938   : > { %v8711_v61 = vadd.f32 %v11279_v41, %v8614_v13  ;;  %v8702_v11 = vpop.f32.mrb[57].mxu1 }
0x1939   : > { %v8703_v21 = vadd.f32 %v8702_v11, %v8606_v30  ;;  %v11280_v55 = vpop.f32.mrb[58].mxu1 }
0x193a   : > { %8765 = vst [vmem:[%s21141_s9 + $0x100] sm:$0xff] %v8711_v61  ;;  %v8714_v20 = vadd.f32 %v11280_v55, %v8617_v40  ;;  %v8705_v19 = vpop.f32.mrb[59].mxu1 }
0x193b   : > { %8759 = vst [vmem:[%s21141_s9 + $0xd0] sm:$0xff] %v8703_v21  ;;  %v8706_v14 = vadd.f32 %v8705_v19, %v8609_v42 }
0x193c   : > { %8768 = vst [vmem:[%s21141_s9 + $0x118] sm:$0xff] %v8714_v20 }
0x193d   : > { %8762 = vst [vmem:[%s21141_s9 + $0xe8] sm:$0xff] %v8706_v14 }
0x193f   : > { %v11283_v31 = vpop.f32.mrb[60].mxu1 }
0x1940   : > { %v8727_v25 = vadd.f32 %v11283_v31, %v8630_v62  ;;  %v8718_v33 = vpop.f32.mrb[61].mxu1 }
0x1941   : > { %v8719_v8 = vadd.f32 %v8718_v33, %v8622_v16  ;;  %v11284_v15 = vpop.f32.mrb[62].mxu1 }
0x1942   : > { %8777 = vst [vmem:[%s21141_s9 + $0x160] sm:$0xff] %v8727_v25  ;;  %v8730_v49 = vadd.f32 %v11284_v15, %v8633_v4  ;;  %v8721_v24 = vpop.f32.mrb[63].mxu1 }
0x1943   : > { %8771 = vst [vmem:[%s21141_s9 + $0x130] sm:$0xff] %v8719_v8  ;;  %v8722_v35 = vadd.f32 %v8721_v24, %v8625_v43 }
0x1944   : > { %8780 = vst [vmem:[%s21141_s9 + $0x178] sm:$0xff] %v8730_v49 }
0x1945   : > { %8774 = vst [vmem:[%s21141_s9 + $0x148] sm:$0xff] %v8722_v35 }
0x1946   : > { %16579 = shalt.err (!%p16576_p10)
}
0x1947   : > { %s16580_s9 = scalar_lea.hbm %s28857_s0, 6144  ;;  %s16584_s20 = scalar_lea.hbm %s28924_s6, 24576 }
0x1948   : > { %p16581_p12 = scmp.ne.s32.totalorder %s28857_s0, %s16580_s9  ;;  %p16585_p5 = scmp.lt.u32.totalorder %s28857_s0, %s28924_s6 }
0x1949   : > { %p16586_p6 = scmp.lt.u32.totalorder %s16584_s20, %s16580_s9  ;;  %p16588_p9 = scmp.lt.u32.totalorder %s16580_s9, %s28857_s0 }
0x194a   : > { %p16582_p0 = pnand %p16581_p12, %p30478_p11 }
0x194b   : > { %p16587_p7 = por %p16586_p6, %p16585_p5 }
0x194c   : > { %p16583_p2 = pneg %p16582_p0 }
0x194d   : > { %p16589_p13 = por %p16588_p9, %p16587_p7 }
0x194f   : > { %p16590_p1 = pnand %p16589_p13, %p16583_p2 }
0x1951   : > { %16593 = shalt.err (!%p16590_p1)
}
0x1952   : > { %s20570_s24 = smov 384   ;;  %s20571_s16 = smov 24  }
0x1953   : > { %11533 = dma.vmem_to_hbm [thread:$0]  (%p30478_p11), %s28859_s25, 6144, %s28857_s0, %s28866_s14, %s20570_s24, %s20570_s24, %s20571_s16  }
0x1954 PF: > { %p11545_p4 = scmp.ge.s32.totalorder %s18612_s28, 2  ;;  %s8813_s29 = sand.u32 1, %s18584_s21  }
0x1955   : > { %p30479_p3 = scmp.ne.s32.totalorder %s29062_s12, 0  ;;  %s8814_s5 = scalar_lea.sflag [#allocation8], %s8813_s29 }
0x1957   : > { %p11540_p8 = pnand %p11545_p4, %p30479_p3 }
0x1959   : > { %18579 = dma.done.wait (!%p11540_p8), %s8814_s5, 6144  }
0x195a   : > { %18581 = vsyncadd (!%p11540_p8), %s8814_s5, 4294961152  ;;  %s20_s28 = sadd.s32 1, %s18612_s28   ;;  %s30480_s11 = sld [smem:[#allocation12_spill]] }
0x195b   : > { %p17_p10 = scmp.ge.s32.totalorder %s20_s28, 6   ;;  %s30481_s0 = sld [smem:[#allocation13_spill]] }
0x195c   : > { %s30482_s21 = smov %s18588_s22  ;;  %s30483_s22 = smov %s18592_s23 }
0x195d   : > { %s30484_s23 = smov %s20686_s17  ;;  %s30485_s24 = smov %s18604_s26 }
0x195e   : > { %s30486_s25 = smov %s18608_s27  ;;  %19 = sbr.rel (!%p17_p10) target bundleno = 9 (0x9), region = 226 }
0x1960   : > { %s30487_s26 = smov %s30480_s11 }
0x1961   : > { %s30488_s27 = smov %s30481_s0 }
0x1965   :  { %8819 = vsyncpa [#allocation7], 1 }
0x1966   :  { %8821 = vsyncpa [#allocation7 + $0x1], 1 }
0x1967   :  { %8822 = vsyncpa [#allocation8], 1 }
0x1968   :  { %8824 = vsyncpa [#allocation8 + $0x1], 1 }

</bundles_post_ra>
